<compile_context>
chip_gen: v7x
topology: tpu7x:2x2x1
jax: 0.10.0
libtpu: 0.0.40
codegen_flags: <defaults>
</compile_context>

<pallas_src>
import jax
import jax.numpy as jnp
from jax.experimental import pallas as pl
from jax.experimental.pallas import tpu as pltpu


# ----------------------------- Pallas kernels ------------------------------ #

def _conv_pool_conv_kernel(x_ref, w1_ref, b1_ref, w2_ref, b2_ref, o_ref):
    """conv1 + ReLU + 2x2 max-pool + conv2 + ReLU for B images per grid step."""
    B = x_ref.shape[0]
    x = x_ref[...]                                                # (B, 40, 28) f32

    # Six vertically shifted, row-stacked views of the image batch.  32 is a
    # multiple of 8, so the (B, 32, 28) -> (B*32, 28) flatten is layout-free.
    xs = [x[:, m:m + 32, :].reshape(B * 32, 28).astype(jnp.bfloat16)
          for m in range(6)]

    # conv1 with the max-pool folded in: four shifted copies of the conv1
    # output (pool-window taps dy, dx in {0,1}).  The vertical tap dy picks the
    # input-row slice, the horizontal tap dx and the 24 -> 12 x-compaction are
    # baked into the structured weights w1_ref[dx, i].
    taps = []
    for dy in range(2):
        for dx in range(2):
            a = jnp.dot(xs[dy], w1_ref[dx, 0],
                        preferred_element_type=jnp.float32)
            for i in range(1, 5):
                a = a + jnp.dot(xs[i + dy], w1_ref[dx, i],
                                preferred_element_type=jnp.float32)
            taps.append(a)                                        # (B*32, 120)
    pool = jnp.maximum(jnp.maximum(taps[0], taps[1]),
                       jnp.maximum(taps[2], taps[3]))
    pool = jnp.maximum(pool + b1_ref[...], 0.0)       # == maxpool(relu(conv1+b))
    pool = pool.astype(jnp.bfloat16).reshape(B, 32, 120)

    # conv2: valid pooled rows live at even row indices, so its 3 vertical taps
    # are row offsets 0 / 2 / 4 of the (still uncompacted) pooled stack.
    lhs = pool[:, 0:24, :].reshape(B * 24, 120)
    c2 = jnp.dot(lhs, w2_ref[0], preferred_element_type=jnp.float32)
    for i in range(1, 3):
        lhs = pool[:, 2 * i:2 * i + 24, :].reshape(B * 24, 120)
        c2 = c2 + jnp.dot(lhs, w2_ref[i], preferred_element_type=jnp.float32)
    c2 = jnp.maximum(c2 + b2_ref[...], 0.0)                       # (B*24, 200)
    o_ref[...] = c2.reshape(B, 24, 200).astype(o_ref.dtype)


def _fc_kernel(x_ref, w1_ref, b1_ref, w2_ref, b2_ref, o_ref):
    """log_softmax(relu(x @ w1 + b1) @ w2 + b2) for one batch tile."""
    h = jnp.dot(x_ref[...], w1_ref[...], preferred_element_type=jnp.float32)
    h = jnp.maximum(h + b1_ref[...], 0.0).astype(jnp.bfloat16)
    z = jnp.dot(h, w2_ref[...], preferred_element_type=jnp.float32) + b2_ref[...]
    z = z - jnp.max(z, axis=-1, keepdims=True)
    o_ref[...] = (z - jnp.log(jnp.sum(jnp.exp(z), axis=-1, keepdims=True))
                  ).astype(o_ref.dtype)


# ------------------- one-time weight repacking (host side) ------------------ #

def _conv1_pool_weights(w1):
    """w1 (10,1,5,5) OIHW -> (2, 5, 28, 120); the horizontal pool tap dx and
    the x-compaction are folded in:
       out[dx, i][x_in, xp*10 + c] = w1[c, 0, i, x_in - 2*xp - dx]  (if valid)."""
    w = w1.reshape(10, 5, 5)                               # (c, i, j)
    x_in = jnp.arange(28)[:, None]
    xp = jnp.arange(12)[None, :]
    per_dx = []
    for dx in range(2):
        j = x_in - 2 * xp - dx                             # (28, 12)
        valid = (j >= 0) & (j <= 4)
        jc = jnp.clip(j, 0, 4)
        per_i = []
        for i in range(5):
            g = w[:, i, :][:, jc]                          # (10, 28, 12)
            g = jnp.where(valid[None], g, 0.0)
            per_i.append(jnp.transpose(g, (1, 2, 0)).reshape(28, 120))
        per_dx.append(jnp.stack(per_i))                    # (5, 28, 120)
    return jnp.stack(per_dx)                               # (2, 5, 28, 120)


def _conv2_structured_weights(w2):
    """w2 (20,10,3,3) OIHW -> (3, 120, 200):
       out[i][xp*10 + ci, x2*20 + co] = w2[co, ci, i, xp - x2] for 0 <= xp-x2 <= 2."""
    xp = jnp.arange(12)[:, None]
    x2 = jnp.arange(10)[None, :]
    j = xp - x2
    valid = (j >= 0) & (j <= 2)
    jc = jnp.clip(j, 0, 2)
    mats = []
    for i in range(3):
        g = w2[:, :, i, :][:, :, jc]                       # (20, 10, 12, 10)
        g = jnp.where(valid[None, None], g, 0.0)
        mats.append(jnp.transpose(g, (2, 1, 3, 0)).reshape(120, 200))
    return jnp.stack(mats)                                 # (3, 120, 200)


def _fc1_folded_weights(wf1):
    """wf1 (500, 2000) -> (4800, 512): folds (a) the NCHW flatten permutation,
    (b) the selection of the valid (even, <= 18) rows of the uncompacted 24-row
    conv2 output, and (c) the 500 -> 512 output padding."""
    wt = wf1.T.reshape(20, 10, 10, 500)                    # (co, y2, x2, out)
    wt = jnp.transpose(wt, (1, 2, 0, 3))                   # (y2, x2, co, out)
    full = jnp.zeros((24, 10, 20, 500), wf1.dtype)
    full = full.at[0:20:2].set(wt)                         # valid rows r = 2*y2
    return jnp.pad(full.reshape(4800, 500), ((0, 0), (0, 12)))


def prepare_params(params):
    """One-time repack of PyTorch-layout params into bf16 kernel constants."""
    w1, b1, w2, b2, wf1, bf1, wf2, bf2 = params
    w1p = _conv1_pool_weights(w1).astype(jnp.bfloat16)         # (2, 5, 28, 120)
    b1r = jnp.tile(b1, 12).reshape(1, 120).astype(jnp.float32)
    w2p = _conv2_structured_weights(w2).astype(jnp.bfloat16)   # (3, 120, 200)
    b2r = jnp.tile(b2, 10).reshape(1, 200).astype(jnp.float32)
    wf1p = _fc1_folded_weights(wf1).astype(jnp.bfloat16)       # (4800, 512)
    bf1p = jnp.pad(bf1, (0, 12)).reshape(1, 512).astype(jnp.float32)
    wf2p = jnp.pad(wf2.T, ((0, 12), (0, 0))).astype(jnp.bfloat16)   # (512, 10)
    bf2p = bf2.reshape(1, 10).astype(jnp.float32)
    return (w1p, b1r, w2p, b2r, wf1p, bf1p, wf2p, bf2p)


# ------------------------------- forward pass ------------------------------- #

def _pick_images_per_step(n):
    if n >= 64:
        return 32
    if n >= 8:
        return 8
    return max(n, 1)


def _pick_fc_tile(n_pad):
    if n_pad <= 8:
        return n_pad
    cands = [t for t in (256, 128, 64, 32, 16, 8) if n_pad % t == 0]
    if not cands:
        return n_pad
    for t in cands:                      # prefer >= 2 grid steps (v7x megacore)
        if n_pad // t >= 2:
            return t
    return cands[-1]


def convnet_forward(x, prepared):
    """x: (N, 1, 28, 28) float32 -> (N, 10) log-probabilities."""
    (w1p, b1r, w2p, b2r, wf1p, bf1p, wf2p, bf2p) = prepared
    n = x.shape[0]
    B = _pick_images_per_step(n)
    n_pad = ((n + B - 1) // B) * B

    # Pad the batch to a multiple of B and the image rows 28 -> 40 with zeros,
    # so every in-kernel vertical slice / flatten stays (8, 128)-tile friendly.
    img = jnp.pad(x.reshape(n, 28, 28), ((0, n_pad - n), (0, 12), (0, 0)))

    # Kernel 1: conv1 + ReLU + maxpool + conv2 + ReLU, B images per grid step.
    conv_out = pl.pallas_call(
        _conv_pool_conv_kernel,
        out_shape=jax.ShapeDtypeStruct((n_pad, 24, 200), jnp.bfloat16),
        grid=(n_pad // B,),
        in_specs=[
            pl.BlockSpec((B, 40, 28), lambda i: (i, 0, 0)),
            pl.BlockSpec((2, 5, 28, 120), lambda i: (0, 0, 0, 0)),
            pl.BlockSpec((1, 120), lambda i: (0, 0)),
            pl.BlockSpec((3, 120, 200), lambda i: (0, 0, 0)),
            pl.BlockSpec((1, 200), lambda i: (0, 0)),
        ],
        out_specs=pl.BlockSpec((B, 24, 200), lambda i: (i, 0, 0)),
        compiler_params=pltpu.CompilerParams(
            dimension_semantics=("parallel",),
            vmem_limit_bytes=32 * 1024 * 1024),
    )(img, w1p, b1r, w2p, b2r)

    # (n_pad, 24, 200) is contiguous -> free reshape; the valid-row selection
    # and the NCHW permutation are already folded into wf1p.
    flat = conv_out.reshape(n_pad, 24 * 200)

    # Kernel 2: fc1 + ReLU + fc2 + log_softmax, tiled over batch rows.
    bt = _pick_fc_tile(n_pad)
    out = pl.pallas_call(
        _fc_kernel,
        out_shape=jax.ShapeDtypeStruct((n_pad, 10), jnp.float32),
        grid=(n_pad // bt,),
        in_specs=[
            pl.BlockSpec((bt, 4800), lambda m: (m, 0)),
            pl.BlockSpec((4800, 512), lambda m: (0, 0)),   # VMEM-resident weights
            pl.BlockSpec((1, 512), lambda m: (0, 0)),
            pl.BlockSpec((512, 10), lambda m: (0, 0)),
            pl.BlockSpec((1, 10), lambda m: (0, 0)),
        ],
        out_specs=pl.BlockSpec((bt, 10), lambda m: (m, 0)),
        compiler_params=pltpu.CompilerParams(
            dimension_semantics=("parallel",),
            vmem_limit_bytes=32 * 1024 * 1024),
    )(flat, wf1p, bf1p, wf2p, bf2p)
    return out[:n]


# --------------------------- params / reference ----------------------------- #

def init_params(key):
    ks = jax.random.split(key, 8)
    scale = 0.05
    w1 = scale * jax.random.normal(ks[0], (10, 1, 5, 5), jnp.float32)    # conv1
    b1 = scale * jax.random.normal(ks[1], (10,), jnp.float32)
    w2 = scale * jax.random.normal(ks[2], (20, 10, 3, 3), jnp.float32)   # conv2
    b2 = scale * jax.random.normal(ks[3], (20,), jnp.float32)
    wf1 = scale * jax.random.normal(ks[4], (500, 2000), jnp.float32)     # fc1
    bf1 = scale * jax.random.normal(ks[5], (500,), jnp.float32)
    wf2 = scale * jax.random.normal(ks[6], (10, 500), jnp.float32)       # fc2
    bf2 = scale * jax.random.normal(ks[7], (10,), jnp.float32)
    return (w1, b1, w2, b2, wf1, bf1, wf2, bf2)


def reference_forward(x, params):
    """Pure-JAX/XLA reference matching the PyTorch module."""
    w1, b1, w2, b2, wf1, bf1, wf2, bf2 = params
    n = x.shape[0]
    c1 = jax.lax.conv_general_dilated(x, w1, (1, 1), 'VALID',
                                      dimension_numbers=('NCHW', 'OIHW', 'NCHW'))
    c1 = jax.nn.relu(c1 + b1.reshape(1, 10, 1, 1))
    p1 = jax.lax.reduce_window(c1, -jnp.inf, jax.lax.max,
                               (1, 1, 2, 2), (1, 1, 2, 2), 'VALID')
    c2 = jax.lax.conv_general_dilated(p1, w2, (1, 1), 'VALID',
                                      dimension_numbers=('NCHW', 'OIHW', 'NCHW'))
    c2 = jax.nn.relu(c2 + b2.reshape(1, 20, 1, 1))
    flat = c2.reshape(n, -1)
    h = jax.nn.relu(flat @ wf1.T + bf1)
    z = h @ wf2.T + bf2
    return jax.nn.log_softmax(z, axis=-1)


if __name__ == "__main__":
    key = jax.random.PRNGKey(0)
    k_x, k_p = jax.random.split(key)
    x = jax.random.normal(k_x, (2, 1, 28, 28), jnp.float32)   # small MNIST batch
    params = init_params(k_p)

    prepared = prepare_params(params)                         # one-time repack
    fwd = jax.jit(convnet_forward)
    out = jax.block_until_ready(fwd(x, prepared))

    assert out.shape == (2, 10)
    assert bool(jnp.all(jnp.isfinite(out)))

    # Numerical sanity check against the f32 XLA reference (bf16 MXU weights,
    # f32 accumulation -> comfortably inside tolerance).
    ref = jax.block_until_ready(reference_forward(x, params))
    err = float(jnp.max(jnp.abs(out - ref)))
    assert err < 3e-2, f"mismatch vs reference: {err}"

    print("KERNEL_OK")
</pallas_src>

<mosaic_0001>
module attributes {stable_mosaic.version = 11 : i64} {
  func.func @_conv_pool_conv_kernel(%arg0: i32, %arg1: memref<2x40x28xf32, #tpu.memory_space<vmem>>, %arg2: memref<2x5x28x120xbf16, #tpu.memory_space<vmem>>, %arg3: memref<1x120xf32, #tpu.memory_space<vmem>>, %arg4: memref<3x120x200xbf16, #tpu.memory_space<vmem>>, %arg5: memref<1x200xf32, #tpu.memory_space<vmem>>, %arg6: memref<2x24x200xbf16, #tpu.memory_space<vmem>>) attributes {dimension_semantics = [#tpu.dimension_semantics<parallel>], iteration_bounds = array<i64: 1>, scalar_prefetch = 0 : i64, scratch_operands = 0 : i64, tpu.core_type = #tpu.core_type<tc>, window_params = [{transform_indices = @transform_0, window_bounds = array<i64: 2, 40, 28>}, {pipeline_mode = #tpu.pipeline_mode<synchronous>, transform_indices = @transform_1, window_bounds = array<i64: 2, 5, 28, 120>}, {pipeline_mode = #tpu.pipeline_mode<synchronous>, transform_indices = @transform_2, window_bounds = array<i64: 1, 120>}, {pipeline_mode = #tpu.pipeline_mode<synchronous>, transform_indices = @transform_3, window_bounds = array<i64: 3, 120, 200>}, {pipeline_mode = #tpu.pipeline_mode<synchronous>, transform_indices = @transform_4, window_bounds = array<i64: 1, 200>}, {transform_indices = @transform_5, window_bounds = array<i64: 2, 24, 200>}]} {
    %c0 = arith.constant 0 : index
    %c0_0 = arith.constant 0 : index
    %c0_1 = arith.constant 0 : index
    %0 = vector.load %arg1[%c0, %c0_0, %c0_1] : memref<2x40x28xf32, #tpu.memory_space<vmem>>, vector<2x40x28xf32>
    %1 = vector.extract_strided_slice %0 {offsets = [0, 0, 0], sizes = [2, 32, 28], strides = [1, 1, 1]} : vector<2x40x28xf32> to vector<2x32x28xf32>
    %2 = vector.shape_cast %1 : vector<2x32x28xf32> to vector<64x28xf32>
    %3 = arith.truncf %2 : vector<64x28xf32> to vector<64x28xbf16>
    %4 = vector.extract_strided_slice %0 {offsets = [0, 1, 0], sizes = [2, 32, 28], strides = [1, 1, 1]} : vector<2x40x28xf32> to vector<2x32x28xf32>
    %5 = vector.shape_cast %4 : vector<2x32x28xf32> to vector<64x28xf32>
    %6 = arith.truncf %5 : vector<64x28xf32> to vector<64x28xbf16>
    %7 = vector.extract_strided_slice %0 {offsets = [0, 2, 0], sizes = [2, 32, 28], strides = [1, 1, 1]} : vector<2x40x28xf32> to vector<2x32x28xf32>
    %8 = vector.shape_cast %7 : vector<2x32x28xf32> to vector<64x28xf32>
    %9 = arith.truncf %8 : vector<64x28xf32> to vector<64x28xbf16>
    %10 = vector.extract_strided_slice %0 {offsets = [0, 3, 0], sizes = [2, 32, 28], strides = [1, 1, 1]} : vector<2x40x28xf32> to vector<2x32x28xf32>
    %11 = vector.shape_cast %10 : vector<2x32x28xf32> to vector<64x28xf32>
    %12 = arith.truncf %11 : vector<64x28xf32> to vector<64x28xbf16>
    %13 = vector.extract_strided_slice %0 {offsets = [0, 4, 0], sizes = [2, 32, 28], strides = [1, 1, 1]} : vector<2x40x28xf32> to vector<2x32x28xf32>
    %14 = vector.shape_cast %13 : vector<2x32x28xf32> to vector<64x28xf32>
    %15 = arith.truncf %14 : vector<64x28xf32> to vector<64x28xbf16>
    %16 = vector.extract_strided_slice %0 {offsets = [0, 5, 0], sizes = [2, 32, 28], strides = [1, 1, 1]} : vector<2x40x28xf32> to vector<2x32x28xf32>
    %17 = vector.shape_cast %16 : vector<2x32x28xf32> to vector<64x28xf32>
    %18 = arith.truncf %17 : vector<64x28xf32> to vector<64x28xbf16>
    %c0_2 = arith.constant 0 : index
    %c0_3 = arith.constant 0 : index
    %c0_4 = arith.constant 0 : index
    %c0_5 = arith.constant 0 : index
    %19 = vector.load %arg2[%c0_2, %c0_3, %c0_4, %c0_5] : memref<2x5x28x120xbf16, #tpu.memory_space<vmem>>, vector<1x1x28x120xbf16>
    %20 = vector.shape_cast %19 : vector<1x1x28x120xbf16> to vector<28x120xbf16>
    %cst = arith.constant dense<0.000000e+00> : vector<64x120xf32>
    %21 = tpu.matmul %3, %20, %cst {dimension_numbers = #tpu.dot_dimension_numbers<[1], [0], [0], [1], [0, 0, 1, 1], [], []>} : vector<64x28xbf16>, vector<28x120xbf16>, vector<64x120xf32> -> vector<64x120xf32>
    %c0_6 = arith.constant 0 : index
    %c1 = arith.constant 1 : index
    %c0_7 = arith.constant 0 : index
    %c0_8 = arith.constant 0 : index
    %22 = vector.load %arg2[%c0_6, %c1, %c0_7, %c0_8] : memref<2x5x28x120xbf16, #tpu.memory_space<vmem>>, vector<1x1x28x120xbf16>
    %23 = vector.shape_cast %22 : vector<1x1x28x120xbf16> to vector<28x120xbf16>
    %cst_9 = arith.constant dense<0.000000e+00> : vector<64x120xf32>
    %24 = tpu.matmul %6, %23, %cst_9 {dimension_numbers = #tpu.dot_dimension_numbers<[1], [0], [0], [1], [0, 0, 1, 1], [], []>} : vector<64x28xbf16>, vector<28x120xbf16>, vector<64x120xf32> -> vector<64x120xf32>
    %25 = arith.addf %21, %24 : vector<64x120xf32>
    %c0_10 = arith.constant 0 : index
    %c2 = arith.constant 2 : index
    %c0_11 = arith.constant 0 : index
    %c0_12 = arith.constant 0 : index
    %26 = vector.load %arg2[%c0_10, %c2, %c0_11, %c0_12] : memref<2x5x28x120xbf16, #tpu.memory_space<vmem>>, vector<1x1x28x120xbf16>
    %27 = vector.shape_cast %26 : vector<1x1x28x120xbf16> to vector<28x120xbf16>
    %cst_13 = arith.constant dense<0.000000e+00> : vector<64x120xf32>
    %28 = tpu.matmul %9, %27, %cst_13 {dimension_numbers = #tpu.dot_dimension_numbers<[1], [0], [0], [1], [0, 0, 1, 1], [], []>} : vector<64x28xbf16>, vector<28x120xbf16>, vector<64x120xf32> -> vector<64x120xf32>
    %29 = arith.addf %25, %28 : vector<64x120xf32>
    %c0_14 = arith.constant 0 : index
    %c3 = arith.constant 3 : index
    %c0_15 = arith.constant 0 : index
    %c0_16 = arith.constant 0 : index
    %30 = vector.load %arg2[%c0_14, %c3, %c0_15, %c0_16] : memref<2x5x28x120xbf16, #tpu.memory_space<vmem>>, vector<1x1x28x120xbf16>
    %31 = vector.shape_cast %30 : vector<1x1x28x120xbf16> to vector<28x120xbf16>
    %cst_17 = arith.constant dense<0.000000e+00> : vector<64x120xf32>
    %32 = tpu.matmul %12, %31, %cst_17 {dimension_numbers = #tpu.dot_dimension_numbers<[1], [0], [0], [1], [0, 0, 1, 1], [], []>} : vector<64x28xbf16>, vector<28x120xbf16>, vector<64x120xf32> -> vector<64x120xf32>
    %33 = arith.addf %29, %32 : vector<64x120xf32>
    %c0_18 = arith.constant 0 : index
    %c4 = arith.constant 4 : index
    %c0_19 = arith.constant 0 : index
    %c0_20 = arith.constant 0 : index
    %34 = vector.load %arg2[%c0_18, %c4, %c0_19, %c0_20] : memref<2x5x28x120xbf16, #tpu.memory_space<vmem>>, vector<1x1x28x120xbf16>
    %35 = vector.shape_cast %34 : vector<1x1x28x120xbf16> to vector<28x120xbf16>
    %cst_21 = arith.constant dense<0.000000e+00> : vector<64x120xf32>
    %36 = tpu.matmul %15, %35, %cst_21 {dimension_numbers = #tpu.dot_dimension_numbers<[1], [0], [0], [1], [0, 0, 1, 1], [], []>} : vector<64x28xbf16>, vector<28x120xbf16>, vector<64x120xf32> -> vector<64x120xf32>
    %37 = arith.addf %33, %36 : vector<64x120xf32>
    %c1_22 = arith.constant 1 : index
    %c0_23 = arith.constant 0 : index
    %c0_24 = arith.constant 0 : index
    %c0_25 = arith.constant 0 : index
    %38 = vector.load %arg2[%c1_22, %c0_23, %c0_24, %c0_25] : memref<2x5x28x120xbf16, #tpu.memory_space<vmem>>, vector<1x1x28x120xbf16>
    %39 = vector.shape_cast %38 : vector<1x1x28x120xbf16> to vector<28x120xbf16>
    %cst_26 = arith.constant dense<0.000000e+00> : vector<64x120xf32>
    %40 = tpu.matmul %3, %39, %cst_26 {dimension_numbers = #tpu.dot_dimension_numbers<[1], [0], [0], [1], [0, 0, 1, 1], [], []>} : vector<64x28xbf16>, vector<28x120xbf16>, vector<64x120xf32> -> vector<64x120xf32>
    %c1_27 = arith.constant 1 : index
    %c1_28 = arith.constant 1 : index
    %c0_29 = arith.constant 0 : index
    %c0_30 = arith.constant 0 : index
    %41 = vector.load %arg2[%c1_27, %c1_28, %c0_29, %c0_30] : memref<2x5x28x120xbf16, #tpu.memory_space<vmem>>, vector<1x1x28x120xbf16>
    %42 = vector.shape_cast %41 : vector<1x1x28x120xbf16> to vector<28x120xbf16>
    %cst_31 = arith.constant dense<0.000000e+00> : vector<64x120xf32>
    %43 = tpu.matmul %6, %42, %cst_31 {dimension_numbers = #tpu.dot_dimension_numbers<[1], [0], [0], [1], [0, 0, 1, 1], [], []>} : vector<64x28xbf16>, vector<28x120xbf16>, vector<64x120xf32> -> vector<64x120xf32>
    %44 = arith.addf %40, %43 : vector<64x120xf32>
    %c1_32 = arith.constant 1 : index
    %c2_33 = arith.constant 2 : index
    %c0_34 = arith.constant 0 : index
    %c0_35 = arith.constant 0 : index
    %45 = vector.load %arg2[%c1_32, %c2_33, %c0_34, %c0_35] : memref<2x5x28x120xbf16, #tpu.memory_space<vmem>>, vector<1x1x28x120xbf16>
    %46 = vector.shape_cast %45 : vector<1x1x28x120xbf16> to vector<28x120xbf16>
    %cst_36 = arith.constant dense<0.000000e+00> : vector<64x120xf32>
    %47 = tpu.matmul %9, %46, %cst_36 {dimension_numbers = #tpu.dot_dimension_numbers<[1], [0], [0], [1], [0, 0, 1, 1], [], []>} : vector<64x28xbf16>, vector<28x120xbf16>, vector<64x120xf32> -> vector<64x120xf32>
    %48 = arith.addf %44, %47 : vector<64x120xf32>
    %c1_37 = arith.constant 1 : index
    %c3_38 = arith.constant 3 : index
    %c0_39 = arith.constant 0 : index
    %c0_40 = arith.constant 0 : index
    %49 = vector.load %arg2[%c1_37, %c3_38, %c0_39, %c0_40] : memref<2x5x28x120xbf16, #tpu.memory_space<vmem>>, vector<1x1x28x120xbf16>
    %50 = vector.shape_cast %49 : vector<1x1x28x120xbf16> to vector<28x120xbf16>
    %cst_41 = arith.constant dense<0.000000e+00> : vector<64x120xf32>
    %51 = tpu.matmul %12, %50, %cst_41 {dimension_numbers = #tpu.dot_dimension_numbers<[1], [0], [0], [1], [0, 0, 1, 1], [], []>} : vector<64x28xbf16>, vector<28x120xbf16>, vector<64x120xf32> -> vector<64x120xf32>
    %52 = arith.addf %48, %51 : vector<64x120xf32>
    %c1_42 = arith.constant 1 : index
    %c4_43 = arith.constant 4 : index
    %c0_44 = arith.constant 0 : index
    %c0_45 = arith.constant 0 : index
    %53 = vector.load %arg2[%c1_42, %c4_43, %c0_44, %c0_45] : memref<2x5x28x120xbf16, #tpu.memory_space<vmem>>, vector<1x1x28x120xbf16>
    %54 = vector.shape_cast %53 : vector<1x1x28x120xbf16> to vector<28x120xbf16>
    %cst_46 = arith.constant dense<0.000000e+00> : vector<64x120xf32>
    %55 = tpu.matmul %15, %54, %cst_46 {dimension_numbers = #tpu.dot_dimension_numbers<[1], [0], [0], [1], [0, 0, 1, 1], [], []>} : vector<64x28xbf16>, vector<28x120xbf16>, vector<64x120xf32> -> vector<64x120xf32>
    %56 = arith.addf %52, %55 : vector<64x120xf32>
    %c0_47 = arith.constant 0 : index
    %c0_48 = arith.constant 0 : index
    %c0_49 = arith.constant 0 : index
    %c0_50 = arith.constant 0 : index
    %57 = vector.load %arg2[%c0_47, %c0_48, %c0_49, %c0_50] : memref<2x5x28x120xbf16, #tpu.memory_space<vmem>>, vector<1x1x28x120xbf16>
    %58 = vector.shape_cast %57 : vector<1x1x28x120xbf16> to vector<28x120xbf16>
    %cst_51 = arith.constant dense<0.000000e+00> : vector<64x120xf32>
    %59 = tpu.matmul %6, %58, %cst_51 {dimension_numbers = #tpu.dot_dimension_numbers<[1], [0], [0], [1], [0, 0, 1, 1], [], []>} : vector<64x28xbf16>, vector<28x120xbf16>, vector<64x120xf32> -> vector<64x120xf32>
    %c0_52 = arith.constant 0 : index
    %c1_53 = arith.constant 1 : index
    %c0_54 = arith.constant 0 : index
    %c0_55 = arith.constant 0 : index
    %60 = vector.load %arg2[%c0_52, %c1_53, %c0_54, %c0_55] : memref<2x5x28x120xbf16, #tpu.memory_space<vmem>>, vector<1x1x28x120xbf16>
    %61 = vector.shape_cast %60 : vector<1x1x28x120xbf16> to vector<28x120xbf16>
    %cst_56 = arith.constant dense<0.000000e+00> : vector<64x120xf32>
    %62 = tpu.matmul %9, %61, %cst_56 {dimension_numbers = #tpu.dot_dimension_numbers<[1], [0], [0], [1], [0, 0, 1, 1], [], []>} : vector<64x28xbf16>, vector<28x120xbf16>, vector<64x120xf32> -> vector<64x120xf32>
    %63 = arith.addf %59, %62 : vector<64x120xf32>
    %c0_57 = arith.constant 0 : index
    %c2_58 = arith.constant 2 : index
    %c0_59 = arith.constant 0 : index
    %c0_60 = arith.constant 0 : index
    %64 = vector.load %arg2[%c0_57, %c2_58, %c0_59, %c0_60] : memref<2x5x28x120xbf16, #tpu.memory_space<vmem>>, vector<1x1x28x120xbf16>
    %65 = vector.shape_cast %64 : vector<1x1x28x120xbf16> to vector<28x120xbf16>
    %cst_61 = arith.constant dense<0.000000e+00> : vector<64x120xf32>
    %66 = tpu.matmul %12, %65, %cst_61 {dimension_numbers = #tpu.dot_dimension_numbers<[1], [0], [0], [1], [0, 0, 1, 1], [], []>} : vector<64x28xbf16>, vector<28x120xbf16>, vector<64x120xf32> -> vector<64x120xf32>
    %67 = arith.addf %63, %66 : vector<64x120xf32>
    %c0_62 = arith.constant 0 : index
    %c3_63 = arith.constant 3 : index
    %c0_64 = arith.constant 0 : index
    %c0_65 = arith.constant 0 : index
    %68 = vector.load %arg2[%c0_62, %c3_63, %c0_64, %c0_65] : memref<2x5x28x120xbf16, #tpu.memory_space<vmem>>, vector<1x1x28x120xbf16>
    %69 = vector.shape_cast %68 : vector<1x1x28x120xbf16> to vector<28x120xbf16>
    %cst_66 = arith.constant dense<0.000000e+00> : vector<64x120xf32>
    %70 = tpu.matmul %15, %69, %cst_66 {dimension_numbers = #tpu.dot_dimension_numbers<[1], [0], [0], [1], [0, 0, 1, 1], [], []>} : vector<64x28xbf16>, vector<28x120xbf16>, vector<64x120xf32> -> vector<64x120xf32>
    %71 = arith.addf %67, %70 : vector<64x120xf32>
    %c0_67 = arith.constant 0 : index
    %c4_68 = arith.constant 4 : index
    %c0_69 = arith.constant 0 : index
    %c0_70 = arith.constant 0 : index
    %72 = vector.load %arg2[%c0_67, %c4_68, %c0_69, %c0_70] : memref<2x5x28x120xbf16, #tpu.memory_space<vmem>>, vector<1x1x28x120xbf16>
    %73 = vector.shape_cast %72 : vector<1x1x28x120xbf16> to vector<28x120xbf16>
    %cst_71 = arith.constant dense<0.000000e+00> : vector<64x120xf32>
    %74 = tpu.matmul %18, %73, %cst_71 {dimension_numbers = #tpu.dot_dimension_numbers<[1], [0], [0], [1], [0, 0, 1, 1], [], []>} : vector<64x28xbf16>, vector<28x120xbf16>, vector<64x120xf32> -> vector<64x120xf32>
    %75 = arith.addf %71, %74 : vector<64x120xf32>
    %c1_72 = arith.constant 1 : index
    %c0_73 = arith.constant 0 : index
    %c0_74 = arith.constant 0 : index
    %c0_75 = arith.constant 0 : index
    %76 = vector.load %arg2[%c1_72, %c0_73, %c0_74, %c0_75] : memref<2x5x28x120xbf16, #tpu.memory_space<vmem>>, vector<1x1x28x120xbf16>
    %77 = vector.shape_cast %76 : vector<1x1x28x120xbf16> to vector<28x120xbf16>
    %cst_76 = arith.constant dense<0.000000e+00> : vector<64x120xf32>
    %78 = tpu.matmul %6, %77, %cst_76 {dimension_numbers = #tpu.dot_dimension_numbers<[1], [0], [0], [1], [0, 0, 1, 1], [], []>} : vector<64x28xbf16>, vector<28x120xbf16>, vector<64x120xf32> -> vector<64x120xf32>
    %c1_77 = arith.constant 1 : index
    %c1_78 = arith.constant 1 : index
    %c0_79 = arith.constant 0 : index
    %c0_80 = arith.constant 0 : index
    %79 = vector.load %arg2[%c1_77, %c1_78, %c0_79, %c0_80] : memref<2x5x28x120xbf16, #tpu.memory_space<vmem>>, vector<1x1x28x120xbf16>
    %80 = vector.shape_cast %79 : vector<1x1x28x120xbf16> to vector<28x120xbf16>
    %cst_81 = arith.constant dense<0.000000e+00> : vector<64x120xf32>
    %81 = tpu.matmul %9, %80, %cst_81 {dimension_numbers = #tpu.dot_dimension_numbers<[1], [0], [0], [1], [0, 0, 1, 1], [], []>} : vector<64x28xbf16>, vector<28x120xbf16>, vector<64x120xf32> -> vector<64x120xf32>
    %82 = arith.addf %78, %81 : vector<64x120xf32>
    %c1_82 = arith.constant 1 : index
    %c2_83 = arith.constant 2 : index
    %c0_84 = arith.constant 0 : index
    %c0_85 = arith.constant 0 : index
    %83 = vector.load %arg2[%c1_82, %c2_83, %c0_84, %c0_85] : memref<2x5x28x120xbf16, #tpu.memory_space<vmem>>, vector<1x1x28x120xbf16>
    %84 = vector.shape_cast %83 : vector<1x1x28x120xbf16> to vector<28x120xbf16>
    %cst_86 = arith.constant dense<0.000000e+00> : vector<64x120xf32>
    %85 = tpu.matmul %12, %84, %cst_86 {dimension_numbers = #tpu.dot_dimension_numbers<[1], [0], [0], [1], [0, 0, 1, 1], [], []>} : vector<64x28xbf16>, vector<28x120xbf16>, vector<64x120xf32> -> vector<64x120xf32>
    %86 = arith.addf %82, %85 : vector<64x120xf32>
    %c1_87 = arith.constant 1 : index
    %c3_88 = arith.constant 3 : index
    %c0_89 = arith.constant 0 : index
    %c0_90 = arith.constant 0 : index
    %87 = vector.load %arg2[%c1_87, %c3_88, %c0_89, %c0_90] : memref<2x5x28x120xbf16, #tpu.memory_space<vmem>>, vector<1x1x28x120xbf16>
    %88 = vector.shape_cast %87 : vector<1x1x28x120xbf16> to vector<28x120xbf16>
    %cst_91 = arith.constant dense<0.000000e+00> : vector<64x120xf32>
    %89 = tpu.matmul %15, %88, %cst_91 {dimension_numbers = #tpu.dot_dimension_numbers<[1], [0], [0], [1], [0, 0, 1, 1], [], []>} : vector<64x28xbf16>, vector<28x120xbf16>, vector<64x120xf32> -> vector<64x120xf32>
    %90 = arith.addf %86, %89 : vector<64x120xf32>
    %c1_92 = arith.constant 1 : index
    %c4_93 = arith.constant 4 : index
    %c0_94 = arith.constant 0 : index
    %c0_95 = arith.constant 0 : index
    %91 = vector.load %arg2[%c1_92, %c4_93, %c0_94, %c0_95] : memref<2x5x28x120xbf16, #tpu.memory_space<vmem>>, vector<1x1x28x120xbf16>
    %92 = vector.shape_cast %91 : vector<1x1x28x120xbf16> to vector<28x120xbf16>
    %cst_96 = arith.constant dense<0.000000e+00> : vector<64x120xf32>
    %93 = tpu.matmul %18, %92, %cst_96 {dimension_numbers = #tpu.dot_dimension_numbers<[1], [0], [0], [1], [0, 0, 1, 1], [], []>} : vector<64x28xbf16>, vector<28x120xbf16>, vector<64x120xf32> -> vector<64x120xf32>
    %94 = arith.addf %90, %93 : vector<64x120xf32>
    %95 = arith.maximumf %37, %56 : vector<64x120xf32>
    %96 = arith.maximumf %75, %94 : vector<64x120xf32>
    %97 = arith.maximumf %95, %96 : vector<64x120xf32>
    %c0_97 = arith.constant 0 : index
    %c0_98 = arith.constant 0 : index
    %98 = vector.load %arg3[%c0_97, %c0_98] : memref<1x120xf32, #tpu.memory_space<vmem>>, vector<1x120xf32>
    %99 = vector.broadcast %98 : vector<1x120xf32> to vector<64x120xf32>
    %100 = arith.addf %97, %99 : vector<64x120xf32>
    %cst_99 = arith.constant 0.000000e+00 : f32
    %101 = vector.broadcast %cst_99 : f32 to vector<64x120xf32>
    %102 = arith.maximumf %100, %101 : vector<64x120xf32>
    %103 = arith.truncf %102 : vector<64x120xf32> to vector<64x120xbf16>
    %104 = vector.shape_cast %103 : vector<64x120xbf16> to vector<2x32x120xbf16>
    %105 = vector.extract_strided_slice %104 {offsets = [0, 0, 0], sizes = [2, 24, 120], strides = [1, 1, 1]} : vector<2x32x120xbf16> to vector<2x24x120xbf16>
    %106 = vector.shape_cast %105 : vector<2x24x120xbf16> to vector<48x120xbf16>
    %c0_100 = arith.constant 0 : index
    %c0_101 = arith.constant 0 : index
    %c0_102 = arith.constant 0 : index
    %107 = vector.load %arg4[%c0_100, %c0_101, %c0_102] : memref<3x120x200xbf16, #tpu.memory_space<vmem>>, vector<1x120x200xbf16>
    %108 = vector.shape_cast %107 : vector<1x120x200xbf16> to vector<120x200xbf16>
    %cst_103 = arith.constant dense<0.000000e+00> : vector<48x200xf32>
    %109 = tpu.matmul %106, %108, %cst_103 {dimension_numbers = #tpu.dot_dimension_numbers<[1], [0], [0], [1], [0, 0, 1, 1], [], []>} : vector<48x120xbf16>, vector<120x200xbf16>, vector<48x200xf32> -> vector<48x200xf32>
    %110 = vector.extract_strided_slice %104 {offsets = [0, 2, 0], sizes = [2, 24, 120], strides = [1, 1, 1]} : vector<2x32x120xbf16> to vector<2x24x120xbf16>
    %111 = vector.shape_cast %110 : vector<2x24x120xbf16> to vector<48x120xbf16>
    %c1_104 = arith.constant 1 : index
    %c0_105 = arith.constant 0 : index
    %c0_106 = arith.constant 0 : index
    %112 = vector.load %arg4[%c1_104, %c0_105, %c0_106] : memref<3x120x200xbf16, #tpu.memory_space<vmem>>, vector<1x120x200xbf16>
    %113 = vector.shape_cast %112 : vector<1x120x200xbf16> to vector<120x200xbf16>
    %cst_107 = arith.constant dense<0.000000e+00> : vector<48x200xf32>
    %114 = tpu.matmul %111, %113, %cst_107 {dimension_numbers = #tpu.dot_dimension_numbers<[1], [0], [0], [1], [0, 0, 1, 1], [], []>} : vector<48x120xbf16>, vector<120x200xbf16>, vector<48x200xf32> -> vector<48x200xf32>
    %115 = arith.addf %109, %114 : vector<48x200xf32>
    %116 = vector.extract_strided_slice %104 {offsets = [0, 4, 0], sizes = [2, 24, 120], strides = [1, 1, 1]} : vector<2x32x120xbf16> to vector<2x24x120xbf16>
    %117 = vector.shape_cast %116 : vector<2x24x120xbf16> to vector<48x120xbf16>
    %c2_108 = arith.constant 2 : index
    %c0_109 = arith.constant 0 : index
    %c0_110 = arith.constant 0 : index
    %118 = vector.load %arg4[%c2_108, %c0_109, %c0_110] : memref<3x120x200xbf16, #tpu.memory_space<vmem>>, vector<1x120x200xbf16>
    %119 = vector.shape_cast %118 : vector<1x120x200xbf16> to vector<120x200xbf16>
    %cst_111 = arith.constant dense<0.000000e+00> : vector<48x200xf32>
    %120 = tpu.matmul %117, %119, %cst_111 {dimension_numbers = #tpu.dot_dimension_numbers<[1], [0], [0], [1], [0, 0, 1, 1], [], []>} : vector<48x120xbf16>, vector<120x200xbf16>, vector<48x200xf32> -> vector<48x200xf32>
    %121 = arith.addf %115, %120 : vector<48x200xf32>
    %c0_112 = arith.constant 0 : index
    %c0_113 = arith.constant 0 : index
    %122 = vector.load %arg5[%c0_112, %c0_113] : memref<1x200xf32, #tpu.memory_space<vmem>>, vector<1x200xf32>
    %123 = vector.broadcast %122 : vector<1x200xf32> to vector<48x200xf32>
    %124 = arith.addf %121, %123 : vector<48x200xf32>
    %cst_114 = arith.constant 0.000000e+00 : f32
    %125 = vector.broadcast %cst_114 : f32 to vector<48x200xf32>
    %126 = arith.maximumf %124, %125 : vector<48x200xf32>
    %127 = vector.shape_cast %126 : vector<48x200xf32> to vector<2x24x200xf32>
    %128 = arith.truncf %127 : vector<2x24x200xf32> to vector<2x24x200xbf16>
    %c0_115 = arith.constant 0 : index
    %c0_116 = arith.constant 0 : index
    %c0_117 = arith.constant 0 : index
    %129 = vector.load %arg6[%c0_115, %c0_116, %c0_117] : memref<2x24x200xbf16, #tpu.memory_space<vmem>>, vector<2x24x200xbf16>
    tpu.vector_store %arg6[%c0_115, %c0_116, %c0_117], %128 {strides = array<i32>} : memref<2x24x200xbf16, #tpu.memory_space<vmem>>, vector<2x24x200xbf16>,
    return
  }
  func.func @transform_0(%arg0: i32) -> (i32, i32, i32) {
    %c0_i32 = arith.constant 0 : i32
    %c0_i32_0 = arith.constant 0 : i32
    %c0_i32_1 = arith.constant 0 : i32
    return %arg0, %c0_i32, %c0_i32_0 : i32, i32, i32
  }
  func.func @transform_1(%arg0: i32) -> (i32, i32, i32, i32) {
    %c0_i32 = arith.constant 0 : i32
    %c0_i32_0 = arith.constant 0 : i32
    %c0_i32_1 = arith.constant 0 : i32
    %c0_i32_2 = arith.constant 0 : i32
    %c0_i32_3 = arith.constant 0 : i32
    return %c0_i32, %c0_i32_0, %c0_i32_1, %c0_i32_2 : i32, i32, i32, i32
  }
  func.func @transform_2(%arg0: i32) -> (i32, i32) {
    %c0_i32 = arith.constant 0 : i32
    %c0_i32_0 = arith.constant 0 : i32
    %c0_i32_1 = arith.constant 0 : i32
    return %c0_i32, %c0_i32_0 : i32, i32
  }
  func.func @transform_3(%arg0: i32) -> (i32, i32, i32) {
    %c0_i32 = arith.constant 0 : i32
    %c0_i32_0 = arith.constant 0 : i32
    %c0_i32_1 = arith.constant 0 : i32
    %c0_i32_2 = arith.constant 0 : i32
    return %c0_i32, %c0_i32_0, %c0_i32_1 : i32, i32, i32
  }
  func.func @transform_4(%arg0: i32) -> (i32, i32) {
    %c0_i32 = arith.constant 0 : i32
    %c0_i32_0 = arith.constant 0 : i32
    %c0_i32_1 = arith.constant 0 : i32
    return %c0_i32, %c0_i32_0 : i32, i32
  }
  func.func @transform_5(%arg0: i32) -> (i32, i32, i32) {
    %c0_i32 = arith.constant 0 : i32
    %c0_i32_0 = arith.constant 0 : i32
    %c0_i32_1 = arith.constant 0 : i32
    return %arg0, %c0_i32, %c0_i32_0 : i32, i32, i32
  }
}

module attributes {stable_mosaic.version = 11 : i64} {
  func.func @_fc_kernel(%arg0: i32, %arg1: memref<2x4800xbf16, #tpu.memory_space<vmem>>, %arg2: memref<4800x512xbf16, #tpu.memory_space<vmem>>, %arg3: memref<1x512xf32, #tpu.memory_space<vmem>>, %arg4: memref<512x10xbf16, #tpu.memory_space<vmem>>, %arg5: memref<1x10xf32, #tpu.memory_space<vmem>>, %arg6: memref<2x10xf32, #tpu.memory_space<vmem>>) attributes {dimension_semantics = [#tpu.dimension_semantics<parallel>], iteration_bounds = array<i64: 1>, scalar_prefetch = 0 : i64, scratch_operands = 0 : i64, tpu.core_type = #tpu.core_type<tc>, window_params = [{transform_indices = @transform_0, window_bounds = array<i64: 2, 4800>}, {pipeline_mode = #tpu.pipeline_mode<synchronous>, transform_indices = @transform_1, window_bounds = array<i64: 4800, 512>}, {pipeline_mode = #tpu.pipeline_mode<synchronous>, transform_indices = @transform_2, window_bounds = array<i64: 1, 512>}, {pipeline_mode = #tpu.pipeline_mode<synchronous>, transform_indices = @transform_3, window_bounds = array<i64: 512, 10>}, {pipeline_mode = #tpu.pipeline_mode<synchronous>, transform_indices = @transform_4, window_bounds = array<i64: 1, 10>}, {transform_indices = @transform_5, window_bounds = array<i64: 2, 10>}]} {
    %c0 = arith.constant 0 : index
    %c0_0 = arith.constant 0 : index
    %0 = vector.load %arg1[%c0, %c0_0] : memref<2x4800xbf16, #tpu.memory_space<vmem>>, vector<2x4800xbf16>
    %c0_1 = arith.constant 0 : index
    %c0_2 = arith.constant 0 : index
    %1 = vector.load %arg2[%c0_1, %c0_2] : memref<4800x512xbf16, #tpu.memory_space<vmem>>, vector<4800x512xbf16>
    %cst = arith.constant dense<0.000000e+00> : vector<2x512xf32>
    %2 = tpu.matmul %0, %1, %cst {dimension_numbers = #tpu.dot_dimension_numbers<[1], [0], [0], [1], [0, 0, 1, 1], [], []>} : vector<2x4800xbf16>, vector<4800x512xbf16>, vector<2x512xf32> -> vector<2x512xf32>
    %c0_3 = arith.constant 0 : index
    %c0_4 = arith.constant 0 : index
    %3 = vector.load %arg3[%c0_3, %c0_4] : memref<1x512xf32, #tpu.memory_space<vmem>>, vector<1x512xf32>
    %4 = vector.broadcast %3 : vector<1x512xf32> to vector<2x512xf32>
    %5 = arith.addf %2, %4 : vector<2x512xf32>
    %cst_5 = arith.constant 0.000000e+00 : f32
    %6 = vector.broadcast %cst_5 : f32 to vector<2x512xf32>
    %7 = arith.maximumf %5, %6 : vector<2x512xf32>
    %8 = arith.truncf %7 : vector<2x512xf32> to vector<2x512xbf16>
    %c0_6 = arith.constant 0 : index
    %c0_7 = arith.constant 0 : index
    %9 = vector.load %arg4[%c0_6, %c0_7] : memref<512x10xbf16, #tpu.memory_space<vmem>>, vector<512x10xbf16>
    %cst_8 = arith.constant dense<0.000000e+00> : vector<2x10xf32>
    %10 = tpu.matmul %8, %9, %cst_8 {dimension_numbers = #tpu.dot_dimension_numbers<[1], [0], [0], [1], [0, 0, 1, 1], [], []>} : vector<2x512xbf16>, vector<512x10xbf16>, vector<2x10xf32> -> vector<2x10xf32>
    %c0_9 = arith.constant 0 : index
    %c0_10 = arith.constant 0 : index
    %11 = vector.load %arg5[%c0_9, %c0_10] : memref<1x10xf32, #tpu.memory_space<vmem>>, vector<1x10xf32>
    %12 = vector.broadcast %11 : vector<1x10xf32> to vector<2x10xf32>
    %13 = arith.addf %10, %12 : vector<2x10xf32>
    %cst_11 = arith.constant dense<0xFF800000> : vector<2xf32>
    %14 = vector.multi_reduction <maximumf>, %13, %cst_11 [1] : vector<2x10xf32> to vector<2xf32>
    %15 = vector.shape_cast %14 : vector<2xf32> to vector<2x1xf32>
    %16 = vector.broadcast %15 : vector<2x1xf32> to vector<2x10xf32>
    %17 = arith.subf %13, %16 : vector<2x10xf32>
    %18 = math.exp %17 : vector<2x10xf32>
    %cst_12 = arith.constant dense<0.000000e+00> : vector<2xf32>
    %19 = vector.multi_reduction <add>, %18, %cst_12 [1] : vector<2x10xf32> to vector<2xf32>
    %20 = vector.shape_cast %19 : vector<2xf32> to vector<2x1xf32>
    %21 = math.log %20 : vector<2x1xf32>
    %22 = vector.broadcast %21 : vector<2x1xf32> to vector<2x10xf32>
    %23 = arith.subf %17, %22 : vector<2x10xf32>
    %c0_13 = arith.constant 0 : index
    %c0_14 = arith.constant 0 : index
    %24 = vector.load %arg6[%c0_13, %c0_14] : memref<2x10xf32, #tpu.memory_space<vmem>>, vector<2x10xf32>
    tpu.vector_store %arg6[%c0_13, %c0_14], %23 {strides = array<i32>} : memref<2x10xf32, #tpu.memory_space<vmem>>, vector<2x10xf32>,
    return
  }
  func.func @transform_0(%arg0: i32) -> (i32, i32) {
    %c0_i32 = arith.constant 0 : i32
    %c0_i32_0 = arith.constant 0 : i32
    return %arg0, %c0_i32 : i32, i32
  }
  func.func @transform_1(%arg0: i32) -> (i32, i32) {
    %c0_i32 = arith.constant 0 : i32
    %c0_i32_0 = arith.constant 0 : i32
    %c0_i32_1 = arith.constant 0 : i32
    return %c0_i32, %c0_i32_0 : i32, i32
  }
  func.func @transform_2(%arg0: i32) -> (i32, i32) {
    %c0_i32 = arith.constant 0 : i32
    %c0_i32_0 = arith.constant 0 : i32
    %c0_i32_1 = arith.constant 0 : i32
    return %c0_i32, %c0_i32_0 : i32, i32
  }
  func.func @transform_3(%arg0: i32) -> (i32, i32) {
    %c0_i32 = arith.constant 0 : i32
    %c0_i32_0 = arith.constant 0 : i32
    %c0_i32_1 = arith.constant 0 : i32
    return %c0_i32, %c0_i32_0 : i32, i32
  }
  func.func @transform_4(%arg0: i32) -> (i32, i32) {
    %c0_i32 = arith.constant 0 : i32
    %c0_i32_0 = arith.constant 0 : i32
    %c0_i32_1 = arith.constant 0 : i32
    return %c0_i32, %c0_i32_0 : i32, i32
  }
  func.func @transform_5(%arg0: i32) -> (i32, i32) {
    %c0_i32 = arith.constant 0 : i32
    %c0_i32_0 = arith.constant 0 : i32
    return %arg0, %c0_i32 : i32, i32
  }
}

</mosaic_0001>

<bundles_post_ra>
// kernel: convnet_forward.2
= control target key start
LH: loop header
LB: loop body
LE: loop exit
PB: predicated region body
PF: predicated region fallthrough
CT: control target
= control target key end

     0   :  { %10 = vsyncpa [#allocation3], 0  ;;  %s4541_s0 = inlined_call_operand.vmem [shape: f32[2,40,28], index: 0, kind: input, shape index: {}]   ;;  %s4542_s1 = inlined_call_operand.vmem [shape: bf16[2,5,28,120], index: 1, kind: input, shape index: {}]   ;;  %s4543_s2 = inlined_call_operand.hbm [shape: f32[1,120], index: 2, kind: input, shape index: {}]   ;;  %s4544_s3 = inlined_call_operand.vmem [shape: bf16[3,120,200], index: 3, kind: input, shape index: {}]   ;;  %s4545_s4 = inlined_call_operand.hbm [shape: f32[1,200], index: 4, kind: input, shape index: {}]   ;;  %s4546_s5 = inlined_call_operand.vmem [shape: bf16[2,24,200], index: 5, kind: output, shape index: {}]  }
   0x1   :  { %11 = vsyncpa [#allocation5], 0  ;;  %s3568_s18 = smov [#allocation2]   ;;  %s3569_s20 = smov [#allocation4]  }
   0x2   :  { %s22_s19 = sshll.u32 %s3568_s18, 4  ;;  %s34_s21 = sshll.u32 %s3569_s20, 4  ;;  %s23_s19 = int_to_ptr.vmem [resolvable:$true] %s22_s19  ;;  %s35_s21 = int_to_ptr.vmem [resolvable:$true] %s34_s21 }
   0x3   :  { %s3520_s24 = scalar_lea.hbm %s4543_s2, 16 }
   0x4   :  { %p3521_p0 = scmp.ne.s32.totalorder %s4543_s2, %s3520_s24  ;;  %p3524_p1 = scmp.lt.u32.totalorder %s3520_s24, %s4543_s2 }
   0x6   :  { %p3526_p2 = pnand %p3524_p1, %p3521_p0 }
   0x8   :  { %3529 = shalt.err (!%p3526_p2)
}
   0x9   :  { %s3530_s29 = scalar_lea.vmem %s23_s19, 16  ;;  %s3534_s30 = scalar_lea.vmem %s23_s19, 32 }
   0xa   :  { %p3531_p3 = scmp.ne.s32.totalorder %s23_s19, %s3530_s29  ;;  %p3535_p4 = scmp.lt.s32.totalorder %s23_s19, %s23_s19 }
   0xb   :  { %p3536_p5 = scmp.lt.s32.totalorder %s3534_s30, %s3530_s29 }
   0xd   :  { %p3537_p6 = por %p3536_p5, %p3535_p4 }
   0xf   :  { %p3538_p7 = pnand %p3537_p6, %p3531_p3 }
  0x11   :  { %3541 = shalt.err (!%p3538_p7)
}
  0x12   :  { %25 = dma.hbm_to_vmem [thread:$0]  %s4543_s2, 16, %s23_s19, [#allocation3]  }
  0x13   :  { %s3542_s10 = scalar_lea.hbm %s4545_s4, 32 }
  0x14   :  { %p3543_p8 = scmp.ne.s32.totalorder %s4545_s4, %s3542_s10  ;;  %p3546_p9 = scmp.lt.u32.totalorder %s3542_s10, %s4545_s4 }
  0x16   :  { %p3548_p10 = pnand %p3546_p9, %p3543_p8 }
  0x18   :  { %3551 = shalt.err (!%p3548_p10)
}
  0x19   :  { %s3552_s15 = scalar_lea.vmem %s35_s21, 32  ;;  %p3557_p12 = scmp.lt.s32.totalorder %s35_s21, %s35_s21 }
  0x1a   :  { %p3553_p11 = scmp.ne.s32.totalorder %s35_s21, %s3552_s15  ;;  %p3558_p13 = scmp.lt.s32.totalorder %s3552_s15, %s3552_s15 }
  0x1c   :  { %p3559_p0 = por %p3558_p13, %p3557_p12 }
  0x1e   :  { %p3560_p1 = pnand %p3559_p0, %p3553_p11 }
  0x20   :  { %3563 = shalt.err (!%p3560_p1)
}
  0x21   :  { %37 = dma.hbm_to_vmem [thread:$0]  %s4545_s4, 32, %s35_s21, [#allocation5]  }
  0x22   :  { %3564 = dma.done.wait [#allocation3], 16  }
  0x23   :  { %3565 = vsyncadd [#allocation3], 4294967280 }
  0x24   :  { %3566 = dma.done.wait [#allocation5], 32  }
  0x25   :  { %3567 = vsyncadd [#allocation5], 4294967264  ;;  %v3628_v0 = vld [vmem:[%s4542_s1 + $0x10] sm:$0xff]   ;;  %v3633_v1 = vld [vmem:[%s4542_s1] sm:$0xff]   ;;  %vm100_vm0 = vcmask 1045504   ;;  %vm69_vm1 = vcmask 1046528  }
  0x26   :  { %3016 = vmatprep.subr.bf16.mxu1 %v3628_v0  ;;  %v3639_v2 = vld [vmem:[%s4542_s1 + $0x18] sm:$0x3f]   ;;  %3028 = vmatprep.subr.bf16.mxu0 %v3633_v1  ;;  %v3646_v3 = vld [vmem:[%s4542_s1 + $0x8] sm:$0x3f]   ;;  %v3658_v5 = vld [vmem:[%s4541_s0] sm:$0xff]  ;;  %vm244_vm2 = vcmask 228352  }
  0x27   :  { %3017 = vmatpush3.bf16.msra.mxu1 %v3628_v0  ;;  %3029 = vmatpush3.bf16.msra.mxu0 %v3633_v1  ;;  %v3653_v4 = vsel %vm100_vm0, %v3639_v2, 0  ;;  %v3663_v6 = vld [vmem:[%s4541_s0 + $0x8] sm:$0xff]  ;;  %v3668_v7 = vld [vmem:[%s4541_s0 + $0x10] sm:$0xff]  ;;  %v3674_v8 = vsel %vm100_vm0, %v3646_v3, 0  ;;  %v70_v9 = vrot.slane %v3658_v5, 1  ;;  %v3682_v12 = vld [vmem:[%s4541_s0 + $0x18] sm:$0xff] }
  0x28   :  { %3408 = vmatprep.subr.msk.bf16.mxu1 %vm100_vm0, %v3639_v2  ;;  %3409 = vmatprep.subr.msk.bf16.mxu0 %vm100_vm0, %v3646_v3  ;;  %v71_v10 = vrot.slane %v3663_v6, 1  ;;  %v73_v11 = vrot.slane %v3668_v7, 1  ;;  %v3687_v13 = vld [vmem:[%s4541_s0 + $0x20] sm:$0xff]  ;;  %v3691_v14 = vpack.c.bf16 %v3663_v6, %v3658_v5  ;;  %v75_v15 = vrot.slane %v3682_v12, 1  ;;  %v3710_v21 = vld [vmem:[%s4541_s0 + $0x28] sm:$0xff]  ;;  %v3715_v22 = vld [vmem:[%s4541_s0 + $0x30] sm:$0xff] }
  0x29   :  { %v77_v16 = vrot.slane %v3687_v13, 1  ;;  %v3697_v17 = vpack.c.bf16 %v3682_v12, %v3668_v7  ;;  %v3705_v20 = vld [vmem:[%s4542_s1 + $0x60] sm:$0xff]   ;;  %v101_v23 = vrot.slane %v3658_v5, 2  ;;  %v102_v24 = vrot.slane %v3663_v6, 2  ;;  %v3729_v28 = vld [vmem:[%s4541_s0 + $0x38] sm:$0xff]  ;;  %v3740_v31 = vld [vmem:[%s4541_s0 + $0x48] sm:$0xff] }
  0x2a   :  { %v72_v18 = vsel %vm69_vm1, %v70_v9, %v71_v10  ;;  %v74_v19 = vsel %vm69_vm1, %v71_v10, %v73_v11  ;;  %3032 = vmatprep.mubr.msk.bf16.mxu0 %vm244_vm2, %v3691_v14  ;;  %v76_v26 = vsel %vm69_vm1, %v73_v11, %v75_v15  ;;  %v79_v29 = vrot.slane %v3710_v21, 1  ;;  %v3735_v30 = vld [vmem:[%s4541_s0 + $0x40] sm:$0xff]  ;;  %v3769_v41 = vld [vmem:[%s4542_s1 + $0x68] sm:$0x3f]   ;;  %v3795_v49 = vld [vmem:[%s4542_s1 + $0x50] sm:$0xff]  }
  0x2b   :  { %3019 = vmatpush3.bf16.msra.mxu1 %v3653_v4  ;;  %3031 = vmatpush3.bf16.msra.mxu0 %v3674_v8  ;;  %v3720_v25 = vpack.c.bf16 %v74_v19, %v72_v18  ;;  %v78_v27 = vsel %vm69_vm1, %v75_v15, %v77_v16  ;;  %v80_v33 = vrot.slane %v3715_v22, 1  ;;  %v82_v34 = vrot.slane %v3729_v28, 1  ;;  %v3758_v38 = vld [vmem:[%s4542_s1 + $0x20] sm:$0xff]   ;;  %v3781_v45 = vld [vmem:[%s4542_s1 + $0x28] sm:$0x3f]   ;;  %v3817_v55 = vld [vmem:[%s4542_s1 + $0x30] sm:$0xff]  }
  0x2c   :  { %v3742_v32 = vpack.c.bf16 %v78_v27, %v76_v26  ;;  %3076 = vmatprep.subr.bf16.mxu1 %v3705_v20  ;;  %v3749_v35 = vpack.c.bf16 %v3715_v22, %v3710_v21  ;;  %v84_v36 = vrot.slane %v3735_v30, 1  ;;  %v86_v37 = vrot.slane %v3740_v31, 1  ;;  %3040 = vmatprep.subr.bf16.mxu0 %v3758_v38  ;;  %v3850_v18 = vld [vmem:[%s4542_s1 + $0x58] sm:$0x3f]  }
  0x2d   :  { %3020 = vmatprep.mubr.msk.bf16.mxu1 %vm244_vm2, %v3720_v25  ;;  %v81_v39 = vsel %vm69_vm1, %v79_v29, %v80_v33  ;;  %v83_v40 = vsel %vm69_vm1, %v80_v33, %v82_v34  ;;  %v104_v46 = vrot.slane %v3668_v7, 2  ;;  %v3789_v47 = vsel %vm100_vm0, %v3769_v41, 0  ;;  %v3855_v19 = vld [vmem:[%s4542_s1 + $0x38] sm:$0x3f]  }
  0x2e   :  { %3021 = vmatmul.mubr.msk.bf16.vlgmr.msra.gmra.mrb[0].mxu1 %vm244_vm2, %v3742_v32  ;;  %3033 = vmatmul.mubr.msk.bf16.vlgmr.msra.gmra.mrb[0].mxu0 %vm244_vm2, %v3697_v17  ;;  %v3772_v42 = vpack.c.bf16 %v83_v40, %v81_v39  ;;  %v85_v43 = vsel %vm69_vm1, %v82_v34, %v84_v36  ;;  %v87_v44 = vsel %vm69_vm1, %v84_v36, %v86_v37  ;;  %v3811_v53 = vsel %vm100_vm0, %v3781_v45, 0  ;;  %v3876_v34 = vld [vmem:[%s4542_s1 + $0x70] sm:$0xff]  }
  0x2f   :  { %3077 = vmatpush3.bf16.msra.mxu1 %v3705_v20  ;;  %3036 = vmatprep.mubr.msk.bf16.mxu0 %vm244_vm2, %v3749_v35  ;;  %v103_v48 = vsel %vm100_vm0, %v101_v23, %v102_v24  ;;  %v105_v50 = vsel %vm100_vm0, %v102_v24, %v104_v46  ;;  %v3801_v51 = vpack.c.bf16 %v87_v44, %v85_v43  ;;  %v106_v54 = vrot.slane %v3682_v12, 2 }
  0x30   :  { %3413 = vmatprep.subr.msk.bf16.mxu1 %vm100_vm0, %v3769_v41  ;;  %3024 = vmatprep.mubr.msk.bf16.mxu1 %vm244_vm2, %v3772_v42  ;;  %v3805_v52 = vpack.c.bf16 %v3735_v30, %v3729_v28  ;;  %v3820_v56 = vpack.c.bf16 %v105_v50, %v103_v48  ;;  %v108_v57 = vrot.slane %v3687_v13, 2  ;;  %v110_v58 = vrot.slane %v3710_v21, 2 }
  0x31   :  { %3041 = vmatpush3.bf16.msra.mxu0 %v3758_v38  ;;  %v111_v59 = vrot.slane %v3715_v22, 2  ;;  %v113_v60 = vrot.slane %v3729_v28, 2  ;;  %v107_v61 = vsel %vm100_vm0, %v104_v46, %v106_v54  ;;  %v115_v10 = vrot.slane %v3735_v30, 2 }
  0x32   :  { %3410 = vmatprep.subr.msk.bf16.mxu0 %vm100_vm0, %v3781_v45  ;;  %v109_v62 = vsel %vm100_vm0, %v106_v54, %v108_v57  ;;  %v117_v15 = vrot.slane %v3740_v31, 2  ;;  %v132_v23 = vrot.slane %v3658_v5, 3  ;;  %v133_v24 = vrot.slane %v3663_v6, 3  ;;  %v3902_v57 = vld [vmem:[%s4542_s1 + $0x40] sm:$0xff]  }
  0x33   :  { %3079 = vmatpush3.bf16.msra.mxu1 %v3789_v47  ;;  %v112_v63 = vsel %vm100_vm0, %v110_v58, %v111_v59  ;;  %v114_v9 = vsel %vm100_vm0, %v111_v59, %v113_v60  ;;  %v3842_v11 = vpack.c.bf16 %v109_v62, %v107_v61  ;;  %v135_v26 = vrot.slane %v3668_v7, 3 }
  0x34   :  { %3088 = vmatprep.subr.bf16.mxu1 %v3795_v49  ;;  %v3845_v16 = vpack.c.bf16 %v114_v9, %v112_v63  ;;  %vm131_vm3 = vcmask 1044480   ;;  %vm193_vm4 = vcmask 1042432   ;;  %v116_v27 = vsel %vm100_vm0, %v113_v60, %v115_v10 }
  0x35   :  { %3043 = vmatpush3.bf16.msra.mxu0 %v3811_v53  ;;  %v118_v29 = vsel %vm100_vm0, %v115_v10, %v117_v15  ;;  %v3871_v33 = vsel %vm100_vm0, %v3850_v18, 0  ;;  %v3884_v36 = vsel %vm100_vm0, %v3855_v19, 0  ;;  %v134_v37 = vsel %vm131_vm3, %v132_v23, %v133_v24 }
  0x36   :  { %3025 = vmatmul.mubr.msk.bf16.gmra.mrb[4].mxu1 %vm244_vm2, %v3801_v51  ;;  %3037 = vmatmul.mubr.msk.bf16.gmra.mrb[4].mxu0 %vm244_vm2, %v3805_v52  ;;  %v136_v39 = vsel %vm131_vm3, %v133_v24, %v135_v26  ;;  %v137_v40 = vrot.slane %v3682_v12, 3  ;;  %v139_v43 = vrot.slane %v3687_v13, 3  ;;  %v141_v44 = vrot.slane %v3710_v21, 3 }
  0x37   :  { %3044 = vmatprep.mubr.msk.bf16.mxu0 %vm244_vm2, %v3820_v56  ;;  %3080 = vmatprep.mubr.msk.bf16.mxu1 %vm244_vm2, %v3720_v25  ;;  %v194_v46 = vrot.slane %v3658_v5, 5  ;;  %v195_v48 = vrot.slane %v3663_v6, 5  ;;  %v3894_v50 = vpack.c.bf16 %v118_v29, %v116_v27  ;;  %v142_v54 = vrot.slane %v3715_v22, 3 }
  0x38   :  { %3052 = vmatprep.subr.bf16.mxu0 %v3817_v55  ;;  %v197_v58 = vrot.slane %v3668_v7, 5  ;;  %v199_v59 = vrot.slane %v3682_v12, 5  ;;  %v3907_v60 = vpack.c.bf16 %v136_v39, %v134_v37  ;;  %v144_v61 = vrot.slane %v3729_v28, 3 }
  0x39   :  { %v196_v62 = vsel %vm193_vm4, %v194_v46, %v195_v48  ;;  %v201_v63 = vrot.slane %v3687_v13, 5  ;;  %v203_v15 = vrot.slane %v3710_v21, 5  ;;  %v204_v23 = vrot.slane %v3715_v22, 5 }
  0x3a   :  { %v198_v9 = vsel %vm193_vm4, %v195_v48, %v197_v58  ;;  %v200_v10 = vsel %vm193_vm4, %v197_v58, %v199_v59  ;;  %v206_v29 = vrot.slane %v3729_v28, 5  ;;  %v208_v37 = vrot.slane %v3735_v30, 5 }
  0x3b   :  { %v3918_v24 = vpack.c.bf16 %v198_v9, %v196_v62  ;;  %v202_v27 = vsel %vm193_vm4, %v199_v59, %v201_v63  ;;  %v138_v39 = vsel %vm131_vm3, %v135_v26, %v137_v40  ;;  %v205_v48 = vsel %vm193_vm4, %v203_v15, %v204_v23 }
  0x3c   :  { %v3928_v46 = vpack.c.bf16 %v202_v27, %v200_v10  ;;  %v210_v58 = vrot.slane %v3740_v31, 5  ;;  %v140_v59 = vsel %vm131_vm3, %v137_v40, %v139_v43  ;;  %v207_v62 = vsel %vm193_vm4, %v204_v23, %v206_v29 }
  0x3d   :  { %v209_v63 = vsel %vm193_vm4, %v206_v29, %v208_v37  ;;  %v143_v26 = vsel %vm131_vm3, %v141_v44, %v142_v54  ;;  %v145_v9 = vsel %vm131_vm3, %v142_v54, %v144_v61  ;;  %v3942_v10 = vpack.c.bf16 %v207_v62, %v205_v48 }
  0x3e   :  { %3045 = vmatmul.mubr.msk.bf16.vlgmr.msra.gmra.mrb[0].mxu0 %vm244_vm2, %v3842_v11  ;;  %3081 = vmatmul.mubr.msk.bf16.vlgmr.msra.gmra.mrb[8].mxu1 %vm244_vm2, %v3742_v32  ;;  %4548 = vst [vmem:[#allocation8_spill] sm:$0xff] %v3928_v46  ;;  %v211_v15 = vsel %vm193_vm4, %v208_v37, %v210_v58  ;;  %v3947_v46 = vpack.c.bf16 %v140_v59, %v138_v39  ;;  %v146_v43 = vrot.slane %v3735_v30, 3  ;;  %v148_v44 = vrot.slane %v3740_v31, 3  ;;  %v3968_v37 = vld [vmem:[%s4542_s1 + $0x48] sm:$0x3f]  }
  0x3f   :  { %3089 = vmatpush3.bf16.msra.mxu1 %v3795_v49  ;;  %3048 = vmatprep.mubr.msk.bf16.mxu0 %vm244_vm2, %v3845_v16  ;;  %v3945_v27 = vpack.c.bf16 %v211_v15, %v209_v63  ;;  %v3954_v40 = vpack.c.bf16 %v145_v9, %v143_v26  ;;  %v163_v54 = vrot.slane %v3658_v5, 4  ;;  %v164_v23 = vrot.slane %v3663_v6, 4 }
  0x40   :  { %3084 = vmatprep.mubr.msk.bf16.mxu1 %vm244_vm2, %v3772_v42  ;;  %3414 = vmatprep.subr.msk.bf16.mxu1 %vm100_vm0, %v3850_v18  ;;  %v166_v29 = vrot.slane %v3668_v7, 4  ;;  %vm162_vm5 = vcmask 1043456   ;;  %v147_v5 = vsel %vm131_vm3, %v144_v61, %v146_v43  ;;  %v149_v6 = vsel %vm131_vm3, %v146_v43, %v148_v44  ;;  %v3988_v61 = vld [vmem:[%s4542_s1 + $0x80] sm:$0xff]   ;;  %v4031_v44 = vld [vmem:[%s4542_s1 + $0x88] sm:$0x3f]  }
  0x41   :  { %3053 = vmatpush3.bf16.msra.mxu0 %v3817_v55  ;;  %v3991_v48 = vpack.c.bf16 %v149_v6, %v147_v5  ;;  %v168_v58 = vrot.slane %v3682_v12, 4  ;;  %v170_v62 = vrot.slane %v3687_v13, 4  ;;  %v172_v63 = vrot.slane %v3710_v21, 4  ;;  %v3489_v5 = vld [vmem:[%s4544_s3 + $0xcc] ss:$8 sps:$4 sm:$0xff]  }
  0x42   :  { %3411 = vmatprep.subr.msk.bf16.mxu0 %vm100_vm0, %v3855_v19  ;;  %v167_v39 = vsel %vm162_vm5, %v164_v23, %v166_v29  ;;  %v173_v26 = vrot.slane %v3715_v22, 4  ;;  %v175_v9 = vrot.slane %v3729_v28, 4  ;;  %v179_v43 = vrot.slane %v3740_v31, 4 }
  0x43   :  { %3091 = vmatpush3.bf16.msra.mxu1 %v3871_v33  ;;  %v169_v12 = vsel %vm162_vm5, %v166_v29, %v168_v58  ;;  %v171_v13 = vsel %vm162_vm5, %v168_v58, %v170_v62  ;;  %v3492_v62 = vld [vmem:[%s4544_s3 + $0xd8] ss:$8 sps:$4 sm:$0xff]   ;;  %vm1969_vm6 = vcmask 1046532   ;;  %vm2326_vm7 = vcmask 1041408  }
  0x44   :  { %3100 = vmatprep.subr.bf16.mxu1 %v3876_v34  ;;  %v174_v21 = vsel %vm162_vm5, %v172_v63, %v173_v26  ;;  %v176_v22 = vsel %vm162_vm5, %v173_v26, %v175_v9  ;;  %v4022_v28 = vpack.c.bf16 %v171_v13, %v169_v12  ;;  %vm2327_vm8 = vcmask 1045508   ;;  %vm4384_vm10 = vmor %vm193_vm4, %vm1969_vm6 }
  0x45   :  { %3055 = vmatpush3.bf16.msra.mxu0 %v3884_v36  ;;  %v4024_v15 = vpack.c.bf16 %v176_v22, %v174_v21  ;;  %v2790_v21 = vld [vmem:[%s4544_s3 + $0xe8] sm:$0xff]  ;;  %vm2091_vm9 = vcmask 982016   ;;  %vm4393_vm11 = vmor %vm2326_vm7, %vm2327_vm8  ;;  %vm2615_vm12 = vcmask 588804  }
  0x46   :  { %3049 = vmatmul.mubr.msk.bf16.gmra.mrb[4].mxu0 %vm244_vm2, %v3894_v50  ;;  %3085 = vmatmul.mubr.msk.bf16.gmra.mrb[12].mxu1 %vm244_vm2, %v3801_v51  ;;  %vm4507_vm13 = vmor %vm2615_vm12, %vm162_vm5 }
  0x47   :  { %3056 = vmatprep.mubr.msk.bf16.mxu0 %vm244_vm2, %v3907_v60  ;;  %3092 = vmatprep.mubr.msk.bf16.mxu1 %vm244_vm2, %v3691_v14  ;;  %v3952_v14 = vld [vmem:[%s4542_s1 + $0x78] sm:$0x3f]  }
  0x48   :  { %3064 = vmatprep.subr.bf16.mxu0 %v3902_v57  ;;  %v3981_v7 = vsel %vm100_vm0, %v3952_v14, 0 }
  0x4e   :  { %3057 = vmatmul.mubr.msk.bf16.vlgmr.msra.gmra.mrb[0].mxu0 %vm244_vm2, %v3947_v46  ;;  %3093 = vmatmul.mubr.msk.bf16.vlgmr.msra.gmra.mrb[8].mxu1 %vm244_vm2, %v3697_v17  ;;  %v165_v17 = vsel %vm162_vm5, %v163_v54, %v164_v23  ;;  %v4048_v54 = vsel %vm100_vm0, %v4031_v44, 0  ;;  %v4053_v23 = vld [vmem:[%s4542_s1 + $0x90] sm:$0xff]  }
  0x4f   :  { %3101 = vmatpush3.bf16.msra.mxu1 %v3876_v34  ;;  %3060 = vmatprep.mubr.msk.bf16.mxu0 %vm244_vm2, %v3954_v40  ;;  %v4001_v59 = vpack.c.bf16 %v167_v39, %v165_v17 }
  0x50   :  { %3096 = vmatprep.mubr.msk.bf16.mxu1 %vm244_vm2, %v3749_v35  ;;  %3415 = vmatprep.subr.msk.bf16.mxu1 %vm100_vm0, %v3952_v14  ;;  %v3997_v35 = vsel %vm100_vm0, %v3968_v37, 0 }
  0x51   :  { %3065 = vmatpush3.bf16.msra.mxu0 %v3902_v57 }
  0x52   :  { %3412 = vmatprep.subr.msk.bf16.mxu0 %vm100_vm0, %v3968_v37 }
  0x53   :  { %3103 = vmatpush3.bf16.msra.mxu1 %v3981_v7 }
  0x54   :  { %3112 = vmatprep.subr.bf16.mxu1 %v3988_v61 }
  0x55   :  { %3067 = vmatpush3.bf16.msra.mxu0 %v3997_v35 }
  0x56   :  { %3061 = vmatmul.mubr.msk.bf16.gmra.mrb[4].mxu0 %vm244_vm2, %v3991_v48  ;;  %3097 = vmatmul.mubr.msk.bf16.gmra.mrb[12].mxu1 %vm244_vm2, %v3805_v52  ;;  %v177_v52 = vrot.slane %v3735_v30, 4 }
  0x57   :  { %3068 = vmatprep.mubr.msk.bf16.mxu0 %vm244_vm2, %v4001_v59  ;;  %3104 = vmatprep.mubr.msk.bf16.mxu1 %vm244_vm2, %v3820_v56 }
  0x58   :  { %3136 = vmatprep.subr.bf16.mxu0 %v3628_v0  ;;  %v178_v30 = vsel %vm162_vm5, %v175_v9, %v177_v52  ;;  %v180_v31 = vsel %vm162_vm5, %v177_v52, %v179_v43  ;;  %v3570_v9 = vmov 0  }
  0x59   :  { %v4056_v29 = vpack.c.bf16 %v180_v31, %v178_v30 }
  0x5e   :  { %3069 = vmatmul.mubr.msk.bf16.vlgmr.msra.gmra.mrb[0].mxu0 %vm244_vm2, %v4022_v28  ;;  %3105 = vmatmul.mubr.msk.bf16.vlgmr.msra.gmra.mrb[8].mxu1 %vm244_vm2, %v3842_v11 }
  0x5f   :  { %3113 = vmatpush3.bf16.msra.mxu1 %v3988_v61  ;;  %3072 = vmatprep.mubr.msk.bf16.mxu0 %vm244_vm2, %v4024_v15 }
  0x60   :  { %3108 = vmatprep.mubr.msk.bf16.mxu1 %vm244_vm2, %v3845_v16  ;;  %3416 = vmatprep.subr.msk.bf16.mxu1 %vm100_vm0, %v4031_v44 }
  0x61   :  { %3137 = vmatpush3.bf16.msra.mxu0 %v3628_v0  ;;  %v4075_v0 = vld [vmem:[%s4542_s1 + $0x98] sm:$0x3f]  }
  0x62   :  { %3418 = vmatprep.subr.msk.bf16.mxu0 %vm100_vm0, %v3639_v2  ;;  %v4090_v2 = vsel %vm100_vm0, %v4075_v0, 0 }
  0x63   :  { %3115 = vmatpush3.bf16.msra.mxu1 %v4048_v54 }
  0x64   :  { %3124 = vmatprep.subr.bf16.mxu1 %v4053_v23 }
  0x65   :  { %3139 = vmatpush3.bf16.msra.mxu0 %v3653_v4 }
  0x66   :  { %3073 = vmatmul.mubr.msk.bf16.gmra.mrb[4].mxu0 %vm244_vm2, %v4056_v29  ;;  %3109 = vmatmul.mubr.msk.bf16.gmra.mrb[12].mxu1 %vm244_vm2, %v3894_v50 }
  0x67   :  { %3116 = vmatprep.mubr.msk.bf16.mxu1 %vm244_vm2, %v3907_v60  ;;  %3140 = vmatprep.mubr.msk.bf16.mxu0 %vm244_vm2, %v3820_v56 }
  0x68   :  { %3148 = vmatprep.subr.bf16.mxu0 %v3633_v1 }
  0x6e   :  { %3117 = vmatmul.mubr.msk.bf16.vlgmr.msra.gmra.mrb[8].mxu1 %vm244_vm2, %v3947_v46  ;;  %3141 = vmatmul.mubr.msk.bf16.vlgmr.msra.gmra.mrb[8].mxu0 %vm244_vm2, %v3842_v11 }
  0x6f   :  { %3125 = vmatpush3.bf16.msra.mxu1 %v4053_v23  ;;  %3120 = vmatprep.mubr.msk.bf16.mxu1 %vm244_vm2, %v3954_v40 }
  0x70   :  { %3144 = vmatprep.mubr.msk.bf16.mxu0 %vm244_vm2, %v3845_v16  ;;  %3417 = vmatprep.subr.msk.bf16.mxu1 %vm100_vm0, %v4075_v0 }
  0x71   :  { %3149 = vmatpush3.bf16.msra.mxu0 %v3633_v1  ;;  %v4549_v1 = vld [vmem:[#allocation8_spill] sm:$0xff] }
  0x72   :  { %3419 = vmatprep.subr.msk.bf16.mxu0 %vm100_vm0, %v3646_v3 }
  0x73   :  { %3127 = vmatpush3.bf16.msra.mxu1 %v4090_v2 }
  0x74   :  { %3196 = vmatprep.subr.bf16.mxu1 %v3705_v20 }
  0x75   :  { %3151 = vmatpush3.bf16.msra.mxu0 %v3674_v8 }
  0x76   :  { %3121 = vmatmul.mubr.msk.bf16.gmra.mrb[12].mxu1 %vm244_vm2, %v3991_v48  ;;  %3145 = vmatmul.mubr.msk.bf16.gmra.mrb[12].mxu0 %vm244_vm2, %v3894_v50 }
  0x77   :  { %3128 = vmatprep.mubr.msk.bf16.mxu1 %vm244_vm2, %v4001_v59  ;;  %3152 = vmatprep.mubr.msk.bf16.mxu0 %vm244_vm2, %v3720_v25 }
  0x78   :  { %3160 = vmatprep.subr.bf16.mxu0 %v3758_v38 }
  0x7e   :  { %3129 = vmatmul.mubr.msk.bf16.vlgmr.msra.gmra.mrb[8].mxu1 %vm244_vm2, %v4022_v28  ;;  %3153 = vmatmul.mubr.msk.bf16.vlgmr.msra.gmra.mrb[8].mxu0 %vm244_vm2, %v3742_v32 }
  0x7f   :  { %3197 = vmatpush3.bf16.msra.mxu1 %v3705_v20  ;;  %3132 = vmatprep.mubr.msk.bf16.mxu1 %vm244_vm2, %v4024_v15 }
  0x80   :  { %3156 = vmatprep.mubr.msk.bf16.mxu0 %vm244_vm2, %v3772_v42  ;;  %3423 = vmatprep.subr.msk.bf16.mxu1 %vm100_vm0, %v3769_v41 }
  0x81   :  { %3161 = vmatpush3.bf16.msra.mxu0 %v3758_v38 }
  0x82   :  { %3420 = vmatprep.subr.msk.bf16.mxu0 %vm100_vm0, %v3781_v45  ;;  %v3453_v45 = vld [vmem:[%s4544_s3 + $0x4] ss:$8 sps:$4 sm:$0xff]  }
  0x83   :  { %3199 = vmatpush3.bf16.msra.mxu1 %v3789_v47  ;;  %v3456_v47 = vld [vmem:[%s4544_s3 + $0x14] ss:$8 sps:$4 sm:$0xff]  }
  0x84   :  { %3208 = vmatprep.subr.bf16.mxu1 %v3795_v49 }
  0x85   :  { %3163 = vmatpush3.bf16.msra.mxu0 %v3811_v53  ;;  %v3454_v53 = vld [vmem:[%s4544_s3 + $0x10] ss:$8 sps:$4 sm:$0xff]  }
  0x86   :  { %3133 = vmatmul.mubr.msk.bf16.gmra.mrb[12].mxu1 %vm244_vm2, %v4056_v29  ;;  %3157 = vmatmul.mubr.msk.bf16.gmra.mrb[12].mxu0 %vm244_vm2, %v3801_v51 }
  0x87   :  { %3164 = vmatprep.mubr.msk.bf16.mxu0 %vm244_vm2, %v3907_v60  ;;  %3200 = vmatprep.mubr.msk.bf16.mxu1 %vm244_vm2, %v3820_v56  ;;  %v3462_v56 = vld [vmem:[%s4544_s3 + $0x24] ss:$8 sps:$4 sm:$0xff]  }
  0x88   :  { %3172 = vmatprep.subr.bf16.mxu0 %v3817_v55 }
  0x8e   :  { %3165 = vmatmul.mubr.msk.bf16.vlgmr.msra.gmra.mrb[8].mxu0 %vm244_vm2, %v3947_v46  ;;  %3201 = vmatmul.mubr.msk.bf16.vlgmr.msra.gmra.mrb[16].mxu1 %vm244_vm2, %v3842_v11  ;;  %v3463_v11 = vld [vmem:[%s4544_s3 + $0x88] ss:$8 sps:$4 sm:$0xff]  }
  0x8f   :  { %3209 = vmatpush3.bf16.msra.mxu1 %v3795_v49  ;;  %3168 = vmatprep.mubr.msk.bf16.mxu0 %vm244_vm2, %v3954_v40  ;;  %v3457_v49 = vld [vmem:[%s4544_s3 + $0x78] ss:$8 sps:$4 sm:$0xff]  }
  0x90   :  { %3204 = vmatprep.mubr.msk.bf16.mxu1 %vm244_vm2, %v3845_v16  ;;  %3424 = vmatprep.subr.msk.bf16.mxu1 %vm100_vm0, %v3850_v18  ;;  %v3471_v16 = vld [vmem:[%s4544_s3 + $0x9c] ss:$8 sps:$4 sm:$0xff]   ;;  %v3460_v18 = vld [vmem:[%s4544_s3 + $0x20] ss:$8 sps:$4 sm:$0xff]  }
  0x91   :  { %3173 = vmatpush3.bf16.msra.mxu0 %v3817_v55  ;;  %v3465_v55 = vld [vmem:[%s4544_s3 + $0x8c] ss:$8 sps:$4 sm:$0xff]  }
  0x92   :  { %3421 = vmatprep.subr.msk.bf16.mxu0 %vm100_vm0, %v3855_v19  ;;  %v3468_v19 = vld [vmem:[%s4544_s3 + $0x34] ss:$8 sps:$4 sm:$0xff]  }
  0x93   :  { %3211 = vmatpush3.bf16.msra.mxu1 %v3871_v33  ;;  %v3469_v33 = vld [vmem:[%s4544_s3 + $0x98] ss:$8 sps:$4 sm:$0xff]  }
  0x94   :  { %3220 = vmatprep.subr.bf16.mxu1 %v3876_v34 }
  0x95   :  { %3175 = vmatpush3.bf16.msra.mxu0 %v3884_v36  ;;  %v3474_v36 = vld [vmem:[%s4544_s3 + $0x44] ss:$8 sps:$4 sm:$0xff]  }
  0x96   :  { %3169 = vmatmul.mubr.msk.bf16.gmra.mrb[12].mxu0 %vm244_vm2, %v3991_v48  ;;  %3205 = vmatmul.mubr.msk.bf16.gmra.mrb[20].mxu1 %vm244_vm2, %v3894_v50  ;;  %v3472_v50 = vld [vmem:[%s4544_s3 + $0x40] ss:$8 sps:$4 sm:$0xff]  }
  0x97   :  { %3176 = vmatprep.mubr.msk.bf16.mxu0 %vm244_vm2, %v4001_v59  ;;  %3212 = vmatprep.mubr.msk.bf16.mxu1 %vm244_vm2, %v3720_v25 }
  0x98   :  { %3184 = vmatprep.subr.bf16.mxu0 %v3902_v57 }
  0x9e   :  { %3177 = vmatmul.mubr.msk.bf16.vlgmr.msra.gmra.mrb[8].mxu0 %vm244_vm2, %v4022_v28  ;;  %3213 = vmatmul.mubr.msk.bf16.vlgmr.msra.gmra.mrb[16].mxu1 %vm244_vm2, %v3742_v32 }
  0x9f   :  { %3221 = vmatpush3.bf16.msra.mxu1 %v3876_v34  ;;  %3180 = vmatprep.mubr.msk.bf16.mxu0 %vm244_vm2, %v4024_v15  ;;  %v3466_v34 = vld [vmem:[%s4544_s3 + $0x30] ss:$8 sps:$4 sm:$0xff]  }
  0xa0   :  { %3216 = vmatprep.mubr.msk.bf16.mxu1 %vm244_vm2, %v3772_v42  ;;  %3425 = vmatprep.subr.msk.bf16.mxu1 %vm100_vm0, %v3952_v14  ;;  %v3451_v42 = vld [vmem:[%s4544_s3] ss:$8 sps:$4 sm:$0xff]  }
  0xa1   :  { %3185 = vmatpush3.bf16.msra.mxu0 %v3902_v57  ;;  %v3477_v57 = vld [vmem:[%s4544_s3 + $0xac] ss:$8 sps:$4 sm:$0xff]   ;;  %v3481_v14 = vld [vmem:[%s4544_s3 + $0xb8] ss:$8 sps:$4 sm:$0xff]  }
  0xa2   :  { %3422 = vmatprep.subr.msk.bf16.mxu0 %vm100_vm0, %v3968_v37  ;;  %v1957_v37 = vld [vmem:[%s4544_s3 + $0x70] sm:$0xff] }
  0xa3   :  { %3223 = vmatpush3.bf16.msra.mxu1 %v3981_v7  ;;  %v2830_v6 = vcombine.high %v1957_v37, %v1957_v37  ;;  %v3487_v7 = vld [vmem:[%s4544_s3 + $0xc8] ss:$8 sps:$4 sm:$0xff]   ;;  %v2829_v17 = vcombine.low %v1957_v37, %v1957_v37 }
  0xa4   :  { %3232 = vmatprep.subr.bf16.mxu1 %v3988_v61 }
  0xa5   :  { %3187 = vmatpush3.bf16.msra.mxu0 %v3997_v35  ;;  %v2258_v39 = vsel %vm162_vm5, %v2829_v17, 0  ;;  %v3497_v35 = vld [vmem:[%s4544_s3 + $0xf4] ss:$8 sps:$4 sm:$0xff]  }
  0xa6   :  { %3181 = vmatmul.mubr.msk.bf16.gmra.mrb[12].mxu0 %vm244_vm2, %v4056_v29  ;;  %3217 = vmatmul.mubr.msk.bf16.gmra.mrb[20].mxu1 %vm244_vm2, %v3801_v51  ;;  %v3459_v51 = vld [vmem:[%s4544_s3 + $0x7c] ss:$8 sps:$4 sm:$0xff]  }
  0xa7   :  { %3188 = vmatprep.mubr.msk.bf16.mxu0 %vm244_vm2, %v3918_v24  ;;  %3224 = vmatprep.mubr.msk.bf16.mxu1 %vm244_vm2, %v3907_v60  ;;  %v3480_v60 = vld [vmem:[%s4544_s3 + $0x54] ss:$8 sps:$4 sm:$0xff]  }
  0xa8   :  { %2263 = vmatprep.subr.bf16.mxu0 %v3453_v45 }
  0xae   :  { %3189 = vmatmul.mubr.msk.bf16.vlgmr.msra.gmra.mrb[8].mxu0 %vm244_vm2, %v4549_v1  ;;  %3225 = vmatmul.mubr.msk.bf16.vlgmr.msra.gmra.mrb[16].mxu1 %vm244_vm2, %v3947_v46  ;;  %v3478_v46 = vld [vmem:[%s4544_s3 + $0x50] ss:$8 sps:$4 sm:$0xff]  }
  0xaf   :  { %3233 = vmatpush3.bf16.msra.mxu1 %v3988_v61  ;;  %3192 = vmatprep.mubr.msk.bf16.mxu0 %vm244_vm2, %v3942_v10 }
  0xb0   :  { %3228 = vmatprep.mubr.msk.bf16.mxu1 %vm244_vm2, %v3954_v40  ;;  %3426 = vmatprep.subr.msk.bf16.mxu1 %vm100_vm0, %v4031_v44  ;;  %v3484_v40 = vld [vmem:[%s4544_s3 + $0x60] ss:$8 sps:$4 sm:$0xff]  }
  0xb1   :  { %2264 = vmatpush1.bf16.msra.mxu0 %v3451_v42 }
  0xb2   :  { %2265 = vmatprep.subr.bf16.mxu0 %v3456_v47 }
  0xb3   :  { %3235 = vmatpush3.bf16.msra.mxu1 %v4048_v54 }
  0xb4   :  { %3244 = vmatprep.subr.bf16.mxu1 %v4053_v23 }
  0xb5   :  { %2266 = vmatpush1.bf16.msra.mxu0 %v3454_v53 }
  0xb6   :  { %3193 = vmatmul.mubr.msk.bf16.gmra.mrb[12].mxu0 %vm244_vm2, %v3945_v27  ;;  %3229 = vmatmul.mubr.msk.bf16.gmra.mrb[20].mxu1 %vm244_vm2, %v3991_v48  ;;  %v3494_v48 = vld [vmem:[%s4544_s3 + $0xdc] ss:$8 sps:$4 sm:$0xff]  }
  0xb7   :  { %3236 = vmatprep.mubr.msk.bf16.mxu1 %vm244_vm2, %v4001_v59  ;;  %2267 = vmatprep.subr.bf16.mxu0 %v3462_v56 }
  0xb8   :  { %2295 = vmatprep.mubr.bf16.mxu0 %v3570_v9 }
  0xb9   :  { %2268 = vmatpush1.bf16.msra.mxu0 %v3460_v18 }
  0xba   :  { %2269 = vmatprep.subr.bf16.mxu0 %v3468_v19 }
  0xbd   :  { %2270 = vmatpush1.bf16.msra.mxu0 %v3466_v34 }
  0xbe   :  { %3237 = vmatmul.mubr.msk.bf16.vlgmr.msra.gmra.mrb[16].mxu1 %vm244_vm2, %v4022_v28  ;;  %2271 = vmatprep.subr.bf16.mxu0 %v3474_v36  ;;  %v2809_v28 = vcombine.high %v2790_v21, %v2790_v21 }
  0xbf   :  { %3245 = vmatpush3.bf16.msra.mxu1 %v4053_v23  ;;  %3240 = vmatprep.mubr.msk.bf16.mxu1 %vm244_vm2, %v4024_v15  ;;  %v2808_v15 = vcombine.low %v2790_v21, %v2790_v21 }
  0xc0   :  { %3427 = vmatprep.subr.msk.bf16.mxu1 %vm100_vm0, %v4075_v0 }
  0xc1   :  { %2272 = vmatpush1.bf16.msra.mxu0 %v3472_v50  ;;  %v2102_v52 = vsel %vm162_vm5, %v2808_v15, 0 }
  0xc2   :  { %2273 = vmatprep.subr.bf16.mxu0 %v3480_v60  ;;  %v4369_v60 = vld [vmem:[#allocation2] ss:$0 sm:$0xff] }
  0xc3   :  { %3247 = vmatpush3.bf16.msra.mxu1 %v4090_v2 }
  0xc4   :  { %2107 = vmatprep.subr.bf16.mxu1 %v3459_v51 }
  0xc5   :  { %2274 = vmatpush1.bf16.msra.mxu0 %v3478_v46 }
  0xc6   :  { %3241 = vmatmul.mubr.msk.bf16.gmra.mrb[20].mxu1 %vm244_vm2, %v4056_v29 }
  0xc7   :  { %3248 = vmatprep.mubr.msk.bf16.mxu1 %vm244_vm2, %v3918_v24  ;;  %v3475_v24 = vld [vmem:[%s4544_s3 + $0xa8] ss:$8 sps:$4 sm:$0xff]  }
  0xce   :  { %3249 = vmatmul.mubr.msk.bf16.vlgmr.msra.gmra.mrb[16].mxu1 %vm244_vm2, %v4549_v1 }
  0xcf   :  { %3252 = vmatprep.mubr.msk.bf16.mxu1 %vm244_vm2, %v3942_v10  ;;  %2108 = vmatpush1.bf16.msra.mxu1 %v3457_v49  ;;  %v3483_v10 = vld [vmem:[%s4544_s3 + $0xbc] ss:$8 sps:$4 sm:$0xff]  }
  0xd0   :  { %2109 = vmatprep.subr.bf16.mxu1 %v3465_v55 }
  0xd3   :  { %2110 = vmatpush1.bf16.msra.mxu1 %v3463_v11 }
  0xd4   :  { %2111 = vmatprep.subr.bf16.mxu1 %v3471_v16 }
  0xd6   :  { %3253 = vmatmul.mubr.msk.bf16.gmra.mrb[20].mxu1 %vm244_vm2, %v3945_v27  ;;  %v3486_v27 = vld [vmem:[%s4544_s3 + $0x64] ss:$8 sps:$4 sm:$0xff]  }
  0xd7   :  { %2112 = vmatpush1.bf16.msra.mxu1 %v3469_v33  ;;  %2275 = vmatprep.subr.bf16.mxu0 %v3486_v27 }
  0xd8   :  { %2113 = vmatprep.subr.bf16.mxu1 %v3477_v57  ;;  %2276 = vmatpush1.bf16.msra.mxu0 %v3484_v40 }
  0xd9   :  { %2831 = vmatprep.subr.msk.bf16.mxu0 %vm162_vm5, %v2830_v6  ;;  %2139 = vmatprep.mubr.bf16.mxu1 %v3570_v9 }
  0xdb   :  { %2114 = vmatpush1.bf16.msra.mxu1 %v3475_v24 }
  0xdc   :  { %2115 = vmatprep.subr.bf16.mxu1 %v3483_v10  ;;  %2278 = vmatpush1.bf16.msra.mxu0 %v2258_v39 }
  0xdd   :  { %2464 = vmatprep.subr.bf16.mxu0 %v3497_v35 }
  0xdf   :  { %2116 = vmatpush1.bf16.msra.mxu1 %v3481_v14 }
  0xe0   :  { %2117 = vmatprep.subr.bf16.mxu1 %v3489_v5 }
  0xe3   :  { %2118 = vmatpush1.bf16.msra.mxu1 %v3487_v7 }
  0xe4   :  { %2119 = vmatprep.subr.bf16.mxu1 %v3494_v48 }
  0xe7   :  { %2120 = vmatpush1.bf16.msra.mxu1 %v3492_v62 }
  0xe8   :  { %2810 = vmatprep.subr.msk.bf16.mxu1 %vm162_vm5, %v2809_v28 }
  0xeb   :  { %2122 = vmatpush1.bf16.msra.mxu1 %v2102_v52 }
 0x101   :  { %v4221_v3 = vpop.f32.mrb[0].mxu1 }
 0x102   :  { %v4223_v4 = vpop.f32.mrb[1].mxu1 }
 0x103   :  { %v4225_v8 = vpop.f32.mrb[2].mxu1 }
 0x104   :  { %v4227_v20 = vpop.f32.mrb[3].mxu1 }
 0x109   :  { %v4229_v25 = vpop.f32.mrb[4].mxu1 }
 0x10a   :  { %v4231_v32 = vpop.f32.mrb[5].mxu1 }
 0x10b   :  { %v4233_v38 = vpop.f32.mrb[6].mxu1 }
 0x10c   :  { %v4235_v41 = vpop.f32.mrb[7].mxu1 }
 0x131   :  { %v3070_v61 = vpop.f32.mrb[0].mxu0 }
 0x132   :  { %v3256_v58 = vadd.f32 %v3070_v61, %v4221_v3  ;;  %v689_v59 = vpop.f32.mrb[1].mxu0 }
 0x133   :  { %v3257_v63 = vadd.f32 %v689_v59, %v4223_v4  ;;  %v3071_v26 = vpop.f32.mrb[2].mxu0 }
 0x134   :  { %v3258_v12 = vadd.f32 %v3071_v26, %v4225_v8  ;;  %v692_v13 = vpop.f32.mrb[3].mxu0 }
 0x135   :  { %v3259_v22 = vadd.f32 %v692_v13, %v4227_v20 }
 0x139   :  { %v3074_v43 = vpop.f32.mrb[4].mxu0 }
 0x13a   :  { %v4341_v44 = vadd.f32 %v3074_v43, %v4229_v25  ;;  %v705_v30 = vpop.f32.mrb[5].mxu0 }
 0x13b   :  { %v4344_v31 = vadd.f32 %v705_v30, %v4231_v32  ;;  %v3075_v54 = vpop.f32.mrb[6].mxu0  ;;  %v3495_v30 = vld [vmem:[%s4544_s3 + $0xf0] ss:$8 sps:$4 sm:$0xff]  }
 0x13c   :  { %v4347_v23 = vadd.f32 %v3075_v54, %v4233_v38  ;;  %v708_v29 = vpop.f32.mrb[7].mxu0 }
 0x13d   :  { %v4350_v0 = vadd.f32 %v708_v29, %v4235_v41 }
 0x151   :  { %v3130_v2 = vpop.f32.mrb[8].mxu1 }
 0x152   :  { %v1884_v1 = vmax.f32 %v3256_v58, %v3130_v2  ;;  %v1133_v3 = vpop.f32.mrb[9].mxu1 }
 0x153   :  { %v1882_v4 = vmax.f32 %v3257_v63, %v1133_v3  ;;  %v3131_v8 = vpop.f32.mrb[10].mxu1  ;;  %v3517_v3 = vld [vmem:[%s4544_s3 + $0x154] ss:$8 sps:$4 sm:$0xff]  }
 0x154   :  { %v1885_v20 = vmax.f32 %v3258_v12, %v3131_v8  ;;  %v1136_v25 = vpop.f32.mrb[11].mxu1 }
 0x155   :  { %v1883_v42 = vmax.f32 %v3259_v22, %v1136_v25 }
 0x159   :  { %v3134_v45 = vpop.f32.mrb[12].mxu1 }
 0x15a   :  { %v1888_v32 = vmax.f32 %v4341_v44, %v3134_v45  ;;  %v4353_v47 = vpop.f32.mrb[13].mxu1  ;;  %v2851_v45 = vld [vmem:[%s4544_s3 + $0x160] sm:$0xff] }
 0x15b   :  { %v1886_v38 = vmax.f32 %v4344_v31, %v4353_v47  ;;  %v4357_v49 = vpop.f32.mrb[14].mxu1 }
 0x15c   :  { %v1889_v41 = vmax.f32 %v4347_v23, %v4357_v49  ;;  %v4361_v51 = vpop.f32.mrb[15].mxu1 }
 0x15d   :  { %v1887_v53 = vmax.f32 %v4350_v0, %v4361_v51 }
 0x181   :  { %v3190_v55 = vpop.f32.mrb[8].mxu0 }
 0x182   :  { %v1494_v56 = vpop.f32.mrb[9].mxu0 }
 0x183   :  { %v3191_v11 = vpop.f32.mrb[10].mxu0 }
 0x184   :  { %v1497_v16 = vpop.f32.mrb[11].mxu0 }
 0x189   :  { %v3194_v18 = vpop.f32.mrb[12].mxu0 }
 0x18a   :  { %v1510_v19 = vpop.f32.mrb[13].mxu0 }
 0x18b   :  { %v4365_v33 = vpop.f32.mrb[14].mxu0 }
 0x18c   :  { %v4367_v34 = vpop.f32.mrb[15].mxu0 }
 0x1a1   :  { %v3250_v36 = vpop.f32.mrb[16].mxu1 }
 0x1a2   :  { %v1892_v50 = vmax.f32 %v3190_v55, %v3250_v36  ;;  %v1843_v57 = vpop.f32.mrb[17].mxu1 }
 0x1a3   :  { %v1890_v24 = vmax.f32 %v1494_v56, %v1843_v57  ;;  %v3251_v46 = vpop.f32.mrb[18].mxu1 }
 0x1a4   :  { %v1900_v10 = vmax.f32 %v1884_v1, %v1892_v50  ;;  %v1893_v27 = vmax.f32 %v3191_v11, %v3251_v46  ;;  %v1846_v14 = vpop.f32.mrb[19].mxu1 }
 0x1a5   :  { %v1898_v40 = vmax.f32 %v1882_v4, %v1890_v24  ;;  %v1891_v37 = vmax.f32 %v1497_v16, %v1846_v14  ;;  %v3501_v4 = vld [vmem:[%s4544_s3 + $0x104] ss:$8 sps:$4 sm:$0xff]  }
 0x1a6   :  { %v1915_v5 = vadd.f32 %v4369_v60, %v1900_v10  ;;  %v1901_v6 = vmax.f32 %v1885_v20, %v1893_v27 }
 0x1a7   :  { %v1913_v7 = vadd.f32 %v4369_v60, %v1898_v40  ;;  %v1899_v17 = vmax.f32 %v1883_v42, %v1891_v37 }
 0x1a8   :  { %v4373_v39 = vmax.f32 %v1915_v5, 0.0  ;;  %v1916_v61 = vadd.f32 %v4369_v60, %v1901_v6 }
 0x1a9   :  { %v1921_v48 = vmax.f32 %v1913_v7, 0.0  ;;  %v1914_v35 = vadd.f32 %v4369_v60, %v1899_v17  ;;  %v3254_v58 = vpop.f32.mrb[20].mxu1  ;;  %v3508_v7 = vld [vmem:[%s4544_s3 + $0x124] ss:$8 sps:$4 sm:$0xff]  }
 0x1aa   :  { %v2883_v59 = vpack.c.bf16 %v4373_v39, %v4373_v39  ;;  %v1924_v62 = vmax.f32 %v1916_v61, 0.0  ;;  %v1896_v63 = vmax.f32 %v3194_v18, %v3254_v58  ;;  %v1859_v26 = vpop.f32.mrb[21].mxu1 }
 0x1ab   :  { %v2881_v12 = vpack.c.bf16 %v1921_v48, %v1921_v48  ;;  %v1922_v13 = vmax.f32 %v1914_v35, 0.0  ;;  %v1894_v21 = vmax.f32 %v1510_v19, %v1859_v26  ;;  %v3255_v22 = vpop.f32.mrb[22].mxu1  ;;  %v3499_v19 = vld [vmem:[%s4544_s3 + $0x100] ss:$8 sps:$4 sm:$0xff]   ;;  %v3511_v26 = vld [vmem:[%s4544_s3 + $0x134] ss:$8 sps:$4 sm:$0xff]  }
 0x1ac   :  { %v1976_v28 = vrot.slane %v2883_v59, 5  ;;  %v2334_v15 = vrot.slane %v2883_v59, 6  ;;  %v2884_v52 = vpack.c.bf16 %v1924_v62, %v1924_v62  ;;  %v1904_v43 = vmax.f32 %v1888_v32, %v1896_v63  ;;  %v1862_v44 = vpop.f32.mrb[23].mxu1 }
 0x1ad   :  { %v2774_v54 = vrot.slane %v2881_v12, 9  ;;  %v2835_v29 = vrot.slane %v2881_v12, 10  ;;  %v1929_v2 = vpack.c.bf16 %v1922_v13, %v1921_v48  ;;  %v2882_v1 = vpack.c.bf16 %v1922_v13, %v1922_v13 }
 0x1ae   :  { %v1978_v8 = vrot.slane %v1976_v28, 4  ;;  %v2336_v20 = vrot.slane %v2334_v15, 4  ;;  %v1979_v25 = vrot.slane %v2884_v52, 5  ;;  %v2337_v42 = vrot.slane %v2884_v52, 6 }
 0x1af   :  { %v1973_v32 = vrot.slane %v2882_v1, 5  ;;  %v2331_v55 = vrot.slane %v2882_v1, 6  ;;  %v1919_v56 = vadd.f32 %v4369_v60, %v1904_v43  ;;  %v1902_v11 = vmax.f32 %v1886_v38, %v1894_v21  ;;  %2832 = vmatmul.mubr.msk.bf16.vlgmr.msra.gmra.mrb[16].mxu0 %vm2091_vm9, %v1929_v2 }
 0x1b0   :  { %v1897_v16 = vmax.f32 %v4365_v33, %v3255_v22  ;;  %v1895_v18 = vmax.f32 %v4367_v34, %v1862_v44  ;;  %2465 = vmatpush1.bf16.msra.mxu0 %v3495_v30  ;;  %2305 = vmatprep.mubr.bf16.mxu0 %v3570_v9  ;;  %v4410_v36 = vsel %vm4384_vm10, %v1978_v8, %v1979_v25  ;;  %v3505_v34 = vld [vmem:[%s4544_s3 + $0x114] ss:$8 sps:$4 sm:$0xff]   ;;  %v3509_v44 = vld [vmem:[%s4544_s3 + $0x130] ss:$8 sps:$4 sm:$0xff]   ;;  %v3514_v8 = vld [vmem:[%s4544_s3 + $0x144] ss:$8 sps:$4 sm:$0xff]  }
 0x1b1   :  { %v1974_v31 = vsel %vm4384_vm10, %v2774_v54, %v1973_v32  ;;  %v1975_v47 = vrot.slane %v1973_v32, 4  ;;  %v4416_v38 = vsel %vm4393_vm11, %v2835_v29, %v2331_v55  ;;  %v2333_v33 = vrot.slane %v2331_v55, 4  ;;  %2466 = vmatprep.subr.bf16.mxu0 %v3501_v4 }
 0x1b2   :  { %v1927_v50 = vmax.f32 %v1919_v56, 0.0  ;;  %v1917_v57 = vadd.f32 %v4369_v60, %v1902_v11  ;;  %v1905_v24 = vmax.f32 %v1889_v41, %v1897_v16  ;;  %v1903_v46 = vmax.f32 %v1887_v53, %v1895_v18  ;;  %v3503_v53 = vld [vmem:[%s4544_s3 + $0x110] ss:$8 sps:$4 sm:$0xff]   ;;  %v3512_v56 = vld [vmem:[%s4544_s3 + $0x140] ss:$8 sps:$4 sm:$0xff]  }
 0x1b3   :  { %v1977_v10 = vsel %vm4384_vm10, %v1975_v47, %v1976_v28  ;;  %v4432_v27 = vsel %vm4393_vm11, %v2333_v33, %v2334_v15  ;;  %v4436_v14 = vsel %vm4393_vm11, %v2336_v20, %v2337_v42  ;;  %v3515_v18 = vld [vmem:[%s4544_s3 + $0x150] ss:$8 sps:$4 sm:$0xff]  }
 0x1b4   :  { %v2791_v40 = vcombine.low %v1974_v31, %v1977_v10  ;;  %v2852_v23 = vcombine.low %v4416_v38, %v4432_v27  ;;  %v2887_v49 = vpack.c.bf16 %v1927_v50, %v1927_v50  ;;  %v1925_v41 = vmax.f32 %v1917_v57, 0.0  ;;  %2467 = vmatpush1.bf16.msra.mxu0 %v3499_v19 }
 0x1b5   :  { %v1920_v0 = vadd.f32 %v4369_v60, %v1905_v24  ;;  %v1918_v51 = vadd.f32 %v4369_v60, %v1903_v46  ;;  %2468 = vmatprep.subr.bf16.mxu0 %v3505_v34  ;;  %v2870_v19 = vcombine.high %v2851_v45, %v2851_v45  ;;  %v2541_v10 = vlaneseq }
 0x1b6   :  { %v1986_v37 = vrot.slane %v2887_v49, 5  ;;  %v2344_v5 = vrot.slane %v2887_v49, 6  ;;  %2811 = vmatmul.mubr.msk.bf16.vlgmr.msra.gmra.mrb[24].mxu1 %vm2091_vm9, %v2791_v40  ;;  %v2889_v6 = vpack.c.bf16 %v1925_v41, %v4373_v39  ;;  %v2885_v35 = vpack.c.bf16 %v1925_v41, %v1925_v41  ;;  %v3506_v39 = vld [vmem:[%s4544_s3 + $0x120] ss:$8 sps:$4 sm:$0xff]  }
 0x1b7   :  { %v1928_v17 = vmax.f32 %v1920_v0, 0.0  ;;  %v1926_v61 = vmax.f32 %v1918_v51, 0.0  ;;  %2149 = vmatprep.mubr.bf16.mxu1 %v3570_v9  ;;  %v2542_v38 = vshrl.u32 %v2541_v10, 7  ;;  %v2539_v0 = vld [vmem:[#allocation4] sm:$0x3] }
 0x1b8   :  { %v1988_v60 = vrot.slane %v1986_v37, 4  ;;  %v2346_v48 = vrot.slane %v2344_v5, 4  ;;  %2833 = vmatmul.mubr.msk.bf16.gmra.mrb[20].mxu0 %vm2091_vm9, %v2889_v6  ;;  %v2775_v28 = vrot.slane %v2885_v35, 9  ;;  %v2836_v15 = vrot.slane %v2885_v35, 10 }
 0x1b9   :  { %v1932_v58 = vpack.c.bf16 %v1928_v17, %v1927_v50  ;;  %v2888_v59 = vpack.c.bf16 %v1928_v17, %v1928_v17  ;;  %v1931_v62 = vpack.c.bf16 %v1926_v61, %v1925_v41  ;;  %v2886_v63 = vpack.c.bf16 %v1926_v61, %v1926_v61  ;;  %2469 = vmatpush1.bf16.msra.mxu0 %v3503_v53 }
 0x1ba   :  { %2470 = vmatprep.subr.bf16.mxu0 %v3508_v7  ;;  %2315 = vmatprep.mubr.bf16.mxu0 %v3570_v9  ;;  %v2543_v49 = vsub.s32 0, %v2542_v38  ;;  %v2547_v51 = vsub.s32 1, %v2542_v38 }
 0x1bb   :  { %v1942_v12 = vunpack.c.l.b16 %v1932_v58  ;;  %v1989_v13 = vrot.slane %v2888_v59, 5  ;;  %v2347_v21 = vrot.slane %v2888_v59, 6  ;;  %v1941_v22 = vunpack.c.h.b16 %v1931_v62 }
 0x1bc   :  { %v1983_v52 = vrot.slane %v2886_v63, 5  ;;  %v2341_v43 = vrot.slane %v2886_v63, 6 }
 0x1bd   :  { %2471 = vmatpush1.bf16.msra.mxu0 %v3506_v39  ;;  %v2172_v30 = vpack.c.b16 %v1942_v12, %v1941_v22  ;;  %v1990_v54 = vsel %vm4384_vm10, %v1988_v60, %v1989_v13  ;;  %v2348_v29 = vsel %vm4393_vm11, %v2346_v48, %v2347_v21 }
 0x1be   :  { %v1985_v2 = vrot.slane %v1983_v52, 4  ;;  %v2343_v1 = vrot.slane %v2341_v43, 4  ;;  %v1984_v4 = vsel %vm4384_vm10, %v2775_v28, %v1983_v52  ;;  %2472 = vmatprep.subr.bf16.mxu0 %v3511_v26  ;;  %v2342_v20 = vsel %vm4393_vm11, %v2836_v15, %v2341_v43 }
 0x1bf   :  { %v2792_v25 = vcombine.low %v4410_v36, %v1984_v4  ;;  %v2853_v42 = vcombine.low %v4436_v14, %v2342_v20  ;;  %v2869_v36 = vcombine.low %v2851_v45, %v2851_v45 }
 0x1c0   :  { %2834 = vmatmul.mubr.msk.bf16.gmra.mrb[24].mxu0 %vm2091_vm9, %v2172_v30  ;;  %v1987_v32 = vsel %vm4384_vm10, %v1985_v2, %v1986_v37  ;;  %v2345_v55 = vsel %vm4393_vm11, %v2343_v1, %v2344_v5  ;;  %v2548_v37 = vrot.slane %v2539_v0, %v2547_v51 }
 0x1c1   :  { %2812 = vmatmul.mubr.msk.bf16.gmra.mrb[28].mxu1 %vm2091_vm9, %v2792_v25  ;;  %2473 = vmatpush1.bf16.msra.mxu0 %v3509_v44  ;;  %v2793_v11 = vcombine.low %v1987_v32, %v1990_v54  ;;  %v2854_v16 = vcombine.low %v2345_v55, %v2348_v29  ;;  %v2459_v31 = vsel %vm162_vm5, %v2869_v36, 0 }
 0x1c2   :  { %2474 = vmatprep.subr.bf16.mxu0 %v3514_v8  ;;  %2159 = vmatprep.mubr.bf16.mxu1 %v3570_v9 }
 0x1c3   :  { %2496 = vmatprep.mubr.bf16.mxu0 %v3570_v9 }
 0x1c5   :  { %2475 = vmatpush1.bf16.msra.mxu0 %v3512_v56 }
 0x1c6   :  { %2476 = vmatprep.subr.bf16.mxu0 %v3517_v3 }
 0x1c9   :  { %2813 = vmatmul.mubr.msk.bf16.gmra.mrb[32].mxu1 %vm2091_vm9, %v2793_v11  ;;  %2477 = vmatpush1.bf16.msra.mxu0 %v3515_v18 }
 0x1ca   :  { %2871 = vmatprep.subr.msk.bf16.mxu0 %vm162_vm5, %v2870_v19 }
 0x1cd   :  { %2479 = vmatpush1.bf16.msra.mxu0 %v2459_v31 }
 0x1d0   :  { %2872 = vmatmul.mubr.msk.bf16.vlgmr.msra.gmra.mrb[16].mxu0 %vm2091_vm9, %v2852_v23 }
 0x1d1   :  { %2506 = vmatprep.mubr.bf16.mxu0 %v3570_v9 }
 0x1d8   :  { %2873 = vmatmul.mubr.msk.bf16.gmra.mrb[20].mxu0 %vm2091_vm9, %v2853_v42 }
 0x1d9   :  { %2516 = vmatprep.mubr.bf16.mxu0 %v3570_v9  ;;  %v2544_v9 = vrot.slane %v2539_v0, %v2543_v49 }
 0x1e0   :  { %2874 = vmatmul.mubr.msk.bf16.gmra.mrb[24].mxu0 %vm2091_vm9, %v2854_v16 }
 0x289   :  { %v2141_v47 = vpop.f32.mrb[24].mxu1 }
 0x28a   :  { %v2143_v33 = vpop.f32.mrb[25].mxu1 }
 0x28b   :  { %v2145_v34 = vpop.f32.mrb[26].mxu1 }
 0x28c   :  { %v2147_v50 = vpop.f32.mrb[27].mxu1 }
 0x294   :  { %v2151_v57 = vpop.f32.mrb[28].mxu1 }
 0x295   :  { %v2153_v24 = vpop.f32.mrb[29].mxu1 }
 0x296   :  { %v2155_v46 = vpop.f32.mrb[30].mxu1 }
 0x297   :  { %v2157_v14 = vpop.f32.mrb[31].mxu1 }
 0x29c   :  { %v2161_v27 = vpop.f32.mrb[32].mxu1 }
 0x29d   :  { %v2163_v40 = vpop.f32.mrb[33].mxu1 }
 0x29e   :  { %v2165_v23 = vpop.f32.mrb[34].mxu1 }
 0x29f   :  { %v2167_v41 = vpop.f32.mrb[35].mxu1 }
 0x2a3   :  { %v2498_v53 = vpop.f32.mrb[16].mxu0 }
 0x2a4   :  { %v3264_v5 = vadd.f32 %v2498_v53, %v2141_v47  ;;  %v2500_v6 = vpop.f32.mrb[17].mxu0 }
 0x2a5   :  { %v3265_v7 = vadd.f32 %v2500_v6, %v2143_v33  ;;  %v2502_v17 = vpop.f32.mrb[18].mxu0 }
 0x2a6   :  { %v2551_v61 = vadd.f32 %v3264_v5, %v2544_v9  ;;  %v3266_v60 = vadd.f32 %v2502_v17, %v2145_v34  ;;  %v2504_v48 = vpop.f32.mrb[19].mxu0 }
 0x2a7   :  { %v2552_v35 = vadd.f32 %v3265_v7, %v2548_v37  ;;  %v3267_v58 = vadd.f32 %v2504_v48, %v2147_v50 }
 0x2a8   :  { %v2563_v59 = vmax.f32 %v2551_v61, 0.0  ;;  %v2553_v62 = vadd.f32 %v3266_v60, %v2544_v9 }
 0x2a9   :  { %v2564_v63 = vmax.f32 %v2552_v35, 0.0  ;;  %v2554_v39 = vadd.f32 %v3267_v58, %v2548_v37 }
 0x2aa   :  { %v2565_v12 = vmax.f32 %v2553_v62, 0.0 }
 0x2ab   :  { %v2890_v13 = vpack.c.bf16 %v2564_v63, %v2563_v59  ;;  %v2566_v21 = vmax.f32 %v2554_v39, 0.0  ;;  %v2508_v22 = vpop.f32.mrb[20].mxu0 }
 0x2ac   :  { %v3268_v28 = vadd.f32 %v2508_v22, %v2151_v57  ;;  %v2510_v15 = vpop.f32.mrb[21].mxu0 }
 0x2ad   :  { %2617 = vst.msk [vmem:[%s4546_s5] sm:$0xff] %vm4507_vm13, %v2890_v13  ;;  %v2891_v52 = vpack.c.bf16 %v2566_v21, %v2565_v12  ;;  %v3269_v43 = vadd.f32 %v2510_v15, %v2153_v24  ;;  %v2512_v44 = vpop.f32.mrb[22].mxu0 }
 0x2ae   :  { %v2555_v30 = vadd.f32 %v3268_v28, %v2544_v9  ;;  %v3270_v54 = vadd.f32 %v2512_v44, %v2155_v46  ;;  %v2514_v29 = vpop.f32.mrb[23].mxu0 }
 0x2af   :  { %2618 = vst.msk [vmem:[%s4546_s5 + $0x8] sm:$0xff] %vm4507_vm13, %v2891_v52  ;;  %v2556_v2 = vadd.f32 %v3269_v43, %v2548_v37  ;;  %v3271_v1 = vadd.f32 %v2514_v29, %v2157_v14 }
 0x2b0   :  { %v2567_v4 = vmax.f32 %v2555_v30, 0.0  ;;  %v2557_v8 = vadd.f32 %v3270_v54, %v2544_v9 }
 0x2b1   :  { %v2568_v20 = vmax.f32 %v2556_v2, 0.0  ;;  %v2558_v25 = vadd.f32 %v3271_v1, %v2548_v37 }
 0x2b2   :  { %v2569_v42 = vmax.f32 %v2557_v8, 0.0 }
 0x2b3   :  { %v2892_v32 = vpack.c.bf16 %v2568_v20, %v2567_v4  ;;  %v2570_v55 = vmax.f32 %v2558_v25, 0.0  ;;  %v2518_v56 = vpop.f32.mrb[24].mxu0 }
 0x2b4   :  { %v3272_v11 = vadd.f32 %v2518_v56, %v2161_v27  ;;  %v2520_v16 = vpop.f32.mrb[25].mxu0 }
 0x2b5   :  { %2619 = vst.msk [vmem:[%s4546_s5 + $0x10] sm:$0xff] %vm4507_vm13, %v2892_v32  ;;  %v2893_v3 = vpack.c.bf16 %v2570_v55, %v2569_v42  ;;  %v3273_v45 = vadd.f32 %v2520_v16, %v2163_v40  ;;  %v2522_v18 = vpop.f32.mrb[26].mxu0 }
 0x2b6   :  { %v2559_v19 = vadd.f32 %v3272_v11, %v2544_v9  ;;  %v3274_v36 = vadd.f32 %v2522_v18, %v2165_v23  ;;  %v2524_v31 = vpop.f32.mrb[27].mxu0 }
 0x2b7   :  { %2620 = vst.msk [vmem:[%s4546_s5 + $0x18] sm:$0xff] %vm4507_vm13, %v2893_v3  ;;  %v2560_v47 = vadd.f32 %v3273_v45, %v2548_v37  ;;  %v3275_v33 = vadd.f32 %v2524_v31, %v2167_v41 }
 0x2b8   :  { %v2571_v34 = vmax.f32 %v2559_v19, 0.0  ;;  %v2561_v50 = vadd.f32 %v3274_v36, %v2544_v9 }
 0x2b9   :  { %v2572_v57 = vmax.f32 %v2560_v47, 0.0  ;;  %v2562_v24 = vadd.f32 %v3275_v33, %v2548_v37 }
 0x2ba   :  { %v2573_v46 = vmax.f32 %v2561_v50, 0.0 }
 0x2bb   :  { %v2894_v10 = vpack.c.bf16 %v2572_v57, %v2571_v34  ;;  %v2574_v14 = vmax.f32 %v2562_v24, 0.0 }
 0x2bd   :  { %2621 = vst.msk [vmem:[%s4546_s5 + $0x20] sm:$0xff] %vm4507_vm13, %v2894_v10  ;;  %v2895_v38 = vpack.c.bf16 %v2574_v14, %v2573_v46 }
 0x2bf   :  { %2622 = vst.msk [vmem:[%s4546_s5 + $0x28] sm:$0xff] %vm4507_vm13, %v2895_v38 }
 0x2c0   :  { %2627 = vsyncpa [#allocation3], 1 }
 0x2c1   :  { %2628 = vsyncpa [#allocation5], 1 }

// kernel: convnet_forward.3
= control target key start
LH: loop header
LB: loop body
LE: loop exit
PB: predicated region body
PF: predicated region fallthrough
CT: control target
= control target key end

     0   :  { %10 = vsyncpa [#allocation3], 0  ;;  %s13298_s0 = inlined_call_operand.vmem [shape: bf16[2,4800], index: 0, kind: input, shape index: {}]   ;;  %s13299_s1 = inlined_call_operand.hbm [shape: bf16[4800,512], index: 1, kind: input, shape index: {}]   ;;  %s13300_s2 = inlined_call_operand.hbm [shape: f32[1,512], index: 2, kind: input, shape index: {}]   ;;  %s13301_s3 = inlined_call_operand.vmem [shape: bf16[512,10], index: 3, kind: input, shape index: {}]   ;;  %s13302_s4 = inlined_call_operand.hbm [shape: f32[1,10], index: 4, kind: input, shape index: {}]   ;;  %s13303_s5 = inlined_call_operand.hbm [shape: f32[2,10], index: 5, kind: output, shape index: {}]  }
   0x1   :  { %11 = vsyncpa [#allocation6], 0 }
   0x2   :  { %12 = vsyncpa [#allocation4], 0  ;;  %s12887_s18 = smov [#allocation5]   ;;  %s12888_s20 = smov [#allocation2]  }
   0x3   :  { %s33_s19 = sshll.u32 %s12887_s18, 4  ;;  %s20_s21 = sshll.u32 %s12888_s20, 4  ;;  %s34_s19 = int_to_ptr.vmem [resolvable:$true] %s33_s19  ;;  %s12924_s21 = int_to_ptr.vmem [resolvable:$true] %s20_s21 }
   0x4   :  { %s12793_s24 = scalar_lea.hbm %s13300_s2, 64 }
   0x5   :  { %p12794_p0 = scmp.ne.s32.totalorder %s13300_s2, %s12793_s24  ;;  %p12797_p1 = scmp.lt.u32.totalorder %s12793_s24, %s13300_s2 }
   0x7   :  { %p12799_p2 = pnand %p12797_p1, %p12794_p0 }
   0x9   :  { %12802 = shalt.err (!%p12799_p2)
}
   0xa   :  { %s12803_s29 = scalar_lea.vmem %s34_s19, 64  ;;  %p12808_p4 = scmp.lt.s32.totalorder %s34_s19, %s34_s19 }
   0xb   :  { %p12804_p3 = scmp.ne.s32.totalorder %s34_s19, %s12803_s29  ;;  %p12809_p5 = scmp.lt.s32.totalorder %s12803_s29, %s12803_s29 }
   0xd   :  { %p12810_p6 = por %p12809_p5, %p12808_p4 }
   0xf   :  { %p12811_p7 = pnand %p12810_p6, %p12804_p3 }
  0x11   :  { %12814 = shalt.err (!%p12811_p7)
}
  0x12   :  { %36 = dma.hbm_to_vmem [thread:$0]  %s13300_s2, 64, %s34_s19, [#allocation6]  }
  0x13   :  { %s12815_s9 = scalar_lea.hbm %s13299_s1, 153600 }
  0x14   :  { %p12816_p8 = scmp.ne.s32.totalorder %s13299_s1, %s12815_s9  ;;  %p12819_p9 = scmp.lt.u32.totalorder %s12815_s9, %s13299_s1 }
  0x16   :  { %p12821_p10 = pnand %p12819_p9, %p12816_p8 }
  0x18   :  { %12824 = shalt.err (!%p12821_p10)
}
  0x19   :  { %s12825_s14 = scalar_lea.vmem %s12924_s21, 153600  ;;  %p12830_p12 = scmp.lt.s32.totalorder %s12924_s21, %s12924_s21 }
  0x1a   :  { %p12826_p11 = scmp.ne.s32.totalorder %s12924_s21, %s12825_s14  ;;  %p12831_p13 = scmp.lt.s32.totalorder %s12825_s14, %s12825_s14 }
  0x1c   :  { %p12832_p0 = por %p12831_p13, %p12830_p12 }
  0x1e   :  { %p12833_p1 = pnand %p12832_p0, %p12826_p11 }
  0x20   :  { %12836 = shalt.err (!%p12833_p1)
}
  0x21   :  { %s12889_s2 = smov 256   ;;  %s12890_s15 = smov 16  }
  0x22   :  { %26 = dma.hbm_to_vmem [thread:$0]  %s13299_s1, 153600, %s12924_s21, [#allocation3], %s12889_s2, %s12889_s2, %s12890_s15  }
  0x23   :  { %s12891_s18 = smov [#allocation7]   ;;  %s12837_s23 = scalar_lea.hbm %s13302_s4, 16 }
  0x24   :  { %s45_s19 = sshll.u32 %s12891_s18, 4  ;;  %p12838_p2 = scmp.ne.s32.totalorder %s13302_s4, %s12837_s23  ;;  %s46_s19 = int_to_ptr.vmem [resolvable:$true] %s45_s19 }
  0x25   :  { %p12841_p3 = scmp.lt.u32.totalorder %s12837_s23, %s13302_s4 }
  0x27   :  { %p12843_p4 = pnand %p12841_p3, %p12838_p2 }
  0x29   :  { %12846 = shalt.err (!%p12843_p4)
}
  0x2a   :  { %s12847_s28 = scalar_lea.vmem %s46_s19, 16  ;;  %s12851_s1 = scalar_lea.vmem %s46_s19, 32 }
  0x2b   :  { %p12848_p5 = scmp.ne.s32.totalorder %s46_s19, %s12847_s28  ;;  %p12852_p6 = scmp.lt.s32.totalorder %s46_s19, %s46_s19 }
  0x2c   :  { %p12853_p7 = scmp.lt.s32.totalorder %s12851_s1, %s12847_s28 }
  0x2e   :  { %p12854_p8 = por %p12853_p7, %p12852_p6 }
  0x30   :  { %p12855_p9 = pnand %p12854_p8, %p12848_p5 }
  0x32   :  { %12858 = shalt.err (!%p12855_p9)
}
  0x33   :  { %48 = dma.hbm_to_vmem [thread:$0]  %s13302_s4, 16, %s46_s19, [#allocation6]  }
  0x34   :  { %12881 = dma.done.wait [#allocation3], 153600  }
  0x35   :  { %12882 = vsyncadd [#allocation3], 4294813696 }
  0x36   :  { %12883 = dma.done.wait [#allocation6], 80  }
  0x37   :  { %12884 = vsyncadd [#allocation6], 4294967216  ;;  %v10948_v0 = vld [vmem:[#allocation2 + $0x4] ss:$16 sps:$4 sm:$0xff]   ;;  %v10950_v1 = vld [vmem:[#allocation2 + $0xc] ss:$16 sps:$4 sm:$0xff]   ;;  %v1266_v36 = vlaneseq }
  0x38   :  { %7575 = vmatprep.subr.bf16.mxu0 %v10948_v0  ;;  %v10952_v2 = vld [vmem:[#allocation2] ss:$16 sps:$4 sm:$0xff]   ;;  %v10953_v3 = vld [vmem:[#allocation2 + $0x8] ss:$16 sps:$4 sm:$0xff]   ;;  %8354 = vmatprep.subr.bf16.mxu1 %v10950_v1  ;;  %v10954_v4 = vld [vmem:[#allocation2 + $0x24] ss:$16 sps:$4 sm:$0xff]  }
  0x39   :  { %7576 = vmatpush1.bf16.msra.mxu0 %v10952_v2  ;;  %8355 = vmatpush1.bf16.msra.mxu1 %v10953_v3  ;;  %v10956_v5 = vld [vmem:[#allocation2 + $0x2c] ss:$16 sps:$4 sm:$0xff]   ;;  %v10958_v6 = vld [vmem:[#allocation2 + $0x20] ss:$16 sps:$4 sm:$0xff]   ;;  %v10959_v7 = vld [vmem:[#allocation2 + $0x28] ss:$16 sps:$4 sm:$0xff]  }
  0x3a   :  { %7577 = vmatprep.subr.bf16.mxu0 %v10954_v4  ;;  %8356 = vmatprep.subr.bf16.mxu1 %v10956_v5  ;;  %v10960_v8 = vld [vmem:[#allocation2 + $0x44] ss:$16 sps:$4 sm:$0xff]   ;;  %v10962_v9 = vld [vmem:[#allocation2 + $0x4c] ss:$16 sps:$4 sm:$0xff]   ;;  %v10964_v10 = vld [vmem:[#allocation2 + $0x40] ss:$16 sps:$4 sm:$0xff]  }
  0x3b   :  { %v10965_v11 = vld [vmem:[#allocation2 + $0x48] ss:$16 sps:$4 sm:$0xff]   ;;  %v10966_v12 = vld [vmem:[#allocation2 + $0x64] ss:$16 sps:$4 sm:$0xff]   ;;  %v10968_v13 = vld [vmem:[#allocation2 + $0x6c] ss:$16 sps:$4 sm:$0xff]  }
  0x3c   :  { %v10970_v14 = vld [vmem:[#allocation2 + $0x60] ss:$16 sps:$4 sm:$0xff]   ;;  %v10971_v15 = vld [vmem:[#allocation2 + $0x68] ss:$16 sps:$4 sm:$0xff]   ;;  %v10972_v16 = vld [vmem:[#allocation2 + $0x84] ss:$16 sps:$4 sm:$0xff]  }
  0x3d   :  { %7578 = vmatpush1.bf16.msra.mxu0 %v10958_v6  ;;  %8357 = vmatpush1.bf16.msra.mxu1 %v10959_v7  ;;  %v10974_v17 = vld [vmem:[#allocation2 + $0x8c] ss:$16 sps:$4 sm:$0xff]   ;;  %v10976_v18 = vld [vmem:[#allocation2 + $0x80] ss:$16 sps:$4 sm:$0xff]   ;;  %v10977_v19 = vld [vmem:[#allocation2 + $0x88] ss:$16 sps:$4 sm:$0xff]  }
  0x3e   :  { %7579 = vmatprep.subr.bf16.mxu0 %v10960_v8  ;;  %8358 = vmatprep.subr.bf16.mxu1 %v10962_v9  ;;  %v10978_v20 = vld [vmem:[#allocation2 + $0xa4] ss:$16 sps:$4 sm:$0xff]   ;;  %v10980_v21 = vld [vmem:[#allocation2 + $0xac] ss:$16 sps:$4 sm:$0xff]   ;;  %v10982_v22 = vld [vmem:[#allocation2 + $0xa0] ss:$16 sps:$4 sm:$0xff]  }
  0x3f   :  { %v10983_v23 = vld [vmem:[#allocation2 + $0xa8] ss:$16 sps:$4 sm:$0xff]   ;;  %v10984_v24 = vld [vmem:[#allocation2 + $0xc4] ss:$16 sps:$4 sm:$0xff]   ;;  %v10986_v25 = vld [vmem:[#allocation2 + $0xcc] ss:$16 sps:$4 sm:$0xff]  }
  0x40   :  { %v10988_v26 = vld [vmem:[#allocation2 + $0xc0] ss:$16 sps:$4 sm:$0xff]   ;;  %v10989_v27 = vld [vmem:[#allocation2 + $0xc8] ss:$16 sps:$4 sm:$0xff]   ;;  %v10990_v28 = vld [vmem:[#allocation2 + $0xe4] ss:$16 sps:$4 sm:$0xff]  }
  0x41   :  { %7580 = vmatpush1.bf16.msra.mxu0 %v10964_v10  ;;  %8359 = vmatpush1.bf16.msra.mxu1 %v10965_v11  ;;  %v10992_v29 = vld [vmem:[#allocation2 + $0xec] ss:$16 sps:$4 sm:$0xff]   ;;  %v10994_v30 = vld [vmem:[#allocation2 + $0xe0] ss:$16 sps:$4 sm:$0xff]   ;;  %v10995_v31 = vld [vmem:[#allocation2 + $0xe8] ss:$16 sps:$4 sm:$0xff]  }
  0x42   :  { %7581 = vmatprep.subr.bf16.mxu0 %v10966_v12  ;;  %8360 = vmatprep.subr.bf16.mxu1 %v10968_v13  ;;  %v10996_v32 = vld [vmem:[#allocation2 + $0x104] ss:$16 sps:$4 sm:$0xff]   ;;  %v10998_v33 = vld [vmem:[#allocation2 + $0x10c] ss:$16 sps:$4 sm:$0xff]   ;;  %v11000_v34 = vld [vmem:[#allocation2 + $0x100] ss:$16 sps:$4 sm:$0xff]  }
  0x43   :  { %v11001_v35 = vld [vmem:[#allocation2 + $0x108] ss:$16 sps:$4 sm:$0xff]   ;;  %v12892_v37 = vmov 1966171168   ;;  %v11002_v39 = vld [vmem:[#allocation2 + $0x124] ss:$16 sps:$4 sm:$0xff]  }
  0x44   :  { %v1293_v38 = vunpack.c.l.s4 %v12892_v37  ;;  %v11004_v40 = vld [vmem:[#allocation2 + $0x12c] ss:$16 sps:$4 sm:$0xff]   ;;  %v11006_v41 = vld [vmem:[#allocation2 + $0x120] ss:$16 sps:$4 sm:$0xff]   ;;  %v12967_v42 = vshrl.u32 %v1266_v36, 7  ;;  %vm7571_vm0 = vcmask 523264  }
  0x45   :  { %7582 = vmatpush1.bf16.msra.mxu0 %v10970_v14  ;;  %8361 = vmatpush1.bf16.msra.mxu1 %v10971_v15  ;;  %v11007_v44 = vld [vmem:[#allocation2 + $0x128] ss:$16 sps:$4 sm:$0xff]   ;;  %v11008_v45 = vld [vmem:[#allocation2 + $0x144] ss:$16 sps:$4 sm:$0xff]   ;;  %v11010_v46 = vld [vmem:[#allocation2 + $0x14c] ss:$16 sps:$4 sm:$0xff]  }
  0x46   :  { %7583 = vmatprep.subr.bf16.mxu0 %v10972_v16  ;;  %8362 = vmatprep.subr.bf16.mxu1 %v10974_v17  ;;  %v1294_v43 = vunpack.c.0.s8 %v1293_v38  ;;  %v11012_v47 = vld [vmem:[#allocation2 + $0x140] ss:$16 sps:$4 sm:$0xff]   ;;  %v11013_v48 = vld [vmem:[#allocation2 + $0x148] ss:$16 sps:$4 sm:$0xff]   ;;  %v11014_v50 = vld [vmem:[#allocation2 + $0x164] ss:$16 sps:$4 sm:$0xff]  }
  0x47   :  { %v11016_v51 = vld [vmem:[#allocation2 + $0x16c] ss:$16 sps:$4 sm:$0xff]   ;;  %v12975_v52 = vld [vmem:[%s13298_s0] sm:$0xff]  ;;  %v11019_v55 = vld [vmem:[#allocation2 + $0x168] ss:$16 sps:$4 sm:$0xff]   ;;  %vm9484_vm1 = vcmask 74752  }
  0x48   :  { %v12970_v49 = vsub.s32 %v1294_v43, %v12967_v42  ;;  %v11018_v53 = vld [vmem:[#allocation2 + $0x160] ss:$16 sps:$4 sm:$0xff]   ;;  %v11020_v56 = vld [vmem:[#allocation2 + $0x184] ss:$16 sps:$4 sm:$0xff]   ;;  %v11022_v57 = vld [vmem:[#allocation2 + $0x18c] ss:$16 sps:$4 sm:$0xff]  }
  0x49   :  { %7584 = vmatpush1.bf16.msra.mxu0 %v10976_v18  ;;  %8363 = vmatpush1.bf16.msra.mxu1 %v10977_v19  ;;  %v11024_v59 = vld [vmem:[#allocation2 + $0x180] ss:$16 sps:$4 sm:$0xff]   ;;  %v11025_v61 = vld [vmem:[#allocation2 + $0x188] ss:$16 sps:$4 sm:$0xff]   ;;  %v11026_v62 = vld [vmem:[#allocation2 + $0x1a4] ss:$16 sps:$4 sm:$0xff]  }
  0x4a   :  { %7585 = vmatprep.subr.bf16.mxu0 %v10978_v20  ;;  %8364 = vmatprep.subr.bf16.mxu1 %v10980_v21  ;;  %v1298_v54 = vrot.slane %v12975_v52, %v12970_v49  ;;  %v11028_v63 = vld [vmem:[#allocation2 + $0x1ac] ss:$16 sps:$4 sm:$0xff]   ;;  %v11030_v0 = vld [vmem:[#allocation2 + $0x1a0] ss:$16 sps:$4 sm:$0xff]   ;;  %v11031_v1 = vld [vmem:[#allocation2 + $0x1a8] ss:$16 sps:$4 sm:$0xff]  }
  0x4b   :  { %v11032_v2 = vld [vmem:[#allocation2 + $0x1c4] ss:$16 sps:$4 sm:$0xff]   ;;  %v11034_v3 = vld [vmem:[#allocation2 + $0x1cc] ss:$16 sps:$4 sm:$0xff]   ;;  %v11036_v4 = vld [vmem:[#allocation2 + $0x1c0] ss:$16 sps:$4 sm:$0xff]  }
  0x4c   :  { %v1306_v58 = vcombine.high %v1298_v54, %v1298_v54  ;;  %v11037_v5 = vld [vmem:[#allocation2 + $0x1c8] ss:$16 sps:$4 sm:$0xff]   ;;  %v11038_v6 = vld [vmem:[#allocation2 + $0x1e4] ss:$16 sps:$4 sm:$0xff]   ;;  %v11040_v7 = vld [vmem:[#allocation2 + $0x1ec] ss:$16 sps:$4 sm:$0xff]   ;;  %v12981_v13 = vrot.slane %v1298_v54, %v12970_v49 }
  0x4d   :  { %7586 = vmatpush1.bf16.msra.mxu0 %v10982_v22  ;;  %8365 = vmatpush1.bf16.msra.mxu1 %v10983_v23  ;;  %v11042_v8 = vld [vmem:[#allocation2 + $0x1e0] ss:$16 sps:$4 sm:$0xff]   ;;  %v11043_v9 = vld [vmem:[#allocation2 + $0x1e8] ss:$16 sps:$4 sm:$0xff]   ;;  %v11046_v10 = vld [vmem:[#allocation2 + $0x204] ss:$16 sps:$4 sm:$0xff]  }
  0x4e   :  { %7587 = vmatprep.subr.bf16.mxu0 %v10984_v24  ;;  %8366 = vmatprep.subr.bf16.mxu1 %v10986_v25  ;;  %v1328_v60 = vrot.slane %v1306_v58, %v12970_v49  ;;  %v11049_v11 = vld [vmem:[#allocation2 + $0x20c] ss:$16 sps:$4 sm:$0xff]   ;;  %v11044_v12 = vld [vmem:[#allocation2 + $0x200] ss:$16 sps:$4 sm:$0xff]   ;;  %v11047_v14 = vld [vmem:[#allocation2 + $0x208] ss:$16 sps:$4 sm:$0xff]  }
  0x4f   :  { %v11052_v15 = vld [vmem:[#allocation2 + $0x224] ss:$16 sps:$4 sm:$0xff]   ;;  %v11055_v16 = vld [vmem:[#allocation2 + $0x22c] ss:$16 sps:$4 sm:$0xff]   ;;  %v11050_v18 = vld [vmem:[#allocation2 + $0x220] ss:$16 sps:$4 sm:$0xff]  }
  0x50   :  { %7607 = vmatprep.mubr.bf16.mxu0 %v1328_v60  ;;  %8386 = vmatprep.mubr.bf16.mxu1 %v1328_v60  ;;  %v1338_v17 = vcombine.high %v1328_v60, %v1328_v60  ;;  %v11053_v19 = vld [vmem:[#allocation2 + $0x228] ss:$16 sps:$4 sm:$0xff]   ;;  %v11058_v20 = vld [vmem:[#allocation2 + $0x244] ss:$16 sps:$4 sm:$0xff]   ;;  %v11061_v21 = vld [vmem:[#allocation2 + $0x24c] ss:$16 sps:$4 sm:$0xff]  }
  0x51   :  { %7588 = vmatpush1.bf16.msra.mxu0 %v10988_v26  ;;  %8367 = vmatpush1.bf16.msra.mxu1 %v10989_v27  ;;  %v11056_v22 = vld [vmem:[#allocation2 + $0x240] ss:$16 sps:$4 sm:$0xff]   ;;  %v11059_v23 = vld [vmem:[#allocation2 + $0x248] ss:$16 sps:$4 sm:$0xff]   ;;  %v11064_v24 = vld [vmem:[#allocation2 + $0x264] ss:$16 sps:$4 sm:$0xff]  }
  0x52   :  { %7589 = vmatprep.subr.bf16.mxu0 %v10990_v28  ;;  %8368 = vmatprep.subr.bf16.mxu1 %v10992_v29  ;;  %v11067_v25 = vld [vmem:[#allocation2 + $0x26c] ss:$16 sps:$4 sm:$0xff]   ;;  %v11062_v26 = vld [vmem:[#allocation2 + $0x260] ss:$16 sps:$4 sm:$0xff]   ;;  %v11065_v27 = vld [vmem:[#allocation2 + $0x268] ss:$16 sps:$4 sm:$0xff]  }
  0x53   :  { %v11070_v28 = vld [vmem:[#allocation2 + $0x284] ss:$16 sps:$4 sm:$0xff]   ;;  %v11073_v29 = vld [vmem:[#allocation2 + $0x28c] ss:$16 sps:$4 sm:$0xff]   ;;  %v11080_v38 = vld [vmem:[#allocation2 + $0x2c0] ss:$16 sps:$4 sm:$0xff]  }
  0x54   :  { %v11082_v36 = vld [vmem:[#allocation2 + $0x2c4] ss:$16 sps:$4 sm:$0xff]   ;;  %v11085_v37 = vld [vmem:[#allocation2 + $0x2cc] ss:$16 sps:$4 sm:$0xff]   ;;  %v11086_v43 = vld [vmem:[#allocation2 + $0x2e0] ss:$16 sps:$4 sm:$0xff]  }
  0x55   :  { %7590 = vmatpush1.bf16.msra.mxu0 %v10994_v30  ;;  %8369 = vmatpush1.bf16.msra.mxu1 %v10995_v31  ;;  %v11068_v30 = vld [vmem:[#allocation2 + $0x280] ss:$16 sps:$4 sm:$0xff]   ;;  %v11071_v31 = vld [vmem:[#allocation2 + $0x288] ss:$16 sps:$4 sm:$0xff]   ;;  %v11115_v60 = vld [vmem:[#allocation2 + $0x36c] ss:$16 sps:$4 sm:$0xff]  }
  0x56   :  { %7591 = vmatprep.subr.bf16.mxu0 %v10996_v32  ;;  %8370 = vmatprep.subr.bf16.mxu1 %v10998_v33  ;;  %v11076_v32 = vld [vmem:[#allocation2 + $0x2a4] ss:$16 sps:$4 sm:$0xff]   ;;  %v11079_v33 = vld [vmem:[#allocation2 + $0x2ac] ss:$16 sps:$4 sm:$0xff]   ;;  %v11101_v54 = vld [vmem:[#allocation2 + $0x328] ss:$16 sps:$4 sm:$0xff]  }
  0x57   :  { %v11107_v58 = vld [vmem:[#allocation2 + $0x348] ss:$16 sps:$4 sm:$0xff]  }
  0x59   :  { %7592 = vmatpush1.bf16.msra.mxu0 %v11000_v34  ;;  %8371 = vmatpush1.bf16.msra.mxu1 %v11001_v35  ;;  %v11074_v34 = vld [vmem:[#allocation2 + $0x2a0] ss:$16 sps:$4 sm:$0xff]   ;;  %v11077_v35 = vld [vmem:[#allocation2 + $0x2a8] ss:$16 sps:$4 sm:$0xff]  }
  0x5a   :  { %7593 = vmatprep.subr.bf16.mxu0 %v11002_v39  ;;  %8372 = vmatprep.subr.bf16.mxu1 %v11004_v40  ;;  %v11083_v39 = vld [vmem:[#allocation2 + $0x2c8] ss:$16 sps:$4 sm:$0xff]   ;;  %v11088_v40 = vld [vmem:[#allocation2 + $0x2e4] ss:$16 sps:$4 sm:$0xff]  }
  0x5d   :  { %7594 = vmatpush1.bf16.msra.mxu0 %v11006_v41  ;;  %8373 = vmatpush1.bf16.msra.mxu1 %v11007_v44  ;;  %v11091_v41 = vld [vmem:[#allocation2 + $0x2ec] ss:$16 sps:$4 sm:$0xff]   ;;  %v11089_v44 = vld [vmem:[#allocation2 + $0x2e8] ss:$16 sps:$4 sm:$0xff]  }
  0x5e   :  { %7595 = vmatprep.subr.bf16.mxu0 %v11008_v45  ;;  %8374 = vmatprep.subr.bf16.mxu1 %v11010_v46  ;;  %v11094_v45 = vld [vmem:[#allocation2 + $0x304] ss:$16 sps:$4 sm:$0xff]   ;;  %v11097_v46 = vld [vmem:[#allocation2 + $0x30c] ss:$16 sps:$4 sm:$0xff]  }
  0x61   :  { %7596 = vmatpush1.bf16.msra.mxu0 %v11012_v47  ;;  %8375 = vmatpush1.bf16.msra.mxu1 %v11013_v48  ;;  %v11092_v47 = vld [vmem:[#allocation2 + $0x300] ss:$16 sps:$4 sm:$0xff]   ;;  %v11095_v48 = vld [vmem:[#allocation2 + $0x308] ss:$16 sps:$4 sm:$0xff]  }
  0x62   :  { %7597 = vmatprep.subr.bf16.mxu0 %v11014_v50  ;;  %8376 = vmatprep.subr.bf16.mxu1 %v11016_v51  ;;  %v11100_v50 = vld [vmem:[#allocation2 + $0x324] ss:$16 sps:$4 sm:$0xff]   ;;  %v11103_v51 = vld [vmem:[#allocation2 + $0x32c] ss:$16 sps:$4 sm:$0xff]  }
  0x65   :  { %7598 = vmatpush1.bf16.msra.mxu0 %v11018_v53  ;;  %8377 = vmatpush1.bf16.msra.mxu1 %v11019_v55  ;;  %v11098_v53 = vld [vmem:[#allocation2 + $0x320] ss:$16 sps:$4 sm:$0xff]   ;;  %v11106_v55 = vld [vmem:[#allocation2 + $0x344] ss:$16 sps:$4 sm:$0xff]  }
  0x66   :  { %7599 = vmatprep.subr.bf16.mxu0 %v11020_v56  ;;  %8378 = vmatprep.subr.bf16.mxu1 %v11022_v57  ;;  %v11109_v56 = vld [vmem:[#allocation2 + $0x34c] ss:$16 sps:$4 sm:$0xff]   ;;  %v11104_v57 = vld [vmem:[#allocation2 + $0x340] ss:$16 sps:$4 sm:$0xff]  }
  0x69   :  { %7600 = vmatpush1.bf16.msra.mxu0 %v11024_v59  ;;  %8379 = vmatpush1.bf16.msra.mxu1 %v11025_v61  ;;  %v11112_v59 = vld [vmem:[#allocation2 + $0x364] ss:$16 sps:$4 sm:$0xff]   ;;  %v11110_v61 = vld [vmem:[#allocation2 + $0x360] ss:$16 sps:$4 sm:$0xff]  }
  0x6a   :  { %7601 = vmatprep.subr.bf16.mxu0 %v11026_v62  ;;  %8380 = vmatprep.subr.bf16.mxu1 %v11028_v63  ;;  %v11113_v62 = vld [vmem:[#allocation2 + $0x368] ss:$16 sps:$4 sm:$0xff]   ;;  %v11118_v63 = vld [vmem:[#allocation2 + $0x384] ss:$16 sps:$4 sm:$0xff]  }
  0x6d   :  { %7602 = vmatpush1.bf16.msra.mxu0 %v11030_v0  ;;  %8381 = vmatpush1.bf16.msra.mxu1 %v11031_v1  ;;  %v11121_v0 = vld [vmem:[#allocation2 + $0x38c] ss:$16 sps:$4 sm:$0xff]   ;;  %v11116_v1 = vld [vmem:[#allocation2 + $0x380] ss:$16 sps:$4 sm:$0xff]  }
  0x6e   :  { %7603 = vmatprep.subr.bf16.mxu0 %v11032_v2  ;;  %8382 = vmatprep.subr.bf16.mxu1 %v11034_v3  ;;  %v11119_v2 = vld [vmem:[#allocation2 + $0x388] ss:$16 sps:$4 sm:$0xff]   ;;  %v11124_v3 = vld [vmem:[#allocation2 + $0x3a4] ss:$16 sps:$4 sm:$0xff]  }
  0x71   :  { %7604 = vmatpush1.bf16.msra.mxu0 %v11036_v4  ;;  %8383 = vmatpush1.bf16.msra.mxu1 %v11037_v5  ;;  %v11127_v4 = vld [vmem:[#allocation2 + $0x3ac] ss:$16 sps:$4 sm:$0xff]   ;;  %v11122_v5 = vld [vmem:[#allocation2 + $0x3a0] ss:$16 sps:$4 sm:$0xff]  }
  0x72   :  { %7605 = vmatprep.subr.bf16.mxu0 %v11038_v6  ;;  %8384 = vmatprep.subr.bf16.mxu1 %v11040_v7  ;;  %v11125_v6 = vld [vmem:[#allocation2 + $0x3a8] ss:$16 sps:$4 sm:$0xff]   ;;  %v11130_v7 = vld [vmem:[#allocation2 + $0x3c4] ss:$16 sps:$4 sm:$0xff]  }
  0x75   :  { %7606 = vmatpush1.bf16.msra.mxu0 %v11042_v8  ;;  %8385 = vmatpush1.bf16.msra.mxu1 %v11043_v9  ;;  %v11133_v8 = vld [vmem:[#allocation2 + $0x3cc] ss:$16 sps:$4 sm:$0xff]   ;;  %v1291_v9 = vcombine.high %v12975_v52, %v12975_v52 }
  0x76   :  { %7616 = vmatprep.subr.bf16.mxu0 %v11046_v10  ;;  %8395 = vmatprep.subr.bf16.mxu1 %v11049_v11  ;;  %v11128_v10 = vld [vmem:[#allocation2 + $0x3c0] ss:$16 sps:$4 sm:$0xff]   ;;  %v11131_v11 = vld [vmem:[#allocation2 + $0x3c8] ss:$16 sps:$4 sm:$0xff]  }
  0x78   :  { %7608 = vmatmul.mubr.bf16.vlgmr.msra.gmra.mrb[0].mxu0 %v12981_v13  ;;  %8387 = vmatmul.mubr.bf16.vlgmr.msra.gmra.mrb[0].mxu1 %v12981_v13 }
  0x79   :  { %7617 = vmatpush1.bf16.msra.mxu0 %v11044_v12  ;;  %8396 = vmatpush1.bf16.msra.mxu1 %v11047_v14  ;;  %v11136_v12 = vld [vmem:[#allocation2 + $0x3e4] ss:$16 sps:$4 sm:$0xff]   ;;  %v11139_v14 = vld [vmem:[#allocation2 + $0x3ec] ss:$16 sps:$4 sm:$0xff]  }
  0x7a   :  { %7618 = vmatprep.subr.bf16.mxu0 %v11052_v15  ;;  %8397 = vmatprep.subr.bf16.mxu1 %v11055_v16  ;;  %v12988_v15 = vrot.slane %v1291_v9, %v12970_v49  ;;  %v11134_v16 = vld [vmem:[#allocation2 + $0x3e0] ss:$16 sps:$4 sm:$0xff]   ;;  %v11215_v9 = vld [vmem:[#allocation2 + $0x588] ss:$16 sps:$4 sm:$0xff]  }
  0x7b   :  { %7648 = vmatprep.mubr.bf16.mxu0 %v1338_v17  ;;  %8427 = vmatprep.mubr.bf16.mxu1 %v1338_v17  ;;  %v11137_v17 = vld [vmem:[#allocation2 + $0x3e8] ss:$16 sps:$4 sm:$0xff]  }
  0x7c   :  { %v1307_v52 = vcombine.high %v12988_v15, %v12988_v15 }
  0x7d   :  { %7619 = vmatpush1.bf16.msra.mxu0 %v11050_v18  ;;  %8398 = vmatpush1.bf16.msra.mxu1 %v11053_v19  ;;  %v11142_v18 = vld [vmem:[#allocation2 + $0x404] ss:$16 sps:$4 sm:$0xff]   ;;  %v11145_v19 = vld [vmem:[#allocation2 + $0x40c] ss:$16 sps:$4 sm:$0xff]  }
  0x7e   :  { %7620 = vmatprep.subr.bf16.mxu0 %v11058_v20  ;;  %8399 = vmatprep.subr.bf16.mxu1 %v11061_v21  ;;  %v11140_v20 = vld [vmem:[#allocation2 + $0x400] ss:$16 sps:$4 sm:$0xff]   ;;  %v1336_v21 = vcombine.high %v12981_v13, %v12981_v13  ;;  %v11157_v13 = vld [vmem:[#allocation2 + $0x44c] ss:$16 sps:$4 sm:$0xff]  }
  0x81   :  { %7621 = vmatpush1.bf16.msra.mxu0 %v11056_v22  ;;  %8400 = vmatpush1.bf16.msra.mxu1 %v11059_v23  ;;  %v11143_v22 = vld [vmem:[#allocation2 + $0x408] ss:$16 sps:$4 sm:$0xff]   ;;  %v11148_v23 = vld [vmem:[#allocation2 + $0x424] ss:$16 sps:$4 sm:$0xff]  }
  0x82   :  { %7622 = vmatprep.subr.bf16.mxu0 %v11064_v24  ;;  %8401 = vmatprep.subr.bf16.mxu1 %v11067_v25  ;;  %v11151_v24 = vld [vmem:[#allocation2 + $0x42c] ss:$16 sps:$4 sm:$0xff]   ;;  %v12995_v25 = vrot.slane %v1307_v52, %v12970_v49  ;;  %v11232_v52 = vld [vmem:[#allocation2 + $0x5e4] ss:$16 sps:$4 sm:$0xff]  }
  0x85   :  { %7623 = vmatpush1.bf16.msra.mxu0 %v11062_v26  ;;  %8402 = vmatpush1.bf16.msra.mxu1 %v11065_v27  ;;  %v11146_v26 = vld [vmem:[#allocation2 + $0x420] ss:$16 sps:$4 sm:$0xff]   ;;  %v11149_v27 = vld [vmem:[#allocation2 + $0x428] ss:$16 sps:$4 sm:$0xff]  }
  0x86   :  { %7624 = vmatprep.subr.bf16.mxu0 %v11070_v28  ;;  %8403 = vmatprep.subr.bf16.mxu1 %v11073_v29  ;;  %v11154_v28 = vld [vmem:[#allocation2 + $0x444] ss:$16 sps:$4 sm:$0xff]   ;;  %v11152_v29 = vld [vmem:[#allocation2 + $0x440] ss:$16 sps:$4 sm:$0xff]  }
  0x89   :  { %7625 = vmatpush1.bf16.msra.mxu0 %v11068_v30  ;;  %8404 = vmatpush1.bf16.msra.mxu1 %v11071_v31  ;;  %v11155_v30 = vld [vmem:[#allocation2 + $0x448] ss:$16 sps:$4 sm:$0xff]   ;;  %v11160_v31 = vld [vmem:[#allocation2 + $0x464] ss:$16 sps:$4 sm:$0xff]  }
  0x8a   :  { %7626 = vmatprep.subr.bf16.mxu0 %v11076_v32  ;;  %8405 = vmatprep.subr.bf16.mxu1 %v11079_v33  ;;  %v11163_v32 = vld [vmem:[#allocation2 + $0x46c] ss:$16 sps:$4 sm:$0xff]   ;;  %v11158_v33 = vld [vmem:[#allocation2 + $0x460] ss:$16 sps:$4 sm:$0xff]  }
  0x8d   :  { %7627 = vmatpush1.bf16.msra.mxu0 %v11074_v34  ;;  %8406 = vmatpush1.bf16.msra.mxu1 %v11077_v35  ;;  %v11161_v34 = vld [vmem:[#allocation2 + $0x468] ss:$16 sps:$4 sm:$0xff]   ;;  %v11166_v35 = vld [vmem:[#allocation2 + $0x484] ss:$16 sps:$4 sm:$0xff]  }
  0x8e   :  { %7628 = vmatprep.subr.bf16.mxu0 %v11082_v36  ;;  %8407 = vmatprep.subr.bf16.mxu1 %v11085_v37  ;;  %v11169_v36 = vld [vmem:[#allocation2 + $0x48c] ss:$16 sps:$4 sm:$0xff]   ;;  %v11164_v37 = vld [vmem:[#allocation2 + $0x480] ss:$16 sps:$4 sm:$0xff]  }
  0x91   :  { %7629 = vmatpush1.bf16.msra.mxu0 %v11080_v38  ;;  %8408 = vmatpush1.bf16.msra.mxu1 %v11083_v39  ;;  %v11167_v38 = vld [vmem:[#allocation2 + $0x488] ss:$16 sps:$4 sm:$0xff]   ;;  %v11172_v39 = vld [vmem:[#allocation2 + $0x4a4] ss:$16 sps:$4 sm:$0xff]  }
  0x92   :  { %7630 = vmatprep.subr.bf16.mxu0 %v11088_v40  ;;  %8409 = vmatprep.subr.bf16.mxu1 %v11091_v41  ;;  %v11175_v40 = vld [vmem:[#allocation2 + $0x4ac] ss:$16 sps:$4 sm:$0xff]   ;;  %v11170_v41 = vld [vmem:[#allocation2 + $0x4a0] ss:$16 sps:$4 sm:$0xff]  }
  0x95   :  { %7631 = vmatpush1.bf16.msra.mxu0 %v11086_v43  ;;  %8410 = vmatpush1.bf16.msra.mxu1 %v11089_v44  ;;  %v11173_v43 = vld [vmem:[#allocation2 + $0x4a8] ss:$16 sps:$4 sm:$0xff]   ;;  %v11178_v44 = vld [vmem:[#allocation2 + $0x4c4] ss:$16 sps:$4 sm:$0xff]  }
  0x96   :  { %7632 = vmatprep.subr.bf16.mxu0 %v11094_v45  ;;  %8411 = vmatprep.subr.bf16.mxu1 %v11097_v46  ;;  %v11181_v45 = vld [vmem:[#allocation2 + $0x4cc] ss:$16 sps:$4 sm:$0xff]   ;;  %v11176_v46 = vld [vmem:[#allocation2 + $0x4c0] ss:$16 sps:$4 sm:$0xff]  }
  0x99   :  { %7633 = vmatpush1.bf16.msra.mxu0 %v11092_v47  ;;  %8412 = vmatpush1.bf16.msra.mxu1 %v11095_v48  ;;  %v11179_v47 = vld [vmem:[#allocation2 + $0x4c8] ss:$16 sps:$4 sm:$0xff]   ;;  %v11184_v48 = vld [vmem:[#allocation2 + $0x4e4] ss:$16 sps:$4 sm:$0xff]  }
  0x9a   :  { %7634 = vmatprep.subr.bf16.mxu0 %v11100_v50  ;;  %8413 = vmatprep.subr.bf16.mxu1 %v11103_v51  ;;  %v11187_v50 = vld [vmem:[#allocation2 + $0x4ec] ss:$16 sps:$4 sm:$0xff]   ;;  %v11182_v51 = vld [vmem:[#allocation2 + $0x4e0] ss:$16 sps:$4 sm:$0xff]  }
  0x9d   :  { %7635 = vmatpush1.bf16.msra.mxu0 %v11098_v53  ;;  %8414 = vmatpush1.bf16.msra.mxu1 %v11101_v54  ;;  %v11185_v53 = vld [vmem:[#allocation2 + $0x4e8] ss:$16 sps:$4 sm:$0xff]   ;;  %v11190_v54 = vld [vmem:[#allocation2 + $0x504] ss:$16 sps:$4 sm:$0xff]  }
  0x9e   :  { %7636 = vmatprep.subr.bf16.mxu0 %v11106_v55  ;;  %8415 = vmatprep.subr.bf16.mxu1 %v11109_v56  ;;  %v11193_v55 = vld [vmem:[#allocation2 + $0x50c] ss:$16 sps:$4 sm:$0xff]   ;;  %v11188_v56 = vld [vmem:[#allocation2 + $0x500] ss:$16 sps:$4 sm:$0xff]  }
  0xa1   :  { %7637 = vmatpush1.bf16.msra.mxu0 %v11104_v57  ;;  %8416 = vmatpush1.bf16.msra.mxu1 %v11107_v58  ;;  %v11191_v57 = vld [vmem:[#allocation2 + $0x508] ss:$16 sps:$4 sm:$0xff]   ;;  %v11196_v58 = vld [vmem:[#allocation2 + $0x524] ss:$16 sps:$4 sm:$0xff]  }
  0xa2   :  { %7638 = vmatprep.subr.bf16.mxu0 %v11112_v59  ;;  %8417 = vmatprep.subr.bf16.mxu1 %v11115_v60  ;;  %v11199_v59 = vld [vmem:[#allocation2 + $0x52c] ss:$16 sps:$4 sm:$0xff]   ;;  %v11194_v60 = vld [vmem:[#allocation2 + $0x520] ss:$16 sps:$4 sm:$0xff]  }
  0xa5   :  { %7639 = vmatpush1.bf16.msra.mxu0 %v11110_v61  ;;  %8418 = vmatpush1.bf16.msra.mxu1 %v11113_v62  ;;  %v11197_v61 = vld [vmem:[#allocation2 + $0x528] ss:$16 sps:$4 sm:$0xff]   ;;  %v11202_v62 = vld [vmem:[#allocation2 + $0x544] ss:$16 sps:$4 sm:$0xff]  }
  0xa6   :  { %7640 = vmatprep.subr.bf16.mxu0 %v11118_v63  ;;  %8419 = vmatprep.subr.bf16.mxu1 %v11121_v0  ;;  %v11205_v63 = vld [vmem:[#allocation2 + $0x54c] ss:$16 sps:$4 sm:$0xff]   ;;  %v11200_v0 = vld [vmem:[#allocation2 + $0x540] ss:$16 sps:$4 sm:$0xff]  }
  0xa9   :  { %7641 = vmatpush1.bf16.msra.mxu0 %v11116_v1  ;;  %8420 = vmatpush1.bf16.msra.mxu1 %v11119_v2  ;;  %v11203_v1 = vld [vmem:[#allocation2 + $0x548] ss:$16 sps:$4 sm:$0xff]   ;;  %v11208_v2 = vld [vmem:[#allocation2 + $0x564] ss:$16 sps:$4 sm:$0xff]  }
  0xaa   :  { %7642 = vmatprep.subr.bf16.mxu0 %v11124_v3  ;;  %8421 = vmatprep.subr.bf16.mxu1 %v11127_v4  ;;  %v11211_v3 = vld [vmem:[#allocation2 + $0x56c] ss:$16 sps:$4 sm:$0xff]   ;;  %v11206_v4 = vld [vmem:[#allocation2 + $0x560] ss:$16 sps:$4 sm:$0xff]  }
  0xad   :  { %7643 = vmatpush1.bf16.msra.mxu0 %v11122_v5  ;;  %8422 = vmatpush1.bf16.msra.mxu1 %v11125_v6  ;;  %v11209_v5 = vld [vmem:[#allocation2 + $0x568] ss:$16 sps:$4 sm:$0xff]   ;;  %v11214_v6 = vld [vmem:[#allocation2 + $0x584] ss:$16 sps:$4 sm:$0xff]  }
  0xae   :  { %7644 = vmatprep.subr.bf16.mxu0 %v11130_v7  ;;  %8423 = vmatprep.subr.bf16.mxu1 %v11133_v8  ;;  %v11217_v7 = vld [vmem:[#allocation2 + $0x58c] ss:$16 sps:$4 sm:$0xff]   ;;  %v11212_v8 = vld [vmem:[#allocation2 + $0x580] ss:$16 sps:$4 sm:$0xff]  }
  0xb1   :  { %7645 = vmatpush1.bf16.msra.mxu0 %v11128_v10  ;;  %8424 = vmatpush1.bf16.msra.mxu1 %v11131_v11  ;;  %v11220_v10 = vld [vmem:[#allocation2 + $0x5a4] ss:$16 sps:$4 sm:$0xff]   ;;  %v11223_v11 = vld [vmem:[#allocation2 + $0x5ac] ss:$16 sps:$4 sm:$0xff]  }
  0xb2   :  { %7646 = vmatprep.subr.bf16.mxu0 %v11136_v12  ;;  %8425 = vmatprep.subr.bf16.mxu1 %v11139_v14  ;;  %v11218_v12 = vld [vmem:[#allocation2 + $0x5a0] ss:$16 sps:$4 sm:$0xff]   ;;  %v11221_v14 = vld [vmem:[#allocation2 + $0x5a8] ss:$16 sps:$4 sm:$0xff]  }
  0xb5   :  { %7647 = vmatpush1.bf16.msra.mxu0 %v11134_v16  ;;  %8426 = vmatpush1.bf16.msra.mxu1 %v11137_v17  ;;  %v11226_v16 = vld [vmem:[#allocation2 + $0x5c4] ss:$16 sps:$4 sm:$0xff]   ;;  %v11229_v17 = vld [vmem:[#allocation2 + $0x5cc] ss:$16 sps:$4 sm:$0xff]  }
  0xb6   :  { %7657 = vmatprep.subr.bf16.mxu0 %v11142_v18  ;;  %8436 = vmatprep.subr.bf16.mxu1 %v11145_v19  ;;  %v11224_v18 = vld [vmem:[#allocation2 + $0x5c0] ss:$16 sps:$4 sm:$0xff]   ;;  %v11227_v19 = vld [vmem:[#allocation2 + $0x5c8] ss:$16 sps:$4 sm:$0xff]  }
  0xb8   :  { %7649 = vmatmul.mubr.bf16.vlgmr.msra.gmra.mrb[0].mxu0 %v1336_v21  ;;  %8428 = vmatmul.mubr.bf16.vlgmr.msra.gmra.mrb[0].mxu1 %v1336_v21  ;;  %v11230_v21 = vld [vmem:[#allocation2 + $0x5e0] ss:$16 sps:$4 sm:$0xff]  }
  0xb9   :  { %7658 = vmatpush1.bf16.msra.mxu0 %v11140_v20  ;;  %8437 = vmatpush1.bf16.msra.mxu1 %v11143_v22  ;;  %v11235_v20 = vld [vmem:[#allocation2 + $0x5ec] ss:$16 sps:$4 sm:$0xff]   ;;  %v11233_v22 = vld [vmem:[#allocation2 + $0x5e8] ss:$16 sps:$4 sm:$0xff]  }
  0xba   :  { %7659 = vmatprep.subr.bf16.mxu0 %v11148_v23  ;;  %8438 = vmatprep.subr.bf16.mxu1 %v11151_v24  ;;  %v11239_v23 = vld [vmem:[#allocation2 + $0x604] ss:$16 sps:$4 sm:$0xff]   ;;  %v11242_v24 = vld [vmem:[#allocation2 + $0x60c] ss:$16 sps:$4 sm:$0xff]  }
  0xbb   :  { %7689 = vmatprep.mubr.bf16.mxu0 %v12995_v25  ;;  %8468 = vmatprep.mubr.bf16.mxu1 %v12995_v25 }
  0xbd   :  { %7660 = vmatpush1.bf16.msra.mxu0 %v11146_v26  ;;  %8439 = vmatpush1.bf16.msra.mxu1 %v11149_v27  ;;  %v11237_v26 = vld [vmem:[#allocation2 + $0x600] ss:$16 sps:$4 sm:$0xff]   ;;  %v13001_v27 = vrot.slane %v12988_v15, %v12970_v49  ;;  %v11251_v15 = vld [vmem:[#allocation2 + $0x644] ss:$16 sps:$4 sm:$0xff]  }
  0xbe   :  { %7661 = vmatprep.subr.bf16.mxu0 %v11154_v28  ;;  %8440 = vmatprep.subr.bf16.mxu1 %v11157_v13  ;;  %v11240_v28 = vld [vmem:[#allocation2 + $0x608] ss:$16 sps:$4 sm:$0xff]   ;;  %v11245_v13 = vld [vmem:[#allocation2 + $0x624] ss:$16 sps:$4 sm:$0xff]  }
  0xc1   :  { %7662 = vmatpush1.bf16.msra.mxu0 %v11152_v29  ;;  %8441 = vmatpush1.bf16.msra.mxu1 %v11155_v30  ;;  %v11248_v29 = vld [vmem:[#allocation2 + $0x62c] ss:$16 sps:$4 sm:$0xff]   ;;  %v1339_v30 = vcombine.high %v12995_v25, %v12995_v25  ;;  %v11257_v25 = vld [vmem:[#allocation2 + $0x664] ss:$16 sps:$4 sm:$0xff]  }
  0xc2   :  { %7663 = vmatprep.subr.bf16.mxu0 %v11160_v31  ;;  %8442 = vmatprep.subr.bf16.mxu1 %v11163_v32  ;;  %v11243_v31 = vld [vmem:[#allocation2 + $0x620] ss:$16 sps:$4 sm:$0xff]   ;;  %v11246_v32 = vld [vmem:[#allocation2 + $0x628] ss:$16 sps:$4 sm:$0xff]  }
  0xc5   :  { %7664 = vmatpush1.bf16.msra.mxu0 %v11158_v33  ;;  %8443 = vmatpush1.bf16.msra.mxu1 %v11161_v34  ;;  %v11254_v33 = vld [vmem:[#allocation2 + $0x64c] ss:$16 sps:$4 sm:$0xff]   ;;  %v11249_v34 = vld [vmem:[#allocation2 + $0x640] ss:$16 sps:$4 sm:$0xff]  }
  0xc6   :  { %7665 = vmatprep.subr.bf16.mxu0 %v11166_v35  ;;  %8444 = vmatprep.subr.bf16.mxu1 %v11169_v36  ;;  %v11252_v35 = vld [vmem:[#allocation2 + $0x648] ss:$16 sps:$4 sm:$0xff]   ;;  %v11260_v36 = vld [vmem:[#allocation2 + $0x66c] ss:$16 sps:$4 sm:$0xff]  }
  0xc9   :  { %7666 = vmatpush1.bf16.msra.mxu0 %v11164_v37  ;;  %8445 = vmatpush1.bf16.msra.mxu1 %v11167_v38  ;;  %v11255_v37 = vld [vmem:[#allocation2 + $0x660] ss:$16 sps:$4 sm:$0xff]   ;;  %v11258_v38 = vld [vmem:[#allocation2 + $0x668] ss:$16 sps:$4 sm:$0xff]  }
  0xca   :  { %7667 = vmatprep.subr.bf16.mxu0 %v11172_v39  ;;  %8446 = vmatprep.subr.bf16.mxu1 %v11175_v40  ;;  %v11263_v39 = vld [vmem:[#allocation2 + $0x684] ss:$16 sps:$4 sm:$0xff]   ;;  %v11266_v40 = vld [vmem:[#allocation2 + $0x68c] ss:$16 sps:$4 sm:$0xff]  }
  0xcd   :  { %7668 = vmatpush1.bf16.msra.mxu0 %v11170_v41  ;;  %8447 = vmatpush1.bf16.msra.mxu1 %v11173_v43  ;;  %v11261_v41 = vld [vmem:[#allocation2 + $0x680] ss:$16 sps:$4 sm:$0xff]   ;;  %v11264_v43 = vld [vmem:[#allocation2 + $0x688] ss:$16 sps:$4 sm:$0xff]  }
  0xce   :  { %7669 = vmatprep.subr.bf16.mxu0 %v11178_v44  ;;  %8448 = vmatprep.subr.bf16.mxu1 %v11181_v45  ;;  %v11269_v44 = vld [vmem:[#allocation2 + $0x6a4] ss:$16 sps:$4 sm:$0xff]   ;;  %v11272_v45 = vld [vmem:[#allocation2 + $0x6ac] ss:$16 sps:$4 sm:$0xff]  }
  0xd1   :  { %7670 = vmatpush1.bf16.msra.mxu0 %v11176_v46  ;;  %8449 = vmatpush1.bf16.msra.mxu1 %v11179_v47  ;;  %v11267_v46 = vld [vmem:[#allocation2 + $0x6a0] ss:$16 sps:$4 sm:$0xff]   ;;  %v11270_v47 = vld [vmem:[#allocation2 + $0x6a8] ss:$16 sps:$4 sm:$0xff]  }
  0xd2   :  { %7671 = vmatprep.subr.bf16.mxu0 %v11184_v48  ;;  %8450 = vmatprep.subr.bf16.mxu1 %v11187_v50  ;;  %v11275_v48 = vld [vmem:[#allocation2 + $0x6c4] ss:$16 sps:$4 sm:$0xff]   ;;  %v11278_v50 = vld [vmem:[#allocation2 + $0x6cc] ss:$16 sps:$4 sm:$0xff]  }
  0xd5   :  { %7672 = vmatpush1.bf16.msra.mxu0 %v11182_v51  ;;  %8451 = vmatpush1.bf16.msra.mxu1 %v11185_v53  ;;  %v11273_v51 = vld [vmem:[#allocation2 + $0x6c0] ss:$16 sps:$4 sm:$0xff]   ;;  %v11276_v53 = vld [vmem:[#allocation2 + $0x6c8] ss:$16 sps:$4 sm:$0xff]  }
  0xd6   :  { %7673 = vmatprep.subr.bf16.mxu0 %v11190_v54  ;;  %8452 = vmatprep.subr.bf16.mxu1 %v11193_v55  ;;  %v11281_v54 = vld [vmem:[#allocation2 + $0x6e4] ss:$16 sps:$4 sm:$0xff]   ;;  %v11284_v55 = vld [vmem:[#allocation2 + $0x6ec] ss:$16 sps:$4 sm:$0xff]  }
  0xd9   :  { %7674 = vmatpush1.bf16.msra.mxu0 %v11188_v56  ;;  %8453 = vmatpush1.bf16.msra.mxu1 %v11191_v57  ;;  %v11279_v56 = vld [vmem:[#allocation2 + $0x6e0] ss:$16 sps:$4 sm:$0xff]   ;;  %v11282_v57 = vld [vmem:[#allocation2 + $0x6e8] ss:$16 sps:$4 sm:$0xff]  }
  0xda   :  { %7675 = vmatprep.subr.bf16.mxu0 %v11196_v58  ;;  %8454 = vmatprep.subr.bf16.mxu1 %v11199_v59  ;;  %v11287_v58 = vld [vmem:[#allocation2 + $0x704] ss:$16 sps:$4 sm:$0xff]   ;;  %v11290_v59 = vld [vmem:[#allocation2 + $0x70c] ss:$16 sps:$4 sm:$0xff]  }
  0xdd   :  { %7676 = vmatpush1.bf16.msra.mxu0 %v11194_v60  ;;  %8455 = vmatpush1.bf16.msra.mxu1 %v11197_v61  ;;  %v11285_v60 = vld [vmem:[#allocation2 + $0x700] ss:$16 sps:$4 sm:$0xff]   ;;  %v11288_v61 = vld [vmem:[#allocation2 + $0x708] ss:$16 sps:$4 sm:$0xff]  }
  0xde   :  { %7677 = vmatprep.subr.bf16.mxu0 %v11202_v62  ;;  %8456 = vmatprep.subr.bf16.mxu1 %v11205_v63  ;;  %v11293_v62 = vld [vmem:[#allocation2 + $0x724] ss:$16 sps:$4 sm:$0xff]   ;;  %v11296_v63 = vld [vmem:[#allocation2 + $0x72c] ss:$16 sps:$4 sm:$0xff]  }
  0xe1   :  { %7678 = vmatpush1.bf16.msra.mxu0 %v11200_v0  ;;  %8457 = vmatpush1.bf16.msra.mxu1 %v11203_v1  ;;  %v11291_v0 = vld [vmem:[#allocation2 + $0x720] ss:$16 sps:$4 sm:$0xff]   ;;  %v11294_v1 = vld [vmem:[#allocation2 + $0x728] ss:$16 sps:$4 sm:$0xff]  }
  0xe2   :  { %7679 = vmatprep.subr.bf16.mxu0 %v11208_v2  ;;  %8458 = vmatprep.subr.bf16.mxu1 %v11211_v3  ;;  %v11299_v2 = vld [vmem:[#allocation2 + $0x744] ss:$16 sps:$4 sm:$0xff]   ;;  %v11302_v3 = vld [vmem:[#allocation2 + $0x74c] ss:$16 sps:$4 sm:$0xff]  }
  0xe5   :  { %7680 = vmatpush1.bf16.msra.mxu0 %v11206_v4  ;;  %8459 = vmatpush1.bf16.msra.mxu1 %v11209_v5  ;;  %v11297_v4 = vld [vmem:[#allocation2 + $0x740] ss:$16 sps:$4 sm:$0xff]   ;;  %v11300_v5 = vld [vmem:[#allocation2 + $0x748] ss:$16 sps:$4 sm:$0xff]  }
  0xe6   :  { %7681 = vmatprep.subr.bf16.mxu0 %v11214_v6  ;;  %8460 = vmatprep.subr.bf16.mxu1 %v11217_v7  ;;  %v11305_v6 = vld [vmem:[#allocation2 + $0x764] ss:$16 sps:$4 sm:$0xff]   ;;  %v11308_v7 = vld [vmem:[#allocation2 + $0x76c] ss:$16 sps:$4 sm:$0xff]  }
  0xe9   :  { %7682 = vmatpush1.bf16.msra.mxu0 %v11212_v8  ;;  %8461 = vmatpush1.bf16.msra.mxu1 %v11215_v9  ;;  %v11303_v8 = vld [vmem:[#allocation2 + $0x760] ss:$16 sps:$4 sm:$0xff]   ;;  %v11306_v9 = vld [vmem:[#allocation2 + $0x768] ss:$16 sps:$4 sm:$0xff]  }
  0xea   :  { %7683 = vmatprep.subr.bf16.mxu0 %v11220_v10  ;;  %8462 = vmatprep.subr.bf16.mxu1 %v11223_v11  ;;  %v11311_v10 = vld [vmem:[#allocation2 + $0x784] ss:$16 sps:$4 sm:$0xff]   ;;  %v11314_v11 = vld [vmem:[#allocation2 + $0x78c] ss:$16 sps:$4 sm:$0xff]  }
  0xed   :  { %7684 = vmatpush1.bf16.msra.mxu0 %v11218_v12  ;;  %8463 = vmatpush1.bf16.msra.mxu1 %v11221_v14  ;;  %v11309_v12 = vld [vmem:[#allocation2 + $0x780] ss:$16 sps:$4 sm:$0xff]   ;;  %v11312_v14 = vld [vmem:[#allocation2 + $0x788] ss:$16 sps:$4 sm:$0xff]  }
  0xee   :  { %7685 = vmatprep.subr.bf16.mxu0 %v11226_v16  ;;  %8464 = vmatprep.subr.bf16.mxu1 %v11229_v17  ;;  %v11317_v16 = vld [vmem:[#allocation2 + $0x7a4] ss:$16 sps:$4 sm:$0xff]   ;;  %v11320_v17 = vld [vmem:[#allocation2 + $0x7ac] ss:$16 sps:$4 sm:$0xff]  }
  0xf1   :  { %7686 = vmatpush1.bf16.msra.mxu0 %v11224_v18  ;;  %8465 = vmatpush1.bf16.msra.mxu1 %v11227_v19  ;;  %v11315_v18 = vld [vmem:[#allocation2 + $0x7a0] ss:$16 sps:$4 sm:$0xff]   ;;  %v11318_v19 = vld [vmem:[#allocation2 + $0x7a8] ss:$16 sps:$4 sm:$0xff]  }
  0xf2   :  { %7687 = vmatprep.subr.bf16.mxu0 %v11232_v52  ;;  %8466 = vmatprep.subr.bf16.mxu1 %v11235_v20  ;;  %v11323_v52 = vld [vmem:[#allocation2 + $0x7c4] ss:$16 sps:$4 sm:$0xff]   ;;  %v11326_v20 = vld [vmem:[#allocation2 + $0x7cc] ss:$16 sps:$4 sm:$0xff]  }
  0xf5   :  { %7688 = vmatpush1.bf16.msra.mxu0 %v11230_v21  ;;  %8467 = vmatpush1.bf16.msra.mxu1 %v11233_v22  ;;  %v13010_v21 = vld.sshfl [vmem:[%s13298_s0 + $0x8] sm:$0xff pattern:$0x75316420]  ;;  %v11321_v22 = vld [vmem:[#allocation2 + $0x7c0] ss:$16 sps:$4 sm:$0xff]  }
  0xf6   :  { %7698 = vmatprep.subr.bf16.mxu0 %v11239_v23  ;;  %8477 = vmatprep.subr.bf16.mxu1 %v11242_v24  ;;  %v11324_v23 = vld [vmem:[#allocation2 + $0x7c8] ss:$16 sps:$4 sm:$0xff]   ;;  %v11329_v24 = vld [vmem:[#allocation2 + $0x7e4] ss:$16 sps:$4 sm:$0xff]  }
  0xf8   :  { %7690 = vmatmul.mubr.bf16.vlgmr.msra.gmra.mrb[0].mxu0 %v13001_v27  ;;  %8469 = vmatmul.mubr.bf16.vlgmr.msra.gmra.mrb[0].mxu1 %v13001_v27 }
  0xf9   :  { %7699 = vmatpush1.bf16.msra.mxu0 %v11237_v26  ;;  %8478 = vmatpush1.bf16.msra.mxu1 %v11240_v28  ;;  %v11332_v26 = vld [vmem:[#allocation2 + $0x7ec] ss:$16 sps:$4 sm:$0xff]   ;;  %v11327_v28 = vld [vmem:[#allocation2 + $0x7e0] ss:$16 sps:$4 sm:$0xff]  }
  0xfa   :  { %7700 = vmatprep.subr.bf16.mxu0 %v11245_v13  ;;  %8479 = vmatprep.subr.bf16.mxu1 %v11248_v29  ;;  %v11330_v13 = vld [vmem:[#allocation2 + $0x7e8] ss:$16 sps:$4 sm:$0xff]   ;;  %v11335_v29 = vld [vmem:[#allocation2 + $0x804] ss:$16 sps:$4 sm:$0xff]  }
  0xfb   :  { %7730 = vmatprep.mubr.bf16.mxu0 %v1339_v30  ;;  %8509 = vmatprep.mubr.bf16.mxu1 %v1339_v30  ;;  %v11338_v30 = vld [vmem:[#allocation2 + $0x80c] ss:$16 sps:$4 sm:$0xff]  }
  0xfd   :  { %7701 = vmatpush1.bf16.msra.mxu0 %v11243_v31  ;;  %8480 = vmatpush1.bf16.msra.mxu1 %v11246_v32  ;;  %v1355_v31 = vcombine.high %v13010_v21, %v13010_v21  ;;  %v1337_v32 = vcombine.high %v13001_v27, %v13001_v27  ;;  %v11347_v27 = vld [vmem:[#allocation2 + $0x844] ss:$16 sps:$4 sm:$0xff]  }
  0xfe   :  { %7702 = vmatprep.subr.bf16.mxu0 %v11251_v15  ;;  %8481 = vmatprep.subr.bf16.mxu1 %v11254_v33  ;;  %v11333_v15 = vld [vmem:[#allocation2 + $0x800] ss:$16 sps:$4 sm:$0xff]   ;;  %v11336_v33 = vld [vmem:[#allocation2 + $0x808] ss:$16 sps:$4 sm:$0xff]  }
 0x101   :  { %7703 = vmatpush1.bf16.msra.mxu0 %v11249_v34  ;;  %8482 = vmatpush1.bf16.msra.mxu1 %v11252_v35  ;;  %v11341_v34 = vld [vmem:[#allocation2 + $0x824] ss:$16 sps:$4 sm:$0xff]   ;;  %v11344_v35 = vld [vmem:[#allocation2 + $0x82c] ss:$16 sps:$4 sm:$0xff]  }
 0x102   :  { %7704 = vmatprep.subr.bf16.mxu0 %v11257_v25  ;;  %8483 = vmatprep.subr.bf16.mxu1 %v11260_v36  ;;  %v13017_v25 = vrot.slane %v1355_v31, %v12970_v49  ;;  %v11339_v36 = vld [vmem:[#allocation2 + $0x820] ss:$16 sps:$4 sm:$0xff]   ;;  %v11425_v31 = vld [vmem:[#allocation2 + $0x9e4] ss:$16 sps:$4 sm:$0xff]  }
 0x105   :  { %7705 = vmatpush1.bf16.msra.mxu0 %v11255_v37  ;;  %8484 = vmatpush1.bf16.msra.mxu1 %v11258_v38  ;;  %v11342_v37 = vld [vmem:[#allocation2 + $0x828] ss:$16 sps:$4 sm:$0xff]   ;;  %v11350_v38 = vld [vmem:[#allocation2 + $0x84c] ss:$16 sps:$4 sm:$0xff]  }
 0x106   :  { %7706 = vmatprep.subr.bf16.mxu0 %v11263_v39  ;;  %8485 = vmatprep.subr.bf16.mxu1 %v11266_v40  ;;  %v11345_v39 = vld [vmem:[#allocation2 + $0x840] ss:$16 sps:$4 sm:$0xff]   ;;  %v11348_v40 = vld [vmem:[#allocation2 + $0x848] ss:$16 sps:$4 sm:$0xff]  }
 0x109   :  { %7707 = vmatpush1.bf16.msra.mxu0 %v11261_v41  ;;  %8486 = vmatpush1.bf16.msra.mxu1 %v11264_v43  ;;  %v11353_v41 = vld [vmem:[#allocation2 + $0x864] ss:$16 sps:$4 sm:$0xff]   ;;  %v11356_v43 = vld [vmem:[#allocation2 + $0x86c] ss:$16 sps:$4 sm:$0xff]  }
 0x10a   :  { %7708 = vmatprep.subr.bf16.mxu0 %v11269_v44  ;;  %8487 = vmatprep.subr.bf16.mxu1 %v11272_v45  ;;  %v11351_v44 = vld [vmem:[#allocation2 + $0x860] ss:$16 sps:$4 sm:$0xff]   ;;  %v11354_v45 = vld [vmem:[#allocation2 + $0x868] ss:$16 sps:$4 sm:$0xff]  }
 0x10d   :  { %7709 = vmatpush1.bf16.msra.mxu0 %v11267_v46  ;;  %8488 = vmatpush1.bf16.msra.mxu1 %v11270_v47  ;;  %v11359_v46 = vld [vmem:[#allocation2 + $0x884] ss:$16 sps:$4 sm:$0xff]   ;;  %v11362_v47 = vld [vmem:[#allocation2 + $0x88c] ss:$16 sps:$4 sm:$0xff]  }
 0x10e   :  { %7710 = vmatprep.subr.bf16.mxu0 %v11275_v48  ;;  %8489 = vmatprep.subr.bf16.mxu1 %v11278_v50  ;;  %v11357_v48 = vld [vmem:[#allocation2 + $0x880] ss:$16 sps:$4 sm:$0xff]   ;;  %v11360_v50 = vld [vmem:[#allocation2 + $0x888] ss:$16 sps:$4 sm:$0xff]  }
 0x111   :  { %7711 = vmatpush1.bf16.msra.mxu0 %v11273_v51  ;;  %8490 = vmatpush1.bf16.msra.mxu1 %v11276_v53  ;;  %v11365_v51 = vld [vmem:[#allocation2 + $0x8a4] ss:$16 sps:$4 sm:$0xff]   ;;  %v11368_v53 = vld [vmem:[#allocation2 + $0x8ac] ss:$16 sps:$4 sm:$0xff]  }
 0x112   :  { %7712 = vmatprep.subr.bf16.mxu0 %v11281_v54  ;;  %8491 = vmatprep.subr.bf16.mxu1 %v11284_v55  ;;  %v11363_v54 = vld [vmem:[#allocation2 + $0x8a0] ss:$16 sps:$4 sm:$0xff]   ;;  %v11366_v55 = vld [vmem:[#allocation2 + $0x8a8] ss:$16 sps:$4 sm:$0xff]  }
 0x115   :  { %7713 = vmatpush1.bf16.msra.mxu0 %v11279_v56  ;;  %8492 = vmatpush1.bf16.msra.mxu1 %v11282_v57  ;;  %v11371_v56 = vld [vmem:[#allocation2 + $0x8c4] ss:$16 sps:$4 sm:$0xff]   ;;  %v11374_v57 = vld [vmem:[#allocation2 + $0x8cc] ss:$16 sps:$4 sm:$0xff]  }
 0x116   :  { %7714 = vmatprep.subr.bf16.mxu0 %v11287_v58  ;;  %8493 = vmatprep.subr.bf16.mxu1 %v11290_v59  ;;  %v11369_v58 = vld [vmem:[#allocation2 + $0x8c0] ss:$16 sps:$4 sm:$0xff]   ;;  %v11372_v59 = vld [vmem:[#allocation2 + $0x8c8] ss:$16 sps:$4 sm:$0xff]  }
 0x119   :  { %7715 = vmatpush1.bf16.msra.mxu0 %v11285_v60  ;;  %8494 = vmatpush1.bf16.msra.mxu1 %v11288_v61  ;;  %v11377_v60 = vld [vmem:[#allocation2 + $0x8e4] ss:$16 sps:$4 sm:$0xff]   ;;  %v11380_v61 = vld [vmem:[#allocation2 + $0x8ec] ss:$16 sps:$4 sm:$0xff]  }
 0x11a   :  { %7716 = vmatprep.subr.bf16.mxu0 %v11293_v62  ;;  %8495 = vmatprep.subr.bf16.mxu1 %v11296_v63  ;;  %v11375_v62 = vld [vmem:[#allocation2 + $0x8e0] ss:$16 sps:$4 sm:$0xff]   ;;  %v11378_v63 = vld [vmem:[#allocation2 + $0x8e8] ss:$16 sps:$4 sm:$0xff]  }
 0x11d   :  { %7717 = vmatpush1.bf16.msra.mxu0 %v11291_v0  ;;  %8496 = vmatpush1.bf16.msra.mxu1 %v11294_v1  ;;  %v11383_v0 = vld [vmem:[#allocation2 + $0x904] ss:$16 sps:$4 sm:$0xff]   ;;  %v11386_v1 = vld [vmem:[#allocation2 + $0x90c] ss:$16 sps:$4 sm:$0xff]  }
 0x11e   :  { %7718 = vmatprep.subr.bf16.mxu0 %v11299_v2  ;;  %8497 = vmatprep.subr.bf16.mxu1 %v11302_v3  ;;  %v11381_v2 = vld [vmem:[#allocation2 + $0x900] ss:$16 sps:$4 sm:$0xff]   ;;  %v11384_v3 = vld [vmem:[#allocation2 + $0x908] ss:$16 sps:$4 sm:$0xff]  }
 0x121   :  { %7719 = vmatpush1.bf16.msra.mxu0 %v11297_v4  ;;  %8498 = vmatpush1.bf16.msra.mxu1 %v11300_v5  ;;  %v11389_v4 = vld [vmem:[#allocation2 + $0x924] ss:$16 sps:$4 sm:$0xff]   ;;  %v11392_v5 = vld [vmem:[#allocation2 + $0x92c] ss:$16 sps:$4 sm:$0xff]  }
 0x122   :  { %7720 = vmatprep.subr.bf16.mxu0 %v11305_v6  ;;  %8499 = vmatprep.subr.bf16.mxu1 %v11308_v7  ;;  %v11387_v6 = vld [vmem:[#allocation2 + $0x920] ss:$16 sps:$4 sm:$0xff]   ;;  %v11390_v7 = vld [vmem:[#allocation2 + $0x928] ss:$16 sps:$4 sm:$0xff]  }
 0x125   :  { %7721 = vmatpush1.bf16.msra.mxu0 %v11303_v8  ;;  %8500 = vmatpush1.bf16.msra.mxu1 %v11306_v9  ;;  %v11395_v8 = vld [vmem:[#allocation2 + $0x944] ss:$16 sps:$4 sm:$0xff]   ;;  %v11398_v9 = vld [vmem:[#allocation2 + $0x94c] ss:$16 sps:$4 sm:$0xff]  }
 0x126   :  { %7722 = vmatprep.subr.bf16.mxu0 %v11311_v10  ;;  %8501 = vmatprep.subr.bf16.mxu1 %v11314_v11  ;;  %v11393_v10 = vld [vmem:[#allocation2 + $0x940] ss:$16 sps:$4 sm:$0xff]   ;;  %v11396_v11 = vld [vmem:[#allocation2 + $0x948] ss:$16 sps:$4 sm:$0xff]  }
 0x129   :  { %7723 = vmatpush1.bf16.msra.mxu0 %v11309_v12  ;;  %8502 = vmatpush1.bf16.msra.mxu1 %v11312_v14  ;;  %v11401_v12 = vld [vmem:[#allocation2 + $0x964] ss:$16 sps:$4 sm:$0xff]   ;;  %v11404_v14 = vld [vmem:[#allocation2 + $0x96c] ss:$16 sps:$4 sm:$0xff]  }
 0x12a   :  { %7724 = vmatprep.subr.bf16.mxu0 %v11317_v16  ;;  %8503 = vmatprep.subr.bf16.mxu1 %v11320_v17  ;;  %v11399_v16 = vld [vmem:[#allocation2 + $0x960] ss:$16 sps:$4 sm:$0xff]   ;;  %v11402_v17 = vld [vmem:[#allocation2 + $0x968] ss:$16 sps:$4 sm:$0xff]  }
 0x12d   :  { %7725 = vmatpush1.bf16.msra.mxu0 %v11315_v18  ;;  %8504 = vmatpush1.bf16.msra.mxu1 %v11318_v19  ;;  %v11407_v18 = vld [vmem:[#allocation2 + $0x984] ss:$16 sps:$4 sm:$0xff]   ;;  %v11410_v19 = vld [vmem:[#allocation2 + $0x98c] ss:$16 sps:$4 sm:$0xff]  }
 0x12e   :  { %7726 = vmatprep.subr.bf16.mxu0 %v11323_v52  ;;  %8505 = vmatprep.subr.bf16.mxu1 %v11326_v20  ;;  %v11405_v52 = vld [vmem:[#allocation2 + $0x980] ss:$16 sps:$4 sm:$0xff]   ;;  %v11408_v20 = vld [vmem:[#allocation2 + $0x988] ss:$16 sps:$4 sm:$0xff]  }
 0x131   :  { %7727 = vmatpush1.bf16.msra.mxu0 %v11321_v22  ;;  %8506 = vmatpush1.bf16.msra.mxu1 %v11324_v23  ;;  %v11413_v22 = vld [vmem:[#allocation2 + $0x9a4] ss:$16 sps:$4 sm:$0xff]   ;;  %v11416_v23 = vld [vmem:[#allocation2 + $0x9ac] ss:$16 sps:$4 sm:$0xff]  }
 0x132   :  { %7728 = vmatprep.subr.bf16.mxu0 %v11329_v24  ;;  %8507 = vmatprep.subr.bf16.mxu1 %v11332_v26  ;;  %v11411_v24 = vld [vmem:[#allocation2 + $0x9a0] ss:$16 sps:$4 sm:$0xff]   ;;  %v11414_v26 = vld [vmem:[#allocation2 + $0x9a8] ss:$16 sps:$4 sm:$0xff]  }
 0x135   :  { %7729 = vmatpush1.bf16.msra.mxu0 %v11327_v28  ;;  %8508 = vmatpush1.bf16.msra.mxu1 %v11330_v13  ;;  %v11419_v28 = vld [vmem:[#allocation2 + $0x9c4] ss:$16 sps:$4 sm:$0xff]   ;;  %v11422_v13 = vld [vmem:[#allocation2 + $0x9cc] ss:$16 sps:$4 sm:$0xff]  }
 0x136   :  { %7739 = vmatprep.subr.bf16.mxu0 %v11335_v29  ;;  %8518 = vmatprep.subr.bf16.mxu1 %v11338_v30  ;;  %v11417_v29 = vld [vmem:[#allocation2 + $0x9c0] ss:$16 sps:$4 sm:$0xff]   ;;  %v11420_v30 = vld [vmem:[#allocation2 + $0x9c8] ss:$16 sps:$4 sm:$0xff]  }
 0x138   :  { %7731 = vmatmul.mubr.bf16.vlgmr.msra.gmra.mrb[0].mxu0 %v1337_v32  ;;  %8510 = vmatmul.mubr.bf16.vlgmr.msra.gmra.mrb[0].mxu1 %v1337_v32  ;;  %v11428_v32 = vld [vmem:[#allocation2 + $0x9ec] ss:$16 sps:$4 sm:$0xff]  }
 0x139   :  { %7740 = vmatpush1.bf16.msra.mxu0 %v11333_v15  ;;  %8519 = vmatpush1.bf16.msra.mxu1 %v11336_v33  ;;  %v11423_v15 = vld [vmem:[#allocation2 + $0x9e0] ss:$16 sps:$4 sm:$0xff]   ;;  %v11426_v33 = vld [vmem:[#allocation2 + $0x9e8] ss:$16 sps:$4 sm:$0xff]  }
 0x13a   :  { %7741 = vmatprep.subr.bf16.mxu0 %v11341_v34  ;;  %8520 = vmatprep.subr.bf16.mxu1 %v11344_v35  ;;  %v11431_v34 = vld [vmem:[#allocation2 + $0xa04] ss:$16 sps:$4 sm:$0xff]   ;;  %v11434_v35 = vld [vmem:[#allocation2 + $0xa0c] ss:$16 sps:$4 sm:$0xff]  }
 0x13b   :  { %7771 = vmatprep.mubr.bf16.mxu0 %v13017_v25  ;;  %8550 = vmatprep.mubr.bf16.mxu1 %v13017_v25 }
 0x13d   :  { %7742 = vmatpush1.bf16.msra.mxu0 %v11339_v36  ;;  %8521 = vmatpush1.bf16.msra.mxu1 %v11342_v37  ;;  %v13023_v36 = vrot.slane %v13010_v21, %v12970_v49  ;;  %v11429_v37 = vld [vmem:[#allocation2 + $0xa00] ss:$16 sps:$4 sm:$0xff]   ;;  %v11438_v21 = vld [vmem:[#allocation2 + $0xa28] ss:$16 sps:$4 sm:$0xff]  }
 0x13e   :  { %7743 = vmatprep.subr.bf16.mxu0 %v11347_v27  ;;  %8522 = vmatprep.subr.bf16.mxu1 %v11350_v38  ;;  %v11432_v27 = vld [vmem:[#allocation2 + $0xa08] ss:$16 sps:$4 sm:$0xff]   ;;  %v11437_v38 = vld [vmem:[#allocation2 + $0xa24] ss:$16 sps:$4 sm:$0xff]  }
 0x141   :  { %7744 = vmatpush1.bf16.msra.mxu0 %v11345_v39  ;;  %8523 = vmatpush1.bf16.msra.mxu1 %v11348_v40  ;;  %v11440_v39 = vld [vmem:[#allocation2 + $0xa2c] ss:$16 sps:$4 sm:$0xff]   ;;  %v1387_v40 = vcombine.high %v13017_v25, %v13017_v25  ;;  %v11449_v25 = vld [vmem:[#allocation2 + $0xa64] ss:$16 sps:$4 sm:$0xff]  }
 0x142   :  { %7745 = vmatprep.subr.bf16.mxu0 %v11353_v41  ;;  %8524 = vmatprep.subr.bf16.mxu1 %v11356_v43  ;;  %v11435_v41 = vld [vmem:[#allocation2 + $0xa20] ss:$16 sps:$4 sm:$0xff]   ;;  %v11443_v43 = vld [vmem:[#allocation2 + $0xa44] ss:$16 sps:$4 sm:$0xff]  }
 0x145   :  { %7746 = vmatpush1.bf16.msra.mxu0 %v11351_v44  ;;  %8525 = vmatpush1.bf16.msra.mxu1 %v11354_v45  ;;  %v11446_v44 = vld [vmem:[#allocation2 + $0xa4c] ss:$16 sps:$4 sm:$0xff]   ;;  %v11441_v45 = vld [vmem:[#allocation2 + $0xa40] ss:$16 sps:$4 sm:$0xff]  }
 0x146   :  { %7747 = vmatprep.subr.bf16.mxu0 %v11359_v46  ;;  %8526 = vmatprep.subr.bf16.mxu1 %v11362_v47  ;;  %v11444_v46 = vld [vmem:[#allocation2 + $0xa48] ss:$16 sps:$4 sm:$0xff]   ;;  %v11452_v47 = vld [vmem:[#allocation2 + $0xa6c] ss:$16 sps:$4 sm:$0xff]  }
 0x149   :  { %7748 = vmatpush1.bf16.msra.mxu0 %v11357_v48  ;;  %8527 = vmatpush1.bf16.msra.mxu1 %v11360_v50  ;;  %v11447_v48 = vld [vmem:[#allocation2 + $0xa60] ss:$16 sps:$4 sm:$0xff]   ;;  %v11450_v50 = vld [vmem:[#allocation2 + $0xa68] ss:$16 sps:$4 sm:$0xff]  }
 0x14a   :  { %7749 = vmatprep.subr.bf16.mxu0 %v11365_v51  ;;  %8528 = vmatprep.subr.bf16.mxu1 %v11368_v53  ;;  %v11455_v51 = vld [vmem:[#allocation2 + $0xa84] ss:$16 sps:$4 sm:$0xff]   ;;  %v11458_v53 = vld [vmem:[#allocation2 + $0xa8c] ss:$16 sps:$4 sm:$0xff]  }
 0x14d   :  { %7750 = vmatpush1.bf16.msra.mxu0 %v11363_v54  ;;  %8529 = vmatpush1.bf16.msra.mxu1 %v11366_v55  ;;  %v11453_v54 = vld [vmem:[#allocation2 + $0xa80] ss:$16 sps:$4 sm:$0xff]   ;;  %v11456_v55 = vld [vmem:[#allocation2 + $0xa88] ss:$16 sps:$4 sm:$0xff]  }
 0x14e   :  { %7751 = vmatprep.subr.bf16.mxu0 %v11371_v56  ;;  %8530 = vmatprep.subr.bf16.mxu1 %v11374_v57  ;;  %v11461_v56 = vld [vmem:[#allocation2 + $0xaa4] ss:$16 sps:$4 sm:$0xff]   ;;  %v11464_v57 = vld [vmem:[#allocation2 + $0xaac] ss:$16 sps:$4 sm:$0xff]  }
 0x151   :  { %7752 = vmatpush1.bf16.msra.mxu0 %v11369_v58  ;;  %8531 = vmatpush1.bf16.msra.mxu1 %v11372_v59  ;;  %v11459_v58 = vld [vmem:[#allocation2 + $0xaa0] ss:$16 sps:$4 sm:$0xff]   ;;  %v11462_v59 = vld [vmem:[#allocation2 + $0xaa8] ss:$16 sps:$4 sm:$0xff]  }
 0x152   :  { %7753 = vmatprep.subr.bf16.mxu0 %v11377_v60  ;;  %8532 = vmatprep.subr.bf16.mxu1 %v11380_v61  ;;  %v11467_v60 = vld [vmem:[#allocation2 + $0xac4] ss:$16 sps:$4 sm:$0xff]   ;;  %v11470_v61 = vld [vmem:[#allocation2 + $0xacc] ss:$16 sps:$4 sm:$0xff]  }
 0x155   :  { %7754 = vmatpush1.bf16.msra.mxu0 %v11375_v62  ;;  %8533 = vmatpush1.bf16.msra.mxu1 %v11378_v63  ;;  %v11465_v62 = vld [vmem:[#allocation2 + $0xac0] ss:$16 sps:$4 sm:$0xff]   ;;  %v11468_v63 = vld [vmem:[#allocation2 + $0xac8] ss:$16 sps:$4 sm:$0xff]  }
 0x156   :  { %7755 = vmatprep.subr.bf16.mxu0 %v11383_v0  ;;  %8534 = vmatprep.subr.bf16.mxu1 %v11386_v1  ;;  %v11473_v0 = vld [vmem:[#allocation2 + $0xae4] ss:$16 sps:$4 sm:$0xff]   ;;  %v11476_v1 = vld [vmem:[#allocation2 + $0xaec] ss:$16 sps:$4 sm:$0xff]  }
 0x159   :  { %7756 = vmatpush1.bf16.msra.mxu0 %v11381_v2  ;;  %8535 = vmatpush1.bf16.msra.mxu1 %v11384_v3  ;;  %v11471_v2 = vld [vmem:[#allocation2 + $0xae0] ss:$16 sps:$4 sm:$0xff]   ;;  %v11474_v3 = vld [vmem:[#allocation2 + $0xae8] ss:$16 sps:$4 sm:$0xff]  }
 0x15a   :  { %7757 = vmatprep.subr.bf16.mxu0 %v11389_v4  ;;  %8536 = vmatprep.subr.bf16.mxu1 %v11392_v5  ;;  %v11479_v4 = vld [vmem:[#allocation2 + $0xb04] ss:$16 sps:$4 sm:$0xff]   ;;  %v11482_v5 = vld [vmem:[#allocation2 + $0xb0c] ss:$16 sps:$4 sm:$0xff]  }
 0x15d   :  { %7758 = vmatpush1.bf16.msra.mxu0 %v11387_v6  ;;  %8537 = vmatpush1.bf16.msra.mxu1 %v11390_v7  ;;  %v11477_v6 = vld [vmem:[#allocation2 + $0xb00] ss:$16 sps:$4 sm:$0xff]   ;;  %v11480_v7 = vld [vmem:[#allocation2 + $0xb08] ss:$16 sps:$4 sm:$0xff]  }
 0x15e   :  { %7759 = vmatprep.subr.bf16.mxu0 %v11395_v8  ;;  %8538 = vmatprep.subr.bf16.mxu1 %v11398_v9  ;;  %v11485_v8 = vld [vmem:[#allocation2 + $0xb24] ss:$16 sps:$4 sm:$0xff]   ;;  %v11488_v9 = vld [vmem:[#allocation2 + $0xb2c] ss:$16 sps:$4 sm:$0xff]  }
 0x161   :  { %7760 = vmatpush1.bf16.msra.mxu0 %v11393_v10  ;;  %8539 = vmatpush1.bf16.msra.mxu1 %v11396_v11  ;;  %v11483_v10 = vld [vmem:[#allocation2 + $0xb20] ss:$16 sps:$4 sm:$0xff]   ;;  %v11486_v11 = vld [vmem:[#allocation2 + $0xb28] ss:$16 sps:$4 sm:$0xff]  }
 0x162   :  { %7761 = vmatprep.subr.bf16.mxu0 %v11401_v12  ;;  %8540 = vmatprep.subr.bf16.mxu1 %v11404_v14  ;;  %v11491_v12 = vld [vmem:[#allocation2 + $0xb44] ss:$16 sps:$4 sm:$0xff]   ;;  %v11494_v14 = vld [vmem:[#allocation2 + $0xb4c] ss:$16 sps:$4 sm:$0xff]  }
 0x165   :  { %7762 = vmatpush1.bf16.msra.mxu0 %v11399_v16  ;;  %8541 = vmatpush1.bf16.msra.mxu1 %v11402_v17  ;;  %v11489_v16 = vld [vmem:[#allocation2 + $0xb40] ss:$16 sps:$4 sm:$0xff]   ;;  %v11492_v17 = vld [vmem:[#allocation2 + $0xb48] ss:$16 sps:$4 sm:$0xff]  }
 0x166   :  { %7763 = vmatprep.subr.bf16.mxu0 %v11407_v18  ;;  %8542 = vmatprep.subr.bf16.mxu1 %v11410_v19  ;;  %v11497_v18 = vld [vmem:[#allocation2 + $0xb64] ss:$16 sps:$4 sm:$0xff]   ;;  %v11500_v19 = vld [vmem:[#allocation2 + $0xb6c] ss:$16 sps:$4 sm:$0xff]  }
 0x169   :  { %7764 = vmatpush1.bf16.msra.mxu0 %v11405_v52  ;;  %8543 = vmatpush1.bf16.msra.mxu1 %v11408_v20  ;;  %v11495_v52 = vld [vmem:[#allocation2 + $0xb60] ss:$16 sps:$4 sm:$0xff]   ;;  %v11498_v20 = vld [vmem:[#allocation2 + $0xb68] ss:$16 sps:$4 sm:$0xff]  }
 0x16a   :  { %7765 = vmatprep.subr.bf16.mxu0 %v11413_v22  ;;  %8544 = vmatprep.subr.bf16.mxu1 %v11416_v23  ;;  %v11503_v22 = vld [vmem:[#allocation2 + $0xb84] ss:$16 sps:$4 sm:$0xff]   ;;  %v11506_v23 = vld [vmem:[#allocation2 + $0xb8c] ss:$16 sps:$4 sm:$0xff]  }
 0x16d   :  { %7766 = vmatpush1.bf16.msra.mxu0 %v11411_v24  ;;  %8545 = vmatpush1.bf16.msra.mxu1 %v11414_v26  ;;  %v11501_v24 = vld [vmem:[#allocation2 + $0xb80] ss:$16 sps:$4 sm:$0xff]   ;;  %v11504_v26 = vld [vmem:[#allocation2 + $0xb88] ss:$16 sps:$4 sm:$0xff]  }
 0x16e   :  { %7767 = vmatprep.subr.bf16.mxu0 %v11419_v28  ;;  %8546 = vmatprep.subr.bf16.mxu1 %v11422_v13  ;;  %v11509_v28 = vld [vmem:[#allocation2 + $0xba4] ss:$16 sps:$4 sm:$0xff]   ;;  %v11512_v13 = vld [vmem:[#allocation2 + $0xbac] ss:$16 sps:$4 sm:$0xff]  }
 0x171   :  { %7768 = vmatpush1.bf16.msra.mxu0 %v11417_v29  ;;  %8547 = vmatpush1.bf16.msra.mxu1 %v11420_v30  ;;  %v11507_v29 = vld [vmem:[#allocation2 + $0xba0] ss:$16 sps:$4 sm:$0xff]   ;;  %v11510_v30 = vld [vmem:[#allocation2 + $0xba8] ss:$16 sps:$4 sm:$0xff]  }
 0x172   :  { %7769 = vmatprep.subr.bf16.mxu0 %v11425_v31  ;;  %8548 = vmatprep.subr.bf16.mxu1 %v11428_v32  ;;  %v11515_v31 = vld [vmem:[#allocation2 + $0xbc4] ss:$16 sps:$4 sm:$0xff]   ;;  %v11518_v32 = vld [vmem:[#allocation2 + $0xbcc] ss:$16 sps:$4 sm:$0xff]  }
 0x175   :  { %7770 = vmatpush1.bf16.msra.mxu0 %v11423_v15  ;;  %8549 = vmatpush1.bf16.msra.mxu1 %v11426_v33  ;;  %v12789_v15 = vld [vmem:[%s13298_s0 + $0x8] sm:$0xff] }
 0x176   :  { %7780 = vmatprep.subr.bf16.mxu0 %v11431_v34  ;;  %8559 = vmatprep.subr.bf16.mxu1 %v11434_v35  ;;  %v1340_v33 = vcombine.high %v12789_v15, %v12789_v15  ;;  %v11513_v34 = vld [vmem:[#allocation2 + $0xbc0] ss:$16 sps:$4 sm:$0xff]   ;;  %v11516_v35 = vld [vmem:[#allocation2 + $0xbc8] ss:$16 sps:$4 sm:$0xff]  }
 0x177   :  { %v11597_v15 = vld [vmem:[#allocation2 + $0xd80] ss:$16 sps:$4 sm:$0xff]  }
 0x178   :  { %7772 = vmatmul.mubr.bf16.vlgmr.msra.gmra.mrb[0].mxu0 %v13023_v36  ;;  %8551 = vmatmul.mubr.bf16.vlgmr.msra.gmra.mrb[0].mxu1 %v13023_v36 }
 0x179   :  { %7781 = vmatpush1.bf16.msra.mxu0 %v11429_v37  ;;  %8560 = vmatpush1.bf16.msra.mxu1 %v11432_v27  ;;  %v11521_v37 = vld [vmem:[#allocation2 + $0xbe4] ss:$16 sps:$4 sm:$0xff]   ;;  %v11524_v27 = vld [vmem:[#allocation2 + $0xbec] ss:$16 sps:$4 sm:$0xff]  }
 0x17a   :  { %7782 = vmatprep.subr.bf16.mxu0 %v11437_v38  ;;  %8561 = vmatprep.subr.bf16.mxu1 %v11440_v39  ;;  %v13033_v38 = vrot.slane %v1340_v33, %v12970_v49  ;;  %v11519_v39 = vld [vmem:[#allocation2 + $0xbe0] ss:$16 sps:$4 sm:$0xff]   ;;  %v11600_v33 = vld [vmem:[#allocation2 + $0xd88] ss:$16 sps:$4 sm:$0xff]  }
 0x17b   :  { %7812 = vmatprep.mubr.bf16.mxu0 %v1387_v40  ;;  %8591 = vmatprep.mubr.bf16.mxu1 %v1387_v40  ;;  %v11522_v40 = vld [vmem:[#allocation2 + $0xbe8] ss:$16 sps:$4 sm:$0xff]  }
 0x17d   :  { %7783 = vmatpush1.bf16.msra.mxu0 %v11435_v41  ;;  %8562 = vmatpush1.bf16.msra.mxu1 %v11438_v21  ;;  %v11527_v41 = vld [vmem:[#allocation2 + $0xc04] ss:$16 sps:$4 sm:$0xff]   ;;  %v11530_v21 = vld [vmem:[#allocation2 + $0xc0c] ss:$16 sps:$4 sm:$0xff]  }
 0x17e   :  { %7784 = vmatprep.subr.bf16.mxu0 %v11443_v43  ;;  %8563 = vmatprep.subr.bf16.mxu1 %v11446_v44  ;;  %v1356_v43 = vcombine.high %v13033_v38, %v13033_v38  ;;  %v1385_v44 = vcombine.high %v13023_v36, %v13023_v36  ;;  %v11539_v36 = vld [vmem:[#allocation2 + $0xc44] ss:$16 sps:$4 sm:$0xff]  }
 0x181   :  { %7785 = vmatpush1.bf16.msra.mxu0 %v11441_v45  ;;  %8564 = vmatpush1.bf16.msra.mxu1 %v11444_v46  ;;  %v11525_v45 = vld [vmem:[#allocation2 + $0xc00] ss:$16 sps:$4 sm:$0xff]   ;;  %v11528_v46 = vld [vmem:[#allocation2 + $0xc08] ss:$16 sps:$4 sm:$0xff]  }
 0x182   :  { %7786 = vmatprep.subr.bf16.mxu0 %v11449_v25  ;;  %8565 = vmatprep.subr.bf16.mxu1 %v11452_v47  ;;  %v11533_v25 = vld [vmem:[#allocation2 + $0xc24] ss:$16 sps:$4 sm:$0xff]   ;;  %v11536_v47 = vld [vmem:[#allocation2 + $0xc2c] ss:$16 sps:$4 sm:$0xff]  }
 0x185   :  { %7787 = vmatpush1.bf16.msra.mxu0 %v11447_v48  ;;  %8566 = vmatpush1.bf16.msra.mxu1 %v11450_v50  ;;  %v13040_v48 = vrot.slane %v1356_v43, %v12970_v49  ;;  %v11531_v50 = vld [vmem:[#allocation2 + $0xc20] ss:$16 sps:$4 sm:$0xff]   ;;  %v11617_v43 = vld [vmem:[#allocation2 + $0xde4] ss:$16 sps:$4 sm:$0xff]  }
 0x186   :  { %7788 = vmatprep.subr.bf16.mxu0 %v11455_v51  ;;  %8567 = vmatprep.subr.bf16.mxu1 %v11458_v53  ;;  %v11534_v51 = vld [vmem:[#allocation2 + $0xc28] ss:$16 sps:$4 sm:$0xff]   ;;  %v11542_v53 = vld [vmem:[#allocation2 + $0xc4c] ss:$16 sps:$4 sm:$0xff]  }
 0x189   :  { %7789 = vmatpush1.bf16.msra.mxu0 %v11453_v54  ;;  %8568 = vmatpush1.bf16.msra.mxu1 %v11456_v55  ;;  %v11537_v54 = vld [vmem:[#allocation2 + $0xc40] ss:$16 sps:$4 sm:$0xff]   ;;  %v11540_v55 = vld [vmem:[#allocation2 + $0xc48] ss:$16 sps:$4 sm:$0xff]  }
 0x18a   :  { %7790 = vmatprep.subr.bf16.mxu0 %v11461_v56  ;;  %8569 = vmatprep.subr.bf16.mxu1 %v11464_v57  ;;  %v11545_v56 = vld [vmem:[#allocation2 + $0xc64] ss:$16 sps:$4 sm:$0xff]   ;;  %v11548_v57 = vld [vmem:[#allocation2 + $0xc6c] ss:$16 sps:$4 sm:$0xff]  }
 0x18d   :  { %7791 = vmatpush1.bf16.msra.mxu0 %v11459_v58  ;;  %8570 = vmatpush1.bf16.msra.mxu1 %v11462_v59  ;;  %v11543_v58 = vld [vmem:[#allocation2 + $0xc60] ss:$16 sps:$4 sm:$0xff]   ;;  %v11546_v59 = vld [vmem:[#allocation2 + $0xc68] ss:$16 sps:$4 sm:$0xff]  }
 0x18e   :  { %7792 = vmatprep.subr.bf16.mxu0 %v11467_v60  ;;  %8571 = vmatprep.subr.bf16.mxu1 %v11470_v61  ;;  %v11551_v60 = vld [vmem:[#allocation2 + $0xc84] ss:$16 sps:$4 sm:$0xff]   ;;  %v11554_v61 = vld [vmem:[#allocation2 + $0xc8c] ss:$16 sps:$4 sm:$0xff]  }
 0x191   :  { %7793 = vmatpush1.bf16.msra.mxu0 %v11465_v62  ;;  %8572 = vmatpush1.bf16.msra.mxu1 %v11468_v63  ;;  %v11549_v62 = vld [vmem:[#allocation2 + $0xc80] ss:$16 sps:$4 sm:$0xff]   ;;  %v11552_v63 = vld [vmem:[#allocation2 + $0xc88] ss:$16 sps:$4 sm:$0xff]  }
 0x192   :  { %7794 = vmatprep.subr.bf16.mxu0 %v11473_v0  ;;  %8573 = vmatprep.subr.bf16.mxu1 %v11476_v1  ;;  %v11557_v0 = vld [vmem:[#allocation2 + $0xca4] ss:$16 sps:$4 sm:$0xff]   ;;  %v11560_v1 = vld [vmem:[#allocation2 + $0xcac] ss:$16 sps:$4 sm:$0xff]  }
 0x195   :  { %7795 = vmatpush1.bf16.msra.mxu0 %v11471_v2  ;;  %8574 = vmatpush1.bf16.msra.mxu1 %v11474_v3  ;;  %v11555_v2 = vld [vmem:[#allocation2 + $0xca0] ss:$16 sps:$4 sm:$0xff]   ;;  %v11558_v3 = vld [vmem:[#allocation2 + $0xca8] ss:$16 sps:$4 sm:$0xff]  }
 0x196   :  { %7796 = vmatprep.subr.bf16.mxu0 %v11479_v4  ;;  %8575 = vmatprep.subr.bf16.mxu1 %v11482_v5  ;;  %v11563_v4 = vld [vmem:[#allocation2 + $0xcc4] ss:$16 sps:$4 sm:$0xff]   ;;  %v11566_v5 = vld [vmem:[#allocation2 + $0xccc] ss:$16 sps:$4 sm:$0xff]  }
 0x199   :  { %7797 = vmatpush1.bf16.msra.mxu0 %v11477_v6  ;;  %8576 = vmatpush1.bf16.msra.mxu1 %v11480_v7  ;;  %v11561_v6 = vld [vmem:[#allocation2 + $0xcc0] ss:$16 sps:$4 sm:$0xff]   ;;  %v11564_v7 = vld [vmem:[#allocation2 + $0xcc8] ss:$16 sps:$4 sm:$0xff]  }
 0x19a   :  { %7798 = vmatprep.subr.bf16.mxu0 %v11485_v8  ;;  %8577 = vmatprep.subr.bf16.mxu1 %v11488_v9  ;;  %v11569_v8 = vld [vmem:[#allocation2 + $0xce4] ss:$16 sps:$4 sm:$0xff]   ;;  %v11572_v9 = vld [vmem:[#allocation2 + $0xcec] ss:$16 sps:$4 sm:$0xff]  }
 0x19d   :  { %7799 = vmatpush1.bf16.msra.mxu0 %v11483_v10  ;;  %8578 = vmatpush1.bf16.msra.mxu1 %v11486_v11  ;;  %v11567_v10 = vld [vmem:[#allocation2 + $0xce0] ss:$16 sps:$4 sm:$0xff]   ;;  %v11570_v11 = vld [vmem:[#allocation2 + $0xce8] ss:$16 sps:$4 sm:$0xff]  }
 0x19e   :  { %7800 = vmatprep.subr.bf16.mxu0 %v11491_v12  ;;  %8579 = vmatprep.subr.bf16.mxu1 %v11494_v14  ;;  %v11575_v12 = vld [vmem:[#allocation2 + $0xd04] ss:$16 sps:$4 sm:$0xff]   ;;  %v11578_v14 = vld [vmem:[#allocation2 + $0xd0c] ss:$16 sps:$4 sm:$0xff]  }
 0x1a1   :  { %7801 = vmatpush1.bf16.msra.mxu0 %v11489_v16  ;;  %8580 = vmatpush1.bf16.msra.mxu1 %v11492_v17  ;;  %v11573_v16 = vld [vmem:[#allocation2 + $0xd00] ss:$16 sps:$4 sm:$0xff]   ;;  %v11576_v17 = vld [vmem:[#allocation2 + $0xd08] ss:$16 sps:$4 sm:$0xff]  }
 0x1a2   :  { %7802 = vmatprep.subr.bf16.mxu0 %v11497_v18  ;;  %8581 = vmatprep.subr.bf16.mxu1 %v11500_v19  ;;  %v11581_v18 = vld [vmem:[#allocation2 + $0xd24] ss:$16 sps:$4 sm:$0xff]   ;;  %v11584_v19 = vld [vmem:[#allocation2 + $0xd2c] ss:$16 sps:$4 sm:$0xff]  }
 0x1a5   :  { %7803 = vmatpush1.bf16.msra.mxu0 %v11495_v52  ;;  %8582 = vmatpush1.bf16.msra.mxu1 %v11498_v20  ;;  %v11579_v52 = vld [vmem:[#allocation2 + $0xd20] ss:$16 sps:$4 sm:$0xff]   ;;  %v11582_v20 = vld [vmem:[#allocation2 + $0xd28] ss:$16 sps:$4 sm:$0xff]  }
 0x1a6   :  { %7804 = vmatprep.subr.bf16.mxu0 %v11503_v22  ;;  %8583 = vmatprep.subr.bf16.mxu1 %v11506_v23  ;;  %v11587_v22 = vld [vmem:[#allocation2 + $0xd44] ss:$16 sps:$4 sm:$0xff]   ;;  %v11590_v23 = vld [vmem:[#allocation2 + $0xd4c] ss:$16 sps:$4 sm:$0xff]  }
 0x1a9   :  { %7805 = vmatpush1.bf16.msra.mxu0 %v11501_v24  ;;  %8584 = vmatpush1.bf16.msra.mxu1 %v11504_v26  ;;  %v11585_v24 = vld [vmem:[#allocation2 + $0xd40] ss:$16 sps:$4 sm:$0xff]   ;;  %v11588_v26 = vld [vmem:[#allocation2 + $0xd48] ss:$16 sps:$4 sm:$0xff]  }
 0x1aa   :  { %7806 = vmatprep.subr.bf16.mxu0 %v11509_v28  ;;  %8585 = vmatprep.subr.bf16.mxu1 %v11512_v13  ;;  %v11593_v28 = vld [vmem:[#allocation2 + $0xd64] ss:$16 sps:$4 sm:$0xff]   ;;  %v11596_v13 = vld [vmem:[#allocation2 + $0xd6c] ss:$16 sps:$4 sm:$0xff]  }
 0x1ad   :  { %7807 = vmatpush1.bf16.msra.mxu0 %v11507_v29  ;;  %8586 = vmatpush1.bf16.msra.mxu1 %v11510_v30  ;;  %v11591_v29 = vld [vmem:[#allocation2 + $0xd60] ss:$16 sps:$4 sm:$0xff]   ;;  %v11594_v30 = vld [vmem:[#allocation2 + $0xd68] ss:$16 sps:$4 sm:$0xff]  }
 0x1ae   :  { %7808 = vmatprep.subr.bf16.mxu0 %v11515_v31  ;;  %8587 = vmatprep.subr.bf16.mxu1 %v11518_v32  ;;  %v11599_v31 = vld [vmem:[#allocation2 + $0xd84] ss:$16 sps:$4 sm:$0xff]   ;;  %v11602_v32 = vld [vmem:[#allocation2 + $0xd8c] ss:$16 sps:$4 sm:$0xff]  }
 0x1b1   :  { %7809 = vmatpush1.bf16.msra.mxu0 %v11513_v34  ;;  %8588 = vmatpush1.bf16.msra.mxu1 %v11516_v35  ;;  %v11605_v34 = vld [vmem:[#allocation2 + $0xda4] ss:$16 sps:$4 sm:$0xff]   ;;  %v11608_v35 = vld [vmem:[#allocation2 + $0xdac] ss:$16 sps:$4 sm:$0xff]  }
 0x1b2   :  { %7810 = vmatprep.subr.bf16.mxu0 %v11521_v37  ;;  %8589 = vmatprep.subr.bf16.mxu1 %v11524_v27  ;;  %v11603_v37 = vld [vmem:[#allocation2 + $0xda0] ss:$16 sps:$4 sm:$0xff]   ;;  %v11606_v27 = vld [vmem:[#allocation2 + $0xda8] ss:$16 sps:$4 sm:$0xff]  }
 0x1b5   :  { %7811 = vmatpush1.bf16.msra.mxu0 %v11519_v39  ;;  %8590 = vmatpush1.bf16.msra.mxu1 %v11522_v40  ;;  %v11611_v39 = vld [vmem:[#allocation2 + $0xdc4] ss:$16 sps:$4 sm:$0xff]   ;;  %v11614_v40 = vld [vmem:[#allocation2 + $0xdcc] ss:$16 sps:$4 sm:$0xff]  }
 0x1b6   :  { %7821 = vmatprep.subr.bf16.mxu0 %v11527_v41  ;;  %8600 = vmatprep.subr.bf16.mxu1 %v11530_v21  ;;  %v11609_v41 = vld [vmem:[#allocation2 + $0xdc0] ss:$16 sps:$4 sm:$0xff]   ;;  %v11612_v21 = vld [vmem:[#allocation2 + $0xdc8] ss:$16 sps:$4 sm:$0xff]  }
 0x1b8   :  { %7813 = vmatmul.mubr.bf16.vlgmr.msra.gmra.mrb[0].mxu0 %v1385_v44  ;;  %8592 = vmatmul.mubr.bf16.vlgmr.msra.gmra.mrb[0].mxu1 %v1385_v44  ;;  %v11620_v44 = vld [vmem:[#allocation2 + $0xdec] ss:$16 sps:$4 sm:$0xff]  }
 0x1b9   :  { %7822 = vmatpush1.bf16.msra.mxu0 %v11525_v45  ;;  %8601 = vmatpush1.bf16.msra.mxu1 %v11528_v46  ;;  %v11615_v45 = vld [vmem:[#allocation2 + $0xde0] ss:$16 sps:$4 sm:$0xff]   ;;  %v11618_v46 = vld [vmem:[#allocation2 + $0xde8] ss:$16 sps:$4 sm:$0xff]  }
 0x1ba   :  { %7823 = vmatprep.subr.bf16.mxu0 %v11533_v25  ;;  %8602 = vmatprep.subr.bf16.mxu1 %v11536_v47  ;;  %v11624_v25 = vld [vmem:[#allocation2 + $0xe04] ss:$16 sps:$4 sm:$0xff]   ;;  %v11627_v47 = vld [vmem:[#allocation2 + $0xe0c] ss:$16 sps:$4 sm:$0xff]  }
 0x1bb   :  { %7853 = vmatprep.mubr.bf16.mxu0 %v13040_v48  ;;  %8632 = vmatprep.mubr.bf16.mxu1 %v13040_v48 }
 0x1bd   :  { %7824 = vmatpush1.bf16.msra.mxu0 %v11531_v50  ;;  %8603 = vmatpush1.bf16.msra.mxu1 %v11534_v51  ;;  %v13046_v50 = vrot.slane %v13033_v38, %v12970_v49  ;;  %v11622_v51 = vld [vmem:[#allocation2 + $0xe00] ss:$16 sps:$4 sm:$0xff]   ;;  %v11631_v38 = vld [vmem:[#allocation2 + $0xe28] ss:$16 sps:$4 sm:$0xff]  }
 0x1be   :  { %7825 = vmatprep.subr.bf16.mxu0 %v11539_v36  ;;  %8604 = vmatprep.subr.bf16.mxu1 %v11542_v53  ;;  %v11625_v36 = vld [vmem:[#allocation2 + $0xe08] ss:$16 sps:$4 sm:$0xff]   ;;  %v11630_v53 = vld [vmem:[#allocation2 + $0xe24] ss:$16 sps:$4 sm:$0xff]  }
 0x1c1   :  { %7826 = vmatpush1.bf16.msra.mxu0 %v11537_v54  ;;  %8605 = vmatpush1.bf16.msra.mxu1 %v11540_v55  ;;  %v11633_v54 = vld [vmem:[#allocation2 + $0xe2c] ss:$16 sps:$4 sm:$0xff]   ;;  %v1388_v55 = vcombine.high %v13040_v48, %v13040_v48  ;;  %v11642_v48 = vld [vmem:[#allocation2 + $0xe64] ss:$16 sps:$4 sm:$0xff]  }
 0x1c2   :  { %7827 = vmatprep.subr.bf16.mxu0 %v11545_v56  ;;  %8606 = vmatprep.subr.bf16.mxu1 %v11548_v57  ;;  %v11628_v56 = vld [vmem:[#allocation2 + $0xe20] ss:$16 sps:$4 sm:$0xff]   ;;  %v11636_v57 = vld [vmem:[#allocation2 + $0xe44] ss:$16 sps:$4 sm:$0xff]  }
 0x1c5   :  { %7828 = vmatpush1.bf16.msra.mxu0 %v11543_v58  ;;  %8607 = vmatpush1.bf16.msra.mxu1 %v11546_v59  ;;  %v11639_v58 = vld [vmem:[#allocation2 + $0xe4c] ss:$16 sps:$4 sm:$0xff]   ;;  %v11634_v59 = vld [vmem:[#allocation2 + $0xe40] ss:$16 sps:$4 sm:$0xff]  }
 0x1c6   :  { %7829 = vmatprep.subr.bf16.mxu0 %v11551_v60  ;;  %8608 = vmatprep.subr.bf16.mxu1 %v11554_v61  ;;  %v11637_v60 = vld [vmem:[#allocation2 + $0xe48] ss:$16 sps:$4 sm:$0xff]   ;;  %v11645_v61 = vld [vmem:[#allocation2 + $0xe6c] ss:$16 sps:$4 sm:$0xff]  }
 0x1c9   :  { %7830 = vmatpush1.bf16.msra.mxu0 %v11549_v62  ;;  %8609 = vmatpush1.bf16.msra.mxu1 %v11552_v63  ;;  %v11640_v62 = vld [vmem:[#allocation2 + $0xe60] ss:$16 sps:$4 sm:$0xff]   ;;  %v11643_v63 = vld [vmem:[#allocation2 + $0xe68] ss:$16 sps:$4 sm:$0xff]  }
 0x1ca   :  { %7831 = vmatprep.subr.bf16.mxu0 %v11557_v0  ;;  %8610 = vmatprep.subr.bf16.mxu1 %v11560_v1  ;;  %v11648_v0 = vld [vmem:[#allocation2 + $0xe84] ss:$16 sps:$4 sm:$0xff]   ;;  %v11651_v1 = vld [vmem:[#allocation2 + $0xe8c] ss:$16 sps:$4 sm:$0xff]  }
 0x1cd   :  { %7832 = vmatpush1.bf16.msra.mxu0 %v11555_v2  ;;  %8611 = vmatpush1.bf16.msra.mxu1 %v11558_v3  ;;  %v11646_v2 = vld [vmem:[#allocation2 + $0xe80] ss:$16 sps:$4 sm:$0xff]   ;;  %v11649_v3 = vld [vmem:[#allocation2 + $0xe88] ss:$16 sps:$4 sm:$0xff]  }
 0x1ce   :  { %7833 = vmatprep.subr.bf16.mxu0 %v11563_v4  ;;  %8612 = vmatprep.subr.bf16.mxu1 %v11566_v5  ;;  %v11654_v4 = vld [vmem:[#allocation2 + $0xea4] ss:$16 sps:$4 sm:$0xff]   ;;  %v11657_v5 = vld [vmem:[#allocation2 + $0xeac] ss:$16 sps:$4 sm:$0xff]  }
 0x1d1   :  { %7834 = vmatpush1.bf16.msra.mxu0 %v11561_v6  ;;  %8613 = vmatpush1.bf16.msra.mxu1 %v11564_v7  ;;  %v11652_v6 = vld [vmem:[#allocation2 + $0xea0] ss:$16 sps:$4 sm:$0xff]   ;;  %v11655_v7 = vld [vmem:[#allocation2 + $0xea8] ss:$16 sps:$4 sm:$0xff]  }
 0x1d2   :  { %7835 = vmatprep.subr.bf16.mxu0 %v11569_v8  ;;  %8614 = vmatprep.subr.bf16.mxu1 %v11572_v9  ;;  %v11660_v8 = vld [vmem:[#allocation2 + $0xec4] ss:$16 sps:$4 sm:$0xff]   ;;  %v11663_v9 = vld [vmem:[#allocation2 + $0xecc] ss:$16 sps:$4 sm:$0xff]  }
 0x1d5   :  { %7836 = vmatpush1.bf16.msra.mxu0 %v11567_v10  ;;  %8615 = vmatpush1.bf16.msra.mxu1 %v11570_v11  ;;  %v11658_v10 = vld [vmem:[#allocation2 + $0xec0] ss:$16 sps:$4 sm:$0xff]   ;;  %v11661_v11 = vld [vmem:[#allocation2 + $0xec8] ss:$16 sps:$4 sm:$0xff]  }
 0x1d6   :  { %7837 = vmatprep.subr.bf16.mxu0 %v11575_v12  ;;  %8616 = vmatprep.subr.bf16.mxu1 %v11578_v14  ;;  %v11666_v12 = vld [vmem:[#allocation2 + $0xee4] ss:$16 sps:$4 sm:$0xff]   ;;  %v11669_v14 = vld [vmem:[#allocation2 + $0xeec] ss:$16 sps:$4 sm:$0xff]  }
 0x1d9   :  { %7838 = vmatpush1.bf16.msra.mxu0 %v11573_v16  ;;  %8617 = vmatpush1.bf16.msra.mxu1 %v11576_v17  ;;  %v11664_v16 = vld [vmem:[#allocation2 + $0xee0] ss:$16 sps:$4 sm:$0xff]   ;;  %v11667_v17 = vld [vmem:[#allocation2 + $0xee8] ss:$16 sps:$4 sm:$0xff]  }
 0x1da   :  { %7839 = vmatprep.subr.bf16.mxu0 %v11581_v18  ;;  %8618 = vmatprep.subr.bf16.mxu1 %v11584_v19  ;;  %v11672_v18 = vld [vmem:[#allocation2 + $0xf04] ss:$16 sps:$4 sm:$0xff]   ;;  %v11675_v19 = vld [vmem:[#allocation2 + $0xf0c] ss:$16 sps:$4 sm:$0xff]  }
 0x1dd   :  { %7840 = vmatpush1.bf16.msra.mxu0 %v11579_v52  ;;  %8619 = vmatpush1.bf16.msra.mxu1 %v11582_v20  ;;  %v11670_v52 = vld [vmem:[#allocation2 + $0xf00] ss:$16 sps:$4 sm:$0xff]   ;;  %v11673_v20 = vld [vmem:[#allocation2 + $0xf08] ss:$16 sps:$4 sm:$0xff]  }
 0x1de   :  { %7841 = vmatprep.subr.bf16.mxu0 %v11587_v22  ;;  %8620 = vmatprep.subr.bf16.mxu1 %v11590_v23  ;;  %v11678_v22 = vld [vmem:[#allocation2 + $0xf24] ss:$16 sps:$4 sm:$0xff]   ;;  %v11681_v23 = vld [vmem:[#allocation2 + $0xf2c] ss:$16 sps:$4 sm:$0xff]  }
 0x1e1   :  { %7842 = vmatpush1.bf16.msra.mxu0 %v11585_v24  ;;  %8621 = vmatpush1.bf16.msra.mxu1 %v11588_v26  ;;  %v11676_v24 = vld [vmem:[#allocation2 + $0xf20] ss:$16 sps:$4 sm:$0xff]   ;;  %v11679_v26 = vld [vmem:[#allocation2 + $0xf28] ss:$16 sps:$4 sm:$0xff]  }
 0x1e2   :  { %7843 = vmatprep.subr.bf16.mxu0 %v11593_v28  ;;  %8622 = vmatprep.subr.bf16.mxu1 %v11596_v13  ;;  %v11684_v28 = vld [vmem:[#allocation2 + $0xf44] ss:$16 sps:$4 sm:$0xff]   ;;  %v11687_v13 = vld [vmem:[#allocation2 + $0xf4c] ss:$16 sps:$4 sm:$0xff]  }
 0x1e5   :  { %7844 = vmatpush1.bf16.msra.mxu0 %v11591_v29  ;;  %8623 = vmatpush1.bf16.msra.mxu1 %v11594_v30  ;;  %v11682_v29 = vld [vmem:[#allocation2 + $0xf40] ss:$16 sps:$4 sm:$0xff]   ;;  %v11685_v30 = vld [vmem:[#allocation2 + $0xf48] ss:$16 sps:$4 sm:$0xff]  }
 0x1e6   :  { %7845 = vmatprep.subr.bf16.mxu0 %v11599_v31  ;;  %8624 = vmatprep.subr.bf16.mxu1 %v11602_v32  ;;  %v11690_v31 = vld [vmem:[#allocation2 + $0xf64] ss:$16 sps:$4 sm:$0xff]   ;;  %v11693_v32 = vld [vmem:[#allocation2 + $0xf6c] ss:$16 sps:$4 sm:$0xff]  }
 0x1e9   :  { %7846 = vmatpush1.bf16.msra.mxu0 %v11597_v15  ;;  %8625 = vmatpush1.bf16.msra.mxu1 %v11600_v33  ;;  %v11688_v15 = vld [vmem:[#allocation2 + $0xf60] ss:$16 sps:$4 sm:$0xff]   ;;  %v11691_v33 = vld [vmem:[#allocation2 + $0xf68] ss:$16 sps:$4 sm:$0xff]  }
 0x1ea   :  { %7847 = vmatprep.subr.bf16.mxu0 %v11605_v34  ;;  %8626 = vmatprep.subr.bf16.mxu1 %v11608_v35  ;;  %v11696_v34 = vld [vmem:[#allocation2 + $0xf84] ss:$16 sps:$4 sm:$0xff]   ;;  %v11699_v35 = vld [vmem:[#allocation2 + $0xf8c] ss:$16 sps:$4 sm:$0xff]  }
 0x1ed   :  { %7848 = vmatpush1.bf16.msra.mxu0 %v11603_v37  ;;  %8627 = vmatpush1.bf16.msra.mxu1 %v11606_v27  ;;  %v11694_v37 = vld [vmem:[#allocation2 + $0xf80] ss:$16 sps:$4 sm:$0xff]   ;;  %v11697_v27 = vld [vmem:[#allocation2 + $0xf88] ss:$16 sps:$4 sm:$0xff]  }
 0x1ee   :  { %7849 = vmatprep.subr.bf16.mxu0 %v11611_v39  ;;  %8628 = vmatprep.subr.bf16.mxu1 %v11614_v40  ;;  %v11702_v39 = vld [vmem:[#allocation2 + $0xfa4] ss:$16 sps:$4 sm:$0xff]   ;;  %v11705_v40 = vld [vmem:[#allocation2 + $0xfac] ss:$16 sps:$4 sm:$0xff]  }
 0x1f1   :  { %7850 = vmatpush1.bf16.msra.mxu0 %v11609_v41  ;;  %8629 = vmatpush1.bf16.msra.mxu1 %v11612_v21  ;;  %v11700_v41 = vld [vmem:[#allocation2 + $0xfa0] ss:$16 sps:$4 sm:$0xff]   ;;  %v11703_v21 = vld [vmem:[#allocation2 + $0xfa8] ss:$16 sps:$4 sm:$0xff]  }
 0x1f2   :  { %7851 = vmatprep.subr.bf16.mxu0 %v11617_v43  ;;  %8630 = vmatprep.subr.bf16.mxu1 %v11620_v44  ;;  %v11708_v43 = vld [vmem:[#allocation2 + $0xfc4] ss:$16 sps:$4 sm:$0xff]   ;;  %v11711_v44 = vld [vmem:[#allocation2 + $0xfcc] ss:$16 sps:$4 sm:$0xff]  }
 0x1f5   :  { %7852 = vmatpush1.bf16.msra.mxu0 %v11615_v45  ;;  %8631 = vmatpush1.bf16.msra.mxu1 %v11618_v46  ;;  %v13055_v45 = vld.sshfl [vmem:[%s13298_s0 + $0x10] sm:$0xff pattern:$0x75316420] }
 0x1f6   :  { %7862 = vmatprep.subr.bf16.mxu0 %v11624_v25  ;;  %8641 = vmatprep.subr.bf16.mxu1 %v11627_v47  ;;  %v11706_v46 = vld [vmem:[#allocation2 + $0xfc0] ss:$16 sps:$4 sm:$0xff]   ;;  %v11709_v25 = vld [vmem:[#allocation2 + $0xfc8] ss:$16 sps:$4 sm:$0xff]   ;;  %v11714_v47 = vld [vmem:[#allocation2 + $0xfe4] ss:$16 sps:$4 sm:$0xff]  }
 0x1f8   :  { %7854 = vmatmul.mubr.bf16.vlgmr.msra.gmra.mrb[0].mxu0 %v13046_v50  ;;  %8633 = vmatmul.mubr.bf16.vlgmr.msra.gmra.mrb[0].mxu1 %v13046_v50 }
 0x1f9   :  { %7863 = vmatpush1.bf16.msra.mxu0 %v11622_v51  ;;  %8642 = vmatpush1.bf16.msra.mxu1 %v11625_v36  ;;  %v11717_v51 = vld [vmem:[#allocation2 + $0xfec] ss:$16 sps:$4 sm:$0xff]   ;;  %v11712_v36 = vld [vmem:[#allocation2 + $0xfe0] ss:$16 sps:$4 sm:$0xff]  }
 0x1fa   :  { %7864 = vmatprep.subr.bf16.mxu0 %v11630_v53  ;;  %8643 = vmatprep.subr.bf16.mxu1 %v11633_v54  ;;  %v11715_v53 = vld [vmem:[#allocation2 + $0xfe8] ss:$16 sps:$4 sm:$0xff]   ;;  %v11720_v54 = vld [vmem:[#allocation2 + $0x1004] ss:$16 sps:$4 sm:$0xff]  }
 0x1fb   :  { %7894 = vmatprep.mubr.bf16.mxu0 %v1388_v55  ;;  %8673 = vmatprep.mubr.bf16.mxu1 %v1388_v55  ;;  %v11723_v55 = vld [vmem:[#allocation2 + $0x100c] ss:$16 sps:$4 sm:$0xff]  }
 0x1fd   :  { %7865 = vmatpush1.bf16.msra.mxu0 %v11628_v56  ;;  %8644 = vmatpush1.bf16.msra.mxu1 %v11631_v38  ;;  %v1404_v56 = vcombine.high %v13055_v45, %v13055_v45  ;;  %v1386_v38 = vcombine.high %v13046_v50, %v13046_v50  ;;  %v11732_v50 = vld [vmem:[#allocation2 + $0x1044] ss:$16 sps:$4 sm:$0xff]  }
 0x1fe   :  { %7866 = vmatprep.subr.bf16.mxu0 %v11636_v57  ;;  %8645 = vmatprep.subr.bf16.mxu1 %v11639_v58  ;;  %v11718_v57 = vld [vmem:[#allocation2 + $0x1000] ss:$16 sps:$4 sm:$0xff]   ;;  %v11721_v58 = vld [vmem:[#allocation2 + $0x1008] ss:$16 sps:$4 sm:$0xff]  }
 0x201   :  { %7867 = vmatpush1.bf16.msra.mxu0 %v11634_v59  ;;  %8646 = vmatpush1.bf16.msra.mxu1 %v11637_v60  ;;  %v11726_v59 = vld [vmem:[#allocation2 + $0x1024] ss:$16 sps:$4 sm:$0xff]   ;;  %v11729_v60 = vld [vmem:[#allocation2 + $0x102c] ss:$16 sps:$4 sm:$0xff]  }
 0x202   :  { %7868 = vmatprep.subr.bf16.mxu0 %v11642_v48  ;;  %8647 = vmatprep.subr.bf16.mxu1 %v11645_v61  ;;  %v13062_v48 = vrot.slane %v1404_v56, %v12970_v49  ;;  %v11724_v61 = vld [vmem:[#allocation2 + $0x1020] ss:$16 sps:$4 sm:$0xff]   ;;  %v11810_v56 = vld [vmem:[#allocation2 + $0x11e4] ss:$16 sps:$4 sm:$0xff]  }
 0x205   :  { %7869 = vmatpush1.bf16.msra.mxu0 %v11640_v62  ;;  %8648 = vmatpush1.bf16.msra.mxu1 %v11643_v63  ;;  %v11727_v62 = vld [vmem:[#allocation2 + $0x1028] ss:$16 sps:$4 sm:$0xff]   ;;  %v11735_v63 = vld [vmem:[#allocation2 + $0x104c] ss:$16 sps:$4 sm:$0xff]  }
 0x206   :  { %7870 = vmatprep.subr.bf16.mxu0 %v11648_v0  ;;  %8649 = vmatprep.subr.bf16.mxu1 %v11651_v1  ;;  %v11730_v0 = vld [vmem:[#allocation2 + $0x1040] ss:$16 sps:$4 sm:$0xff]   ;;  %v11733_v1 = vld [vmem:[#allocation2 + $0x1048] ss:$16 sps:$4 sm:$0xff]  }
 0x209   :  { %7871 = vmatpush1.bf16.msra.mxu0 %v11646_v2  ;;  %8650 = vmatpush1.bf16.msra.mxu1 %v11649_v3  ;;  %v11738_v2 = vld [vmem:[#allocation2 + $0x1064] ss:$16 sps:$4 sm:$0xff]   ;;  %v11741_v3 = vld [vmem:[#allocation2 + $0x106c] ss:$16 sps:$4 sm:$0xff]  }
 0x20a   :  { %7872 = vmatprep.subr.bf16.mxu0 %v11654_v4  ;;  %8651 = vmatprep.subr.bf16.mxu1 %v11657_v5  ;;  %v11736_v4 = vld [vmem:[#allocation2 + $0x1060] ss:$16 sps:$4 sm:$0xff]   ;;  %v11739_v5 = vld [vmem:[#allocation2 + $0x1068] ss:$16 sps:$4 sm:$0xff]  }
 0x20d   :  { %7873 = vmatpush1.bf16.msra.mxu0 %v11652_v6  ;;  %8652 = vmatpush1.bf16.msra.mxu1 %v11655_v7  ;;  %v11744_v6 = vld [vmem:[#allocation2 + $0x1084] ss:$16 sps:$4 sm:$0xff]   ;;  %v11747_v7 = vld [vmem:[#allocation2 + $0x108c] ss:$16 sps:$4 sm:$0xff]  }
 0x20e   :  { %7874 = vmatprep.subr.bf16.mxu0 %v11660_v8  ;;  %8653 = vmatprep.subr.bf16.mxu1 %v11663_v9  ;;  %v11742_v8 = vld [vmem:[#allocation2 + $0x1080] ss:$16 sps:$4 sm:$0xff]   ;;  %v11745_v9 = vld [vmem:[#allocation2 + $0x1088] ss:$16 sps:$4 sm:$0xff]  }
 0x211   :  { %7875 = vmatpush1.bf16.msra.mxu0 %v11658_v10  ;;  %8654 = vmatpush1.bf16.msra.mxu1 %v11661_v11  ;;  %v11750_v10 = vld [vmem:[#allocation2 + $0x10a4] ss:$16 sps:$4 sm:$0xff]   ;;  %v11753_v11 = vld [vmem:[#allocation2 + $0x10ac] ss:$16 sps:$4 sm:$0xff]  }
 0x212   :  { %7876 = vmatprep.subr.bf16.mxu0 %v11666_v12  ;;  %8655 = vmatprep.subr.bf16.mxu1 %v11669_v14  ;;  %v11748_v12 = vld [vmem:[#allocation2 + $0x10a0] ss:$16 sps:$4 sm:$0xff]   ;;  %v11751_v14 = vld [vmem:[#allocation2 + $0x10a8] ss:$16 sps:$4 sm:$0xff]  }
 0x215   :  { %7877 = vmatpush1.bf16.msra.mxu0 %v11664_v16  ;;  %8656 = vmatpush1.bf16.msra.mxu1 %v11667_v17  ;;  %v11756_v16 = vld [vmem:[#allocation2 + $0x10c4] ss:$16 sps:$4 sm:$0xff]   ;;  %v11759_v17 = vld [vmem:[#allocation2 + $0x10cc] ss:$16 sps:$4 sm:$0xff]  }
 0x216   :  { %7878 = vmatprep.subr.bf16.mxu0 %v11672_v18  ;;  %8657 = vmatprep.subr.bf16.mxu1 %v11675_v19  ;;  %v11754_v18 = vld [vmem:[#allocation2 + $0x10c0] ss:$16 sps:$4 sm:$0xff]   ;;  %v11757_v19 = vld [vmem:[#allocation2 + $0x10c8] ss:$16 sps:$4 sm:$0xff]  }
 0x219   :  { %7879 = vmatpush1.bf16.msra.mxu0 %v11670_v52  ;;  %8658 = vmatpush1.bf16.msra.mxu1 %v11673_v20  ;;  %v11762_v52 = vld [vmem:[#allocation2 + $0x10e4] ss:$16 sps:$4 sm:$0xff]   ;;  %v11765_v20 = vld [vmem:[#allocation2 + $0x10ec] ss:$16 sps:$4 sm:$0xff]  }
 0x21a   :  { %7880 = vmatprep.subr.bf16.mxu0 %v11678_v22  ;;  %8659 = vmatprep.subr.bf16.mxu1 %v11681_v23  ;;  %v11760_v22 = vld [vmem:[#allocation2 + $0x10e0] ss:$16 sps:$4 sm:$0xff]   ;;  %v11763_v23 = vld [vmem:[#allocation2 + $0x10e8] ss:$16 sps:$4 sm:$0xff]  }
 0x21d   :  { %7881 = vmatpush1.bf16.msra.mxu0 %v11676_v24  ;;  %8660 = vmatpush1.bf16.msra.mxu1 %v11679_v26  ;;  %v11768_v24 = vld [vmem:[#allocation2 + $0x1104] ss:$16 sps:$4 sm:$0xff]   ;;  %v11771_v26 = vld [vmem:[#allocation2 + $0x110c] ss:$16 sps:$4 sm:$0xff]  }
 0x21e   :  { %7882 = vmatprep.subr.bf16.mxu0 %v11684_v28  ;;  %8661 = vmatprep.subr.bf16.mxu1 %v11687_v13  ;;  %v11766_v28 = vld [vmem:[#allocation2 + $0x1100] ss:$16 sps:$4 sm:$0xff]   ;;  %v11769_v13 = vld [vmem:[#allocation2 + $0x1108] ss:$16 sps:$4 sm:$0xff]  }
 0x221   :  { %7883 = vmatpush1.bf16.msra.mxu0 %v11682_v29  ;;  %8662 = vmatpush1.bf16.msra.mxu1 %v11685_v30  ;;  %v11774_v29 = vld [vmem:[#allocation2 + $0x1124] ss:$16 sps:$4 sm:$0xff]   ;;  %v11777_v30 = vld [vmem:[#allocation2 + $0x112c] ss:$16 sps:$4 sm:$0xff]  }
 0x222   :  { %7884 = vmatprep.subr.bf16.mxu0 %v11690_v31  ;;  %8663 = vmatprep.subr.bf16.mxu1 %v11693_v32  ;;  %v11772_v31 = vld [vmem:[#allocation2 + $0x1120] ss:$16 sps:$4 sm:$0xff]   ;;  %v11775_v32 = vld [vmem:[#allocation2 + $0x1128] ss:$16 sps:$4 sm:$0xff]  }
 0x225   :  { %7885 = vmatpush1.bf16.msra.mxu0 %v11688_v15  ;;  %8664 = vmatpush1.bf16.msra.mxu1 %v11691_v33  ;;  %v11780_v15 = vld [vmem:[#allocation2 + $0x1144] ss:$16 sps:$4 sm:$0xff]   ;;  %v11783_v33 = vld [vmem:[#allocation2 + $0x114c] ss:$16 sps:$4 sm:$0xff]  }
 0x226   :  { %7886 = vmatprep.subr.bf16.mxu0 %v11696_v34  ;;  %8665 = vmatprep.subr.bf16.mxu1 %v11699_v35  ;;  %v11778_v34 = vld [vmem:[#allocation2 + $0x1140] ss:$16 sps:$4 sm:$0xff]   ;;  %v11781_v35 = vld [vmem:[#allocation2 + $0x1148] ss:$16 sps:$4 sm:$0xff]  }
 0x229   :  { %7887 = vmatpush1.bf16.msra.mxu0 %v11694_v37  ;;  %8666 = vmatpush1.bf16.msra.mxu1 %v11697_v27  ;;  %v11786_v37 = vld [vmem:[#allocation2 + $0x1164] ss:$16 sps:$4 sm:$0xff]   ;;  %v11789_v27 = vld [vmem:[#allocation2 + $0x116c] ss:$16 sps:$4 sm:$0xff]  }
 0x22a   :  { %7888 = vmatprep.subr.bf16.mxu0 %v11702_v39  ;;  %8667 = vmatprep.subr.bf16.mxu1 %v11705_v40  ;;  %v11784_v39 = vld [vmem:[#allocation2 + $0x1160] ss:$16 sps:$4 sm:$0xff]   ;;  %v11787_v40 = vld [vmem:[#allocation2 + $0x1168] ss:$16 sps:$4 sm:$0xff]  }
 0x22d   :  { %7889 = vmatpush1.bf16.msra.mxu0 %v11700_v41  ;;  %8668 = vmatpush1.bf16.msra.mxu1 %v11703_v21  ;;  %v11792_v41 = vld [vmem:[#allocation2 + $0x1184] ss:$16 sps:$4 sm:$0xff]   ;;  %v11795_v21 = vld [vmem:[#allocation2 + $0x118c] ss:$16 sps:$4 sm:$0xff]  }
 0x22e   :  { %7890 = vmatprep.subr.bf16.mxu0 %v11708_v43  ;;  %8669 = vmatprep.subr.bf16.mxu1 %v11711_v44  ;;  %v11790_v43 = vld [vmem:[#allocation2 + $0x1180] ss:$16 sps:$4 sm:$0xff]   ;;  %v11793_v44 = vld [vmem:[#allocation2 + $0x1188] ss:$16 sps:$4 sm:$0xff]  }
 0x231   :  { %7891 = vmatpush1.bf16.msra.mxu0 %v11706_v46  ;;  %8670 = vmatpush1.bf16.msra.mxu1 %v11709_v25  ;;  %v11798_v46 = vld [vmem:[#allocation2 + $0x11a4] ss:$16 sps:$4 sm:$0xff]   ;;  %v11801_v25 = vld [vmem:[#allocation2 + $0x11ac] ss:$16 sps:$4 sm:$0xff]  }
 0x232   :  { %7892 = vmatprep.subr.bf16.mxu0 %v11714_v47  ;;  %8671 = vmatprep.subr.bf16.mxu1 %v11717_v51  ;;  %v11796_v47 = vld [vmem:[#allocation2 + $0x11a0] ss:$16 sps:$4 sm:$0xff]   ;;  %v11799_v51 = vld [vmem:[#allocation2 + $0x11a8] ss:$16 sps:$4 sm:$0xff]  }
 0x235   :  { %7893 = vmatpush1.bf16.msra.mxu0 %v11712_v36  ;;  %8672 = vmatpush1.bf16.msra.mxu1 %v11715_v53  ;;  %v11804_v36 = vld [vmem:[#allocation2 + $0x11c4] ss:$16 sps:$4 sm:$0xff]   ;;  %v11807_v53 = vld [vmem:[#allocation2 + $0x11cc] ss:$16 sps:$4 sm:$0xff]  }
 0x236   :  { %7903 = vmatprep.subr.bf16.mxu0 %v11720_v54  ;;  %8682 = vmatprep.subr.bf16.mxu1 %v11723_v55  ;;  %v11802_v54 = vld [vmem:[#allocation2 + $0x11c0] ss:$16 sps:$4 sm:$0xff]   ;;  %v11805_v55 = vld [vmem:[#allocation2 + $0x11c8] ss:$16 sps:$4 sm:$0xff]  }
 0x238   :  { %7895 = vmatmul.mubr.bf16.vlgmr.msra.gmra.mrb[0].mxu0 %v1386_v38  ;;  %8674 = vmatmul.mubr.bf16.vlgmr.msra.gmra.mrb[0].mxu1 %v1386_v38  ;;  %v11813_v38 = vld [vmem:[#allocation2 + $0x11ec] ss:$16 sps:$4 sm:$0xff]  }
 0x239   :  { %7904 = vmatpush1.bf16.msra.mxu0 %v11718_v57  ;;  %8683 = vmatpush1.bf16.msra.mxu1 %v11721_v58  ;;  %v11808_v57 = vld [vmem:[#allocation2 + $0x11e0] ss:$16 sps:$4 sm:$0xff]   ;;  %v11811_v58 = vld [vmem:[#allocation2 + $0x11e8] ss:$16 sps:$4 sm:$0xff]  }
 0x23a   :  { %7905 = vmatprep.subr.bf16.mxu0 %v11726_v59  ;;  %8684 = vmatprep.subr.bf16.mxu1 %v11729_v60  ;;  %v11816_v59 = vld [vmem:[#allocation2 + $0x1204] ss:$16 sps:$4 sm:$0xff]   ;;  %v11819_v60 = vld [vmem:[#allocation2 + $0x120c] ss:$16 sps:$4 sm:$0xff]  }
 0x23b   :  { %7935 = vmatprep.mubr.bf16.mxu0 %v13062_v48  ;;  %8714 = vmatprep.mubr.bf16.mxu1 %v13062_v48 }
 0x23d   :  { %7906 = vmatpush1.bf16.msra.mxu0 %v11724_v61  ;;  %8685 = vmatpush1.bf16.msra.mxu1 %v11727_v62  ;;  %v13068_v61 = vrot.slane %v13055_v45, %v12970_v49  ;;  %v11814_v62 = vld [vmem:[#allocation2 + $0x1200] ss:$16 sps:$4 sm:$0xff]   ;;  %v11823_v45 = vld [vmem:[#allocation2 + $0x1228] ss:$16 sps:$4 sm:$0xff]  }
 0x23e   :  { %7907 = vmatprep.subr.bf16.mxu0 %v11732_v50  ;;  %8686 = vmatprep.subr.bf16.mxu1 %v11735_v63  ;;  %v11817_v50 = vld [vmem:[#allocation2 + $0x1208] ss:$16 sps:$4 sm:$0xff]   ;;  %v11822_v63 = vld [vmem:[#allocation2 + $0x1224] ss:$16 sps:$4 sm:$0xff]  }
 0x241   :  { %7908 = vmatpush1.bf16.msra.mxu0 %v11730_v0  ;;  %8687 = vmatpush1.bf16.msra.mxu1 %v11733_v1  ;;  %v11825_v0 = vld [vmem:[#allocation2 + $0x122c] ss:$16 sps:$4 sm:$0xff]   ;;  %v1436_v1 = vcombine.high %v13062_v48, %v13062_v48  ;;  %v11834_v48 = vld [vmem:[#allocation2 + $0x1264] ss:$16 sps:$4 sm:$0xff]  }
 0x242   :  { %7909 = vmatprep.subr.bf16.mxu0 %v11738_v2  ;;  %8688 = vmatprep.subr.bf16.mxu1 %v11741_v3  ;;  %v11820_v2 = vld [vmem:[#allocation2 + $0x1220] ss:$16 sps:$4 sm:$0xff]   ;;  %v11828_v3 = vld [vmem:[#allocation2 + $0x1244] ss:$16 sps:$4 sm:$0xff]  }
 0x245   :  { %7910 = vmatpush1.bf16.msra.mxu0 %v11736_v4  ;;  %8689 = vmatpush1.bf16.msra.mxu1 %v11739_v5  ;;  %v11831_v4 = vld [vmem:[#allocation2 + $0x124c] ss:$16 sps:$4 sm:$0xff]   ;;  %v11826_v5 = vld [vmem:[#allocation2 + $0x1240] ss:$16 sps:$4 sm:$0xff]  }
 0x246   :  { %7911 = vmatprep.subr.bf16.mxu0 %v11744_v6  ;;  %8690 = vmatprep.subr.bf16.mxu1 %v11747_v7  ;;  %v11829_v6 = vld [vmem:[#allocation2 + $0x1248] ss:$16 sps:$4 sm:$0xff]   ;;  %v11837_v7 = vld [vmem:[#allocation2 + $0x126c] ss:$16 sps:$4 sm:$0xff]  }
 0x249   :  { %7912 = vmatpush1.bf16.msra.mxu0 %v11742_v8  ;;  %8691 = vmatpush1.bf16.msra.mxu1 %v11745_v9  ;;  %v11832_v8 = vld [vmem:[#allocation2 + $0x1260] ss:$16 sps:$4 sm:$0xff]   ;;  %v11835_v9 = vld [vmem:[#allocation2 + $0x1268] ss:$16 sps:$4 sm:$0xff]  }
 0x24a   :  { %7913 = vmatprep.subr.bf16.mxu0 %v11750_v10  ;;  %8692 = vmatprep.subr.bf16.mxu1 %v11753_v11  ;;  %v11840_v10 = vld [vmem:[#allocation2 + $0x1284] ss:$16 sps:$4 sm:$0xff]   ;;  %v11843_v11 = vld [vmem:[#allocation2 + $0x128c] ss:$16 sps:$4 sm:$0xff]  }
 0x24d   :  { %7914 = vmatpush1.bf16.msra.mxu0 %v11748_v12  ;;  %8693 = vmatpush1.bf16.msra.mxu1 %v11751_v14  ;;  %v11838_v12 = vld [vmem:[#allocation2 + $0x1280] ss:$16 sps:$4 sm:$0xff]   ;;  %v11841_v14 = vld [vmem:[#allocation2 + $0x1288] ss:$16 sps:$4 sm:$0xff]  }
 0x24e   :  { %7915 = vmatprep.subr.bf16.mxu0 %v11756_v16  ;;  %8694 = vmatprep.subr.bf16.mxu1 %v11759_v17  ;;  %v11846_v16 = vld [vmem:[#allocation2 + $0x12a4] ss:$16 sps:$4 sm:$0xff]   ;;  %v11849_v17 = vld [vmem:[#allocation2 + $0x12ac] ss:$16 sps:$4 sm:$0xff]  }
 0x251   :  { %7916 = vmatpush1.bf16.msra.mxu0 %v11754_v18  ;;  %8695 = vmatpush1.bf16.msra.mxu1 %v11757_v19  ;;  %v11844_v18 = vld [vmem:[#allocation2 + $0x12a0] ss:$16 sps:$4 sm:$0xff]   ;;  %v11847_v19 = vld [vmem:[#allocation2 + $0x12a8] ss:$16 sps:$4 sm:$0xff]  }
 0x252   :  { %7917 = vmatprep.subr.bf16.mxu0 %v11762_v52  ;;  %8696 = vmatprep.subr.bf16.mxu1 %v11765_v20  ;;  %v11852_v52 = vld [vmem:[#allocation2 + $0x12c4] ss:$16 sps:$4 sm:$0xff]   ;;  %v11855_v20 = vld [vmem:[#allocation2 + $0x12cc] ss:$16 sps:$4 sm:$0xff]  }
 0x255   :  { %7918 = vmatpush1.bf16.msra.mxu0 %v11760_v22  ;;  %8697 = vmatpush1.bf16.msra.mxu1 %v11763_v23  ;;  %v11850_v22 = vld [vmem:[#allocation2 + $0x12c0] ss:$16 sps:$4 sm:$0xff]   ;;  %v11853_v23 = vld [vmem:[#allocation2 + $0x12c8] ss:$16 sps:$4 sm:$0xff]  }
 0x256   :  { %7919 = vmatprep.subr.bf16.mxu0 %v11768_v24  ;;  %8698 = vmatprep.subr.bf16.mxu1 %v11771_v26  ;;  %v11858_v24 = vld [vmem:[#allocation2 + $0x12e4] ss:$16 sps:$4 sm:$0xff]   ;;  %v11861_v26 = vld [vmem:[#allocation2 + $0x12ec] ss:$16 sps:$4 sm:$0xff]  }
 0x259   :  { %7920 = vmatpush1.bf16.msra.mxu0 %v11766_v28  ;;  %8699 = vmatpush1.bf16.msra.mxu1 %v11769_v13  ;;  %v11856_v28 = vld [vmem:[#allocation2 + $0x12e0] ss:$16 sps:$4 sm:$0xff]   ;;  %v11859_v13 = vld [vmem:[#allocation2 + $0x12e8] ss:$16 sps:$4 sm:$0xff]  }
 0x25a   :  { %7921 = vmatprep.subr.bf16.mxu0 %v11774_v29  ;;  %8700 = vmatprep.subr.bf16.mxu1 %v11777_v30  ;;  %v11864_v29 = vld [vmem:[#allocation2 + $0x1304] ss:$16 sps:$4 sm:$0xff]   ;;  %v11867_v30 = vld [vmem:[#allocation2 + $0x130c] ss:$16 sps:$4 sm:$0xff]  }
 0x25d   :  { %7922 = vmatpush1.bf16.msra.mxu0 %v11772_v31  ;;  %8701 = vmatpush1.bf16.msra.mxu1 %v11775_v32  ;;  %v11862_v31 = vld [vmem:[#allocation2 + $0x1300] ss:$16 sps:$4 sm:$0xff]   ;;  %v11865_v32 = vld [vmem:[#allocation2 + $0x1308] ss:$16 sps:$4 sm:$0xff]  }
 0x25e   :  { %7923 = vmatprep.subr.bf16.mxu0 %v11780_v15  ;;  %8702 = vmatprep.subr.bf16.mxu1 %v11783_v33  ;;  %v11870_v15 = vld [vmem:[#allocation2 + $0x1324] ss:$16 sps:$4 sm:$0xff]   ;;  %v11873_v33 = vld [vmem:[#allocation2 + $0x132c] ss:$16 sps:$4 sm:$0xff]  }
 0x261   :  { %7924 = vmatpush1.bf16.msra.mxu0 %v11778_v34  ;;  %8703 = vmatpush1.bf16.msra.mxu1 %v11781_v35  ;;  %v11868_v34 = vld [vmem:[#allocation2 + $0x1320] ss:$16 sps:$4 sm:$0xff]   ;;  %v11871_v35 = vld [vmem:[#allocation2 + $0x1328] ss:$16 sps:$4 sm:$0xff]  }
 0x262   :  { %7925 = vmatprep.subr.bf16.mxu0 %v11786_v37  ;;  %8704 = vmatprep.subr.bf16.mxu1 %v11789_v27  ;;  %v11876_v37 = vld [vmem:[#allocation2 + $0x1344] ss:$16 sps:$4 sm:$0xff]   ;;  %v11879_v27 = vld [vmem:[#allocation2 + $0x134c] ss:$16 sps:$4 sm:$0xff]  }
 0x265   :  { %7926 = vmatpush1.bf16.msra.mxu0 %v11784_v39  ;;  %8705 = vmatpush1.bf16.msra.mxu1 %v11787_v40  ;;  %v11874_v39 = vld [vmem:[#allocation2 + $0x1340] ss:$16 sps:$4 sm:$0xff]   ;;  %v11877_v40 = vld [vmem:[#allocation2 + $0x1348] ss:$16 sps:$4 sm:$0xff]  }
 0x266   :  { %7927 = vmatprep.subr.bf16.mxu0 %v11792_v41  ;;  %8706 = vmatprep.subr.bf16.mxu1 %v11795_v21  ;;  %v11882_v41 = vld [vmem:[#allocation2 + $0x1364] ss:$16 sps:$4 sm:$0xff]   ;;  %v11885_v21 = vld [vmem:[#allocation2 + $0x136c] ss:$16 sps:$4 sm:$0xff]  }
 0x269   :  { %7928 = vmatpush1.bf16.msra.mxu0 %v11790_v43  ;;  %8707 = vmatpush1.bf16.msra.mxu1 %v11793_v44  ;;  %v11880_v43 = vld [vmem:[#allocation2 + $0x1360] ss:$16 sps:$4 sm:$0xff]   ;;  %v11883_v44 = vld [vmem:[#allocation2 + $0x1368] ss:$16 sps:$4 sm:$0xff]  }
 0x26a   :  { %7929 = vmatprep.subr.bf16.mxu0 %v11798_v46  ;;  %8708 = vmatprep.subr.bf16.mxu1 %v11801_v25  ;;  %v11888_v46 = vld [vmem:[#allocation2 + $0x1384] ss:$16 sps:$4 sm:$0xff]   ;;  %v11891_v25 = vld [vmem:[#allocation2 + $0x138c] ss:$16 sps:$4 sm:$0xff]  }
 0x26d   :  { %7930 = vmatpush1.bf16.msra.mxu0 %v11796_v47  ;;  %8709 = vmatpush1.bf16.msra.mxu1 %v11799_v51  ;;  %v11886_v47 = vld [vmem:[#allocation2 + $0x1380] ss:$16 sps:$4 sm:$0xff]   ;;  %v11889_v51 = vld [vmem:[#allocation2 + $0x1388] ss:$16 sps:$4 sm:$0xff]  }
 0x26e   :  { %7931 = vmatprep.subr.bf16.mxu0 %v11804_v36  ;;  %8710 = vmatprep.subr.bf16.mxu1 %v11807_v53  ;;  %v11894_v36 = vld [vmem:[#allocation2 + $0x13a4] ss:$16 sps:$4 sm:$0xff]   ;;  %v11897_v53 = vld [vmem:[#allocation2 + $0x13ac] ss:$16 sps:$4 sm:$0xff]  }
 0x271   :  { %7932 = vmatpush1.bf16.msra.mxu0 %v11802_v54  ;;  %8711 = vmatpush1.bf16.msra.mxu1 %v11805_v55  ;;  %v11892_v54 = vld [vmem:[#allocation2 + $0x13a0] ss:$16 sps:$4 sm:$0xff]   ;;  %v11895_v55 = vld [vmem:[#allocation2 + $0x13a8] ss:$16 sps:$4 sm:$0xff]  }
 0x272   :  { %7933 = vmatprep.subr.bf16.mxu0 %v11810_v56  ;;  %8712 = vmatprep.subr.bf16.mxu1 %v11813_v38  ;;  %v11900_v56 = vld [vmem:[#allocation2 + $0x13c4] ss:$16 sps:$4 sm:$0xff]   ;;  %v11903_v38 = vld [vmem:[#allocation2 + $0x13cc] ss:$16 sps:$4 sm:$0xff]  }
 0x275   :  { %7934 = vmatpush1.bf16.msra.mxu0 %v11808_v57  ;;  %8713 = vmatpush1.bf16.msra.mxu1 %v11811_v58  ;;  %v12790_v57 = vld [vmem:[%s13298_s0 + $0x10] sm:$0xff] }
 0x276   :  { %7944 = vmatprep.subr.bf16.mxu0 %v11816_v59  ;;  %8723 = vmatprep.subr.bf16.mxu1 %v11819_v60  ;;  %v1389_v58 = vcombine.high %v12790_v57, %v12790_v57  ;;  %v11898_v59 = vld [vmem:[#allocation2 + $0x13c0] ss:$16 sps:$4 sm:$0xff]   ;;  %v11901_v60 = vld [vmem:[#allocation2 + $0x13c8] ss:$16 sps:$4 sm:$0xff]  }
 0x277   :  { %v11982_v57 = vld [vmem:[#allocation2 + $0x1580] ss:$16 sps:$4 sm:$0xff]  }
 0x278   :  { %7936 = vmatmul.mubr.bf16.vlgmr.msra.gmra.mrb[0].mxu0 %v13068_v61  ;;  %8715 = vmatmul.mubr.bf16.vlgmr.msra.gmra.mrb[0].mxu1 %v13068_v61 }
 0x279   :  { %7945 = vmatpush1.bf16.msra.mxu0 %v11814_v62  ;;  %8724 = vmatpush1.bf16.msra.mxu1 %v11817_v50  ;;  %v11906_v62 = vld [vmem:[#allocation2 + $0x13e4] ss:$16 sps:$4 sm:$0xff]   ;;  %v11909_v50 = vld [vmem:[#allocation2 + $0x13ec] ss:$16 sps:$4 sm:$0xff]  }
 0x27a   :  { %7946 = vmatprep.subr.bf16.mxu0 %v11822_v63  ;;  %8725 = vmatprep.subr.bf16.mxu1 %v11825_v0  ;;  %v13078_v63 = vrot.slane %v1389_v58, %v12970_v49  ;;  %v11904_v0 = vld [vmem:[#allocation2 + $0x13e0] ss:$16 sps:$4 sm:$0xff]   ;;  %v11985_v58 = vld [vmem:[#allocation2 + $0x1588] ss:$16 sps:$4 sm:$0xff]  }
 0x27b   :  { %7976 = vmatprep.mubr.bf16.mxu0 %v1436_v1  ;;  %8755 = vmatprep.mubr.bf16.mxu1 %v1436_v1  ;;  %v11907_v1 = vld [vmem:[#allocation2 + $0x13e8] ss:$16 sps:$4 sm:$0xff]  }
 0x27d   :  { %7947 = vmatpush1.bf16.msra.mxu0 %v11820_v2  ;;  %8726 = vmatpush1.bf16.msra.mxu1 %v11823_v45  ;;  %v11912_v2 = vld [vmem:[#allocation2 + $0x1404] ss:$16 sps:$4 sm:$0xff]   ;;  %v11915_v45 = vld [vmem:[#allocation2 + $0x140c] ss:$16 sps:$4 sm:$0xff]  }
 0x27e   :  { %7948 = vmatprep.subr.bf16.mxu0 %v11828_v3  ;;  %8727 = vmatprep.subr.bf16.mxu1 %v11831_v4  ;;  %v1405_v3 = vcombine.high %v13078_v63, %v13078_v63  ;;  %v1434_v4 = vcombine.high %v13068_v61, %v13068_v61  ;;  %v11924_v61 = vld [vmem:[#allocation2 + $0x1444] ss:$16 sps:$4 sm:$0xff]  }
 0x281   :  { %7949 = vmatpush1.bf16.msra.mxu0 %v11826_v5  ;;  %8728 = vmatpush1.bf16.msra.mxu1 %v11829_v6  ;;  %v11910_v5 = vld [vmem:[#allocation2 + $0x1400] ss:$16 sps:$4 sm:$0xff]   ;;  %v11913_v6 = vld [vmem:[#allocation2 + $0x1408] ss:$16 sps:$4 sm:$0xff]  }
 0x282   :  { %7950 = vmatprep.subr.bf16.mxu0 %v11834_v48  ;;  %8729 = vmatprep.subr.bf16.mxu1 %v11837_v7  ;;  %v11918_v48 = vld [vmem:[#allocation2 + $0x1424] ss:$16 sps:$4 sm:$0xff]   ;;  %v11921_v7 = vld [vmem:[#allocation2 + $0x142c] ss:$16 sps:$4 sm:$0xff]  }
 0x285   :  { %7951 = vmatpush1.bf16.msra.mxu0 %v11832_v8  ;;  %8730 = vmatpush1.bf16.msra.mxu1 %v11835_v9  ;;  %v13085_v8 = vrot.slane %v1405_v3, %v12970_v49  ;;  %v11916_v9 = vld [vmem:[#allocation2 + $0x1420] ss:$16 sps:$4 sm:$0xff]   ;;  %v12002_v3 = vld [vmem:[#allocation2 + $0x15e4] ss:$16 sps:$4 sm:$0xff]  }
 0x286   :  { %7952 = vmatprep.subr.bf16.mxu0 %v11840_v10  ;;  %8731 = vmatprep.subr.bf16.mxu1 %v11843_v11  ;;  %v11919_v10 = vld [vmem:[#allocation2 + $0x1428] ss:$16 sps:$4 sm:$0xff]   ;;  %v11927_v11 = vld [vmem:[#allocation2 + $0x144c] ss:$16 sps:$4 sm:$0xff]  }
 0x289   :  { %7953 = vmatpush1.bf16.msra.mxu0 %v11838_v12  ;;  %8732 = vmatpush1.bf16.msra.mxu1 %v11841_v14  ;;  %v11922_v12 = vld [vmem:[#allocation2 + $0x1440] ss:$16 sps:$4 sm:$0xff]   ;;  %v11925_v14 = vld [vmem:[#allocation2 + $0x1448] ss:$16 sps:$4 sm:$0xff]  }
 0x28a   :  { %7954 = vmatprep.subr.bf16.mxu0 %v11846_v16  ;;  %8733 = vmatprep.subr.bf16.mxu1 %v11849_v17  ;;  %v11930_v16 = vld [vmem:[#allocation2 + $0x1464] ss:$16 sps:$4 sm:$0xff]   ;;  %v11933_v17 = vld [vmem:[#allocation2 + $0x146c] ss:$16 sps:$4 sm:$0xff]  }
 0x28d   :  { %7955 = vmatpush1.bf16.msra.mxu0 %v11844_v18  ;;  %8734 = vmatpush1.bf16.msra.mxu1 %v11847_v19  ;;  %v11928_v18 = vld [vmem:[#allocation2 + $0x1460] ss:$16 sps:$4 sm:$0xff]   ;;  %v11931_v19 = vld [vmem:[#allocation2 + $0x1468] ss:$16 sps:$4 sm:$0xff]  }
 0x28e   :  { %7956 = vmatprep.subr.bf16.mxu0 %v11852_v52  ;;  %8735 = vmatprep.subr.bf16.mxu1 %v11855_v20  ;;  %v11936_v52 = vld [vmem:[#allocation2 + $0x1484] ss:$16 sps:$4 sm:$0xff]   ;;  %v11939_v20 = vld [vmem:[#allocation2 + $0x148c] ss:$16 sps:$4 sm:$0xff]  }
 0x291   :  { %7957 = vmatpush1.bf16.msra.mxu0 %v11850_v22  ;;  %8736 = vmatpush1.bf16.msra.mxu1 %v11853_v23  ;;  %v11934_v22 = vld [vmem:[#allocation2 + $0x1480] ss:$16 sps:$4 sm:$0xff]   ;;  %v11937_v23 = vld [vmem:[#allocation2 + $0x1488] ss:$16 sps:$4 sm:$0xff]  }
 0x292   :  { %7958 = vmatprep.subr.bf16.mxu0 %v11858_v24  ;;  %8737 = vmatprep.subr.bf16.mxu1 %v11861_v26  ;;  %v11942_v24 = vld [vmem:[#allocation2 + $0x14a4] ss:$16 sps:$4 sm:$0xff]   ;;  %v11945_v26 = vld [vmem:[#allocation2 + $0x14ac] ss:$16 sps:$4 sm:$0xff]  }
 0x295   :  { %7959 = vmatpush1.bf16.msra.mxu0 %v11856_v28  ;;  %8738 = vmatpush1.bf16.msra.mxu1 %v11859_v13  ;;  %v11940_v28 = vld [vmem:[#allocation2 + $0x14a0] ss:$16 sps:$4 sm:$0xff]   ;;  %v11943_v13 = vld [vmem:[#allocation2 + $0x14a8] ss:$16 sps:$4 sm:$0xff]  }
 0x296   :  { %7960 = vmatprep.subr.bf16.mxu0 %v11864_v29  ;;  %8739 = vmatprep.subr.bf16.mxu1 %v11867_v30  ;;  %v11948_v29 = vld [vmem:[#allocation2 + $0x14c4] ss:$16 sps:$4 sm:$0xff]   ;;  %v11951_v30 = vld [vmem:[#allocation2 + $0x14cc] ss:$16 sps:$4 sm:$0xff]  }
 0x299   :  { %7961 = vmatpush1.bf16.msra.mxu0 %v11862_v31  ;;  %8740 = vmatpush1.bf16.msra.mxu1 %v11865_v32  ;;  %v11946_v31 = vld [vmem:[#allocation2 + $0x14c0] ss:$16 sps:$4 sm:$0xff]   ;;  %v11949_v32 = vld [vmem:[#allocation2 + $0x14c8] ss:$16 sps:$4 sm:$0xff]  }
 0x29a   :  { %7962 = vmatprep.subr.bf16.mxu0 %v11870_v15  ;;  %8741 = vmatprep.subr.bf16.mxu1 %v11873_v33  ;;  %v11954_v15 = vld [vmem:[#allocation2 + $0x14e4] ss:$16 sps:$4 sm:$0xff]   ;;  %v11957_v33 = vld [vmem:[#allocation2 + $0x14ec] ss:$16 sps:$4 sm:$0xff]  }
 0x29d   :  { %7963 = vmatpush1.bf16.msra.mxu0 %v11868_v34  ;;  %8742 = vmatpush1.bf16.msra.mxu1 %v11871_v35  ;;  %v11952_v34 = vld [vmem:[#allocation2 + $0x14e0] ss:$16 sps:$4 sm:$0xff]   ;;  %v11955_v35 = vld [vmem:[#allocation2 + $0x14e8] ss:$16 sps:$4 sm:$0xff]  }
 0x29e   :  { %7964 = vmatprep.subr.bf16.mxu0 %v11876_v37  ;;  %8743 = vmatprep.subr.bf16.mxu1 %v11879_v27  ;;  %v11960_v37 = vld [vmem:[#allocation2 + $0x1504] ss:$16 sps:$4 sm:$0xff]   ;;  %v11963_v27 = vld [vmem:[#allocation2 + $0x150c] ss:$16 sps:$4 sm:$0xff]  }
 0x2a1   :  { %7965 = vmatpush1.bf16.msra.mxu0 %v11874_v39  ;;  %8744 = vmatpush1.bf16.msra.mxu1 %v11877_v40  ;;  %v11958_v39 = vld [vmem:[#allocation2 + $0x1500] ss:$16 sps:$4 sm:$0xff]   ;;  %v11961_v40 = vld [vmem:[#allocation2 + $0x1508] ss:$16 sps:$4 sm:$0xff]  }
 0x2a2   :  { %7966 = vmatprep.subr.bf16.mxu0 %v11882_v41  ;;  %8745 = vmatprep.subr.bf16.mxu1 %v11885_v21  ;;  %v11966_v41 = vld [vmem:[#allocation2 + $0x1524] ss:$16 sps:$4 sm:$0xff]   ;;  %v11969_v21 = vld [vmem:[#allocation2 + $0x152c] ss:$16 sps:$4 sm:$0xff]  }
 0x2a5   :  { %7967 = vmatpush1.bf16.msra.mxu0 %v11880_v43  ;;  %8746 = vmatpush1.bf16.msra.mxu1 %v11883_v44  ;;  %v11964_v43 = vld [vmem:[#allocation2 + $0x1520] ss:$16 sps:$4 sm:$0xff]   ;;  %v11967_v44 = vld [vmem:[#allocation2 + $0x1528] ss:$16 sps:$4 sm:$0xff]  }
 0x2a6   :  { %7968 = vmatprep.subr.bf16.mxu0 %v11888_v46  ;;  %8747 = vmatprep.subr.bf16.mxu1 %v11891_v25  ;;  %v11972_v46 = vld [vmem:[#allocation2 + $0x1544] ss:$16 sps:$4 sm:$0xff]   ;;  %v11975_v25 = vld [vmem:[#allocation2 + $0x154c] ss:$16 sps:$4 sm:$0xff]  }
 0x2a9   :  { %7969 = vmatpush1.bf16.msra.mxu0 %v11886_v47  ;;  %8748 = vmatpush1.bf16.msra.mxu1 %v11889_v51  ;;  %v11970_v47 = vld [vmem:[#allocation2 + $0x1540] ss:$16 sps:$4 sm:$0xff]   ;;  %v11973_v51 = vld [vmem:[#allocation2 + $0x1548] ss:$16 sps:$4 sm:$0xff]  }
 0x2aa   :  { %7970 = vmatprep.subr.bf16.mxu0 %v11894_v36  ;;  %8749 = vmatprep.subr.bf16.mxu1 %v11897_v53  ;;  %v11978_v36 = vld [vmem:[#allocation2 + $0x1564] ss:$16 sps:$4 sm:$0xff]   ;;  %v11981_v53 = vld [vmem:[#allocation2 + $0x156c] ss:$16 sps:$4 sm:$0xff]  }
 0x2ad   :  { %7971 = vmatpush1.bf16.msra.mxu0 %v11892_v54  ;;  %8750 = vmatpush1.bf16.msra.mxu1 %v11895_v55  ;;  %v11976_v54 = vld [vmem:[#allocation2 + $0x1560] ss:$16 sps:$4 sm:$0xff]   ;;  %v11979_v55 = vld [vmem:[#allocation2 + $0x1568] ss:$16 sps:$4 sm:$0xff]  }
 0x2ae   :  { %7972 = vmatprep.subr.bf16.mxu0 %v11900_v56  ;;  %8751 = vmatprep.subr.bf16.mxu1 %v11903_v38  ;;  %v11984_v56 = vld [vmem:[#allocation2 + $0x1584] ss:$16 sps:$4 sm:$0xff]   ;;  %v11987_v38 = vld [vmem:[#allocation2 + $0x158c] ss:$16 sps:$4 sm:$0xff]  }
 0x2b1   :  { %7973 = vmatpush1.bf16.msra.mxu0 %v11898_v59  ;;  %8752 = vmatpush1.bf16.msra.mxu1 %v11901_v60  ;;  %v11990_v59 = vld [vmem:[#allocation2 + $0x15a4] ss:$16 sps:$4 sm:$0xff]   ;;  %v11993_v60 = vld [vmem:[#allocation2 + $0x15ac] ss:$16 sps:$4 sm:$0xff]  }
 0x2b2   :  { %7974 = vmatprep.subr.bf16.mxu0 %v11906_v62  ;;  %8753 = vmatprep.subr.bf16.mxu1 %v11909_v50  ;;  %v11988_v62 = vld [vmem:[#allocation2 + $0x15a0] ss:$16 sps:$4 sm:$0xff]   ;;  %v11991_v50 = vld [vmem:[#allocation2 + $0x15a8] ss:$16 sps:$4 sm:$0xff]  }
 0x2b5   :  { %7975 = vmatpush1.bf16.msra.mxu0 %v11904_v0  ;;  %8754 = vmatpush1.bf16.msra.mxu1 %v11907_v1  ;;  %v11996_v0 = vld [vmem:[#allocation2 + $0x15c4] ss:$16 sps:$4 sm:$0xff]   ;;  %v11999_v1 = vld [vmem:[#allocation2 + $0x15cc] ss:$16 sps:$4 sm:$0xff]  }
 0x2b6   :  { %7985 = vmatprep.subr.bf16.mxu0 %v11912_v2  ;;  %8764 = vmatprep.subr.bf16.mxu1 %v11915_v45  ;;  %v11994_v2 = vld [vmem:[#allocation2 + $0x15c0] ss:$16 sps:$4 sm:$0xff]   ;;  %v11997_v45 = vld [vmem:[#allocation2 + $0x15c8] ss:$16 sps:$4 sm:$0xff]  }
 0x2b8   :  { %7977 = vmatmul.mubr.bf16.vlgmr.msra.gmra.mrb[0].mxu0 %v1434_v4  ;;  %8756 = vmatmul.mubr.bf16.vlgmr.msra.gmra.mrb[0].mxu1 %v1434_v4  ;;  %v12005_v4 = vld [vmem:[#allocation2 + $0x15ec] ss:$16 sps:$4 sm:$0xff]  }
 0x2b9   :  { %7986 = vmatpush1.bf16.msra.mxu0 %v11910_v5  ;;  %8765 = vmatpush1.bf16.msra.mxu1 %v11913_v6  ;;  %v12000_v5 = vld [vmem:[#allocation2 + $0x15e0] ss:$16 sps:$4 sm:$0xff]   ;;  %v12003_v6 = vld [vmem:[#allocation2 + $0x15e8] ss:$16 sps:$4 sm:$0xff]  }
 0x2ba   :  { %7987 = vmatprep.subr.bf16.mxu0 %v11918_v48  ;;  %8766 = vmatprep.subr.bf16.mxu1 %v11921_v7  ;;  %v12009_v48 = vld [vmem:[#allocation2 + $0x1604] ss:$16 sps:$4 sm:$0xff]   ;;  %v12012_v7 = vld [vmem:[#allocation2 + $0x160c] ss:$16 sps:$4 sm:$0xff]  }
 0x2bb   :  { %8017 = vmatprep.mubr.bf16.mxu0 %v13085_v8  ;;  %8796 = vmatprep.mubr.bf16.mxu1 %v13085_v8 }
 0x2bd   :  { %7988 = vmatpush1.bf16.msra.mxu0 %v11916_v9  ;;  %8767 = vmatpush1.bf16.msra.mxu1 %v11919_v10  ;;  %v13091_v9 = vrot.slane %v13078_v63, %v12970_v49  ;;  %v12007_v10 = vld [vmem:[#allocation2 + $0x1600] ss:$16 sps:$4 sm:$0xff]   ;;  %v12016_v63 = vld [vmem:[#allocation2 + $0x1628] ss:$16 sps:$4 sm:$0xff]  }
 0x2be   :  { %7989 = vmatprep.subr.bf16.mxu0 %v11924_v61  ;;  %8768 = vmatprep.subr.bf16.mxu1 %v11927_v11  ;;  %v12010_v61 = vld [vmem:[#allocation2 + $0x1608] ss:$16 sps:$4 sm:$0xff]   ;;  %v12015_v11 = vld [vmem:[#allocation2 + $0x1624] ss:$16 sps:$4 sm:$0xff]  }
 0x2c1   :  { %7990 = vmatpush1.bf16.msra.mxu0 %v11922_v12  ;;  %8769 = vmatpush1.bf16.msra.mxu1 %v11925_v14  ;;  %v12018_v12 = vld [vmem:[#allocation2 + $0x162c] ss:$16 sps:$4 sm:$0xff]   ;;  %v1437_v14 = vcombine.high %v13085_v8, %v13085_v8  ;;  %v12027_v8 = vld [vmem:[#allocation2 + $0x1664] ss:$16 sps:$4 sm:$0xff]  }
 0x2c2   :  { %7991 = vmatprep.subr.bf16.mxu0 %v11930_v16  ;;  %8770 = vmatprep.subr.bf16.mxu1 %v11933_v17  ;;  %v12013_v16 = vld [vmem:[#allocation2 + $0x1620] ss:$16 sps:$4 sm:$0xff]   ;;  %v12021_v17 = vld [vmem:[#allocation2 + $0x1644] ss:$16 sps:$4 sm:$0xff]  }
 0x2c5   :  { %7992 = vmatpush1.bf16.msra.mxu0 %v11928_v18  ;;  %8771 = vmatpush1.bf16.msra.mxu1 %v11931_v19  ;;  %v12024_v18 = vld [vmem:[#allocation2 + $0x164c] ss:$16 sps:$4 sm:$0xff]   ;;  %v12019_v19 = vld [vmem:[#allocation2 + $0x1640] ss:$16 sps:$4 sm:$0xff]  }
 0x2c6   :  { %7993 = vmatprep.subr.bf16.mxu0 %v11936_v52  ;;  %8772 = vmatprep.subr.bf16.mxu1 %v11939_v20  ;;  %v12022_v52 = vld [vmem:[#allocation2 + $0x1648] ss:$16 sps:$4 sm:$0xff]   ;;  %v12030_v20 = vld [vmem:[#allocation2 + $0x166c] ss:$16 sps:$4 sm:$0xff]  }
 0x2c9   :  { %7994 = vmatpush1.bf16.msra.mxu0 %v11934_v22  ;;  %8773 = vmatpush1.bf16.msra.mxu1 %v11937_v23  ;;  %v12025_v22 = vld [vmem:[#allocation2 + $0x1660] ss:$16 sps:$4 sm:$0xff]   ;;  %v12028_v23 = vld [vmem:[#allocation2 + $0x1668] ss:$16 sps:$4 sm:$0xff]  }
 0x2ca   :  { %7995 = vmatprep.subr.bf16.mxu0 %v11942_v24  ;;  %8774 = vmatprep.subr.bf16.mxu1 %v11945_v26  ;;  %v12033_v24 = vld [vmem:[#allocation2 + $0x1684] ss:$16 sps:$4 sm:$0xff]   ;;  %v12036_v26 = vld [vmem:[#allocation2 + $0x168c] ss:$16 sps:$4 sm:$0xff]  }
 0x2cd   :  { %7996 = vmatpush1.bf16.msra.mxu0 %v11940_v28  ;;  %8775 = vmatpush1.bf16.msra.mxu1 %v11943_v13  ;;  %v12031_v28 = vld [vmem:[#allocation2 + $0x1680] ss:$16 sps:$4 sm:$0xff]   ;;  %v12034_v13 = vld [vmem:[#allocation2 + $0x1688] ss:$16 sps:$4 sm:$0xff]  }
 0x2ce   :  { %7997 = vmatprep.subr.bf16.mxu0 %v11948_v29  ;;  %8776 = vmatprep.subr.bf16.mxu1 %v11951_v30  ;;  %v12039_v29 = vld [vmem:[#allocation2 + $0x16a4] ss:$16 sps:$4 sm:$0xff]   ;;  %v12042_v30 = vld [vmem:[#allocation2 + $0x16ac] ss:$16 sps:$4 sm:$0xff]  }
 0x2d1   :  { %7998 = vmatpush1.bf16.msra.mxu0 %v11946_v31  ;;  %8777 = vmatpush1.bf16.msra.mxu1 %v11949_v32  ;;  %v12037_v31 = vld [vmem:[#allocation2 + $0x16a0] ss:$16 sps:$4 sm:$0xff]   ;;  %v12040_v32 = vld [vmem:[#allocation2 + $0x16a8] ss:$16 sps:$4 sm:$0xff]  }
 0x2d2   :  { %7999 = vmatprep.subr.bf16.mxu0 %v11954_v15  ;;  %8778 = vmatprep.subr.bf16.mxu1 %v11957_v33  ;;  %v12045_v15 = vld [vmem:[#allocation2 + $0x16c4] ss:$16 sps:$4 sm:$0xff]   ;;  %v12048_v33 = vld [vmem:[#allocation2 + $0x16cc] ss:$16 sps:$4 sm:$0xff]  }
 0x2d5   :  { %8000 = vmatpush1.bf16.msra.mxu0 %v11952_v34  ;;  %8779 = vmatpush1.bf16.msra.mxu1 %v11955_v35  ;;  %v12043_v34 = vld [vmem:[#allocation2 + $0x16c0] ss:$16 sps:$4 sm:$0xff]   ;;  %v12046_v35 = vld [vmem:[#allocation2 + $0x16c8] ss:$16 sps:$4 sm:$0xff]  }
 0x2d6   :  { %8001 = vmatprep.subr.bf16.mxu0 %v11960_v37  ;;  %8780 = vmatprep.subr.bf16.mxu1 %v11963_v27  ;;  %v12051_v37 = vld [vmem:[#allocation2 + $0x16e4] ss:$16 sps:$4 sm:$0xff]   ;;  %v12054_v27 = vld [vmem:[#allocation2 + $0x16ec] ss:$16 sps:$4 sm:$0xff]  }
 0x2d9   :  { %8002 = vmatpush1.bf16.msra.mxu0 %v11958_v39  ;;  %8781 = vmatpush1.bf16.msra.mxu1 %v11961_v40  ;;  %v12049_v39 = vld [vmem:[#allocation2 + $0x16e0] ss:$16 sps:$4 sm:$0xff]   ;;  %v12052_v40 = vld [vmem:[#allocation2 + $0x16e8] ss:$16 sps:$4 sm:$0xff]  }
 0x2da   :  { %8003 = vmatprep.subr.bf16.mxu0 %v11966_v41  ;;  %8782 = vmatprep.subr.bf16.mxu1 %v11969_v21  ;;  %v12057_v41 = vld [vmem:[#allocation2 + $0x1704] ss:$16 sps:$4 sm:$0xff]   ;;  %v12060_v21 = vld [vmem:[#allocation2 + $0x170c] ss:$16 sps:$4 sm:$0xff]  }
 0x2dd   :  { %8004 = vmatpush1.bf16.msra.mxu0 %v11964_v43  ;;  %8783 = vmatpush1.bf16.msra.mxu1 %v11967_v44  ;;  %v12055_v43 = vld [vmem:[#allocation2 + $0x1700] ss:$16 sps:$4 sm:$0xff]   ;;  %v12058_v44 = vld [vmem:[#allocation2 + $0x1708] ss:$16 sps:$4 sm:$0xff]  }
 0x2de   :  { %8005 = vmatprep.subr.bf16.mxu0 %v11972_v46  ;;  %8784 = vmatprep.subr.bf16.mxu1 %v11975_v25  ;;  %v12063_v46 = vld [vmem:[#allocation2 + $0x1724] ss:$16 sps:$4 sm:$0xff]   ;;  %v12066_v25 = vld [vmem:[#allocation2 + $0x172c] ss:$16 sps:$4 sm:$0xff]  }
 0x2e1   :  { %8006 = vmatpush1.bf16.msra.mxu0 %v11970_v47  ;;  %8785 = vmatpush1.bf16.msra.mxu1 %v11973_v51  ;;  %v12061_v47 = vld [vmem:[#allocation2 + $0x1720] ss:$16 sps:$4 sm:$0xff]   ;;  %v12064_v51 = vld [vmem:[#allocation2 + $0x1728] ss:$16 sps:$4 sm:$0xff]  }
 0x2e2   :  { %8007 = vmatprep.subr.bf16.mxu0 %v11978_v36  ;;  %8786 = vmatprep.subr.bf16.mxu1 %v11981_v53  ;;  %v12069_v36 = vld [vmem:[#allocation2 + $0x1744] ss:$16 sps:$4 sm:$0xff]   ;;  %v12072_v53 = vld [vmem:[#allocation2 + $0x174c] ss:$16 sps:$4 sm:$0xff]  }
 0x2e5   :  { %8008 = vmatpush1.bf16.msra.mxu0 %v11976_v54  ;;  %8787 = vmatpush1.bf16.msra.mxu1 %v11979_v55  ;;  %v12067_v54 = vld [vmem:[#allocation2 + $0x1740] ss:$16 sps:$4 sm:$0xff]   ;;  %v12070_v55 = vld [vmem:[#allocation2 + $0x1748] ss:$16 sps:$4 sm:$0xff]  }
 0x2e6   :  { %8009 = vmatprep.subr.bf16.mxu0 %v11984_v56  ;;  %8788 = vmatprep.subr.bf16.mxu1 %v11987_v38  ;;  %v12075_v56 = vld [vmem:[#allocation2 + $0x1764] ss:$16 sps:$4 sm:$0xff]   ;;  %v12078_v38 = vld [vmem:[#allocation2 + $0x176c] ss:$16 sps:$4 sm:$0xff]  }
 0x2e9   :  { %8010 = vmatpush1.bf16.msra.mxu0 %v11982_v57  ;;  %8789 = vmatpush1.bf16.msra.mxu1 %v11985_v58  ;;  %v12073_v57 = vld [vmem:[#allocation2 + $0x1760] ss:$16 sps:$4 sm:$0xff]   ;;  %v12076_v58 = vld [vmem:[#allocation2 + $0x1768] ss:$16 sps:$4 sm:$0xff]  }
 0x2ea   :  { %8011 = vmatprep.subr.bf16.mxu0 %v11990_v59  ;;  %8790 = vmatprep.subr.bf16.mxu1 %v11993_v60  ;;  %v12081_v59 = vld [vmem:[#allocation2 + $0x1784] ss:$16 sps:$4 sm:$0xff]   ;;  %v12084_v60 = vld [vmem:[#allocation2 + $0x178c] ss:$16 sps:$4 sm:$0xff]  }
 0x2ed   :  { %8012 = vmatpush1.bf16.msra.mxu0 %v11988_v62  ;;  %8791 = vmatpush1.bf16.msra.mxu1 %v11991_v50  ;;  %v12079_v62 = vld [vmem:[#allocation2 + $0x1780] ss:$16 sps:$4 sm:$0xff]   ;;  %v12082_v50 = vld [vmem:[#allocation2 + $0x1788] ss:$16 sps:$4 sm:$0xff]  }
 0x2ee   :  { %8013 = vmatprep.subr.bf16.mxu0 %v11996_v0  ;;  %8792 = vmatprep.subr.bf16.mxu1 %v11999_v1  ;;  %v12087_v0 = vld [vmem:[#allocation2 + $0x17a4] ss:$16 sps:$4 sm:$0xff]   ;;  %v12090_v1 = vld [vmem:[#allocation2 + $0x17ac] ss:$16 sps:$4 sm:$0xff]  }
 0x2f1   :  { %8014 = vmatpush1.bf16.msra.mxu0 %v11994_v2  ;;  %8793 = vmatpush1.bf16.msra.mxu1 %v11997_v45  ;;  %v12085_v2 = vld [vmem:[#allocation2 + $0x17a0] ss:$16 sps:$4 sm:$0xff]   ;;  %v12088_v45 = vld [vmem:[#allocation2 + $0x17a8] ss:$16 sps:$4 sm:$0xff]  }
 0x2f2   :  { %8015 = vmatprep.subr.bf16.mxu0 %v12002_v3  ;;  %8794 = vmatprep.subr.bf16.mxu1 %v12005_v4  ;;  %v12093_v3 = vld [vmem:[#allocation2 + $0x17c4] ss:$16 sps:$4 sm:$0xff]   ;;  %v12096_v4 = vld [vmem:[#allocation2 + $0x17cc] ss:$16 sps:$4 sm:$0xff]  }
 0x2f5   :  { %8016 = vmatpush1.bf16.msra.mxu0 %v12000_v5  ;;  %8795 = vmatpush1.bf16.msra.mxu1 %v12003_v6  ;;  %v13100_v5 = vld [vmem:[%s13298_s0 + $0x18] sm:$0xff]  ;;  %v12091_v6 = vld [vmem:[#allocation2 + $0x17c0] ss:$16 sps:$4 sm:$0xff]  }
 0x2f6   :  { %8026 = vmatprep.subr.bf16.mxu0 %v12009_v48  ;;  %8805 = vmatprep.subr.bf16.mxu1 %v12012_v7  ;;  %v12094_v48 = vld [vmem:[#allocation2 + $0x17c8] ss:$16 sps:$4 sm:$0xff]   ;;  %v12099_v7 = vld [vmem:[#allocation2 + $0x17e4] ss:$16 sps:$4 sm:$0xff]  }
 0x2f8   :  { %8018 = vmatmul.mubr.bf16.vlgmr.msra.gmra.mrb[0].mxu0 %v13091_v9  ;;  %8797 = vmatmul.mubr.bf16.vlgmr.msra.gmra.mrb[0].mxu1 %v13091_v9 }
 0x2f9   :  { %8027 = vmatpush1.bf16.msra.mxu0 %v12007_v10  ;;  %8806 = vmatpush1.bf16.msra.mxu1 %v12010_v61  ;;  %v12102_v10 = vld [vmem:[#allocation2 + $0x17ec] ss:$16 sps:$4 sm:$0xff]   ;;  %v13104_v61 = vrot.slane %v13100_v5, %v12970_v49 }
 0x2fa   :  { %8028 = vmatprep.subr.bf16.mxu0 %v12015_v11  ;;  %8807 = vmatprep.subr.bf16.mxu1 %v12018_v12  ;;  %v12097_v11 = vld [vmem:[#allocation2 + $0x17e0] ss:$16 sps:$4 sm:$0xff]   ;;  %v12100_v12 = vld [vmem:[#allocation2 + $0x17e8] ss:$16 sps:$4 sm:$0xff]  }
 0x2fb   :  { %8058 = vmatprep.mubr.bf16.mxu0 %v1437_v14  ;;  %8837 = vmatprep.mubr.bf16.mxu1 %v1437_v14  ;;  %v12105_v14 = vld [vmem:[#allocation2 + $0x1804] ss:$16 sps:$4 sm:$0xff]  }
 0x2fd   :  { %8029 = vmatpush1.bf16.msra.mxu0 %v12013_v16  ;;  %8808 = vmatpush1.bf16.msra.mxu1 %v12016_v63  ;;  %v12108_v16 = vld [vmem:[#allocation2 + $0x180c] ss:$16 sps:$4 sm:$0xff]   ;;  %v1453_v63 = vcombine.high %v13104_v61, %v13104_v61 }
 0x2fe   :  { %8030 = vmatprep.subr.bf16.mxu0 %v12021_v17  ;;  %8809 = vmatprep.subr.bf16.mxu1 %v12024_v18  ;;  %v1435_v17 = vcombine.high %v13091_v9, %v13091_v9  ;;  %v12103_v18 = vld [vmem:[#allocation2 + $0x1800] ss:$16 sps:$4 sm:$0xff]   ;;  %v12117_v9 = vld [vmem:[#allocation2 + $0x1844] ss:$16 sps:$4 sm:$0xff]  }
 0x301   :  { %8031 = vmatpush1.bf16.msra.mxu0 %v12019_v19  ;;  %8810 = vmatpush1.bf16.msra.mxu1 %v12022_v52  ;;  %v12106_v19 = vld [vmem:[#allocation2 + $0x1808] ss:$16 sps:$4 sm:$0xff]   ;;  %v12111_v52 = vld [vmem:[#allocation2 + $0x1824] ss:$16 sps:$4 sm:$0xff]  }
 0x302   :  { %8032 = vmatprep.subr.bf16.mxu0 %v12027_v8  ;;  %8811 = vmatprep.subr.bf16.mxu1 %v12030_v20  ;;  %v12114_v8 = vld [vmem:[#allocation2 + $0x182c] ss:$16 sps:$4 sm:$0xff]   ;;  %v13111_v20 = vrot.slane %v1453_v63, %v12970_v49  ;;  %v12190_v63 = vld [vmem:[#allocation2 + $0x19c8] ss:$16 sps:$4 sm:$0xff]  }
 0x305   :  { %8033 = vmatpush1.bf16.msra.mxu0 %v12025_v22  ;;  %8812 = vmatpush1.bf16.msra.mxu1 %v12028_v23  ;;  %v12109_v22 = vld [vmem:[#allocation2 + $0x1820] ss:$16 sps:$4 sm:$0xff]   ;;  %v12112_v23 = vld [vmem:[#allocation2 + $0x1828] ss:$16 sps:$4 sm:$0xff]  }
 0x306   :  { %8034 = vmatprep.subr.bf16.mxu0 %v12033_v24  ;;  %8813 = vmatprep.subr.bf16.mxu1 %v12036_v26  ;;  %v12120_v24 = vld [vmem:[#allocation2 + $0x184c] ss:$16 sps:$4 sm:$0xff]   ;;  %v12115_v26 = vld [vmem:[#allocation2 + $0x1840] ss:$16 sps:$4 sm:$0xff]  }
 0x309   :  { %8035 = vmatpush1.bf16.msra.mxu0 %v12031_v28  ;;  %8814 = vmatpush1.bf16.msra.mxu1 %v12034_v13  ;;  %v12118_v28 = vld [vmem:[#allocation2 + $0x1848] ss:$16 sps:$4 sm:$0xff]   ;;  %v12123_v13 = vld [vmem:[#allocation2 + $0x1864] ss:$16 sps:$4 sm:$0xff]  }
 0x30a   :  { %8036 = vmatprep.subr.bf16.mxu0 %v12039_v29  ;;  %8815 = vmatprep.subr.bf16.mxu1 %v12042_v30  ;;  %v12126_v29 = vld [vmem:[#allocation2 + $0x186c] ss:$16 sps:$4 sm:$0xff]   ;;  %v12121_v30 = vld [vmem:[#allocation2 + $0x1860] ss:$16 sps:$4 sm:$0xff]  }
 0x30d   :  { %8037 = vmatpush1.bf16.msra.mxu0 %v12037_v31  ;;  %8816 = vmatpush1.bf16.msra.mxu1 %v12040_v32  ;;  %v12124_v31 = vld [vmem:[#allocation2 + $0x1868] ss:$16 sps:$4 sm:$0xff]   ;;  %v12129_v32 = vld [vmem:[#allocation2 + $0x1884] ss:$16 sps:$4 sm:$0xff]  }
 0x30e   :  { %8038 = vmatprep.subr.bf16.mxu0 %v12045_v15  ;;  %8817 = vmatprep.subr.bf16.mxu1 %v12048_v33  ;;  %v12132_v15 = vld [vmem:[#allocation2 + $0x188c] ss:$16 sps:$4 sm:$0xff]   ;;  %v12127_v33 = vld [vmem:[#allocation2 + $0x1880] ss:$16 sps:$4 sm:$0xff]  }
 0x311   :  { %8039 = vmatpush1.bf16.msra.mxu0 %v12043_v34  ;;  %8818 = vmatpush1.bf16.msra.mxu1 %v12046_v35  ;;  %v12130_v34 = vld [vmem:[#allocation2 + $0x1888] ss:$16 sps:$4 sm:$0xff]   ;;  %v12135_v35 = vld [vmem:[#allocation2 + $0x18a4] ss:$16 sps:$4 sm:$0xff]  }
 0x312   :  { %8040 = vmatprep.subr.bf16.mxu0 %v12051_v37  ;;  %8819 = vmatprep.subr.bf16.mxu1 %v12054_v27  ;;  %v12138_v37 = vld [vmem:[#allocation2 + $0x18ac] ss:$16 sps:$4 sm:$0xff]   ;;  %v12133_v27 = vld [vmem:[#allocation2 + $0x18a0] ss:$16 sps:$4 sm:$0xff]  }
 0x315   :  { %8041 = vmatpush1.bf16.msra.mxu0 %v12049_v39  ;;  %8820 = vmatpush1.bf16.msra.mxu1 %v12052_v40  ;;  %v12136_v39 = vld [vmem:[#allocation2 + $0x18a8] ss:$16 sps:$4 sm:$0xff]   ;;  %v12141_v40 = vld [vmem:[#allocation2 + $0x18c4] ss:$16 sps:$4 sm:$0xff]  }
 0x316   :  { %8042 = vmatprep.subr.bf16.mxu0 %v12057_v41  ;;  %8821 = vmatprep.subr.bf16.mxu1 %v12060_v21  ;;  %v12144_v41 = vld [vmem:[#allocation2 + $0x18cc] ss:$16 sps:$4 sm:$0xff]   ;;  %v12139_v21 = vld [vmem:[#allocation2 + $0x18c0] ss:$16 sps:$4 sm:$0xff]  }
 0x319   :  { %8043 = vmatpush1.bf16.msra.mxu0 %v12055_v43  ;;  %8822 = vmatpush1.bf16.msra.mxu1 %v12058_v44  ;;  %v12142_v43 = vld [vmem:[#allocation2 + $0x18c8] ss:$16 sps:$4 sm:$0xff]   ;;  %v12147_v44 = vld [vmem:[#allocation2 + $0x18e4] ss:$16 sps:$4 sm:$0xff]  }
 0x31a   :  { %8044 = vmatprep.subr.bf16.mxu0 %v12063_v46  ;;  %8823 = vmatprep.subr.bf16.mxu1 %v12066_v25  ;;  %v12150_v46 = vld [vmem:[#allocation2 + $0x18ec] ss:$16 sps:$4 sm:$0xff]   ;;  %v12145_v25 = vld [vmem:[#allocation2 + $0x18e0] ss:$16 sps:$4 sm:$0xff]  }
 0x31d   :  { %8045 = vmatpush1.bf16.msra.mxu0 %v12061_v47  ;;  %8824 = vmatpush1.bf16.msra.mxu1 %v12064_v51  ;;  %v12148_v47 = vld [vmem:[#allocation2 + $0x18e8] ss:$16 sps:$4 sm:$0xff]   ;;  %v12153_v51 = vld [vmem:[#allocation2 + $0x1904] ss:$16 sps:$4 sm:$0xff]  }
 0x31e   :  { %8046 = vmatprep.subr.bf16.mxu0 %v12069_v36  ;;  %8825 = vmatprep.subr.bf16.mxu1 %v12072_v53  ;;  %v12156_v36 = vld [vmem:[#allocation2 + $0x190c] ss:$16 sps:$4 sm:$0xff]   ;;  %v12151_v53 = vld [vmem:[#allocation2 + $0x1900] ss:$16 sps:$4 sm:$0xff]  }
 0x321   :  { %8047 = vmatpush1.bf16.msra.mxu0 %v12067_v54  ;;  %8826 = vmatpush1.bf16.msra.mxu1 %v12070_v55  ;;  %v12154_v54 = vld [vmem:[#allocation2 + $0x1908] ss:$16 sps:$4 sm:$0xff]   ;;  %v12159_v55 = vld [vmem:[#allocation2 + $0x1924] ss:$16 sps:$4 sm:$0xff]  }
 0x322   :  { %8048 = vmatprep.subr.bf16.mxu0 %v12075_v56  ;;  %8827 = vmatprep.subr.bf16.mxu1 %v12078_v38  ;;  %v12162_v56 = vld [vmem:[#allocation2 + $0x192c] ss:$16 sps:$4 sm:$0xff]   ;;  %v12157_v38 = vld [vmem:[#allocation2 + $0x1920] ss:$16 sps:$4 sm:$0xff]  }
 0x325   :  { %8049 = vmatpush1.bf16.msra.mxu0 %v12073_v57  ;;  %8828 = vmatpush1.bf16.msra.mxu1 %v12076_v58  ;;  %v12160_v57 = vld [vmem:[#allocation2 + $0x1928] ss:$16 sps:$4 sm:$0xff]   ;;  %v12165_v58 = vld [vmem:[#allocation2 + $0x1944] ss:$16 sps:$4 sm:$0xff]  }
 0x326   :  { %8050 = vmatprep.subr.bf16.mxu0 %v12081_v59  ;;  %8829 = vmatprep.subr.bf16.mxu1 %v12084_v60  ;;  %v12168_v59 = vld [vmem:[#allocation2 + $0x194c] ss:$16 sps:$4 sm:$0xff]   ;;  %v12163_v60 = vld [vmem:[#allocation2 + $0x1940] ss:$16 sps:$4 sm:$0xff]  }
 0x329   :  { %8051 = vmatpush1.bf16.msra.mxu0 %v12079_v62  ;;  %8830 = vmatpush1.bf16.msra.mxu1 %v12082_v50  ;;  %v12166_v62 = vld [vmem:[#allocation2 + $0x1948] ss:$16 sps:$4 sm:$0xff]   ;;  %v12171_v50 = vld [vmem:[#allocation2 + $0x1964] ss:$16 sps:$4 sm:$0xff]  }
 0x32a   :  { %8052 = vmatprep.subr.bf16.mxu0 %v12087_v0  ;;  %8831 = vmatprep.subr.bf16.mxu1 %v12090_v1  ;;  %v12174_v0 = vld [vmem:[#allocation2 + $0x196c] ss:$16 sps:$4 sm:$0xff]   ;;  %v12169_v1 = vld [vmem:[#allocation2 + $0x1960] ss:$16 sps:$4 sm:$0xff]  }
 0x32d   :  { %8053 = vmatpush1.bf16.msra.mxu0 %v12085_v2  ;;  %8832 = vmatpush1.bf16.msra.mxu1 %v12088_v45  ;;  %v12172_v2 = vld [vmem:[#allocation2 + $0x1968] ss:$16 sps:$4 sm:$0xff]   ;;  %v12177_v45 = vld [vmem:[#allocation2 + $0x1984] ss:$16 sps:$4 sm:$0xff]  }
 0x32e   :  { %8054 = vmatprep.subr.bf16.mxu0 %v12093_v3  ;;  %8833 = vmatprep.subr.bf16.mxu1 %v12096_v4  ;;  %v12180_v3 = vld [vmem:[#allocation2 + $0x198c] ss:$16 sps:$4 sm:$0xff]   ;;  %v12175_v4 = vld [vmem:[#allocation2 + $0x1980] ss:$16 sps:$4 sm:$0xff]  }
 0x331   :  { %8055 = vmatpush1.bf16.msra.mxu0 %v12091_v6  ;;  %8834 = vmatpush1.bf16.msra.mxu1 %v12094_v48  ;;  %v12178_v6 = vld [vmem:[#allocation2 + $0x1988] ss:$16 sps:$4 sm:$0xff]   ;;  %v12183_v48 = vld [vmem:[#allocation2 + $0x19a4] ss:$16 sps:$4 sm:$0xff]  }
 0x332   :  { %8056 = vmatprep.subr.bf16.mxu0 %v12099_v7  ;;  %8835 = vmatprep.subr.bf16.mxu1 %v12102_v10  ;;  %v12186_v7 = vld [vmem:[#allocation2 + $0x19ac] ss:$16 sps:$4 sm:$0xff]   ;;  %v12181_v10 = vld [vmem:[#allocation2 + $0x19a0] ss:$16 sps:$4 sm:$0xff]  }
 0x335   :  { %8057 = vmatpush1.bf16.msra.mxu0 %v12097_v11  ;;  %8836 = vmatpush1.bf16.msra.mxu1 %v12100_v12  ;;  %v12184_v11 = vld [vmem:[#allocation2 + $0x19a8] ss:$16 sps:$4 sm:$0xff]   ;;  %v12189_v12 = vld [vmem:[#allocation2 + $0x19c4] ss:$16 sps:$4 sm:$0xff]  }
 0x336   :  { %8067 = vmatprep.subr.bf16.mxu0 %v12105_v14  ;;  %8846 = vmatprep.subr.bf16.mxu1 %v12108_v16  ;;  %v12192_v14 = vld [vmem:[#allocation2 + $0x19cc] ss:$16 sps:$4 sm:$0xff]   ;;  %v12187_v16 = vld [vmem:[#allocation2 + $0x19c0] ss:$16 sps:$4 sm:$0xff]  }
 0x338   :  { %8059 = vmatmul.mubr.bf16.vlgmr.msra.gmra.mrb[0].mxu0 %v1435_v17  ;;  %8838 = vmatmul.mubr.bf16.vlgmr.msra.gmra.mrb[0].mxu1 %v1435_v17  ;;  %v12195_v17 = vld [vmem:[#allocation2 + $0x19e4] ss:$16 sps:$4 sm:$0xff]  }
 0x339   :  { %8068 = vmatpush1.bf16.msra.mxu0 %v12103_v18  ;;  %8847 = vmatpush1.bf16.msra.mxu1 %v12106_v19  ;;  %v12198_v18 = vld [vmem:[#allocation2 + $0x19ec] ss:$16 sps:$4 sm:$0xff]   ;;  %v12193_v19 = vld [vmem:[#allocation2 + $0x19e0] ss:$16 sps:$4 sm:$0xff]  }
 0x33a   :  { %8069 = vmatprep.subr.bf16.mxu0 %v12111_v52  ;;  %8848 = vmatprep.subr.bf16.mxu1 %v12114_v8  ;;  %v12196_v52 = vld [vmem:[#allocation2 + $0x19e8] ss:$16 sps:$4 sm:$0xff]   ;;  %v12201_v8 = vld [vmem:[#allocation2 + $0x1a04] ss:$16 sps:$4 sm:$0xff]  }
 0x33b   :  { %8099 = vmatprep.mubr.bf16.mxu0 %v13111_v20  ;;  %8878 = vmatprep.mubr.bf16.mxu1 %v13111_v20 }
 0x33d   :  { %8070 = vmatpush1.bf16.msra.mxu0 %v12109_v22  ;;  %8849 = vmatpush1.bf16.msra.mxu1 %v12112_v23  ;;  %v12204_v22 = vld [vmem:[#allocation2 + $0x1a0c] ss:$16 sps:$4 sm:$0xff]   ;;  %v13117_v23 = vrot.slane %v13104_v61, %v12970_v49  ;;  %v12208_v61 = vld [vmem:[#allocation2 + $0x1a28] ss:$16 sps:$4 sm:$0xff]  }
 0x33e   :  { %8071 = vmatprep.subr.bf16.mxu0 %v12117_v9  ;;  %8850 = vmatprep.subr.bf16.mxu1 %v12120_v24  ;;  %v12199_v9 = vld [vmem:[#allocation2 + $0x1a00] ss:$16 sps:$4 sm:$0xff]   ;;  %v12202_v24 = vld [vmem:[#allocation2 + $0x1a08] ss:$16 sps:$4 sm:$0xff]  }
 0x341   :  { %8072 = vmatpush1.bf16.msra.mxu0 %v12115_v26  ;;  %8851 = vmatpush1.bf16.msra.mxu1 %v12118_v28  ;;  %v12207_v26 = vld [vmem:[#allocation2 + $0x1a24] ss:$16 sps:$4 sm:$0xff]   ;;  %v12210_v28 = vld [vmem:[#allocation2 + $0x1a2c] ss:$16 sps:$4 sm:$0xff]  }
 0x342   :  { %8073 = vmatprep.subr.bf16.mxu0 %v12123_v13  ;;  %8852 = vmatprep.subr.bf16.mxu1 %v12126_v29  ;;  %v1485_v13 = vcombine.high %v13111_v20, %v13111_v20  ;;  %v12205_v29 = vld [vmem:[#allocation2 + $0x1a20] ss:$16 sps:$4 sm:$0xff]   ;;  %v12219_v20 = vld [vmem:[#allocation2 + $0x1a64] ss:$16 sps:$4 sm:$0xff]  }
 0x345   :  { %8074 = vmatpush1.bf16.msra.mxu0 %v12121_v30  ;;  %8853 = vmatpush1.bf16.msra.mxu1 %v12124_v31  ;;  %v12213_v30 = vld [vmem:[#allocation2 + $0x1a44] ss:$16 sps:$4 sm:$0xff]   ;;  %v12216_v31 = vld [vmem:[#allocation2 + $0x1a4c] ss:$16 sps:$4 sm:$0xff]  }
 0x346   :  { %8075 = vmatprep.subr.bf16.mxu0 %v12129_v32  ;;  %8854 = vmatprep.subr.bf16.mxu1 %v12132_v15  ;;  %v12211_v32 = vld [vmem:[#allocation2 + $0x1a40] ss:$16 sps:$4 sm:$0xff]   ;;  %v12214_v15 = vld [vmem:[#allocation2 + $0x1a48] ss:$16 sps:$4 sm:$0xff]  }
 0x349   :  { %8076 = vmatpush1.bf16.msra.mxu0 %v12127_v33  ;;  %8855 = vmatpush1.bf16.msra.mxu1 %v12130_v34  ;;  %v12222_v33 = vld [vmem:[#allocation2 + $0x1a6c] ss:$16 sps:$4 sm:$0xff]   ;;  %v12217_v34 = vld [vmem:[#allocation2 + $0x1a60] ss:$16 sps:$4 sm:$0xff]  }
 0x34a   :  { %8077 = vmatprep.subr.bf16.mxu0 %v12135_v35  ;;  %8856 = vmatprep.subr.bf16.mxu1 %v12138_v37  ;;  %v12220_v35 = vld [vmem:[#allocation2 + $0x1a68] ss:$16 sps:$4 sm:$0xff]   ;;  %v12225_v37 = vld [vmem:[#allocation2 + $0x1a84] ss:$16 sps:$4 sm:$0xff]  }
 0x34d   :  { %8078 = vmatpush1.bf16.msra.mxu0 %v12133_v27  ;;  %8857 = vmatpush1.bf16.msra.mxu1 %v12136_v39  ;;  %v12228_v27 = vld [vmem:[#allocation2 + $0x1a8c] ss:$16 sps:$4 sm:$0xff]   ;;  %v12223_v39 = vld [vmem:[#allocation2 + $0x1a80] ss:$16 sps:$4 sm:$0xff]  }
 0x34e   :  { %8079 = vmatprep.subr.bf16.mxu0 %v12141_v40  ;;  %8858 = vmatprep.subr.bf16.mxu1 %v12144_v41  ;;  %v12226_v40 = vld [vmem:[#allocation2 + $0x1a88] ss:$16 sps:$4 sm:$0xff]   ;;  %v12231_v41 = vld [vmem:[#allocation2 + $0x1aa4] ss:$16 sps:$4 sm:$0xff]  }
 0x351   :  { %8080 = vmatpush1.bf16.msra.mxu0 %v12139_v21  ;;  %8859 = vmatpush1.bf16.msra.mxu1 %v12142_v43  ;;  %v12234_v21 = vld [vmem:[#allocation2 + $0x1aac] ss:$16 sps:$4 sm:$0xff]   ;;  %v12229_v43 = vld [vmem:[#allocation2 + $0x1aa0] ss:$16 sps:$4 sm:$0xff]  }
 0x352   :  { %8081 = vmatprep.subr.bf16.mxu0 %v12147_v44  ;;  %8860 = vmatprep.subr.bf16.mxu1 %v12150_v46  ;;  %v12232_v44 = vld [vmem:[#allocation2 + $0x1aa8] ss:$16 sps:$4 sm:$0xff]   ;;  %v12237_v46 = vld [vmem:[#allocation2 + $0x1ac4] ss:$16 sps:$4 sm:$0xff]  }
 0x355   :  { %8082 = vmatpush1.bf16.msra.mxu0 %v12145_v25  ;;  %8861 = vmatpush1.bf16.msra.mxu1 %v12148_v47  ;;  %v12240_v25 = vld [vmem:[#allocation2 + $0x1acc] ss:$16 sps:$4 sm:$0xff]   ;;  %v12235_v47 = vld [vmem:[#allocation2 + $0x1ac0] ss:$16 sps:$4 sm:$0xff]  }
 0x356   :  { %8083 = vmatprep.subr.bf16.mxu0 %v12153_v51  ;;  %8862 = vmatprep.subr.bf16.mxu1 %v12156_v36  ;;  %v12238_v51 = vld [vmem:[#allocation2 + $0x1ac8] ss:$16 sps:$4 sm:$0xff]   ;;  %v12243_v36 = vld [vmem:[#allocation2 + $0x1ae4] ss:$16 sps:$4 sm:$0xff]  }
 0x359   :  { %8084 = vmatpush1.bf16.msra.mxu0 %v12151_v53  ;;  %8863 = vmatpush1.bf16.msra.mxu1 %v12154_v54  ;;  %v12246_v53 = vld [vmem:[#allocation2 + $0x1aec] ss:$16 sps:$4 sm:$0xff]   ;;  %v12241_v54 = vld [vmem:[#allocation2 + $0x1ae0] ss:$16 sps:$4 sm:$0xff]  }
 0x35a   :  { %8085 = vmatprep.subr.bf16.mxu0 %v12159_v55  ;;  %8864 = vmatprep.subr.bf16.mxu1 %v12162_v56  ;;  %v12244_v55 = vld [vmem:[#allocation2 + $0x1ae8] ss:$16 sps:$4 sm:$0xff]   ;;  %v12249_v56 = vld [vmem:[#allocation2 + $0x1b04] ss:$16 sps:$4 sm:$0xff]  }
 0x35d   :  { %8086 = vmatpush1.bf16.msra.mxu0 %v12157_v38  ;;  %8865 = vmatpush1.bf16.msra.mxu1 %v12160_v57  ;;  %v12252_v38 = vld [vmem:[#allocation2 + $0x1b0c] ss:$16 sps:$4 sm:$0xff]   ;;  %v12247_v57 = vld [vmem:[#allocation2 + $0x1b00] ss:$16 sps:$4 sm:$0xff]  }
 0x35e   :  { %8087 = vmatprep.subr.bf16.mxu0 %v12165_v58  ;;  %8866 = vmatprep.subr.bf16.mxu1 %v12168_v59  ;;  %v12250_v58 = vld [vmem:[#allocation2 + $0x1b08] ss:$16 sps:$4 sm:$0xff]   ;;  %v12255_v59 = vld [vmem:[#allocation2 + $0x1b24] ss:$16 sps:$4 sm:$0xff]  }
 0x361   :  { %8088 = vmatpush1.bf16.msra.mxu0 %v12163_v60  ;;  %8867 = vmatpush1.bf16.msra.mxu1 %v12166_v62  ;;  %v12258_v60 = vld [vmem:[#allocation2 + $0x1b2c] ss:$16 sps:$4 sm:$0xff]   ;;  %v12253_v62 = vld [vmem:[#allocation2 + $0x1b20] ss:$16 sps:$4 sm:$0xff]  }
 0x362   :  { %8089 = vmatprep.subr.bf16.mxu0 %v12171_v50  ;;  %8868 = vmatprep.subr.bf16.mxu1 %v12174_v0  ;;  %v12256_v50 = vld [vmem:[#allocation2 + $0x1b28] ss:$16 sps:$4 sm:$0xff]   ;;  %v12261_v0 = vld [vmem:[#allocation2 + $0x1b44] ss:$16 sps:$4 sm:$0xff]  }
 0x365   :  { %8090 = vmatpush1.bf16.msra.mxu0 %v12169_v1  ;;  %8869 = vmatpush1.bf16.msra.mxu1 %v12172_v2  ;;  %v12264_v1 = vld [vmem:[#allocation2 + $0x1b4c] ss:$16 sps:$4 sm:$0xff]   ;;  %v12259_v2 = vld [vmem:[#allocation2 + $0x1b40] ss:$16 sps:$4 sm:$0xff]  }
 0x366   :  { %8091 = vmatprep.subr.bf16.mxu0 %v12177_v45  ;;  %8870 = vmatprep.subr.bf16.mxu1 %v12180_v3  ;;  %v12262_v45 = vld [vmem:[#allocation2 + $0x1b48] ss:$16 sps:$4 sm:$0xff]   ;;  %v12267_v3 = vld [vmem:[#allocation2 + $0x1b64] ss:$16 sps:$4 sm:$0xff]  }
 0x369   :  { %8092 = vmatpush1.bf16.msra.mxu0 %v12175_v4  ;;  %8871 = vmatpush1.bf16.msra.mxu1 %v12178_v6  ;;  %v12270_v4 = vld [vmem:[#allocation2 + $0x1b6c] ss:$16 sps:$4 sm:$0xff]   ;;  %v12265_v6 = vld [vmem:[#allocation2 + $0x1b60] ss:$16 sps:$4 sm:$0xff]  }
 0x36a   :  { %8093 = vmatprep.subr.bf16.mxu0 %v12183_v48  ;;  %8872 = vmatprep.subr.bf16.mxu1 %v12186_v7  ;;  %v12268_v48 = vld [vmem:[#allocation2 + $0x1b68] ss:$16 sps:$4 sm:$0xff]   ;;  %v12273_v7 = vld [vmem:[#allocation2 + $0x1b84] ss:$16 sps:$4 sm:$0xff]  }
 0x36d   :  { %8094 = vmatpush1.bf16.msra.mxu0 %v12181_v10  ;;  %8873 = vmatpush1.bf16.msra.mxu1 %v12184_v11  ;;  %v12276_v10 = vld [vmem:[#allocation2 + $0x1b8c] ss:$16 sps:$4 sm:$0xff]   ;;  %v12271_v11 = vld [vmem:[#allocation2 + $0x1b80] ss:$16 sps:$4 sm:$0xff]  }
 0x36e   :  { %8095 = vmatprep.subr.bf16.mxu0 %v12189_v12  ;;  %8874 = vmatprep.subr.bf16.mxu1 %v12192_v14  ;;  %v12274_v12 = vld [vmem:[#allocation2 + $0x1b88] ss:$16 sps:$4 sm:$0xff]   ;;  %v12279_v14 = vld [vmem:[#allocation2 + $0x1ba4] ss:$16 sps:$4 sm:$0xff]  }
 0x371   :  { %8096 = vmatpush1.bf16.msra.mxu0 %v12187_v16  ;;  %8875 = vmatpush1.bf16.msra.mxu1 %v12190_v63  ;;  %v12282_v16 = vld [vmem:[#allocation2 + $0x1bac] ss:$16 sps:$4 sm:$0xff]   ;;  %v12277_v63 = vld [vmem:[#allocation2 + $0x1ba0] ss:$16 sps:$4 sm:$0xff]  }
 0x372   :  { %8097 = vmatprep.subr.bf16.mxu0 %v12195_v17  ;;  %8876 = vmatprep.subr.bf16.mxu1 %v12198_v18  ;;  %v12280_v17 = vld [vmem:[#allocation2 + $0x1ba8] ss:$16 sps:$4 sm:$0xff]   ;;  %v12285_v18 = vld [vmem:[#allocation2 + $0x1bc4] ss:$16 sps:$4 sm:$0xff]  }
 0x375   :  { %8098 = vmatpush1.bf16.msra.mxu0 %v12193_v19  ;;  %8877 = vmatpush1.bf16.msra.mxu1 %v12196_v52  ;;  %v12288_v19 = vld [vmem:[#allocation2 + $0x1bcc] ss:$16 sps:$4 sm:$0xff]   ;;  %v1438_v52 = vcombine.high %v13100_v5, %v13100_v5 }
 0x376   :  { %8108 = vmatprep.subr.bf16.mxu0 %v12201_v8  ;;  %8887 = vmatprep.subr.bf16.mxu1 %v12204_v22  ;;  %v12283_v8 = vld [vmem:[#allocation2 + $0x1bc0] ss:$16 sps:$4 sm:$0xff]   ;;  %v12286_v22 = vld [vmem:[#allocation2 + $0x1bc8] ss:$16 sps:$4 sm:$0xff]  }
 0x378   :  { %8100 = vmatmul.mubr.bf16.vlgmr.msra.gmra.mrb[0].mxu0 %v13117_v23  ;;  %8879 = vmatmul.mubr.bf16.vlgmr.msra.gmra.mrb[0].mxu1 %v13117_v23 }
 0x379   :  { %8109 = vmatpush1.bf16.msra.mxu0 %v12199_v9  ;;  %8888 = vmatpush1.bf16.msra.mxu1 %v12202_v24  ;;  %v12291_v9 = vld [vmem:[#allocation2 + $0x1be4] ss:$16 sps:$4 sm:$0xff]   ;;  %v12294_v24 = vld [vmem:[#allocation2 + $0x1bec] ss:$16 sps:$4 sm:$0xff]  }
 0x37a   :  { %8110 = vmatprep.subr.bf16.mxu0 %v12207_v26  ;;  %8889 = vmatprep.subr.bf16.mxu1 %v12210_v28  ;;  %v13126_v26 = vrot.slane %v1438_v52, %v12970_v49  ;;  %v12289_v28 = vld [vmem:[#allocation2 + $0x1be0] ss:$16 sps:$4 sm:$0xff]   ;;  %v12370_v52 = vld [vmem:[#allocation2 + $0x1d88] ss:$16 sps:$4 sm:$0xff]  }
 0x37b   :  { %8140 = vmatprep.mubr.bf16.mxu0 %v1485_v13  ;;  %8919 = vmatprep.mubr.bf16.mxu1 %v1485_v13  ;;  %v12292_v13 = vld [vmem:[#allocation2 + $0x1be8] ss:$16 sps:$4 sm:$0xff]  }
 0x37c   :  { %v1454_v5 = vcombine.high %v13126_v26, %v13126_v26 }
 0x37d   :  { %8111 = vmatpush1.bf16.msra.mxu0 %v12205_v29  ;;  %8890 = vmatpush1.bf16.msra.mxu1 %v12208_v61  ;;  %v12297_v29 = vld [vmem:[#allocation2 + $0x1c04] ss:$16 sps:$4 sm:$0xff]   ;;  %v12300_v61 = vld [vmem:[#allocation2 + $0x1c0c] ss:$16 sps:$4 sm:$0xff]  }
 0x37e   :  { %8112 = vmatprep.subr.bf16.mxu0 %v12213_v30  ;;  %8891 = vmatprep.subr.bf16.mxu1 %v12216_v31  ;;  %v1483_v30 = vcombine.high %v13117_v23, %v13117_v23  ;;  %v12295_v31 = vld [vmem:[#allocation2 + $0x1c00] ss:$16 sps:$4 sm:$0xff]   ;;  %v12309_v23 = vld [vmem:[#allocation2 + $0x1c44] ss:$16 sps:$4 sm:$0xff]  }
 0x381   :  { %8113 = vmatpush1.bf16.msra.mxu0 %v12211_v32  ;;  %8892 = vmatpush1.bf16.msra.mxu1 %v12214_v15  ;;  %v12298_v32 = vld [vmem:[#allocation2 + $0x1c08] ss:$16 sps:$4 sm:$0xff]   ;;  %v12303_v15 = vld [vmem:[#allocation2 + $0x1c24] ss:$16 sps:$4 sm:$0xff]  }
 0x382   :  { %8114 = vmatprep.subr.bf16.mxu0 %v12219_v20  ;;  %8893 = vmatprep.subr.bf16.mxu1 %v12222_v33  ;;  %v12306_v20 = vld [vmem:[#allocation2 + $0x1c2c] ss:$16 sps:$4 sm:$0xff]   ;;  %v13133_v33 = vrot.slane %v1454_v5, %v12970_v49  ;;  %v12387_v5 = vld [vmem:[#allocation2 + $0x1de4] ss:$16 sps:$4 sm:$0xff]  }
 0x385   :  { %8115 = vmatpush1.bf16.msra.mxu0 %v12217_v34  ;;  %8894 = vmatpush1.bf16.msra.mxu1 %v12220_v35  ;;  %v12301_v34 = vld [vmem:[#allocation2 + $0x1c20] ss:$16 sps:$4 sm:$0xff]   ;;  %v12304_v35 = vld [vmem:[#allocation2 + $0x1c28] ss:$16 sps:$4 sm:$0xff]  }
 0x386   :  { %8116 = vmatprep.subr.bf16.mxu0 %v12225_v37  ;;  %8895 = vmatprep.subr.bf16.mxu1 %v12228_v27  ;;  %v12312_v37 = vld [vmem:[#allocation2 + $0x1c4c] ss:$16 sps:$4 sm:$0xff]   ;;  %v12307_v27 = vld [vmem:[#allocation2 + $0x1c40] ss:$16 sps:$4 sm:$0xff]  }
 0x389   :  { %8117 = vmatpush1.bf16.msra.mxu0 %v12223_v39  ;;  %8896 = vmatpush1.bf16.msra.mxu1 %v12226_v40  ;;  %v12310_v39 = vld [vmem:[#allocation2 + $0x1c48] ss:$16 sps:$4 sm:$0xff]   ;;  %v12315_v40 = vld [vmem:[#allocation2 + $0x1c64] ss:$16 sps:$4 sm:$0xff]  }
 0x38a   :  { %8118 = vmatprep.subr.bf16.mxu0 %v12231_v41  ;;  %8897 = vmatprep.subr.bf16.mxu1 %v12234_v21  ;;  %v12318_v41 = vld [vmem:[#allocation2 + $0x1c6c] ss:$16 sps:$4 sm:$0xff]   ;;  %v12313_v21 = vld [vmem:[#allocation2 + $0x1c60] ss:$16 sps:$4 sm:$0xff]  }
 0x38d   :  { %8119 = vmatpush1.bf16.msra.mxu0 %v12229_v43  ;;  %8898 = vmatpush1.bf16.msra.mxu1 %v12232_v44  ;;  %v12316_v43 = vld [vmem:[#allocation2 + $0x1c68] ss:$16 sps:$4 sm:$0xff]   ;;  %v12321_v44 = vld [vmem:[#allocation2 + $0x1c84] ss:$16 sps:$4 sm:$0xff]  }
 0x38e   :  { %8120 = vmatprep.subr.bf16.mxu0 %v12237_v46  ;;  %8899 = vmatprep.subr.bf16.mxu1 %v12240_v25  ;;  %v12324_v46 = vld [vmem:[#allocation2 + $0x1c8c] ss:$16 sps:$4 sm:$0xff]   ;;  %v12319_v25 = vld [vmem:[#allocation2 + $0x1c80] ss:$16 sps:$4 sm:$0xff]  }
 0x391   :  { %8121 = vmatpush1.bf16.msra.mxu0 %v12235_v47  ;;  %8900 = vmatpush1.bf16.msra.mxu1 %v12238_v51  ;;  %v12322_v47 = vld [vmem:[#allocation2 + $0x1c88] ss:$16 sps:$4 sm:$0xff]   ;;  %v12327_v51 = vld [vmem:[#allocation2 + $0x1ca4] ss:$16 sps:$4 sm:$0xff]  }
 0x392   :  { %8122 = vmatprep.subr.bf16.mxu0 %v12243_v36  ;;  %8901 = vmatprep.subr.bf16.mxu1 %v12246_v53  ;;  %v12330_v36 = vld [vmem:[#allocation2 + $0x1cac] ss:$16 sps:$4 sm:$0xff]   ;;  %v12325_v53 = vld [vmem:[#allocation2 + $0x1ca0] ss:$16 sps:$4 sm:$0xff]  }
 0x395   :  { %8123 = vmatpush1.bf16.msra.mxu0 %v12241_v54  ;;  %8902 = vmatpush1.bf16.msra.mxu1 %v12244_v55  ;;  %v12328_v54 = vld [vmem:[#allocation2 + $0x1ca8] ss:$16 sps:$4 sm:$0xff]   ;;  %v12333_v55 = vld [vmem:[#allocation2 + $0x1cc4] ss:$16 sps:$4 sm:$0xff]  }
 0x396   :  { %8124 = vmatprep.subr.bf16.mxu0 %v12249_v56  ;;  %8903 = vmatprep.subr.bf16.mxu1 %v12252_v38  ;;  %v12336_v56 = vld [vmem:[#allocation2 + $0x1ccc] ss:$16 sps:$4 sm:$0xff]   ;;  %v12331_v38 = vld [vmem:[#allocation2 + $0x1cc0] ss:$16 sps:$4 sm:$0xff]  }
 0x399   :  { %8125 = vmatpush1.bf16.msra.mxu0 %v12247_v57  ;;  %8904 = vmatpush1.bf16.msra.mxu1 %v12250_v58  ;;  %v12334_v57 = vld [vmem:[#allocation2 + $0x1cc8] ss:$16 sps:$4 sm:$0xff]   ;;  %v12339_v58 = vld [vmem:[#allocation2 + $0x1ce4] ss:$16 sps:$4 sm:$0xff]  }
 0x39a   :  { %8126 = vmatprep.subr.bf16.mxu0 %v12255_v59  ;;  %8905 = vmatprep.subr.bf16.mxu1 %v12258_v60  ;;  %v12342_v59 = vld [vmem:[#allocation2 + $0x1cec] ss:$16 sps:$4 sm:$0xff]   ;;  %v12337_v60 = vld [vmem:[#allocation2 + $0x1ce0] ss:$16 sps:$4 sm:$0xff]  }
 0x39d   :  { %8127 = vmatpush1.bf16.msra.mxu0 %v12253_v62  ;;  %8906 = vmatpush1.bf16.msra.mxu1 %v12256_v50  ;;  %v12340_v62 = vld [vmem:[#allocation2 + $0x1ce8] ss:$16 sps:$4 sm:$0xff]   ;;  %v12345_v50 = vld [vmem:[#allocation2 + $0x1d04] ss:$16 sps:$4 sm:$0xff]  }
 0x39e   :  { %8128 = vmatprep.subr.bf16.mxu0 %v12261_v0  ;;  %8907 = vmatprep.subr.bf16.mxu1 %v12264_v1  ;;  %v12348_v0 = vld [vmem:[#allocation2 + $0x1d0c] ss:$16 sps:$4 sm:$0xff]   ;;  %v12343_v1 = vld [vmem:[#allocation2 + $0x1d00] ss:$16 sps:$4 sm:$0xff]  }
 0x3a1   :  { %8129 = vmatpush1.bf16.msra.mxu0 %v12259_v2  ;;  %8908 = vmatpush1.bf16.msra.mxu1 %v12262_v45  ;;  %v12346_v2 = vld [vmem:[#allocation2 + $0x1d08] ss:$16 sps:$4 sm:$0xff]   ;;  %v12351_v45 = vld [vmem:[#allocation2 + $0x1d24] ss:$16 sps:$4 sm:$0xff]  }
 0x3a2   :  { %8130 = vmatprep.subr.bf16.mxu0 %v12267_v3  ;;  %8909 = vmatprep.subr.bf16.mxu1 %v12270_v4  ;;  %v12354_v3 = vld [vmem:[#allocation2 + $0x1d2c] ss:$16 sps:$4 sm:$0xff]   ;;  %v12349_v4 = vld [vmem:[#allocation2 + $0x1d20] ss:$16 sps:$4 sm:$0xff]  }
 0x3a5   :  { %8131 = vmatpush1.bf16.msra.mxu0 %v12265_v6  ;;  %8910 = vmatpush1.bf16.msra.mxu1 %v12268_v48  ;;  %v12352_v6 = vld [vmem:[#allocation2 + $0x1d28] ss:$16 sps:$4 sm:$0xff]   ;;  %v12357_v48 = vld [vmem:[#allocation2 + $0x1d44] ss:$16 sps:$4 sm:$0xff]  }
 0x3a6   :  { %8132 = vmatprep.subr.bf16.mxu0 %v12273_v7  ;;  %8911 = vmatprep.subr.bf16.mxu1 %v12276_v10  ;;  %v12360_v7 = vld [vmem:[#allocation2 + $0x1d4c] ss:$16 sps:$4 sm:$0xff]   ;;  %v12355_v10 = vld [vmem:[#allocation2 + $0x1d40] ss:$16 sps:$4 sm:$0xff]  }
 0x3a9   :  { %8133 = vmatpush1.bf16.msra.mxu0 %v12271_v11  ;;  %8912 = vmatpush1.bf16.msra.mxu1 %v12274_v12  ;;  %v12358_v11 = vld [vmem:[#allocation2 + $0x1d48] ss:$16 sps:$4 sm:$0xff]   ;;  %v12363_v12 = vld [vmem:[#allocation2 + $0x1d64] ss:$16 sps:$4 sm:$0xff]  }
 0x3aa   :  { %8134 = vmatprep.subr.bf16.mxu0 %v12279_v14  ;;  %8913 = vmatprep.subr.bf16.mxu1 %v12282_v16  ;;  %v12366_v14 = vld [vmem:[#allocation2 + $0x1d6c] ss:$16 sps:$4 sm:$0xff]   ;;  %v12361_v16 = vld [vmem:[#allocation2 + $0x1d60] ss:$16 sps:$4 sm:$0xff]  }
 0x3ad   :  { %8135 = vmatpush1.bf16.msra.mxu0 %v12277_v63  ;;  %8914 = vmatpush1.bf16.msra.mxu1 %v12280_v17  ;;  %v12364_v63 = vld [vmem:[#allocation2 + $0x1d68] ss:$16 sps:$4 sm:$0xff]   ;;  %v12369_v17 = vld [vmem:[#allocation2 + $0x1d84] ss:$16 sps:$4 sm:$0xff]  }
 0x3ae   :  { %8136 = vmatprep.subr.bf16.mxu0 %v12285_v18  ;;  %8915 = vmatprep.subr.bf16.mxu1 %v12288_v19  ;;  %v12372_v18 = vld [vmem:[#allocation2 + $0x1d8c] ss:$16 sps:$4 sm:$0xff]   ;;  %v12367_v19 = vld [vmem:[#allocation2 + $0x1d80] ss:$16 sps:$4 sm:$0xff]  }
 0x3b1   :  { %8137 = vmatpush1.bf16.msra.mxu0 %v12283_v8  ;;  %8916 = vmatpush1.bf16.msra.mxu1 %v12286_v22  ;;  %v12375_v8 = vld [vmem:[#allocation2 + $0x1da4] ss:$16 sps:$4 sm:$0xff]   ;;  %v12378_v22 = vld [vmem:[#allocation2 + $0x1dac] ss:$16 sps:$4 sm:$0xff]  }
 0x3b2   :  { %8138 = vmatprep.subr.bf16.mxu0 %v12291_v9  ;;  %8917 = vmatprep.subr.bf16.mxu1 %v12294_v24  ;;  %v12373_v9 = vld [vmem:[#allocation2 + $0x1da0] ss:$16 sps:$4 sm:$0xff]   ;;  %v12376_v24 = vld [vmem:[#allocation2 + $0x1da8] ss:$16 sps:$4 sm:$0xff]  }
 0x3b5   :  { %8139 = vmatpush1.bf16.msra.mxu0 %v12289_v28  ;;  %8918 = vmatpush1.bf16.msra.mxu1 %v12292_v13  ;;  %v12381_v28 = vld [vmem:[#allocation2 + $0x1dc4] ss:$16 sps:$4 sm:$0xff]   ;;  %v12384_v13 = vld [vmem:[#allocation2 + $0x1dcc] ss:$16 sps:$4 sm:$0xff]  }
 0x3b6   :  { %8149 = vmatprep.subr.bf16.mxu0 %v12297_v29  ;;  %8928 = vmatprep.subr.bf16.mxu1 %v12300_v61  ;;  %v12379_v29 = vld [vmem:[#allocation2 + $0x1dc0] ss:$16 sps:$4 sm:$0xff]   ;;  %v12382_v61 = vld [vmem:[#allocation2 + $0x1dc8] ss:$16 sps:$4 sm:$0xff]  }
 0x3b8   :  { %8141 = vmatmul.mubr.bf16.vlgmr.msra.gmra.mrb[0].mxu0 %v1483_v30  ;;  %8920 = vmatmul.mubr.bf16.vlgmr.msra.gmra.mrb[0].mxu1 %v1483_v30  ;;  %v12390_v30 = vld [vmem:[#allocation2 + $0x1dec] ss:$16 sps:$4 sm:$0xff]  }
 0x3b9   :  { %8150 = vmatpush1.bf16.msra.mxu0 %v12295_v31  ;;  %8929 = vmatpush1.bf16.msra.mxu1 %v12298_v32  ;;  %v12385_v31 = vld [vmem:[#allocation2 + $0x1de0] ss:$16 sps:$4 sm:$0xff]   ;;  %v12388_v32 = vld [vmem:[#allocation2 + $0x1de8] ss:$16 sps:$4 sm:$0xff]  }
 0x3ba   :  { %8151 = vmatprep.subr.bf16.mxu0 %v12303_v15  ;;  %8930 = vmatprep.subr.bf16.mxu1 %v12306_v20  ;;  %v12394_v15 = vld [vmem:[#allocation2 + $0x1e04] ss:$16 sps:$4 sm:$0xff]   ;;  %v12397_v20 = vld [vmem:[#allocation2 + $0x1e0c] ss:$16 sps:$4 sm:$0xff]  }
 0x3bb   :  { %8181 = vmatprep.mubr.bf16.mxu0 %v13133_v33  ;;  %8960 = vmatprep.mubr.bf16.mxu1 %v13133_v33 }
 0x3bd   :  { %8152 = vmatpush1.bf16.msra.mxu0 %v12301_v34  ;;  %8931 = vmatpush1.bf16.msra.mxu1 %v12304_v35  ;;  %v13139_v34 = vrot.slane %v13126_v26, %v12970_v49  ;;  %v12392_v35 = vld [vmem:[#allocation2 + $0x1e00] ss:$16 sps:$4 sm:$0xff]   ;;  %v12401_v26 = vld [vmem:[#allocation2 + $0x1e28] ss:$16 sps:$4 sm:$0xff]  }
 0x3be   :  { %8153 = vmatprep.subr.bf16.mxu0 %v12309_v23  ;;  %8932 = vmatprep.subr.bf16.mxu1 %v12312_v37  ;;  %v12395_v23 = vld [vmem:[#allocation2 + $0x1e08] ss:$16 sps:$4 sm:$0xff]   ;;  %v12400_v37 = vld [vmem:[#allocation2 + $0x1e24] ss:$16 sps:$4 sm:$0xff]  }
 0x3c1   :  { %8154 = vmatpush1.bf16.msra.mxu0 %v12307_v27  ;;  %8933 = vmatpush1.bf16.msra.mxu1 %v12310_v39  ;;  %v12403_v27 = vld [vmem:[#allocation2 + $0x1e2c] ss:$16 sps:$4 sm:$0xff]   ;;  %v1486_v39 = vcombine.high %v13133_v33, %v13133_v33  ;;  %v12412_v33 = vld [vmem:[#allocation2 + $0x1e64] ss:$16 sps:$4 sm:$0xff]  }
 0x3c2   :  { %8155 = vmatprep.subr.bf16.mxu0 %v12315_v40  ;;  %8934 = vmatprep.subr.bf16.mxu1 %v12318_v41  ;;  %v12398_v40 = vld [vmem:[#allocation2 + $0x1e20] ss:$16 sps:$4 sm:$0xff]   ;;  %v12406_v41 = vld [vmem:[#allocation2 + $0x1e44] ss:$16 sps:$4 sm:$0xff]  }
 0x3c5   :  { %8156 = vmatpush1.bf16.msra.mxu0 %v12313_v21  ;;  %8935 = vmatpush1.bf16.msra.mxu1 %v12316_v43  ;;  %v12409_v21 = vld [vmem:[#allocation2 + $0x1e4c] ss:$16 sps:$4 sm:$0xff]   ;;  %v12404_v43 = vld [vmem:[#allocation2 + $0x1e40] ss:$16 sps:$4 sm:$0xff]  }
 0x3c6   :  { %8157 = vmatprep.subr.bf16.mxu0 %v12321_v44  ;;  %8936 = vmatprep.subr.bf16.mxu1 %v12324_v46  ;;  %v12407_v44 = vld [vmem:[#allocation2 + $0x1e48] ss:$16 sps:$4 sm:$0xff]   ;;  %v12415_v46 = vld [vmem:[#allocation2 + $0x1e6c] ss:$16 sps:$4 sm:$0xff]  }
 0x3c9   :  { %8158 = vmatpush1.bf16.msra.mxu0 %v12319_v25  ;;  %8937 = vmatpush1.bf16.msra.mxu1 %v12322_v47  ;;  %v12410_v25 = vld [vmem:[#allocation2 + $0x1e60] ss:$16 sps:$4 sm:$0xff]   ;;  %v12413_v47 = vld [vmem:[#allocation2 + $0x1e68] ss:$16 sps:$4 sm:$0xff]  }
 0x3ca   :  { %8159 = vmatprep.subr.bf16.mxu0 %v12327_v51  ;;  %8938 = vmatprep.subr.bf16.mxu1 %v12330_v36  ;;  %v12418_v51 = vld [vmem:[#allocation2 + $0x1e84] ss:$16 sps:$4 sm:$0xff]   ;;  %v12421_v36 = vld [vmem:[#allocation2 + $0x1e8c] ss:$16 sps:$4 sm:$0xff]  }
 0x3cd   :  { %8160 = vmatpush1.bf16.msra.mxu0 %v12325_v53  ;;  %8939 = vmatpush1.bf16.msra.mxu1 %v12328_v54  ;;  %v12416_v53 = vld [vmem:[#allocation2 + $0x1e80] ss:$16 sps:$4 sm:$0xff]   ;;  %v12419_v54 = vld [vmem:[#allocation2 + $0x1e88] ss:$16 sps:$4 sm:$0xff]  }
 0x3ce   :  { %8161 = vmatprep.subr.bf16.mxu0 %v12333_v55  ;;  %8940 = vmatprep.subr.bf16.mxu1 %v12336_v56  ;;  %v12424_v55 = vld [vmem:[#allocation2 + $0x1ea4] ss:$16 sps:$4 sm:$0xff]   ;;  %v12427_v56 = vld [vmem:[#allocation2 + $0x1eac] ss:$16 sps:$4 sm:$0xff]  }
 0x3d1   :  { %8162 = vmatpush1.bf16.msra.mxu0 %v12331_v38  ;;  %8941 = vmatpush1.bf16.msra.mxu1 %v12334_v57  ;;  %v12422_v38 = vld [vmem:[#allocation2 + $0x1ea0] ss:$16 sps:$4 sm:$0xff]   ;;  %v12425_v57 = vld [vmem:[#allocation2 + $0x1ea8] ss:$16 sps:$4 sm:$0xff]  }
 0x3d2   :  { %8163 = vmatprep.subr.bf16.mxu0 %v12339_v58  ;;  %8942 = vmatprep.subr.bf16.mxu1 %v12342_v59  ;;  %v12430_v58 = vld [vmem:[#allocation2 + $0x1ec4] ss:$16 sps:$4 sm:$0xff]   ;;  %v12433_v59 = vld [vmem:[#allocation2 + $0x1ecc] ss:$16 sps:$4 sm:$0xff]  }
 0x3d5   :  { %8164 = vmatpush1.bf16.msra.mxu0 %v12337_v60  ;;  %8943 = vmatpush1.bf16.msra.mxu1 %v12340_v62  ;;  %v12428_v60 = vld [vmem:[#allocation2 + $0x1ec0] ss:$16 sps:$4 sm:$0xff]   ;;  %v12431_v62 = vld [vmem:[#allocation2 + $0x1ec8] ss:$16 sps:$4 sm:$0xff]  }
 0x3d6   :  { %8165 = vmatprep.subr.bf16.mxu0 %v12345_v50  ;;  %8944 = vmatprep.subr.bf16.mxu1 %v12348_v0  ;;  %v12436_v50 = vld [vmem:[#allocation2 + $0x1ee4] ss:$16 sps:$4 sm:$0xff]   ;;  %v12439_v0 = vld [vmem:[#allocation2 + $0x1eec] ss:$16 sps:$4 sm:$0xff]  }
 0x3d9   :  { %8166 = vmatpush1.bf16.msra.mxu0 %v12343_v1  ;;  %8945 = vmatpush1.bf16.msra.mxu1 %v12346_v2  ;;  %v12434_v1 = vld [vmem:[#allocation2 + $0x1ee0] ss:$16 sps:$4 sm:$0xff]   ;;  %v12437_v2 = vld [vmem:[#allocation2 + $0x1ee8] ss:$16 sps:$4 sm:$0xff]  }
 0x3da   :  { %8167 = vmatprep.subr.bf16.mxu0 %v12351_v45  ;;  %8946 = vmatprep.subr.bf16.mxu1 %v12354_v3  ;;  %v12442_v45 = vld [vmem:[#allocation2 + $0x1f04] ss:$16 sps:$4 sm:$0xff]   ;;  %v12445_v3 = vld [vmem:[#allocation2 + $0x1f0c] ss:$16 sps:$4 sm:$0xff]  }
 0x3dd   :  { %8168 = vmatpush1.bf16.msra.mxu0 %v12349_v4  ;;  %8947 = vmatpush1.bf16.msra.mxu1 %v12352_v6  ;;  %v12440_v4 = vld [vmem:[#allocation2 + $0x1f00] ss:$16 sps:$4 sm:$0xff]   ;;  %v12443_v6 = vld [vmem:[#allocation2 + $0x1f08] ss:$16 sps:$4 sm:$0xff]  }
 0x3de   :  { %8169 = vmatprep.subr.bf16.mxu0 %v12357_v48  ;;  %8948 = vmatprep.subr.bf16.mxu1 %v12360_v7  ;;  %v12448_v48 = vld [vmem:[#allocation2 + $0x1f24] ss:$16 sps:$4 sm:$0xff]   ;;  %v12451_v7 = vld [vmem:[#allocation2 + $0x1f2c] ss:$16 sps:$4 sm:$0xff]  }
 0x3e1   :  { %8170 = vmatpush1.bf16.msra.mxu0 %v12355_v10  ;;  %8949 = vmatpush1.bf16.msra.mxu1 %v12358_v11  ;;  %v12446_v10 = vld [vmem:[#allocation2 + $0x1f20] ss:$16 sps:$4 sm:$0xff]   ;;  %v12449_v11 = vld [vmem:[#allocation2 + $0x1f28] ss:$16 sps:$4 sm:$0xff]  }
 0x3e2   :  { %8171 = vmatprep.subr.bf16.mxu0 %v12363_v12  ;;  %8950 = vmatprep.subr.bf16.mxu1 %v12366_v14  ;;  %v12454_v12 = vld [vmem:[#allocation2 + $0x1f44] ss:$16 sps:$4 sm:$0xff]   ;;  %v12457_v14 = vld [vmem:[#allocation2 + $0x1f4c] ss:$16 sps:$4 sm:$0xff]  }
 0x3e5   :  { %8172 = vmatpush1.bf16.msra.mxu0 %v12361_v16  ;;  %8951 = vmatpush1.bf16.msra.mxu1 %v12364_v63  ;;  %v12452_v16 = vld [vmem:[#allocation2 + $0x1f40] ss:$16 sps:$4 sm:$0xff]   ;;  %v12455_v63 = vld [vmem:[#allocation2 + $0x1f48] ss:$16 sps:$4 sm:$0xff]  }
 0x3e6   :  { %8173 = vmatprep.subr.bf16.mxu0 %v12369_v17  ;;  %8952 = vmatprep.subr.bf16.mxu1 %v12372_v18  ;;  %v12460_v17 = vld [vmem:[#allocation2 + $0x1f64] ss:$16 sps:$4 sm:$0xff]   ;;  %v12463_v18 = vld [vmem:[#allocation2 + $0x1f6c] ss:$16 sps:$4 sm:$0xff]  }
 0x3e9   :  { %8174 = vmatpush1.bf16.msra.mxu0 %v12367_v19  ;;  %8953 = vmatpush1.bf16.msra.mxu1 %v12370_v52  ;;  %v12458_v19 = vld [vmem:[#allocation2 + $0x1f60] ss:$16 sps:$4 sm:$0xff]   ;;  %v12461_v52 = vld [vmem:[#allocation2 + $0x1f68] ss:$16 sps:$4 sm:$0xff]  }
 0x3ea   :  { %8175 = vmatprep.subr.bf16.mxu0 %v12375_v8  ;;  %8954 = vmatprep.subr.bf16.mxu1 %v12378_v22  ;;  %v12466_v8 = vld [vmem:[#allocation2 + $0x1f84] ss:$16 sps:$4 sm:$0xff]   ;;  %v12469_v22 = vld [vmem:[#allocation2 + $0x1f8c] ss:$16 sps:$4 sm:$0xff]  }
 0x3ed   :  { %8176 = vmatpush1.bf16.msra.mxu0 %v12373_v9  ;;  %8955 = vmatpush1.bf16.msra.mxu1 %v12376_v24  ;;  %v12464_v9 = vld [vmem:[#allocation2 + $0x1f80] ss:$16 sps:$4 sm:$0xff]   ;;  %v12467_v24 = vld [vmem:[#allocation2 + $0x1f88] ss:$16 sps:$4 sm:$0xff]  }
 0x3ee   :  { %8177 = vmatprep.subr.bf16.mxu0 %v12381_v28  ;;  %8956 = vmatprep.subr.bf16.mxu1 %v12384_v13  ;;  %v12472_v28 = vld [vmem:[#allocation2 + $0x1fa4] ss:$16 sps:$4 sm:$0xff]   ;;  %v12475_v13 = vld [vmem:[#allocation2 + $0x1fac] ss:$16 sps:$4 sm:$0xff]  }
 0x3f1   :  { %8178 = vmatpush1.bf16.msra.mxu0 %v12379_v29  ;;  %8957 = vmatpush1.bf16.msra.mxu1 %v12382_v61  ;;  %v12470_v29 = vld [vmem:[#allocation2 + $0x1fa0] ss:$16 sps:$4 sm:$0xff]   ;;  %v12473_v61 = vld [vmem:[#allocation2 + $0x1fa8] ss:$16 sps:$4 sm:$0xff]  }
 0x3f2   :  { %8179 = vmatprep.subr.bf16.mxu0 %v12387_v5  ;;  %8958 = vmatprep.subr.bf16.mxu1 %v12390_v30  ;;  %v12478_v5 = vld [vmem:[#allocation2 + $0x1fc4] ss:$16 sps:$4 sm:$0xff]   ;;  %v12481_v30 = vld [vmem:[#allocation2 + $0x1fcc] ss:$16 sps:$4 sm:$0xff]  }
 0x3f5   :  { %8180 = vmatpush1.bf16.msra.mxu0 %v12385_v31  ;;  %8959 = vmatpush1.bf16.msra.mxu1 %v12388_v32  ;;  %v13148_v31 = vld [vmem:[%s13298_s0 + $0x20] sm:$0x3f] }
 0x3f6   :  { %8190 = vmatprep.subr.bf16.mxu0 %v12394_v15  ;;  %8969 = vmatprep.subr.bf16.mxu1 %v12397_v20  ;;  %v12476_v32 = vld [vmem:[#allocation2 + $0x1fc0] ss:$16 sps:$4 sm:$0xff]   ;;  %v12479_v15 = vld [vmem:[#allocation2 + $0x1fc8] ss:$16 sps:$4 sm:$0xff]   ;;  %v12484_v20 = vld [vmem:[#allocation2 + $0x1fe4] ss:$16 sps:$4 sm:$0xff]  }
 0x3f8   :  { %8182 = vmatmul.mubr.bf16.vlgmr.msra.gmra.mrb[0].mxu0 %v13139_v34  ;;  %8961 = vmatmul.mubr.bf16.vlgmr.msra.gmra.mrb[0].mxu1 %v13139_v34 }
 0x3f9   :  { %8191 = vmatpush1.bf16.msra.mxu0 %v12392_v35  ;;  %8970 = vmatpush1.bf16.msra.mxu1 %v12395_v23  ;;  %v12487_v35 = vld [vmem:[#allocation2 + $0x1fec] ss:$16 sps:$4 sm:$0xff]   ;;  %v13152_v23 = vrot.slane %v13148_v31, %v12970_v49 }
 0x3fa   :  { %8192 = vmatprep.subr.bf16.mxu0 %v12400_v37  ;;  %8971 = vmatprep.subr.bf16.mxu1 %v12403_v27  ;;  %v12482_v37 = vld [vmem:[#allocation2 + $0x1fe0] ss:$16 sps:$4 sm:$0xff]   ;;  %v12485_v27 = vld [vmem:[#allocation2 + $0x1fe8] ss:$16 sps:$4 sm:$0xff]  }
 0x3fb   :  { %8222 = vmatprep.mubr.bf16.mxu0 %v1486_v39  ;;  %9001 = vmatprep.mubr.bf16.mxu1 %v1486_v39  ;;  %v12490_v39 = vld [vmem:[#allocation2 + $0x2004] ss:$16 sps:$4 sm:$0xff]  }
 0x3fd   :  { %8193 = vmatpush1.bf16.msra.mxu0 %v12398_v40  ;;  %8972 = vmatpush1.bf16.msra.mxu1 %v12401_v26  ;;  %v12493_v40 = vld [vmem:[#allocation2 + $0x200c] ss:$16 sps:$4 sm:$0xff]   ;;  %v1502_v26 = vcombine.high %v13152_v23, %v13152_v23 }
 0x3fe   :  { %8194 = vmatprep.subr.bf16.mxu0 %v12406_v41  ;;  %8973 = vmatprep.subr.bf16.mxu1 %v12409_v21  ;;  %v1484_v41 = vcombine.high %v13139_v34, %v13139_v34  ;;  %v12488_v21 = vld [vmem:[#allocation2 + $0x2000] ss:$16 sps:$4 sm:$0xff]   ;;  %v12502_v34 = vld [vmem:[#allocation2 + $0x2044] ss:$16 sps:$4 sm:$0xff]  }
 0x401   :  { %8195 = vmatpush1.bf16.msra.mxu0 %v12404_v43  ;;  %8974 = vmatpush1.bf16.msra.mxu1 %v12407_v44  ;;  %v12491_v43 = vld [vmem:[#allocation2 + $0x2008] ss:$16 sps:$4 sm:$0xff]   ;;  %v12496_v44 = vld [vmem:[#allocation2 + $0x2024] ss:$16 sps:$4 sm:$0xff]  }
 0x402   :  { %8196 = vmatprep.subr.bf16.mxu0 %v12412_v33  ;;  %8975 = vmatprep.subr.bf16.mxu1 %v12415_v46  ;;  %v12499_v33 = vld [vmem:[#allocation2 + $0x202c] ss:$16 sps:$4 sm:$0xff]   ;;  %v13159_v46 = vrot.slane %v1502_v26, %v12970_v49  ;;  %v12575_v26 = vld [vmem:[#allocation2 + $0x21c8] ss:$16 sps:$4 sm:$0xff]  }
 0x405   :  { %8197 = vmatpush1.bf16.msra.mxu0 %v12410_v25  ;;  %8976 = vmatpush1.bf16.msra.mxu1 %v12413_v47  ;;  %v12494_v25 = vld [vmem:[#allocation2 + $0x2020] ss:$16 sps:$4 sm:$0xff]   ;;  %v12497_v47 = vld [vmem:[#allocation2 + $0x2028] ss:$16 sps:$4 sm:$0xff]  }
 0x406   :  { %8198 = vmatprep.subr.bf16.mxu0 %v12418_v51  ;;  %8977 = vmatprep.subr.bf16.mxu1 %v12421_v36  ;;  %v12505_v51 = vld [vmem:[#allocation2 + $0x204c] ss:$16 sps:$4 sm:$0xff]   ;;  %v12500_v36 = vld [vmem:[#allocation2 + $0x2040] ss:$16 sps:$4 sm:$0xff]  }
 0x409   :  { %8199 = vmatpush1.bf16.msra.mxu0 %v12416_v53  ;;  %8978 = vmatpush1.bf16.msra.mxu1 %v12419_v54  ;;  %v12503_v53 = vld [vmem:[#allocation2 + $0x2048] ss:$16 sps:$4 sm:$0xff]   ;;  %v12508_v54 = vld [vmem:[#allocation2 + $0x2064] ss:$16 sps:$4 sm:$0xff]  }
 0x40a   :  { %8200 = vmatprep.subr.bf16.mxu0 %v12424_v55  ;;  %8979 = vmatprep.subr.bf16.mxu1 %v12427_v56  ;;  %v12511_v55 = vld [vmem:[#allocation2 + $0x206c] ss:$16 sps:$4 sm:$0xff]   ;;  %v12506_v56 = vld [vmem:[#allocation2 + $0x2060] ss:$16 sps:$4 sm:$0xff]  }
 0x40d   :  { %8201 = vmatpush1.bf16.msra.mxu0 %v12422_v38  ;;  %8980 = vmatpush1.bf16.msra.mxu1 %v12425_v57  ;;  %v12509_v38 = vld [vmem:[#allocation2 + $0x2068] ss:$16 sps:$4 sm:$0xff]   ;;  %v12514_v57 = vld [vmem:[#allocation2 + $0x2084] ss:$16 sps:$4 sm:$0xff]  }
 0x40e   :  { %8202 = vmatprep.subr.bf16.mxu0 %v12430_v58  ;;  %8981 = vmatprep.subr.bf16.mxu1 %v12433_v59  ;;  %v12517_v58 = vld [vmem:[#allocation2 + $0x208c] ss:$16 sps:$4 sm:$0xff]   ;;  %v12512_v59 = vld [vmem:[#allocation2 + $0x2080] ss:$16 sps:$4 sm:$0xff]  }
 0x411   :  { %8203 = vmatpush1.bf16.msra.mxu0 %v12428_v60  ;;  %8982 = vmatpush1.bf16.msra.mxu1 %v12431_v62  ;;  %v12515_v60 = vld [vmem:[#allocation2 + $0x2088] ss:$16 sps:$4 sm:$0xff]   ;;  %v12520_v62 = vld [vmem:[#allocation2 + $0x20a4] ss:$16 sps:$4 sm:$0xff]  }
 0x412   :  { %8204 = vmatprep.subr.bf16.mxu0 %v12436_v50  ;;  %8983 = vmatprep.subr.bf16.mxu1 %v12439_v0  ;;  %v12523_v50 = vld [vmem:[#allocation2 + $0x20ac] ss:$16 sps:$4 sm:$0xff]   ;;  %v12518_v0 = vld [vmem:[#allocation2 + $0x20a0] ss:$16 sps:$4 sm:$0xff]  }
 0x415   :  { %8205 = vmatpush1.bf16.msra.mxu0 %v12434_v1  ;;  %8984 = vmatpush1.bf16.msra.mxu1 %v12437_v2  ;;  %v12521_v1 = vld [vmem:[#allocation2 + $0x20a8] ss:$16 sps:$4 sm:$0xff]   ;;  %v12526_v2 = vld [vmem:[#allocation2 + $0x20c4] ss:$16 sps:$4 sm:$0xff]  }
 0x416   :  { %8206 = vmatprep.subr.bf16.mxu0 %v12442_v45  ;;  %8985 = vmatprep.subr.bf16.mxu1 %v12445_v3  ;;  %v12529_v45 = vld [vmem:[#allocation2 + $0x20cc] ss:$16 sps:$4 sm:$0xff]   ;;  %v12524_v3 = vld [vmem:[#allocation2 + $0x20c0] ss:$16 sps:$4 sm:$0xff]  }
 0x419   :  { %8207 = vmatpush1.bf16.msra.mxu0 %v12440_v4  ;;  %8986 = vmatpush1.bf16.msra.mxu1 %v12443_v6  ;;  %v12527_v4 = vld [vmem:[#allocation2 + $0x20c8] ss:$16 sps:$4 sm:$0xff]   ;;  %v12532_v6 = vld [vmem:[#allocation2 + $0x20e4] ss:$16 sps:$4 sm:$0xff]  }
 0x41a   :  { %8208 = vmatprep.subr.bf16.mxu0 %v12448_v48  ;;  %8987 = vmatprep.subr.bf16.mxu1 %v12451_v7  ;;  %v12535_v48 = vld [vmem:[#allocation2 + $0x20ec] ss:$16 sps:$4 sm:$0xff]   ;;  %v12530_v7 = vld [vmem:[#allocation2 + $0x20e0] ss:$16 sps:$4 sm:$0xff]  }
 0x41d   :  { %8209 = vmatpush1.bf16.msra.mxu0 %v12446_v10  ;;  %8988 = vmatpush1.bf16.msra.mxu1 %v12449_v11  ;;  %v12533_v10 = vld [vmem:[#allocation2 + $0x20e8] ss:$16 sps:$4 sm:$0xff]   ;;  %v12538_v11 = vld [vmem:[#allocation2 + $0x2104] ss:$16 sps:$4 sm:$0xff]  }
 0x41e   :  { %8210 = vmatprep.subr.bf16.mxu0 %v12454_v12  ;;  %8989 = vmatprep.subr.bf16.mxu1 %v12457_v14  ;;  %v12541_v12 = vld [vmem:[#allocation2 + $0x210c] ss:$16 sps:$4 sm:$0xff]   ;;  %v12536_v14 = vld [vmem:[#allocation2 + $0x2100] ss:$16 sps:$4 sm:$0xff]  }
 0x421   :  { %8211 = vmatpush1.bf16.msra.mxu0 %v12452_v16  ;;  %8990 = vmatpush1.bf16.msra.mxu1 %v12455_v63  ;;  %v12539_v16 = vld [vmem:[#allocation2 + $0x2108] ss:$16 sps:$4 sm:$0xff]   ;;  %v12544_v63 = vld [vmem:[#allocation2 + $0x2124] ss:$16 sps:$4 sm:$0xff]  }
 0x422   :  { %8212 = vmatprep.subr.bf16.mxu0 %v12460_v17  ;;  %8991 = vmatprep.subr.bf16.mxu1 %v12463_v18  ;;  %v12547_v17 = vld [vmem:[#allocation2 + $0x212c] ss:$16 sps:$4 sm:$0xff]   ;;  %v12542_v18 = vld [vmem:[#allocation2 + $0x2120] ss:$16 sps:$4 sm:$0xff]  }
 0x425   :  { %8213 = vmatpush1.bf16.msra.mxu0 %v12458_v19  ;;  %8992 = vmatpush1.bf16.msra.mxu1 %v12461_v52  ;;  %v12545_v19 = vld [vmem:[#allocation2 + $0x2128] ss:$16 sps:$4 sm:$0xff]   ;;  %v12550_v52 = vld [vmem:[#allocation2 + $0x2144] ss:$16 sps:$4 sm:$0xff]  }
 0x426   :  { %8214 = vmatprep.subr.bf16.mxu0 %v12466_v8  ;;  %8993 = vmatprep.subr.bf16.mxu1 %v12469_v22  ;;  %v12553_v8 = vld [vmem:[#allocation2 + $0x214c] ss:$16 sps:$4 sm:$0xff]   ;;  %v12548_v22 = vld [vmem:[#allocation2 + $0x2140] ss:$16 sps:$4 sm:$0xff]  }
 0x429   :  { %8215 = vmatpush1.bf16.msra.mxu0 %v12464_v9  ;;  %8994 = vmatpush1.bf16.msra.mxu1 %v12467_v24  ;;  %v12551_v9 = vld [vmem:[#allocation2 + $0x2148] ss:$16 sps:$4 sm:$0xff]   ;;  %v12556_v24 = vld [vmem:[#allocation2 + $0x2164] ss:$16 sps:$4 sm:$0xff]  }
 0x42a   :  { %8216 = vmatprep.subr.bf16.mxu0 %v12472_v28  ;;  %8995 = vmatprep.subr.bf16.mxu1 %v12475_v13  ;;  %v12559_v28 = vld [vmem:[#allocation2 + $0x216c] ss:$16 sps:$4 sm:$0xff]   ;;  %v12554_v13 = vld [vmem:[#allocation2 + $0x2160] ss:$16 sps:$4 sm:$0xff]  }
 0x42d   :  { %8217 = vmatpush1.bf16.msra.mxu0 %v12470_v29  ;;  %8996 = vmatpush1.bf16.msra.mxu1 %v12473_v61  ;;  %v12557_v29 = vld [vmem:[#allocation2 + $0x2168] ss:$16 sps:$4 sm:$0xff]   ;;  %v12562_v61 = vld [vmem:[#allocation2 + $0x2184] ss:$16 sps:$4 sm:$0xff]  }
 0x42e   :  { %8218 = vmatprep.subr.bf16.mxu0 %v12478_v5  ;;  %8997 = vmatprep.subr.bf16.mxu1 %v12481_v30  ;;  %v12565_v5 = vld [vmem:[#allocation2 + $0x218c] ss:$16 sps:$4 sm:$0xff]   ;;  %v12560_v30 = vld [vmem:[#allocation2 + $0x2180] ss:$16 sps:$4 sm:$0xff]  }
 0x431   :  { %8219 = vmatpush1.bf16.msra.mxu0 %v12476_v32  ;;  %8998 = vmatpush1.bf16.msra.mxu1 %v12479_v15  ;;  %v12563_v32 = vld [vmem:[#allocation2 + $0x2188] ss:$16 sps:$4 sm:$0xff]   ;;  %v12568_v15 = vld [vmem:[#allocation2 + $0x21a4] ss:$16 sps:$4 sm:$0xff]  }
 0x432   :  { %8220 = vmatprep.subr.bf16.mxu0 %v12484_v20  ;;  %8999 = vmatprep.subr.bf16.mxu1 %v12487_v35  ;;  %v12571_v20 = vld [vmem:[#allocation2 + $0x21ac] ss:$16 sps:$4 sm:$0xff]   ;;  %v12566_v35 = vld [vmem:[#allocation2 + $0x21a0] ss:$16 sps:$4 sm:$0xff]  }
 0x435   :  { %8221 = vmatpush1.bf16.msra.mxu0 %v12482_v37  ;;  %9000 = vmatpush1.bf16.msra.mxu1 %v12485_v27  ;;  %v12569_v37 = vld [vmem:[#allocation2 + $0x21a8] ss:$16 sps:$4 sm:$0xff]   ;;  %v12574_v27 = vld [vmem:[#allocation2 + $0x21c4] ss:$16 sps:$4 sm:$0xff]  }
 0x436   :  { %8231 = vmatprep.subr.bf16.mxu0 %v12490_v39  ;;  %9010 = vmatprep.subr.bf16.mxu1 %v12493_v40  ;;  %v12577_v39 = vld [vmem:[#allocation2 + $0x21cc] ss:$16 sps:$4 sm:$0xff]   ;;  %v12572_v40 = vld [vmem:[#allocation2 + $0x21c0] ss:$16 sps:$4 sm:$0xff]  }
 0x438   :  { %8223 = vmatmul.mubr.bf16.vlgmr.msra.gmra.mrb[0].mxu0 %v1484_v41  ;;  %9002 = vmatmul.mubr.bf16.vlgmr.msra.gmra.mrb[0].mxu1 %v1484_v41  ;;  %v12580_v41 = vld [vmem:[#allocation2 + $0x21e4] ss:$16 sps:$4 sm:$0xff]  }
 0x439   :  { %8232 = vmatpush1.bf16.msra.mxu0 %v12488_v21  ;;  %9011 = vmatpush1.bf16.msra.mxu1 %v12491_v43  ;;  %v12583_v21 = vld [vmem:[#allocation2 + $0x21ec] ss:$16 sps:$4 sm:$0xff]   ;;  %v12578_v43 = vld [vmem:[#allocation2 + $0x21e0] ss:$16 sps:$4 sm:$0xff]  }
 0x43a   :  { %8233 = vmatprep.subr.bf16.mxu0 %v12496_v44  ;;  %9012 = vmatprep.subr.bf16.mxu1 %v12499_v33  ;;  %v12581_v44 = vld [vmem:[#allocation2 + $0x21e8] ss:$16 sps:$4 sm:$0xff]   ;;  %v12587_v33 = vld [vmem:[#allocation2 + $0x2204] ss:$16 sps:$4 sm:$0xff]  }
 0x43b   :  { %8263 = vmatprep.mubr.bf16.mxu0 %v13159_v46  ;;  %9042 = vmatprep.mubr.bf16.mxu1 %v13159_v46 }
 0x43d   :  { %8234 = vmatpush1.bf16.msra.mxu0 %v12494_v25  ;;  %9013 = vmatpush1.bf16.msra.mxu1 %v12497_v47  ;;  %v12590_v25 = vld [vmem:[#allocation2 + $0x220c] ss:$16 sps:$4 sm:$0xff]   ;;  %v13165_v47 = vrot.slane %v13152_v23, %v12970_v49  ;;  %v12594_v23 = vld [vmem:[#allocation2 + $0x2228] ss:$16 sps:$4 sm:$0xff]  }
 0x43e   :  { %8235 = vmatprep.subr.bf16.mxu0 %v12502_v34  ;;  %9014 = vmatprep.subr.bf16.mxu1 %v12505_v51  ;;  %v12585_v34 = vld [vmem:[#allocation2 + $0x2200] ss:$16 sps:$4 sm:$0xff]   ;;  %v12588_v51 = vld [vmem:[#allocation2 + $0x2208] ss:$16 sps:$4 sm:$0xff]  }
 0x441   :  { %8236 = vmatpush1.bf16.msra.mxu0 %v12500_v36  ;;  %9015 = vmatpush1.bf16.msra.mxu1 %v12503_v53  ;;  %v12593_v36 = vld [vmem:[#allocation2 + $0x2224] ss:$16 sps:$4 sm:$0xff]   ;;  %v12596_v53 = vld [vmem:[#allocation2 + $0x222c] ss:$16 sps:$4 sm:$0xff]  }
 0x442   :  { %8237 = vmatprep.subr.bf16.mxu0 %v12508_v54  ;;  %9016 = vmatprep.subr.bf16.mxu1 %v12511_v55  ;;  %v1533_v54 = vcombine.high %v13159_v46, %v13159_v46  ;;  %v12591_v55 = vld [vmem:[#allocation2 + $0x2220] ss:$16 sps:$4 sm:$0xff]   ;;  %v12605_v46 = vld [vmem:[#allocation2 + $0x2264] ss:$16 sps:$4 sm:$0xff]  }
 0x445   :  { %8238 = vmatpush1.bf16.msra.mxu0 %v12506_v56  ;;  %9017 = vmatpush1.bf16.msra.mxu1 %v12509_v38  ;;  %v12599_v56 = vld [vmem:[#allocation2 + $0x2244] ss:$16 sps:$4 sm:$0xff]   ;;  %v12602_v38 = vld [vmem:[#allocation2 + $0x224c] ss:$16 sps:$4 sm:$0xff]  }
 0x446   :  { %8239 = vmatprep.subr.bf16.mxu0 %v12514_v57  ;;  %9018 = vmatprep.subr.bf16.mxu1 %v12517_v58  ;;  %v12597_v57 = vld [vmem:[#allocation2 + $0x2240] ss:$16 sps:$4 sm:$0xff]   ;;  %v12600_v58 = vld [vmem:[#allocation2 + $0x2248] ss:$16 sps:$4 sm:$0xff]  }
 0x449   :  { %8240 = vmatpush1.bf16.msra.mxu0 %v12512_v59  ;;  %9019 = vmatpush1.bf16.msra.mxu1 %v12515_v60  ;;  %v12608_v59 = vld [vmem:[#allocation2 + $0x226c] ss:$16 sps:$4 sm:$0xff]   ;;  %v12603_v60 = vld [vmem:[#allocation2 + $0x2260] ss:$16 sps:$4 sm:$0xff]  }
 0x44a   :  { %8241 = vmatprep.subr.bf16.mxu0 %v12520_v62  ;;  %9020 = vmatprep.subr.bf16.mxu1 %v12523_v50  ;;  %v12606_v62 = vld [vmem:[#allocation2 + $0x2268] ss:$16 sps:$4 sm:$0xff]   ;;  %v12611_v50 = vld [vmem:[#allocation2 + $0x2284] ss:$16 sps:$4 sm:$0xff]  }
 0x44d   :  { %8242 = vmatpush1.bf16.msra.mxu0 %v12518_v0  ;;  %9021 = vmatpush1.bf16.msra.mxu1 %v12521_v1  ;;  %v12614_v0 = vld [vmem:[#allocation2 + $0x228c] ss:$16 sps:$4 sm:$0xff]   ;;  %v12609_v1 = vld [vmem:[#allocation2 + $0x2280] ss:$16 sps:$4 sm:$0xff]  }
 0x44e   :  { %8243 = vmatprep.subr.bf16.mxu0 %v12526_v2  ;;  %9022 = vmatprep.subr.bf16.mxu1 %v12529_v45  ;;  %v12612_v2 = vld [vmem:[#allocation2 + $0x2288] ss:$16 sps:$4 sm:$0xff]   ;;  %v12617_v45 = vld [vmem:[#allocation2 + $0x22a4] ss:$16 sps:$4 sm:$0xff]  }
 0x451   :  { %8244 = vmatpush1.bf16.msra.mxu0 %v12524_v3  ;;  %9023 = vmatpush1.bf16.msra.mxu1 %v12527_v4  ;;  %v12620_v3 = vld [vmem:[#allocation2 + $0x22ac] ss:$16 sps:$4 sm:$0xff]   ;;  %v12615_v4 = vld [vmem:[#allocation2 + $0x22a0] ss:$16 sps:$4 sm:$0xff]  }
 0x452   :  { %8245 = vmatprep.subr.bf16.mxu0 %v12532_v6  ;;  %9024 = vmatprep.subr.bf16.mxu1 %v12535_v48  ;;  %v12618_v6 = vld [vmem:[#allocation2 + $0x22a8] ss:$16 sps:$4 sm:$0xff]   ;;  %v12623_v48 = vld [vmem:[#allocation2 + $0x22c4] ss:$16 sps:$4 sm:$0xff]  }
 0x455   :  { %8246 = vmatpush1.bf16.msra.mxu0 %v12530_v7  ;;  %9025 = vmatpush1.bf16.msra.mxu1 %v12533_v10  ;;  %v12626_v7 = vld [vmem:[#allocation2 + $0x22cc] ss:$16 sps:$4 sm:$0xff]   ;;  %v12621_v10 = vld [vmem:[#allocation2 + $0x22c0] ss:$16 sps:$4 sm:$0xff]  }
 0x456   :  { %8247 = vmatprep.subr.bf16.mxu0 %v12538_v11  ;;  %9026 = vmatprep.subr.bf16.mxu1 %v12541_v12  ;;  %v12624_v11 = vld [vmem:[#allocation2 + $0x22c8] ss:$16 sps:$4 sm:$0xff]   ;;  %v12629_v12 = vld [vmem:[#allocation2 + $0x22e4] ss:$16 sps:$4 sm:$0xff]  }
 0x459   :  { %8248 = vmatpush1.bf16.msra.mxu0 %v12536_v14  ;;  %9027 = vmatpush1.bf16.msra.mxu1 %v12539_v16  ;;  %v12632_v14 = vld [vmem:[#allocation2 + $0x22ec] ss:$16 sps:$4 sm:$0xff]   ;;  %v12627_v16 = vld [vmem:[#allocation2 + $0x22e0] ss:$16 sps:$4 sm:$0xff]  }
 0x45a   :  { %8249 = vmatprep.subr.bf16.mxu0 %v12544_v63  ;;  %9028 = vmatprep.subr.bf16.mxu1 %v12547_v17  ;;  %v12630_v63 = vld [vmem:[#allocation2 + $0x22e8] ss:$16 sps:$4 sm:$0xff]   ;;  %v12635_v17 = vld [vmem:[#allocation2 + $0x2304] ss:$16 sps:$4 sm:$0xff]  }
 0x45d   :  { %8250 = vmatpush1.bf16.msra.mxu0 %v12542_v18  ;;  %9029 = vmatpush1.bf16.msra.mxu1 %v12545_v19  ;;  %v12638_v18 = vld [vmem:[#allocation2 + $0x230c] ss:$16 sps:$4 sm:$0xff]   ;;  %v12633_v19 = vld [vmem:[#allocation2 + $0x2300] ss:$16 sps:$4 sm:$0xff]  }
 0x45e   :  { %8251 = vmatprep.subr.bf16.mxu0 %v12550_v52  ;;  %9030 = vmatprep.subr.bf16.mxu1 %v12553_v8  ;;  %v12636_v52 = vld [vmem:[#allocation2 + $0x2308] ss:$16 sps:$4 sm:$0xff]   ;;  %v12641_v8 = vld [vmem:[#allocation2 + $0x2324] ss:$16 sps:$4 sm:$0xff]  }
 0x461   :  { %8252 = vmatpush1.bf16.msra.mxu0 %v12548_v22  ;;  %9031 = vmatpush1.bf16.msra.mxu1 %v12551_v9  ;;  %v12644_v22 = vld [vmem:[#allocation2 + $0x232c] ss:$16 sps:$4 sm:$0xff]   ;;  %v12639_v9 = vld [vmem:[#allocation2 + $0x2320] ss:$16 sps:$4 sm:$0xff]  }
 0x462   :  { %8253 = vmatprep.subr.bf16.mxu0 %v12556_v24  ;;  %9032 = vmatprep.subr.bf16.mxu1 %v12559_v28  ;;  %v12642_v24 = vld [vmem:[#allocation2 + $0x2328] ss:$16 sps:$4 sm:$0xff]   ;;  %v12647_v28 = vld [vmem:[#allocation2 + $0x2344] ss:$16 sps:$4 sm:$0xff]  }
 0x465   :  { %8254 = vmatpush1.bf16.msra.mxu0 %v12554_v13  ;;  %9033 = vmatpush1.bf16.msra.mxu1 %v12557_v29  ;;  %v12650_v13 = vld [vmem:[#allocation2 + $0x234c] ss:$16 sps:$4 sm:$0xff]   ;;  %v12645_v29 = vld [vmem:[#allocation2 + $0x2340] ss:$16 sps:$4 sm:$0xff]  }
 0x466   :  { %8255 = vmatprep.subr.bf16.mxu0 %v12562_v61  ;;  %9034 = vmatprep.subr.bf16.mxu1 %v12565_v5  ;;  %v12648_v61 = vld [vmem:[#allocation2 + $0x2348] ss:$16 sps:$4 sm:$0xff]   ;;  %v12653_v5 = vld [vmem:[#allocation2 + $0x2364] ss:$16 sps:$4 sm:$0xff]  }
 0x469   :  { %8256 = vmatpush1.bf16.msra.mxu0 %v12560_v30  ;;  %9035 = vmatpush1.bf16.msra.mxu1 %v12563_v32  ;;  %v12656_v30 = vld [vmem:[#allocation2 + $0x236c] ss:$16 sps:$4 sm:$0xff]   ;;  %v12651_v32 = vld [vmem:[#allocation2 + $0x2360] ss:$16 sps:$4 sm:$0xff]  }
 0x46a   :  { %8257 = vmatprep.subr.bf16.mxu0 %v12568_v15  ;;  %9036 = vmatprep.subr.bf16.mxu1 %v12571_v20  ;;  %v12654_v15 = vld [vmem:[#allocation2 + $0x2368] ss:$16 sps:$4 sm:$0xff]   ;;  %v12659_v20 = vld [vmem:[#allocation2 + $0x2384] ss:$16 sps:$4 sm:$0xff]  }
 0x46d   :  { %8258 = vmatpush1.bf16.msra.mxu0 %v12566_v35  ;;  %9037 = vmatpush1.bf16.msra.mxu1 %v12569_v37  ;;  %v12662_v35 = vld [vmem:[#allocation2 + $0x238c] ss:$16 sps:$4 sm:$0xff]   ;;  %v12657_v37 = vld [vmem:[#allocation2 + $0x2380] ss:$16 sps:$4 sm:$0xff]  }
 0x46e   :  { %8259 = vmatprep.subr.bf16.mxu0 %v12574_v27  ;;  %9038 = vmatprep.subr.bf16.mxu1 %v12577_v39  ;;  %v12660_v27 = vld [vmem:[#allocation2 + $0x2388] ss:$16 sps:$4 sm:$0xff]   ;;  %v12665_v39 = vld [vmem:[#allocation2 + $0x23a4] ss:$16 sps:$4 sm:$0xff]  }
 0x471   :  { %8260 = vmatpush1.bf16.msra.mxu0 %v12572_v40  ;;  %9039 = vmatpush1.bf16.msra.mxu1 %v12575_v26  ;;  %v12668_v40 = vld [vmem:[#allocation2 + $0x23ac] ss:$16 sps:$4 sm:$0xff]   ;;  %v12663_v26 = vld [vmem:[#allocation2 + $0x23a0] ss:$16 sps:$4 sm:$0xff]  }
 0x472   :  { %8261 = vmatprep.subr.bf16.mxu0 %v12580_v41  ;;  %9040 = vmatprep.subr.bf16.mxu1 %v12583_v21  ;;  %v12666_v41 = vld [vmem:[#allocation2 + $0x23a8] ss:$16 sps:$4 sm:$0xff]   ;;  %v12671_v21 = vld [vmem:[#allocation2 + $0x23c4] ss:$16 sps:$4 sm:$0xff]  }
 0x475   :  { %8262 = vmatpush1.bf16.msra.mxu0 %v12578_v43  ;;  %9041 = vmatpush1.bf16.msra.mxu1 %v12581_v44  ;;  %v12674_v43 = vld [vmem:[#allocation2 + $0x23cc] ss:$16 sps:$4 sm:$0xff]   ;;  %v1487_v44 = vcombine.high %v13148_v31, %v13148_v31 }
 0x476   :  { %8272 = vmatprep.subr.bf16.mxu0 %v12587_v33  ;;  %9051 = vmatprep.subr.bf16.mxu1 %v12590_v25  ;;  %v12669_v33 = vld [vmem:[#allocation2 + $0x23c0] ss:$16 sps:$4 sm:$0xff]   ;;  %v12672_v25 = vld [vmem:[#allocation2 + $0x23c8] ss:$16 sps:$4 sm:$0xff]  }
 0x478   :  { %8264 = vmatmul.mubr.bf16.vlgmr.msra.gmra.mrb[0].mxu0 %v13165_v47  ;;  %9043 = vmatmul.mubr.bf16.vlgmr.msra.gmra.mrb[0].mxu1 %v13165_v47 }
 0x479   :  { %8273 = vmatpush1.bf16.msra.mxu0 %v12585_v34  ;;  %9052 = vmatpush1.bf16.msra.mxu1 %v12588_v51  ;;  %v12677_v34 = vld [vmem:[#allocation2 + $0x23e4] ss:$16 sps:$4 sm:$0xff]   ;;  %v12680_v51 = vld [vmem:[#allocation2 + $0x23ec] ss:$16 sps:$4 sm:$0xff]  }
 0x47a   :  { %8274 = vmatprep.subr.bf16.mxu0 %v12593_v36  ;;  %9053 = vmatprep.subr.bf16.mxu1 %v12596_v53  ;;  %v13174_v36 = vrot.slane %v1487_v44, %v12970_v49  ;;  %v12675_v53 = vld [vmem:[#allocation2 + $0x23e0] ss:$16 sps:$4 sm:$0xff]  }
 0x47b   :  { %8304 = vmatprep.mubr.bf16.mxu0 %v1533_v54  ;;  %9083 = vmatprep.mubr.bf16.mxu1 %v1533_v54  ;;  %v12678_v54 = vld [vmem:[#allocation2 + $0x23e8] ss:$16 sps:$4 sm:$0xff]   ;;  %v12755_v44 = vld [vmem:[%s13301_s3] sm:$0xff]  }
 0x47c   :  { %v1503_v31 = vcombine.high %v13174_v36, %v13174_v36 }
 0x47d   :  { %8275 = vmatpush1.bf16.msra.mxu0 %v12591_v55  ;;  %9054 = vmatpush1.bf16.msra.mxu1 %v12594_v23  ;;  %v12683_v55 = vld [vmem:[#allocation2 + $0x2404] ss:$16 sps:$4 sm:$0xff]   ;;  %v12686_v23 = vld [vmem:[#allocation2 + $0x240c] ss:$16 sps:$4 sm:$0xff]  }
 0x47e   :  { %8276 = vmatprep.subr.bf16.mxu0 %v12599_v56  ;;  %9055 = vmatprep.subr.bf16.mxu1 %v12602_v38  ;;  %v1532_v56 = vcombine.high %v13165_v47, %v13165_v47  ;;  %v12681_v38 = vld [vmem:[#allocation2 + $0x2400] ss:$16 sps:$4 sm:$0xff]   ;;  %v12695_v47 = vld [vmem:[#allocation2 + $0x2444] ss:$16 sps:$4 sm:$0xff]  }
 0x481   :  { %8277 = vmatpush1.bf16.msra.mxu0 %v12597_v57  ;;  %9056 = vmatpush1.bf16.msra.mxu1 %v12600_v58  ;;  %v12684_v57 = vld [vmem:[#allocation2 + $0x2408] ss:$16 sps:$4 sm:$0xff]   ;;  %v12689_v58 = vld [vmem:[#allocation2 + $0x2424] ss:$16 sps:$4 sm:$0xff]  }
 0x482   :  { %8278 = vmatprep.subr.bf16.mxu0 %v12605_v46  ;;  %9057 = vmatprep.subr.bf16.mxu1 %v12608_v59  ;;  %v12692_v46 = vld [vmem:[#allocation2 + $0x242c] ss:$16 sps:$4 sm:$0xff]   ;;  %v1531_v59 = vrot.slane %v1503_v31, %v12970_v49 }
 0x483   :  { %v12766_v31 = vld [vmem:[%s13301_s3 + $0xd8] sm:$0xff]  }
 0x485   :  { %8279 = vmatpush1.bf16.msra.mxu0 %v12603_v60  ;;  %9058 = vmatpush1.bf16.msra.mxu1 %v12606_v62  ;;  %v12687_v60 = vld [vmem:[#allocation2 + $0x2420] ss:$16 sps:$4 sm:$0xff]   ;;  %v12690_v62 = vld [vmem:[#allocation2 + $0x2428] ss:$16 sps:$4 sm:$0xff]  }
 0x486   :  { %8280 = vmatprep.subr.bf16.mxu0 %v12611_v50  ;;  %9059 = vmatprep.subr.bf16.mxu1 %v12614_v0  ;;  %v12698_v50 = vld [vmem:[#allocation2 + $0x244c] ss:$16 sps:$4 sm:$0xff]   ;;  %v12693_v0 = vld [vmem:[#allocation2 + $0x2440] ss:$16 sps:$4 sm:$0xff]  }
 0x489   :  { %8281 = vmatpush1.bf16.msra.mxu0 %v12609_v1  ;;  %9060 = vmatpush1.bf16.msra.mxu1 %v12612_v2  ;;  %v12696_v1 = vld [vmem:[#allocation2 + $0x2448] ss:$16 sps:$4 sm:$0xff]   ;;  %v12701_v2 = vld [vmem:[#allocation2 + $0x2464] ss:$16 sps:$4 sm:$0xff]  }
 0x48a   :  { %8282 = vmatprep.subr.bf16.mxu0 %v12617_v45  ;;  %9061 = vmatprep.subr.bf16.mxu1 %v12620_v3  ;;  %v12704_v45 = vld [vmem:[#allocation2 + $0x246c] ss:$16 sps:$4 sm:$0xff]   ;;  %v12699_v3 = vld [vmem:[#allocation2 + $0x2460] ss:$16 sps:$4 sm:$0xff]  }
 0x48d   :  { %8283 = vmatpush1.bf16.msra.mxu0 %v12615_v4  ;;  %9062 = vmatpush1.bf16.msra.mxu1 %v12618_v6  ;;  %v12702_v4 = vld [vmem:[#allocation2 + $0x2468] ss:$16 sps:$4 sm:$0xff]   ;;  %v12707_v6 = vld [vmem:[#allocation2 + $0x2484] ss:$16 sps:$4 sm:$0xff]  }
 0x48e   :  { %8284 = vmatprep.subr.bf16.mxu0 %v12623_v48  ;;  %9063 = vmatprep.subr.bf16.mxu1 %v12626_v7  ;;  %v12710_v48 = vld [vmem:[#allocation2 + $0x248c] ss:$16 sps:$4 sm:$0xff]   ;;  %v12705_v7 = vld [vmem:[#allocation2 + $0x2480] ss:$16 sps:$4 sm:$0xff]  }
 0x491   :  { %8285 = vmatpush1.bf16.msra.mxu0 %v12621_v10  ;;  %9064 = vmatpush1.bf16.msra.mxu1 %v12624_v11  ;;  %v12708_v10 = vld [vmem:[#allocation2 + $0x2488] ss:$16 sps:$4 sm:$0xff]   ;;  %v12713_v11 = vld [vmem:[#allocation2 + $0x24a4] ss:$16 sps:$4 sm:$0xff]  }
 0x492   :  { %8286 = vmatprep.subr.bf16.mxu0 %v12629_v12  ;;  %9065 = vmatprep.subr.bf16.mxu1 %v12632_v14  ;;  %v12716_v12 = vld [vmem:[#allocation2 + $0x24ac] ss:$16 sps:$4 sm:$0xff]   ;;  %v12711_v14 = vld [vmem:[#allocation2 + $0x24a0] ss:$16 sps:$4 sm:$0xff]  }
 0x495   :  { %8287 = vmatpush1.bf16.msra.mxu0 %v12627_v16  ;;  %9066 = vmatpush1.bf16.msra.mxu1 %v12630_v63  ;;  %v12714_v16 = vld [vmem:[#allocation2 + $0x24a8] ss:$16 sps:$4 sm:$0xff]   ;;  %v12719_v63 = vld [vmem:[#allocation2 + $0x24c4] ss:$16 sps:$4 sm:$0xff]  }
 0x496   :  { %8288 = vmatprep.subr.bf16.mxu0 %v12635_v17  ;;  %9067 = vmatprep.subr.bf16.mxu1 %v12638_v18  ;;  %v12722_v17 = vld [vmem:[#allocation2 + $0x24cc] ss:$16 sps:$4 sm:$0xff]   ;;  %v12717_v18 = vld [vmem:[#allocation2 + $0x24c0] ss:$16 sps:$4 sm:$0xff]  }
 0x499   :  { %8289 = vmatpush1.bf16.msra.mxu0 %v12633_v19  ;;  %9068 = vmatpush1.bf16.msra.mxu1 %v12636_v52  ;;  %v12720_v19 = vld [vmem:[#allocation2 + $0x24c8] ss:$16 sps:$4 sm:$0xff]   ;;  %v12725_v52 = vld [vmem:[#allocation2 + $0x24e4] ss:$16 sps:$4 sm:$0xff]  }
 0x49a   :  { %8290 = vmatprep.subr.bf16.mxu0 %v12641_v8  ;;  %9069 = vmatprep.subr.bf16.mxu1 %v12644_v22  ;;  %v12728_v8 = vld [vmem:[#allocation2 + $0x24ec] ss:$16 sps:$4 sm:$0xff]   ;;  %v12723_v22 = vld [vmem:[#allocation2 + $0x24e0] ss:$16 sps:$4 sm:$0xff]  }
 0x49d   :  { %8291 = vmatpush1.bf16.msra.mxu0 %v12639_v9  ;;  %9070 = vmatpush1.bf16.msra.mxu1 %v12642_v24  ;;  %v12726_v9 = vld [vmem:[#allocation2 + $0x24e8] ss:$16 sps:$4 sm:$0xff]   ;;  %v12731_v24 = vld [vmem:[#allocation2 + $0x2504] ss:$16 sps:$4 sm:$0xff]  }
 0x49e   :  { %8292 = vmatprep.subr.bf16.mxu0 %v12647_v28  ;;  %9071 = vmatprep.subr.bf16.mxu1 %v12650_v13  ;;  %v12734_v28 = vld [vmem:[#allocation2 + $0x250c] ss:$16 sps:$4 sm:$0xff]   ;;  %v12729_v13 = vld [vmem:[#allocation2 + $0x2500] ss:$16 sps:$4 sm:$0xff]  }
 0x4a1   :  { %8293 = vmatpush1.bf16.msra.mxu0 %v12645_v29  ;;  %9072 = vmatpush1.bf16.msra.mxu1 %v12648_v61  ;;  %v12732_v29 = vld [vmem:[#allocation2 + $0x2508] ss:$16 sps:$4 sm:$0xff]   ;;  %v12737_v61 = vld [vmem:[#allocation2 + $0x2524] ss:$16 sps:$4 sm:$0xff]  }
 0x4a2   :  { %8294 = vmatprep.subr.bf16.mxu0 %v12653_v5  ;;  %9073 = vmatprep.subr.bf16.mxu1 %v12656_v30  ;;  %v12740_v5 = vld [vmem:[#allocation2 + $0x252c] ss:$16 sps:$4 sm:$0xff]   ;;  %v12735_v30 = vld [vmem:[#allocation2 + $0x2520] ss:$16 sps:$4 sm:$0xff]  }
 0x4a5   :  { %8295 = vmatpush1.bf16.msra.mxu0 %v12651_v32  ;;  %9074 = vmatpush1.bf16.msra.mxu1 %v12654_v15  ;;  %v12738_v32 = vld [vmem:[#allocation2 + $0x2528] ss:$16 sps:$4 sm:$0xff]   ;;  %v12743_v15 = vld [vmem:[#allocation2 + $0x2544] ss:$16 sps:$4 sm:$0xff]  }
 0x4a6   :  { %8296 = vmatprep.subr.bf16.mxu0 %v12659_v20  ;;  %9075 = vmatprep.subr.bf16.mxu1 %v12662_v35  ;;  %v12746_v20 = vld [vmem:[#allocation2 + $0x254c] ss:$16 sps:$4 sm:$0xff]   ;;  %v12741_v35 = vld [vmem:[#allocation2 + $0x2540] ss:$16 sps:$4 sm:$0xff]  }
 0x4a9   :  { %8297 = vmatpush1.bf16.msra.mxu0 %v12657_v37  ;;  %9076 = vmatpush1.bf16.msra.mxu1 %v12660_v27  ;;  %v12744_v37 = vld [vmem:[#allocation2 + $0x2548] ss:$16 sps:$4 sm:$0xff]   ;;  %v12749_v27 = vld [vmem:[#allocation2 + $0x2564] ss:$16 sps:$4 sm:$0xff]  }
 0x4aa   :  { %8298 = vmatprep.subr.bf16.mxu0 %v12665_v39  ;;  %9077 = vmatprep.subr.bf16.mxu1 %v12668_v40  ;;  %v12752_v39 = vld [vmem:[#allocation2 + $0x256c] ss:$16 sps:$4 sm:$0xff]   ;;  %v12747_v40 = vld [vmem:[#allocation2 + $0x2560] ss:$16 sps:$4 sm:$0xff]  }
 0x4ad   :  { %8299 = vmatpush1.bf16.msra.mxu0 %v12663_v26  ;;  %9078 = vmatpush1.bf16.msra.mxu1 %v12666_v41  ;;  %v12750_v26 = vld [vmem:[#allocation2 + $0x2568] ss:$16 sps:$4 sm:$0xff]   ;;  %v12753_v41 = vld [vmem:[%s13301_s3 + $0x40] sm:$0xff]  }
 0x4ae   :  { %8300 = vmatprep.subr.bf16.mxu0 %v12671_v21  ;;  %9079 = vmatprep.subr.bf16.mxu1 %v12674_v43  ;;  %v12754_v21 = vld [vmem:[%s13301_s3 + $0xc0] sm:$0xff]   ;;  %v1517_v43 = vrot.slane %v13174_v36, %v12970_v49  ;;  %v12758_v49 = vld [vmem:[%s13301_s3 + $0xc8] sm:$0xff]   ;;  %v12761_v36 = vld [vmem:[%s13301_s3 + $0x50] sm:$0xff]  }
 0x4b1   :  { %8301 = vmatpush1.bf16.msra.mxu0 %v12669_v33  ;;  %9080 = vmatpush1.bf16.msra.mxu1 %v12672_v25  ;;  %v12756_v33 = vld [vmem:[%s13301_s3 + $0x80] sm:$0xff]   ;;  %v12757_v25 = vld [vmem:[%s13301_s3 + $0x48] sm:$0xff]  }
 0x4b2   :  { %8302 = vmatprep.subr.bf16.mxu0 %v12677_v34  ;;  %9081 = vmatprep.subr.bf16.mxu1 %v12680_v51  ;;  %v12759_v34 = vld [vmem:[%s13301_s3 + $0x8] sm:$0xff]  }
 0x4b3   :  { %v12760_v51 = vld [vmem:[%s13301_s3 + $0x88] sm:$0xff]  }
 0x4b5   :  { %8303 = vmatpush1.bf16.msra.mxu0 %v12675_v53  ;;  %9082 = vmatpush1.bf16.msra.mxu1 %v12678_v54  ;;  %v12762_v53 = vld [vmem:[%s13301_s3 + $0xd0] sm:$0xff]  }
 0x4b6   :  { %8313 = vmatprep.subr.bf16.mxu0 %v12683_v55  ;;  %9092 = vmatprep.subr.bf16.mxu1 %v12686_v23  ;;  %v12763_v54 = vld [vmem:[%s13301_s3 + $0x10] sm:$0xff]   ;;  %v12765_v23 = vld [vmem:[%s13301_s3 + $0x58] sm:$0xff]  }
 0x4b7   :  { %v12764_v55 = vld [vmem:[%s13301_s3 + $0x90] sm:$0xff]  }
 0x4b8   :  { %8305 = vmatmul.mubr.bf16.vlgmr.msra.gmra.mrb[0].mxu0 %v1532_v56  ;;  %9084 = vmatmul.mubr.bf16.vlgmr.msra.gmra.mrb[0].mxu1 %v1532_v56  ;;  %v12767_v56 = vld [vmem:[%s13301_s3 + $0x18] sm:$0xff]  }
 0x4b9   :  { %8314 = vmatpush1.bf16.msra.mxu0 %v12681_v38  ;;  %9093 = vmatpush1.bf16.msra.mxu1 %v12684_v57  ;;  %v12768_v38 = vld [vmem:[%s13301_s3 + $0x98] sm:$0xff]   ;;  %v12769_v57 = vld [vmem:[%s13301_s3 + $0x60] sm:$0xff]  }
 0x4ba   :  { %8315 = vmatprep.subr.bf16.mxu0 %v12689_v58  ;;  %9094 = vmatprep.subr.bf16.mxu1 %v12692_v46  ;;  %v12770_v58 = vld [vmem:[%s13301_s3 + $0xe0] sm:$0xff]  }
 0x4bb   :  { %10714 = vmatprep.mubr.msk.bf16.mxu0 %vm7571_vm0, %v1531_v59  ;;  %10715 = vmatprep.mubr.msk.bf16.mxu1 %vm7571_vm0, %v1531_v59  ;;  %v12771_v46 = vld [vmem:[%s13301_s3 + $0x20] sm:$0xff]  }
 0x4bc   :  { %v12772_v59 = vld [vmem:[%s13301_s3 + $0xa0] sm:$0xff]  }
 0x4bd   :  { %8316 = vmatpush1.bf16.msra.mxu0 %v12687_v60  ;;  %9095 = vmatpush1.bf16.msra.mxu1 %v12690_v62  ;;  %v12773_v60 = vld [vmem:[%s13301_s3 + $0x68] sm:$0xff]  }
 0x4be   :  { %8317 = vmatprep.subr.bf16.mxu0 %v12695_v47  ;;  %9096 = vmatprep.subr.bf16.mxu1 %v12698_v50  ;;  %v12774_v62 = vld [vmem:[%s13301_s3 + $0xe8] sm:$0xff]  }
 0x4bf   :  { %v12775_v47 = vld [vmem:[%s13301_s3 + $0x28] sm:$0xff]  }
 0x4c0   :  { %v12776_v50 = vld [vmem:[%s13301_s3 + $0xa8] sm:$0xff]  }
 0x4c1   :  { %8318 = vmatpush1.bf16.msra.mxu0 %v12693_v0  ;;  %9097 = vmatpush1.bf16.msra.mxu1 %v12696_v1  ;;  %v12777_v0 = vld [vmem:[%s13301_s3 + $0x70] sm:$0xff]  }
 0x4c2   :  { %8319 = vmatprep.subr.bf16.mxu0 %v12701_v2  ;;  %9098 = vmatprep.subr.bf16.mxu1 %v12704_v45  ;;  %v12778_v1 = vld [vmem:[%s13301_s3 + $0xf0] sm:$0xff]  }
 0x4c3   :  { %v12779_v2 = vld [vmem:[%s13301_s3 + $0x30] sm:$0xff]  }
 0x4c4   :  { %v12780_v45 = vld [vmem:[%s13301_s3 + $0xb0] sm:$0xff]  }
 0x4c5   :  { %8320 = vmatpush1.bf16.msra.mxu0 %v12699_v3  ;;  %9099 = vmatpush1.bf16.msra.mxu1 %v12702_v4  ;;  %v12781_v3 = vld [vmem:[%s13301_s3 + $0x78] sm:$0xff]  }
 0x4c6   :  { %8321 = vmatprep.subr.bf16.mxu0 %v12707_v6  ;;  %9100 = vmatprep.subr.bf16.mxu1 %v12710_v48  ;;  %v12782_v4 = vld [vmem:[%s13301_s3 + $0xf8] sm:$0xff]  }
 0x4c7   :  { %v12783_v6 = vld [vmem:[%s13301_s3 + $0x38] sm:$0xff]  }
 0x4c8   :  { %v12784_v48 = vld [vmem:[%s13301_s3 + $0xb8] sm:$0xff]   ;;  %s12893_s3 = smov [#allocation8]  }
 0x4c9   :  { %8322 = vmatpush1.bf16.msra.mxu0 %v12705_v7  ;;  %9101 = vmatpush1.bf16.msra.mxu1 %v12708_v10  ;;  %v1268_v7 = vsub.s32 0, %v12967_v42  ;;  %v1276_v10 = vsub.s32 2, %v12967_v42  ;;  %s9504_s23 = sshll.u32 %s12893_s3, 4  ;;  %s9505_s23 = int_to_ptr.vmem [resolvable:$true] %s9504_s23 }
 0x4ca   :  { %8323 = vmatprep.subr.bf16.mxu0 %v12713_v11  ;;  %9102 = vmatprep.subr.bf16.mxu1 %v12716_v12  ;;  %v1264_v11 = vld [vmem:[#allocation5] sm:$0xf]  ;;  %v1272_v12 = vsub.s32 1, %v12967_v42  ;;  %s12859_s24 = scalar_lea.vmem %s9505_s23, 32  ;;  %p12864_p11 = scmp.lt.s32.totalorder %s9505_s23, %s9505_s23 }
 0x4cb   :  { %p12860_p10 = scmp.ne.s32.totalorder %s9505_s23, %s12859_s24  ;;  %p12865_p12 = scmp.lt.s32.totalorder %s12859_s24, %s12859_s24 }
 0x4cd   :  { %8324 = vmatpush1.bf16.msra.mxu0 %v12711_v14  ;;  %9103 = vmatpush1.bf16.msra.mxu1 %v12714_v16  ;;  %v1280_v14 = vsub.s32 3, %v12967_v42  ;;  %v1269_v16 = vrot.slane %v1264_v11, %v1268_v7  ;;  %p12866_p13 = por %p12865_p12, %p12864_p11 }
 0x4ce   :  { %8325 = vmatprep.subr.bf16.mxu0 %v12719_v63  ;;  %9104 = vmatprep.subr.bf16.mxu1 %v12722_v17  ;;  %v1277_v63 = vrot.slane %v1264_v11, %v1276_v10  ;;  %v1273_v17 = vrot.slane %v1264_v11, %v1272_v12 }
 0x4cf   :  { %p12867_p0 = pnand %p12866_p13, %p12860_p10 }
 0x4d1   :  { %8326 = vmatpush1.bf16.msra.mxu0 %v12717_v18  ;;  %9105 = vmatpush1.bf16.msra.mxu1 %v12720_v19  ;;  %v1281_v18 = vrot.slane %v1264_v11, %v1280_v14 }
 0x4d2   :  { %8327 = vmatprep.subr.bf16.mxu0 %v12725_v52  ;;  %9106 = vmatprep.subr.bf16.mxu1 %v12728_v8 }
 0x4d5   :  { %8328 = vmatpush1.bf16.msra.mxu0 %v12723_v22  ;;  %9107 = vmatpush1.bf16.msra.mxu1 %v12726_v9 }
 0x4d6   :  { %8329 = vmatprep.subr.bf16.mxu0 %v12731_v24  ;;  %9108 = vmatprep.subr.bf16.mxu1 %v12734_v28 }
 0x4d9   :  { %8330 = vmatpush1.bf16.msra.mxu0 %v12729_v13  ;;  %9109 = vmatpush1.bf16.msra.mxu1 %v12732_v29 }
 0x4da   :  { %8331 = vmatprep.subr.bf16.mxu0 %v12737_v61  ;;  %9110 = vmatprep.subr.bf16.mxu1 %v12740_v5 }
 0x4dd   :  { %8332 = vmatpush1.bf16.msra.mxu0 %v12735_v30  ;;  %9111 = vmatpush1.bf16.msra.mxu1 %v12738_v32 }
 0x4de   :  { %8333 = vmatprep.subr.bf16.mxu0 %v12743_v15  ;;  %9112 = vmatprep.subr.bf16.mxu1 %v12746_v20 }
 0x4e1   :  { %8334 = vmatpush1.bf16.msra.mxu0 %v12741_v35  ;;  %9113 = vmatpush1.bf16.msra.mxu1 %v12744_v37 }
 0x4e2   :  { %8335 = vmatprep.subr.bf16.mxu0 %v12749_v27  ;;  %9114 = vmatprep.subr.bf16.mxu1 %v12752_v39 }
 0x4e5   :  { %8336 = vmatpush1.bf16.msra.mxu0 %v12747_v40  ;;  %9115 = vmatpush1.bf16.msra.mxu1 %v12750_v26 }
 0x4e6   :  { %10749 = vmatprep.subr.bf16.mxu0 %v12753_v41  ;;  %10771 = vmatprep.subr.bf16.mxu1 %v12754_v21  ;;  %v10716_v41 = vld [vmem:[#allocation7] ss:$0 sm:$0xff] }
 0x4e8   :  { %8346 = vmatmul.mubr.bf16.vlgmr.msra.gmra.mrb[0].mxu0 %v1517_v43  ;;  %9125 = vmatmul.mubr.bf16.vlgmr.msra.gmra.mrb[0].mxu1 %v1517_v43 }
 0x4e9   :  { %10750 = vmatpush3.bf16.msra.mxu0 %v12755_v44  ;;  %10772 = vmatpush3.bf16.msra.mxu1 %v12756_v33 }
 0x4ea   :  { %10751 = vmatprep.subr.bf16.mxu0 %v12757_v25  ;;  %10773 = vmatprep.subr.bf16.mxu1 %v12758_v49 }
 0x4ed   :  { %10752 = vmatpush3.bf16.msra.mxu0 %v12759_v34  ;;  %10774 = vmatpush3.bf16.msra.mxu1 %v12760_v51 }
 0x4ee   :  { %10753 = vmatprep.subr.bf16.mxu0 %v12761_v36  ;;  %10775 = vmatprep.subr.bf16.mxu1 %v12762_v53 }
 0x4f1   :  { %10754 = vmatpush3.bf16.msra.mxu0 %v12763_v54  ;;  %10776 = vmatpush3.bf16.msra.mxu1 %v12764_v55 }
 0x4f2   :  { %10755 = vmatprep.subr.bf16.mxu0 %v12765_v23  ;;  %10777 = vmatprep.subr.bf16.mxu1 %v12766_v31 }
 0x4f5   :  { %10756 = vmatpush3.bf16.msra.mxu0 %v12767_v56  ;;  %10778 = vmatpush3.bf16.msra.mxu1 %v12768_v38 }
 0x4f6   :  { %10757 = vmatprep.subr.bf16.mxu0 %v12769_v57  ;;  %10779 = vmatprep.subr.bf16.mxu1 %v12770_v58 }
 0x4f9   :  { %10758 = vmatpush3.bf16.msra.mxu0 %v12771_v46  ;;  %10780 = vmatpush3.bf16.msra.mxu1 %v12772_v59 }
 0x4fa   :  { %10759 = vmatprep.subr.bf16.mxu0 %v12773_v60  ;;  %10781 = vmatprep.subr.bf16.mxu1 %v12774_v62 }
 0x4fd   :  { %10760 = vmatpush3.bf16.msra.mxu0 %v12775_v47  ;;  %10782 = vmatpush3.bf16.msra.mxu1 %v12776_v50 }
 0x4fe   :  { %10761 = vmatprep.subr.bf16.mxu0 %v12777_v0  ;;  %10783 = vmatprep.subr.bf16.mxu1 %v12778_v1 }
 0x501   :  { %10762 = vmatpush3.bf16.msra.mxu0 %v12779_v2  ;;  %10784 = vmatpush3.bf16.msra.mxu1 %v12780_v45 }
 0x502   :  { %10763 = vmatprep.subr.bf16.mxu0 %v12781_v3  ;;  %10785 = vmatprep.subr.bf16.mxu1 %v12782_v4 }
 0x505   :  { %10764 = vmatpush3.bf16.msra.mxu0 %v12783_v6  ;;  %10786 = vmatpush3.bf16.msra.mxu1 %v12784_v48 }
 0x5bb   :  { %v8347_v19 = vpop.f32.mrb[0].mxu0  ;;  %v9126_v52 = vpop.f32.mrb[0].mxu1 }
 0x5bc   :  { %v10793_v8 = vadd.f32 %v8347_v19, %v1269_v16  ;;  %v10795_v22 = vadd.f32 %v9126_v52, %v1277_v63  ;;  %v8349_v9 = vpop.f32.mrb[1].mxu0  ;;  %v9128_v24 = vpop.f32.mrb[1].mxu1 }
 0x5bd   :  { %v10794_v28 = vadd.f32 %v8349_v9, %v1273_v17  ;;  %v10796_v13 = vadd.f32 %v9128_v24, %v1281_v18  ;;  %v8351_v29 = vpop.f32.mrb[2].mxu0  ;;  %v9130_v61 = vpop.f32.mrb[2].mxu1 }
 0x5be   :  { %v9133_v5 = vmax.f32 %v10793_v8, 0.0  ;;  %v9135_v30 = vmax.f32 %v10795_v22, 0.0  ;;  %v8352_v32 = vpop.f32.mrb[3].mxu0  ;;  %v9131_v15 = vpop.f32.mrb[3].mxu1 }
 0x5bf   :  { %v9134_v20 = vmax.f32 %v10794_v28, 0.0  ;;  %v9136_v42 = vmax.f32 %v10796_v13, 0.0 }
 0x5c0   :  { %v9137_v27 = vpack.c.bf16 %v9133_v5, %v9133_v5  ;;  %v9139_v39 = vpack.c.bf16 %v9135_v30, %v9135_v30 }
 0x5c1   :  { %v9138_v35 = vpack.c.bf16 %v9134_v20, %v9134_v20  ;;  %v9140_v37 = vpack.c.bf16 %v9136_v42, %v9136_v42 }
 0x5c3   :  { %9436 = vmatprep.mubr.bf16.mxu0 %v9138_v35  ;;  %9476 = vmatprep.mubr.bf16.mxu1 %v9140_v37 }
 0x5c4   :  { %9437 = vmatmul.mubr.bf16.vlgmr.msra.gmra.mrb[4].mxu0 %v9137_v27  ;;  %9477 = vmatmul.mubr.bf16.vlgmr.msra.gmra.mrb[4].mxu1 %v9139_v39 }
 0x697   :  { %v10765_v40 = vpop.f32.mrb[4].mxu0  ;;  %v10787_v26 = vpop.f32.mrb[4].mxu1 }
 0x698   :  { %v10766_v21 = vpop.f32.mrb[5].mxu0  ;;  %v10788_v43 = vpop.f32.mrb[5].mxu1 }
 0x699   :  { %v10767_v44 = vadd.f32 %v10766_v21, %v10765_v40  ;;  %v10789_v33 = vadd.f32 %v10788_v43, %v10787_v26  ;;  %v10768_v25 = vpop.f32.mrb[6].mxu0  ;;  %v10790_v49 = vpop.f32.mrb[6].mxu1 }
 0x69a   :  { %v10769_v34 = vpop.f32.mrb[7].mxu0  ;;  %v10791_v51 = vpop.f32.mrb[7].mxu1 }
 0x69b   :  { %v9439_v36 = vadd.f32 %v10767_v44, %v10716_v41 }
 0x69d   :  { %v9479_v53 = vadd.f32 %v10789_v33, %v9439_v36 }
 0x69f   :  { %v9485_v54 = vsel %vm9484_vm1, %v9479_v53, -inf }
 0x6a0   :  { %9486 = vmax.xlane.f32.xlu0 %v9485_v54 }
 0x72d   :  { %v9487_v55 = vpop.xlane.xlu0 %9486 }
 0x72e   :  { %v9488_v23 = vsub.f32 %v9479_v53, %v9487_v55 }
 0x730   :  { %v9489_v31 = vmul.f32 1.442695, %v9488_v23 }
 0x732   :  { %12785 = vpow2.f32 %v9489_v31 }
 0x73c   :  { %v12786_v56 = vpop.eup %12785 }
 0x73d   :  { %v9491_v38 = vsel %vm9484_vm1, %v12786_v56, 0.0 }
 0x73e   :  { %9492 = vadd.xlane.f32.xlu0 %v9491_v38 }
 0x7cb   :  { %v9493_v57 = vpop.xlane.xlu0 %9492 }
 0x7cc   :  { %12787 = vlog2.f32 %v9493_v57 }
 0x7d6   :  { %v12788_v58 = vpop.eup %12787 }
 0x7d7   :  { %v9495_v46 = vmul.f32 0.6931472, %v12788_v58 }
 0x7d9   :  { %v9496_v59 = vsub.f32 %v9488_v23, %v9495_v46 }
 0x7db   :  { %9497 = vst.msk [vmem:[#allocation8] sm:$0x3] %vm9484_vm1, %v9496_v59 }
 0x7dc   :  { %12870 = shalt.err (!%p12867_p0)
}
 0x7dd   :  { %s12871_s27 = scalar_lea.hbm %s13303_s5, 32 }
 0x7de   :  { %p12872_p1 = scmp.ne.s32.totalorder %s13303_s5, %s12871_s27  ;;  %p12875_p2 = scmp.lt.u32.totalorder %s12871_s27, %s13303_s5 }
 0x7e0   :  { %p12877_p3 = pnand %p12875_p2, %p12872_p1 }
 0x7e2   :  { %12880 = shalt.err (!%p12877_p3)
}
 0x7e3   :  { %9507 = dma.vmem_to_hbm [thread:$0]  %s9505_s23, 32, %s13303_s5, [#allocation4]  }
 0x7e4   :  { %12885 = dma.done.wait [#allocation4], 32  }
 0x7e5   :  { %12886 = vsyncadd [#allocation4], 4294967264 }
 0x7e6   :  { %9511 = vsyncpa [#allocation3], 1 }
 0x7e7   :  { %9512 = vsyncpa [#allocation6], 1 }
 0x7e8   :  { %9513 = vsyncpa [#allocation4], 1 }

</bundles_post_ra>
